<compile_context>
chip_gen: v5e
topology: v5e:2x2
jax: 0.10.0
libtpu: 0.0.40
codegen_flags: <defaults>
</compile_context>

<pallas_src>
import functools

import jax
import jax.numpy as jnp
from jax import lax
from jax.experimental import pallas as pl
from jax.experimental.pallas import tpu as pltpu

_VMEM_LIMIT = 48 * 1024 * 1024      # safe on v5e/v6e (128 MiB) and v7x (64 MiB)
_EXACT_RATIONAL = False             # flip to True for exact-divide parity tests

# ---------------- Rational (Pade) activation, version "A", degrees (5, 4) ----
RAT_NUM = (0.02996348, 0.61690165, 2.37539147, 3.06608078, 1.52474449, 0.25281987)
RAT_DEN = (1.19160814, 4.40811795, 0.91111034, 0.34885983)


def _rational_poly(x):
    """P(x) / (1 + sum_j |b_j| |x|^j), Horner form, approx-reciprocal divide."""
    a0, a1, a2, a3, a4, a5 = RAT_NUM
    b1, b2, b3, b4 = (abs(b) for b in RAT_DEN)
    p = ((((a5 * x + a4) * x + a3) * x + a2) * x + a1) * x + a0
    ax = jnp.abs(x)
    q = (((b4 * ax + b3) * ax + b2) * ax + b1) * ax + 1.0
    if _EXACT_RATIONAL:
        return p / q
    return p * pl.reciprocal(q, approx=True)


def _round_up(x, m):
    return (x + m - 1) // m * m


def _pick_tile(dim, pref, align):
    dp = _round_up(dim, align)
    if dp <= pref:
        return dp, dp
    return pref, _round_up(dim, pref)


# ---------------- Pallas matmul kernel (all convs via im2col) ----------------
def _matmul_kernel(a_ref, b_ref, o_ref):
    @pl.when(pl.program_id(2) == 0)
    def _():
        o_ref[...] = jnp.zeros_like(o_ref)

    o_ref[...] += jnp.dot(a_ref[...], b_ref[...],
                          preferred_element_type=jnp.float32)


def pallas_matmul(a, b):
    """a: (M, K), b: (K, N); operands cast to bf16, f32 accumulate -> (M, N) f32."""
    M, K = a.shape
    K2, N = b.shape
    assert K == K2

    tm, Mp = _pick_tile(M, 512, 16)      # bf16 sublane granularity
    tn, Np = _pick_tile(N, 512, 128)
    Kp = _round_up(K, 128)
    if Kp <= 512:
        tk = Kp                          # single K step
    elif Kp % 256 == 0:
        tk = 256
    else:
        tk = 128

    a_p = a.astype(jnp.bfloat16)
    b_p = b.astype(jnp.bfloat16)
    if (Mp, Kp) != (M, K):
        a_p = jnp.pad(a_p, ((0, Mp - M), (0, Kp - K)))
    if (Kp, Np) != (K, N):
        b_p = jnp.pad(b_p, ((0, Kp - K), (0, Np - N)))

    out = pl.pallas_call(
        _matmul_kernel,
        out_shape=jax.ShapeDtypeStruct((Mp, Np), jnp.float32),
        grid_spec=pltpu.PrefetchScalarGridSpec(
            num_scalar_prefetch=0,
            grid=(Mp // tm, Np // tn, Kp // tk),
            in_specs=[pl.BlockSpec((tm, tk), lambda i, j, k: (i, k)),
                      pl.BlockSpec((tk, tn), lambda i, j, k: (k, j))],
            out_specs=pl.BlockSpec((tm, tn), lambda i, j, k: (i, j))),
        compiler_params=pltpu.CompilerParams(
            dimension_semantics=("parallel", "parallel", "arbitrary"),
            vmem_limit_bytes=_VMEM_LIMIT),
    )(a_p, b_p)
    if (Mp, Np) != (M, N):
        out = out[:M, :N]
    return out


# ---------------- Fused BN (+ residual) + Rational elementwise kernels -------
def _bn_act_kernel(x_ref, scale_ref, shift_ref, o_ref, *, apply_rational):
    y = x_ref[...] * scale_ref[...] + shift_ref[...]
    if apply_rational:
        y = _rational_poly(y)
    o_ref[...] = y


def _bn_add_act_kernel(x_ref, scale_ref, shift_ref, res_ref, o_ref):
    y = x_ref[...] * scale_ref[...] + shift_ref[...] + res_ref[...]
    o_ref[...] = _rational_poly(y)


def _bn_apply(x_nhwc, gamma, beta, residual=None, apply_rational=True):
    N, H, W, C = x_nhwc.shape
    eps = 1e-5
    M = N * H * W
    xf = x_nhwc.reshape(M, C).astype(jnp.float32)

    # single-pass training-mode batch statistics (biased variance):
    # sum and sum-of-squares fuse into one HBM pass under XLA.
    s = jnp.sum(xf, axis=0)
    ss = jnp.sum(xf * xf, axis=0)
    mean = s / M
    var = ss / M - mean * mean
    scale = gamma * lax.rsqrt(var + eps)
    shift = beta - mean * scale

    # lane-dense slab: fold rows into lanes when C < 128 (C=64 -> (M/2, 128))
    fold = 1
    if C < 128 and 128 % C == 0 and M % (128 // C) == 0:
        fold = 128 // C
    Mf, Cf = M // fold, C * fold
    Cp = _round_up(Cf, 128)
    tr = 512 if Mf >= 512 else _round_up(Mf, 8)
    Mp = _round_up(Mf, tr)

    def to_slab(t):
        t = t.reshape(Mf, Cf)
        if Cp != Cf or Mp != Mf:
            t = jnp.pad(t, ((0, Mp - Mf), (0, Cp - Cf)))
        return t

    def to_vec(v):
        if fold > 1:
            v = jnp.tile(v, fold)
        if Cp != Cf:
            v = jnp.pad(v, (0, Cp - Cf))
        return v.reshape(1, Cp)

    x_p = to_slab(xf)
    sc_p = to_vec(scale)
    sh_p = to_vec(shift)

    row_spec = pl.BlockSpec((tr, Cp), lambda i: (i, 0))
    vec_spec = pl.BlockSpec((1, Cp), lambda i: (0, 0))

    if residual is None:
        kernel = functools.partial(_bn_act_kernel, apply_rational=apply_rational)
        in_specs = [row_spec, vec_spec, vec_spec]
        args = (x_p, sc_p, sh_p)
    else:
        res_p = to_slab(residual.reshape(M, C).astype(jnp.float32))
        kernel = _bn_add_act_kernel
        in_specs = [row_spec, vec_spec, vec_spec, row_spec]
        args = (x_p, sc_p, sh_p, res_p)

    out = pl.pallas_call(
        kernel,
        out_shape=jax.ShapeDtypeStruct((Mp, Cp), jnp.float32),
        grid=(Mp // tr,),
        in_specs=in_specs,
        out_specs=row_spec,
        compiler_params=pltpu.CompilerParams(
            dimension_semantics=("parallel",),
            vmem_limit_bytes=_VMEM_LIMIT),
    )(*args)
    if Mp != Mf or Cp != Cf:
        out = out[:Mf, :Cf]
    return out.reshape(N, H, W, C)


# ---------------- Convolution via im2col (bf16) + Pallas matmul --------------
def conv2d_nhwc(x, w, stride, padding):
    """x: (N, H, W, Cin) NHWC; w: (Cout, Cin, kh, kw) PyTorch layout; no bias."""
    N, H, W, Cin = x.shape
    Cout, _, kh, kw = w.shape
    Ho = (H + 2 * padding - kh) // stride + 1
    Wo = (W + 2 * padding - kw) // stride + 1
    xb = x.astype(jnp.bfloat16)                 # halve im2col HBM traffic
    xp = jnp.pad(xb, ((0, 0), (padding, padding), (padding, padding), (0, 0)))
    # TODO(synk): kh*kw taps are still materialized via im2col; folding (dy,dx)
    # into the matmul grid with an Element-indexed input BlockSpec would remove
    # the remaining kh*kw activation blow-up in HBM.
    patches = []
    for dy in range(kh):
        for dx in range(kw):
            patches.append(
                xp[:, dy:dy + Ho * stride:stride, dx:dx + Wo * stride:stride, :])
    patches = jnp.concatenate(patches, axis=-1)          # (N, Ho, Wo, kh*kw*Cin) bf16
    a = patches.reshape(N * Ho * Wo, kh * kw * Cin)
    b = jnp.transpose(w, (2, 3, 1, 0)).reshape(kh * kw * Cin, Cout).astype(jnp.bfloat16)
    y = pallas_matmul(a, b)                              # f32
    return y.reshape(N, Ho, Wo, Cout)


def maxpool_3x3_s2_p1(x):
    # TODO(synk): maxpool kept as lax.reduce_window glue (window reduction, not on the matmul hot path)
    return lax.reduce_window(x, -jnp.inf, lax.max,
                             window_dimensions=(1, 3, 3, 1),
                             window_strides=(1, 2, 2, 1),
                             padding=((0, 0), (1, 1), (1, 1), (0, 0)))


# ---------------- Parameter init (deterministic, matches nn.Module shapes) ---
def init_params(key, num_classes=10):
    keys = iter(jax.random.split(key, 64))

    def conv_init(cout, cin, kh, kw):
        fan_out = cout * kh * kw                      # kaiming_normal_, mode='fan_out'
        std = (2.0 / fan_out) ** 0.5
        return std * jax.random.normal(next(keys), (cout, cin, kh, kw), jnp.float32)

    params = {
        'conv1': conv_init(64, 3, 7, 7),
        'bn1_w': jnp.ones((64,), jnp.float32),
        'bn1_b': jnp.zeros((64,), jnp.float32),
    }

    layers = []
    inplanes = 64
    for planes, nblocks in ((64, 2), (128, 2), (256, 2), (512, 2)):
        blocks = []
        for bi in range(nblocks):
            stride = 2 if (bi == 0 and planes != 64) else 1
            blk = {
                'conv1': conv_init(planes, inplanes, 3, 3),
                'bn1_w': jnp.ones((planes,), jnp.float32),
                'bn1_b': jnp.zeros((planes,), jnp.float32),
                'conv2': conv_init(planes, planes, 3, 3),
                'bn2_w': jnp.ones((planes,), jnp.float32),
                'bn2_b': jnp.zeros((planes,), jnp.float32),
            }
            if stride != 1 or inplanes != planes:
                blk['convd'] = conv_init(planes, inplanes, 1, 1)
                blk['bnd_w'] = jnp.ones((planes,), jnp.float32)
                blk['bnd_b'] = jnp.zeros((planes,), jnp.float32)
            blocks.append(blk)
            inplanes = planes
        layers.append(blocks)
    params['layers'] = layers

    kf = 1.0 / (512 ** 0.5)                            # nn.Linear default init
    params['fc_w'] = jax.random.uniform(next(keys), (num_classes, 512),
                                        jnp.float32, -kf, kf)
    params['fc_b'] = jax.random.uniform(next(keys), (num_classes,),
                                        jnp.float32, -kf, kf)
    return params


# ---------------- Forward pass -----------------------------------------------
def block_forward(x, blk, stride):
    identity = x
    out = conv2d_nhwc(x, blk['conv1'], stride=stride, padding=1)
    out = _bn_apply(out, blk['bn1_w'], blk['bn1_b'], apply_rational=True)
    out = conv2d_nhwc(out, blk['conv2'], stride=1, padding=1)
    if 'convd' in blk:
        identity = conv2d_nhwc(x, blk['convd'], stride=stride, padding=0)
        identity = _bn_apply(identity, blk['bnd_w'], blk['bnd_b'],
                             apply_rational=False)
    out = _bn_apply(out, blk['bn2_w'], blk['bn2_b'],
                    residual=identity, apply_rational=True)
    return out


def resnet_forward(params, x_nchw):
    x = jnp.transpose(x_nchw, (0, 2, 3, 1)).astype(jnp.float32)    # NCHW -> NHWC
    x = conv2d_nhwc(x, params['conv1'], stride=2, padding=3)
    x = _bn_apply(x, params['bn1_w'], params['bn1_b'], apply_rational=True)
    x = maxpool_3x3_s2_p1(x)
    for li, blocks in enumerate(params['layers']):
        for bi, blk in enumerate(blocks):
            stride = 2 if (li > 0 and bi == 0) else 1
            x = block_forward(x, blk, stride)
    x = jnp.mean(x, axis=(1, 2))                                   # AdaptiveAvgPool2d((1,1)) + flatten
    # tiny (B x 512 x num_classes) FC done in glue per perf review (padding it
    # through the Pallas matmul path adds launch/padding overhead for no gain).
    logits = jnp.dot(x, params['fc_w'].T) + params['fc_b'][None, :]
    return logits


if __name__ == "__main__":
    key = jax.random.PRNGKey(0)
    pkey, xkey = jax.random.split(key)
    params = init_params(pkey, num_classes=10)
    x = jax.random.normal(xkey, (2, 3, 32, 32), jnp.float32)       # small CIFAR-like input
    logits = jax.jit(resnet_forward)(params, x)
    jax.block_until_ready(logits)
    assert logits.shape == (2, 10)
    assert bool(jnp.all(jnp.isfinite(logits)))
    print("KERNEL_OK")
</pallas_src>

<mosaic_0001>
module attributes {stable_mosaic.version = 11 : i64} {
  func.func @_matmul_kernel(%arg0: i32, %arg1: i32, %arg2: i32, %arg3: memref<512x256xbf16, #tpu.memory_space<vmem>>, %arg4: memref<256x128xbf16, #tpu.memory_space<vmem>>, %arg5: memref<512x128xf32, #tpu.memory_space<vmem>>) attributes {dimension_semantics = [#tpu.dimension_semantics<parallel>, #tpu.dimension_semantics<parallel>, #tpu.dimension_semantics<arbitrary>], iteration_bounds = array<i64: 1, 1, 1>, scalar_prefetch = 0 : i64, scratch_operands = 0 : i64, tpu.core_type = #tpu.core_type<tc>, window_params = [{transform_indices = @transform_0, window_bounds = array<i64: 512, 256>}, {transform_indices = @transform_1, window_bounds = array<i64: 256, 128>}, {transform_indices = @transform_2, window_bounds = array<i64: 512, 128>}]} {
    %c0_i32 = arith.constant 0 : i32
    %0 = arith.cmpi eq, %arg2, %c0_i32 : i32
    %1 = arith.extui %0 : i1 to i32
    %c0_i32_0 = arith.constant 0 : i32
    %2 = arith.cmpi ne, %1, %c0_i32_0 : i32
    scf.if %2 {
      %cst_8 = arith.constant 0.000000e+00 : f32
      %9 = vector.broadcast %cst_8 : f32 to vector<512x128xf32>
      %c0_9 = arith.constant 0 : index
      %c0_10 = arith.constant 0 : index
      %10 = vector.load %arg5[%c0_9, %c0_10] : memref<512x128xf32, #tpu.memory_space<vmem>>, vector<512x128xf32>
      tpu.vector_store %arg5[%c0_9, %c0_10], %9 {strides = array<i32>} : memref<512x128xf32, #tpu.memory_space<vmem>>, vector<512x128xf32>,
    } else {
    }
    %c0 = arith.constant 0 : index
    %c0_1 = arith.constant 0 : index
    %3 = vector.load %arg5[%c0, %c0_1] : memref<512x128xf32, #tpu.memory_space<vmem>>, vector<512x128xf32>
    %c0_2 = arith.constant 0 : index
    %c0_3 = arith.constant 0 : index
    %4 = vector.load %arg3[%c0_2, %c0_3] : memref<512x256xbf16, #tpu.memory_space<vmem>>, vector<512x256xbf16>
    %c0_4 = arith.constant 0 : index
    %c0_5 = arith.constant 0 : index
    %5 = vector.load %arg4[%c0_4, %c0_5] : memref<256x128xbf16, #tpu.memory_space<vmem>>, vector<256x128xbf16>
    %cst = arith.constant dense<0.000000e+00> : vector<512x128xf32>
    %6 = tpu.matmul %4, %5, %cst {dimension_numbers = #tpu.dot_dimension_numbers<[1], [0], [0], [1], [0, 0, 1, 1], [], []>} : vector<512x256xbf16>, vector<256x128xbf16>, vector<512x128xf32> -> vector<512x128xf32>
    %7 = arith.addf %3, %6 : vector<512x128xf32>
    %c0_6 = arith.constant 0 : index
    %c0_7 = arith.constant 0 : index
    %8 = vector.load %arg5[%c0_6, %c0_7] : memref<512x128xf32, #tpu.memory_space<vmem>>, vector<512x128xf32>
    tpu.vector_store %arg5[%c0_6, %c0_7], %7 {strides = array<i32>} : memref<512x128xf32, #tpu.memory_space<vmem>>, vector<512x128xf32>,
    return
  }
  func.func @transform_0(%arg0: i32, %arg1: i32, %arg2: i32) -> (i32, i32) {
    %c0_i32 = arith.constant 0 : i32
    return %arg0, %arg2 : i32, i32
  }
  func.func @transform_1(%arg0: i32, %arg1: i32, %arg2: i32) -> (i32, i32) {
    %c0_i32 = arith.constant 0 : i32
    return %arg2, %arg1 : i32, i32
  }
  func.func @transform_2(%arg0: i32, %arg1: i32, %arg2: i32) -> (i32, i32) {
    %c0_i32 = arith.constant 0 : i32
    return %arg0, %arg1 : i32, i32
  }
}

module attributes {stable_mosaic.version = 11 : i64} {
  func.func @_bn_act_kernel(%arg0: i32, %arg1: memref<256x128xf32, #tpu.memory_space<vmem>>, %arg2: memref<1x128xf32, #tpu.memory_space<vmem>>, %arg3: memref<1x128xf32, #tpu.memory_space<vmem>>, %arg4: memref<256x128xf32, #tpu.memory_space<vmem>>) attributes {dimension_semantics = [#tpu.dimension_semantics<parallel>], iteration_bounds = array<i64: 1>, scalar_prefetch = 0 : i64, scratch_operands = 0 : i64, tpu.core_type = #tpu.core_type<tc>, window_params = [{transform_indices = @transform_0, window_bounds = array<i64: 256, 128>}, {pipeline_mode = #tpu.pipeline_mode<synchronous>, transform_indices = @transform_1, window_bounds = array<i64: 1, 128>}, {pipeline_mode = #tpu.pipeline_mode<synchronous>, transform_indices = @transform_2, window_bounds = array<i64: 1, 128>}, {transform_indices = @transform_3, window_bounds = array<i64: 256, 128>}]} {
    %c0 = arith.constant 0 : index
    %c0_0 = arith.constant 0 : index
    %0 = vector.load %arg1[%c0, %c0_0] : memref<256x128xf32, #tpu.memory_space<vmem>>, vector<256x128xf32>
    %c0_1 = arith.constant 0 : index
    %c0_2 = arith.constant 0 : index
    %1 = vector.load %arg2[%c0_1, %c0_2] : memref<1x128xf32, #tpu.memory_space<vmem>>, vector<1x128xf32>
    %2 = vector.broadcast %1 : vector<1x128xf32> to vector<256x128xf32>
    %3 = arith.mulf %0, %2 : vector<256x128xf32>
    %c0_3 = arith.constant 0 : index
    %c0_4 = arith.constant 0 : index
    %4 = vector.load %arg3[%c0_3, %c0_4] : memref<1x128xf32, #tpu.memory_space<vmem>>, vector<1x128xf32>
    %5 = vector.broadcast %4 : vector<1x128xf32> to vector<256x128xf32>
    %6 = arith.addf %3, %5 : vector<256x128xf32>
    %cst = arith.constant 0.252819866 : f32
    %7 = vector.broadcast %cst : f32 to vector<256x128xf32>
    %8 = arith.mulf %7, %6 : vector<256x128xf32>
    %cst_5 = arith.constant 1.52474451 : f32
    %9 = vector.broadcast %cst_5 : f32 to vector<256x128xf32>
    %10 = arith.addf %8, %9 : vector<256x128xf32>
    %11 = arith.mulf %10, %6 : vector<256x128xf32>
    %cst_6 = arith.constant 3.06608081 : f32
    %12 = vector.broadcast %cst_6 : f32 to vector<256x128xf32>
    %13 = arith.addf %11, %12 : vector<256x128xf32>
    %14 = arith.mulf %13, %6 : vector<256x128xf32>
    %cst_7 = arith.constant 2.37539148 : f32
    %15 = vector.broadcast %cst_7 : f32 to vector<256x128xf32>
    %16 = arith.addf %14, %15 : vector<256x128xf32>
    %17 = arith.mulf %16, %6 : vector<256x128xf32>
    %cst_8 = arith.constant 0.616901636 : f32
    %18 = vector.broadcast %cst_8 : f32 to vector<256x128xf32>
    %19 = arith.addf %17, %18 : vector<256x128xf32>
    %20 = arith.mulf %19, %6 : vector<256x128xf32>
    %cst_9 = arith.constant 0.0299634803 : f32
    %21 = vector.broadcast %cst_9 : f32 to vector<256x128xf32>
    %22 = arith.addf %20, %21 : vector<256x128xf32>
    %23 = math.absf %6 : vector<256x128xf32>
    %cst_10 = arith.constant 0.348859817 : f32
    %24 = vector.broadcast %cst_10 : f32 to vector<256x128xf32>
    %25 = arith.mulf %24, %23 : vector<256x128xf32>
    %cst_11 = arith.constant 0.911110341 : f32
    %26 = vector.broadcast %cst_11 : f32 to vector<256x128xf32>
    %27 = arith.addf %25, %26 : vector<256x128xf32>
    %28 = arith.mulf %27, %23 : vector<256x128xf32>
    %cst_12 = arith.constant 4.40811777 : f32
    %29 = vector.broadcast %cst_12 : f32 to vector<256x128xf32>
    %30 = arith.addf %28, %29 : vector<256x128xf32>
    %31 = arith.mulf %30, %23 : vector<256x128xf32>
    %cst_13 = arith.constant 1.19160819 : f32
    %32 = vector.broadcast %cst_13 : f32 to vector<256x128xf32>
    %33 = arith.addf %31, %32 : vector<256x128xf32>
    %34 = arith.mulf %33, %23 : vector<256x128xf32>
    %cst_14 = arith.constant 1.000000e+00 : f32
    %35 = vector.broadcast %cst_14 : f32 to vector<256x128xf32>
    %36 = arith.addf %34, %35 : vector<256x128xf32>
    %37 = tpu.reciprocal %36 {approx = true} : vector<256x128xf32> -> vector<256x128xf32>
    %38 = arith.mulf %22, %37 : vector<256x128xf32>
    %c0_15 = arith.constant 0 : index
    %c0_16 = arith.constant 0 : index
    %39 = vector.load %arg4[%c0_15, %c0_16] : memref<256x128xf32, #tpu.memory_space<vmem>>, vector<256x128xf32>
    tpu.vector_store %arg4[%c0_15, %c0_16], %38 {strides = array<i32>} : memref<256x128xf32, #tpu.memory_space<vmem>>, vector<256x128xf32>,
    return
  }
  func.func @transform_0(%arg0: i32) -> (i32, i32) {
    %c0_i32 = arith.constant 0 : i32
    %c0_i32_0 = arith.constant 0 : i32
    return %arg0, %c0_i32 : i32, i32
  }
  func.func @transform_1(%arg0: i32) -> (i32, i32) {
    %c0_i32 = arith.constant 0 : i32
    %c0_i32_0 = arith.constant 0 : i32
    %c0_i32_1 = arith.constant 0 : i32
    return %c0_i32, %c0_i32_0 : i32, i32
  }
  func.func @transform_2(%arg0: i32) -> (i32, i32) {
    %c0_i32 = arith.constant 0 : i32
    %c0_i32_0 = arith.constant 0 : i32
    %c0_i32_1 = arith.constant 0 : i32
    return %c0_i32, %c0_i32_0 : i32, i32
  }
  func.func @transform_3(%arg0: i32) -> (i32, i32) {
    %c0_i32 = arith.constant 0 : i32
    %c0_i32_0 = arith.constant 0 : i32
    return %arg0, %c0_i32 : i32, i32
  }
}

module attributes {stable_mosaic.version = 11 : i64} {
  func.func @_matmul_kernel(%arg0: i32, %arg1: i32, %arg2: i32, %arg3: memref<128x128xbf16, #tpu.memory_space<vmem>>, %arg4: memref<128x128xbf16, #tpu.memory_space<vmem>>, %arg5: memref<128x128xf32, #tpu.memory_space<vmem>>) attributes {dimension_semantics = [#tpu.dimension_semantics<parallel>, #tpu.dimension_semantics<parallel>, #tpu.dimension_semantics<arbitrary>], iteration_bounds = array<i64: 1, 1, 5>, scalar_prefetch = 0 : i64, scratch_operands = 0 : i64, tpu.core_type = #tpu.core_type<tc>, window_params = [{transform_indices = @transform_0, window_bounds = array<i64: 128, 128>}, {transform_indices = @transform_1, window_bounds = array<i64: 128, 128>}, {transform_indices = @transform_2, window_bounds = array<i64: 128, 128>}]} {
    %c0_i32 = arith.constant 0 : i32
    %0 = arith.cmpi eq, %arg2, %c0_i32 : i32
    %1 = arith.extui %0 : i1 to i32
    %c0_i32_0 = arith.constant 0 : i32
    %2 = arith.cmpi ne, %1, %c0_i32_0 : i32
    scf.if %2 {
      %cst_8 = arith.constant 0.000000e+00 : f32
      %9 = vector.broadcast %cst_8 : f32 to vector<128x128xf32>
      %c0_9 = arith.constant 0 : index
      %c0_10 = arith.constant 0 : index
      %10 = vector.load %arg5[%c0_9, %c0_10] : memref<128x128xf32, #tpu.memory_space<vmem>>, vector<128x128xf32>
      tpu.vector_store %arg5[%c0_9, %c0_10], %9 {strides = array<i32>} : memref<128x128xf32, #tpu.memory_space<vmem>>, vector<128x128xf32>,
    } else {
    }
    %c0 = arith.constant 0 : index
    %c0_1 = arith.constant 0 : index
    %3 = vector.load %arg5[%c0, %c0_1] : memref<128x128xf32, #tpu.memory_space<vmem>>, vector<128x128xf32>
    %c0_2 = arith.constant 0 : index
    %c0_3 = arith.constant 0 : index
    %4 = vector.load %arg3[%c0_2, %c0_3] : memref<128x128xbf16, #tpu.memory_space<vmem>>, vector<128x128xbf16>
    %c0_4 = arith.constant 0 : index
    %c0_5 = arith.constant 0 : index
    %5 = vector.load %arg4[%c0_4, %c0_5] : memref<128x128xbf16, #tpu.memory_space<vmem>>, vector<128x128xbf16>
    %cst = arith.constant dense<0.000000e+00> : vector<128x128xf32>
    %6 = tpu.matmul %4, %5, %cst {dimension_numbers = #tpu.dot_dimension_numbers<[1], [0], [0], [1], [0, 0, 1, 1], [], []>} : vector<128x128xbf16>, vector<128x128xbf16>, vector<128x128xf32> -> vector<128x128xf32>
    %7 = arith.addf %3, %6 : vector<128x128xf32>
    %c0_6 = arith.constant 0 : index
    %c0_7 = arith.constant 0 : index
    %8 = vector.load %arg5[%c0_6, %c0_7] : memref<128x128xf32, #tpu.memory_space<vmem>>, vector<128x128xf32>
    tpu.vector_store %arg5[%c0_6, %c0_7], %7 {strides = array<i32>} : memref<128x128xf32, #tpu.memory_space<vmem>>, vector<128x128xf32>,
    return
  }
  func.func @transform_0(%arg0: i32, %arg1: i32, %arg2: i32) -> (i32, i32) {
    %c0_i32 = arith.constant 0 : i32
    return %arg0, %arg2 : i32, i32
  }
  func.func @transform_1(%arg0: i32, %arg1: i32, %arg2: i32) -> (i32, i32) {
    %c0_i32 = arith.constant 0 : i32
    return %arg2, %arg1 : i32, i32
  }
  func.func @transform_2(%arg0: i32, %arg1: i32, %arg2: i32) -> (i32, i32) {
    %c0_i32 = arith.constant 0 : i32
    return %arg0, %arg1 : i32, i32
  }
}

module attributes {stable_mosaic.version = 11 : i64} {
  func.func @_bn_act_kernel(%arg0: i32, %arg1: memref<64x128xf32, #tpu.memory_space<vmem>>, %arg2: memref<1x128xf32, #tpu.memory_space<vmem>>, %arg3: memref<1x128xf32, #tpu.memory_space<vmem>>, %arg4: memref<64x128xf32, #tpu.memory_space<vmem>>) attributes {dimension_semantics = [#tpu.dimension_semantics<parallel>], iteration_bounds = array<i64: 1>, scalar_prefetch = 0 : i64, scratch_operands = 0 : i64, tpu.core_type = #tpu.core_type<tc>, window_params = [{transform_indices = @transform_0, window_bounds = array<i64: 64, 128>}, {pipeline_mode = #tpu.pipeline_mode<synchronous>, transform_indices = @transform_1, window_bounds = array<i64: 1, 128>}, {pipeline_mode = #tpu.pipeline_mode<synchronous>, transform_indices = @transform_2, window_bounds = array<i64: 1, 128>}, {transform_indices = @transform_3, window_bounds = array<i64: 64, 128>}]} {
    %c0 = arith.constant 0 : index
    %c0_0 = arith.constant 0 : index
    %0 = vector.load %arg1[%c0, %c0_0] : memref<64x128xf32, #tpu.memory_space<vmem>>, vector<64x128xf32>
    %c0_1 = arith.constant 0 : index
    %c0_2 = arith.constant 0 : index
    %1 = vector.load %arg2[%c0_1, %c0_2] : memref<1x128xf32, #tpu.memory_space<vmem>>, vector<1x128xf32>
    %2 = vector.broadcast %1 : vector<1x128xf32> to vector<64x128xf32>
    %3 = arith.mulf %0, %2 : vector<64x128xf32>
    %c0_3 = arith.constant 0 : index
    %c0_4 = arith.constant 0 : index
    %4 = vector.load %arg3[%c0_3, %c0_4] : memref<1x128xf32, #tpu.memory_space<vmem>>, vector<1x128xf32>
    %5 = vector.broadcast %4 : vector<1x128xf32> to vector<64x128xf32>
    %6 = arith.addf %3, %5 : vector<64x128xf32>
    %cst = arith.constant 0.252819866 : f32
    %7 = vector.broadcast %cst : f32 to vector<64x128xf32>
    %8 = arith.mulf %7, %6 : vector<64x128xf32>
    %cst_5 = arith.constant 1.52474451 : f32
    %9 = vector.broadcast %cst_5 : f32 to vector<64x128xf32>
    %10 = arith.addf %8, %9 : vector<64x128xf32>
    %11 = arith.mulf %10, %6 : vector<64x128xf32>
    %cst_6 = arith.constant 3.06608081 : f32
    %12 = vector.broadcast %cst_6 : f32 to vector<64x128xf32>
    %13 = arith.addf %11, %12 : vector<64x128xf32>
    %14 = arith.mulf %13, %6 : vector<64x128xf32>
    %cst_7 = arith.constant 2.37539148 : f32
    %15 = vector.broadcast %cst_7 : f32 to vector<64x128xf32>
    %16 = arith.addf %14, %15 : vector<64x128xf32>
    %17 = arith.mulf %16, %6 : vector<64x128xf32>
    %cst_8 = arith.constant 0.616901636 : f32
    %18 = vector.broadcast %cst_8 : f32 to vector<64x128xf32>
    %19 = arith.addf %17, %18 : vector<64x128xf32>
    %20 = arith.mulf %19, %6 : vector<64x128xf32>
    %cst_9 = arith.constant 0.0299634803 : f32
    %21 = vector.broadcast %cst_9 : f32 to vector<64x128xf32>
    %22 = arith.addf %20, %21 : vector<64x128xf32>
    %23 = math.absf %6 : vector<64x128xf32>
    %cst_10 = arith.constant 0.348859817 : f32
    %24 = vector.broadcast %cst_10 : f32 to vector<64x128xf32>
    %25 = arith.mulf %24, %23 : vector<64x128xf32>
    %cst_11 = arith.constant 0.911110341 : f32
    %26 = vector.broadcast %cst_11 : f32 to vector<64x128xf32>
    %27 = arith.addf %25, %26 : vector<64x128xf32>
    %28 = arith.mulf %27, %23 : vector<64x128xf32>
    %cst_12 = arith.constant 4.40811777 : f32
    %29 = vector.broadcast %cst_12 : f32 to vector<64x128xf32>
    %30 = arith.addf %28, %29 : vector<64x128xf32>
    %31 = arith.mulf %30, %23 : vector<64x128xf32>
    %cst_13 = arith.constant 1.19160819 : f32
    %32 = vector.broadcast %cst_13 : f32 to vector<64x128xf32>
    %33 = arith.addf %31, %32 : vector<64x128xf32>
    %34 = arith.mulf %33, %23 : vector<64x128xf32>
    %cst_14 = arith.constant 1.000000e+00 : f32
    %35 = vector.broadcast %cst_14 : f32 to vector<64x128xf32>
    %36 = arith.addf %34, %35 : vector<64x128xf32>
    %37 = tpu.reciprocal %36 {approx = true} : vector<64x128xf32> -> vector<64x128xf32>
    %38 = arith.mulf %22, %37 : vector<64x128xf32>
    %c0_15 = arith.constant 0 : index
    %c0_16 = arith.constant 0 : index
    %39 = vector.load %arg4[%c0_15, %c0_16] : memref<64x128xf32, #tpu.memory_space<vmem>>, vector<64x128xf32>
    tpu.vector_store %arg4[%c0_15, %c0_16], %38 {strides = array<i32>} : memref<64x128xf32, #tpu.memory_space<vmem>>, vector<64x128xf32>,
    return
  }
  func.func @transform_0(%arg0: i32) -> (i32, i32) {
    %c0_i32 = arith.constant 0 : i32
    %c0_i32_0 = arith.constant 0 : i32
    return %arg0, %c0_i32 : i32, i32
  }
  func.func @transform_1(%arg0: i32) -> (i32, i32) {
    %c0_i32 = arith.constant 0 : i32
    %c0_i32_0 = arith.constant 0 : i32
    %c0_i32_1 = arith.constant 0 : i32
    return %c0_i32, %c0_i32_0 : i32, i32
  }
  func.func @transform_2(%arg0: i32) -> (i32, i32) {
    %c0_i32 = arith.constant 0 : i32
    %c0_i32_0 = arith.constant 0 : i32
    %c0_i32_1 = arith.constant 0 : i32
    return %c0_i32, %c0_i32_0 : i32, i32
  }
  func.func @transform_3(%arg0: i32) -> (i32, i32) {
    %c0_i32 = arith.constant 0 : i32
    %c0_i32_0 = arith.constant 0 : i32
    return %arg0, %c0_i32 : i32, i32
  }
}

module attributes {stable_mosaic.version = 11 : i64} {
  func.func @_bn_add_act_kernel(%arg0: i32, %arg1: memref<64x128xf32, #tpu.memory_space<vmem>>, %arg2: memref<1x128xf32, #tpu.memory_space<vmem>>, %arg3: memref<1x128xf32, #tpu.memory_space<vmem>>, %arg4: memref<64x128xf32, #tpu.memory_space<vmem>>, %arg5: memref<64x128xf32, #tpu.memory_space<vmem>>) attributes {dimension_semantics = [#tpu.dimension_semantics<parallel>], iteration_bounds = array<i64: 1>, scalar_prefetch = 0 : i64, scratch_operands = 0 : i64, tpu.core_type = #tpu.core_type<tc>, window_params = [{transform_indices = @transform_0, window_bounds = array<i64: 64, 128>}, {pipeline_mode = #tpu.pipeline_mode<synchronous>, transform_indices = @transform_1, window_bounds = array<i64: 1, 128>}, {pipeline_mode = #tpu.pipeline_mode<synchronous>, transform_indices = @transform_2, window_bounds = array<i64: 1, 128>}, {transform_indices = @transform_3, window_bounds = array<i64: 64, 128>}, {transform_indices = @transform_4, window_bounds = array<i64: 64, 128>}]} {
    %c0 = arith.constant 0 : index
    %c0_0 = arith.constant 0 : index
    %0 = vector.load %arg1[%c0, %c0_0] : memref<64x128xf32, #tpu.memory_space<vmem>>, vector<64x128xf32>
    %c0_1 = arith.constant 0 : index
    %c0_2 = arith.constant 0 : index
    %1 = vector.load %arg2[%c0_1, %c0_2] : memref<1x128xf32, #tpu.memory_space<vmem>>, vector<1x128xf32>
    %2 = vector.broadcast %1 : vector<1x128xf32> to vector<64x128xf32>
    %3 = arith.mulf %0, %2 : vector<64x128xf32>
    %c0_3 = arith.constant 0 : index
    %c0_4 = arith.constant 0 : index
    %4 = vector.load %arg3[%c0_3, %c0_4] : memref<1x128xf32, #tpu.memory_space<vmem>>, vector<1x128xf32>
    %5 = vector.broadcast %4 : vector<1x128xf32> to vector<64x128xf32>
    %6 = arith.addf %3, %5 : vector<64x128xf32>
    %c0_5 = arith.constant 0 : index
    %c0_6 = arith.constant 0 : index
    %7 = vector.load %arg4[%c0_5, %c0_6] : memref<64x128xf32, #tpu.memory_space<vmem>>, vector<64x128xf32>
    %8 = arith.addf %6, %7 : vector<64x128xf32>
    %cst = arith.constant 0.252819866 : f32
    %9 = vector.broadcast %cst : f32 to vector<64x128xf32>
    %10 = arith.mulf %9, %8 : vector<64x128xf32>
    %cst_7 = arith.constant 1.52474451 : f32
    %11 = vector.broadcast %cst_7 : f32 to vector<64x128xf32>
    %12 = arith.addf %10, %11 : vector<64x128xf32>
    %13 = arith.mulf %12, %8 : vector<64x128xf32>
    %cst_8 = arith.constant 3.06608081 : f32
    %14 = vector.broadcast %cst_8 : f32 to vector<64x128xf32>
    %15 = arith.addf %13, %14 : vector<64x128xf32>
    %16 = arith.mulf %15, %8 : vector<64x128xf32>
    %cst_9 = arith.constant 2.37539148 : f32
    %17 = vector.broadcast %cst_9 : f32 to vector<64x128xf32>
    %18 = arith.addf %16, %17 : vector<64x128xf32>
    %19 = arith.mulf %18, %8 : vector<64x128xf32>
    %cst_10 = arith.constant 0.616901636 : f32
    %20 = vector.broadcast %cst_10 : f32 to vector<64x128xf32>
    %21 = arith.addf %19, %20 : vector<64x128xf32>
    %22 = arith.mulf %21, %8 : vector<64x128xf32>
    %cst_11 = arith.constant 0.0299634803 : f32
    %23 = vector.broadcast %cst_11 : f32 to vector<64x128xf32>
    %24 = arith.addf %22, %23 : vector<64x128xf32>
    %25 = math.absf %8 : vector<64x128xf32>
    %cst_12 = arith.constant 0.348859817 : f32
    %26 = vector.broadcast %cst_12 : f32 to vector<64x128xf32>
    %27 = arith.mulf %26, %25 : vector<64x128xf32>
    %cst_13 = arith.constant 0.911110341 : f32
    %28 = vector.broadcast %cst_13 : f32 to vector<64x128xf32>
    %29 = arith.addf %27, %28 : vector<64x128xf32>
    %30 = arith.mulf %29, %25 : vector<64x128xf32>
    %cst_14 = arith.constant 4.40811777 : f32
    %31 = vector.broadcast %cst_14 : f32 to vector<64x128xf32>
    %32 = arith.addf %30, %31 : vector<64x128xf32>
    %33 = arith.mulf %32, %25 : vector<64x128xf32>
    %cst_15 = arith.constant 1.19160819 : f32
    %34 = vector.broadcast %cst_15 : f32 to vector<64x128xf32>
    %35 = arith.addf %33, %34 : vector<64x128xf32>
    %36 = arith.mulf %35, %25 : vector<64x128xf32>
    %cst_16 = arith.constant 1.000000e+00 : f32
    %37 = vector.broadcast %cst_16 : f32 to vector<64x128xf32>
    %38 = arith.addf %36, %37 : vector<64x128xf32>
    %39 = tpu.reciprocal %38 {approx = true} : vector<64x128xf32> -> vector<64x128xf32>
    %40 = arith.mulf %24, %39 : vector<64x128xf32>
    %c0_17 = arith.constant 0 : index
    %c0_18 = arith.constant 0 : index
    %41 = vector.load %arg5[%c0_17, %c0_18] : memref<64x128xf32, #tpu.memory_space<vmem>>, vector<64x128xf32>
    tpu.vector_store %arg5[%c0_17, %c0_18], %40 {strides = array<i32>} : memref<64x128xf32, #tpu.memory_space<vmem>>, vector<64x128xf32>,
    return
  }
  func.func @transform_0(%arg0: i32) -> (i32, i32) {
    %c0_i32 = arith.constant 0 : i32
    %c0_i32_0 = arith.constant 0 : i32
    return %arg0, %c0_i32 : i32, i32
  }
  func.func @transform_1(%arg0: i32) -> (i32, i32) {
    %c0_i32 = arith.constant 0 : i32
    %c0_i32_0 = arith.constant 0 : i32
    %c0_i32_1 = arith.constant 0 : i32
    return %c0_i32, %c0_i32_0 : i32, i32
  }
  func.func @transform_2(%arg0: i32) -> (i32, i32) {
    %c0_i32 = arith.constant 0 : i32
    %c0_i32_0 = arith.constant 0 : i32
    %c0_i32_1 = arith.constant 0 : i32
    return %c0_i32, %c0_i32_0 : i32, i32
  }
  func.func @transform_3(%arg0: i32) -> (i32, i32) {
    %c0_i32 = arith.constant 0 : i32
    %c0_i32_0 = arith.constant 0 : i32
    return %arg0, %c0_i32 : i32, i32
  }
  func.func @transform_4(%arg0: i32) -> (i32, i32) {
    %c0_i32 = arith.constant 0 : i32
    %c0_i32_0 = arith.constant 0 : i32
    return %arg0, %c0_i32 : i32, i32
  }
}

module attributes {stable_mosaic.version = 11 : i64} {
  func.func @_matmul_kernel(%arg0: i32, %arg1: i32, %arg2: i32, %arg3: memref<32x128xbf16, #tpu.memory_space<vmem>>, %arg4: memref<128x128xbf16, #tpu.memory_space<vmem>>, %arg5: memref<32x128xf32, #tpu.memory_space<vmem>>) attributes {dimension_semantics = [#tpu.dimension_semantics<parallel>, #tpu.dimension_semantics<parallel>, #tpu.dimension_semantics<arbitrary>], iteration_bounds = array<i64: 1, 1, 5>, scalar_prefetch = 0 : i64, scratch_operands = 0 : i64, tpu.core_type = #tpu.core_type<tc>, window_params = [{transform_indices = @transform_0, window_bounds = array<i64: 32, 128>}, {transform_indices = @transform_1, window_bounds = array<i64: 128, 128>}, {transform_indices = @transform_2, window_bounds = array<i64: 32, 128>}]} {
    %c0_i32 = arith.constant 0 : i32
    %0 = arith.cmpi eq, %arg2, %c0_i32 : i32
    %1 = arith.extui %0 : i1 to i32
    %c0_i32_0 = arith.constant 0 : i32
    %2 = arith.cmpi ne, %1, %c0_i32_0 : i32
    scf.if %2 {
      %cst_8 = arith.constant 0.000000e+00 : f32
      %9 = vector.broadcast %cst_8 : f32 to vector<32x128xf32>
      %c0_9 = arith.constant 0 : index
      %c0_10 = arith.constant 0 : index
      %10 = vector.load %arg5[%c0_9, %c0_10] : memref<32x128xf32, #tpu.memory_space<vmem>>, vector<32x128xf32>
      tpu.vector_store %arg5[%c0_9, %c0_10], %9 {strides = array<i32>} : memref<32x128xf32, #tpu.memory_space<vmem>>, vector<32x128xf32>,
    } else {
    }
    %c0 = arith.constant 0 : index
    %c0_1 = arith.constant 0 : index
    %3 = vector.load %arg5[%c0, %c0_1] : memref<32x128xf32, #tpu.memory_space<vmem>>, vector<32x128xf32>
    %c0_2 = arith.constant 0 : index
    %c0_3 = arith.constant 0 : index
    %4 = vector.load %arg3[%c0_2, %c0_3] : memref<32x128xbf16, #tpu.memory_space<vmem>>, vector<32x128xbf16>
    %c0_4 = arith.constant 0 : index
    %c0_5 = arith.constant 0 : index
    %5 = vector.load %arg4[%c0_4, %c0_5] : memref<128x128xbf16, #tpu.memory_space<vmem>>, vector<128x128xbf16>
    %cst = arith.constant dense<0.000000e+00> : vector<32x128xf32>
    %6 = tpu.matmul %4, %5, %cst {dimension_numbers = #tpu.dot_dimension_numbers<[1], [0], [0], [1], [0, 0, 1, 1], [], []>} : vector<32x128xbf16>, vector<128x128xbf16>, vector<32x128xf32> -> vector<32x128xf32>
    %7 = arith.addf %3, %6 : vector<32x128xf32>
    %c0_6 = arith.constant 0 : index
    %c0_7 = arith.constant 0 : index
    %8 = vector.load %arg5[%c0_6, %c0_7] : memref<32x128xf32, #tpu.memory_space<vmem>>, vector<32x128xf32>
    tpu.vector_store %arg5[%c0_6, %c0_7], %7 {strides = array<i32>} : memref<32x128xf32, #tpu.memory_space<vmem>>, vector<32x128xf32>,
    return
  }
  func.func @transform_0(%arg0: i32, %arg1: i32, %arg2: i32) -> (i32, i32) {
    %c0_i32 = arith.constant 0 : i32
    return %arg0, %arg2 : i32, i32
  }
  func.func @transform_1(%arg0: i32, %arg1: i32, %arg2: i32) -> (i32, i32) {
    %c0_i32 = arith.constant 0 : i32
    return %arg2, %arg1 : i32, i32
  }
  func.func @transform_2(%arg0: i32, %arg1: i32, %arg2: i32) -> (i32, i32) {
    %c0_i32 = arith.constant 0 : i32
    return %arg0, %arg1 : i32, i32
  }
}

module attributes {stable_mosaic.version = 11 : i64} {
  func.func @_bn_act_kernel(%arg0: i32, %arg1: memref<32x128xf32, #tpu.memory_space<vmem>>, %arg2: memref<1x128xf32, #tpu.memory_space<vmem>>, %arg3: memref<1x128xf32, #tpu.memory_space<vmem>>, %arg4: memref<32x128xf32, #tpu.memory_space<vmem>>) attributes {dimension_semantics = [#tpu.dimension_semantics<parallel>], iteration_bounds = array<i64: 1>, scalar_prefetch = 0 : i64, scratch_operands = 0 : i64, tpu.core_type = #tpu.core_type<tc>, window_params = [{transform_indices = @transform_0, window_bounds = array<i64: 32, 128>}, {pipeline_mode = #tpu.pipeline_mode<synchronous>, transform_indices = @transform_1, window_bounds = array<i64: 1, 128>}, {pipeline_mode = #tpu.pipeline_mode<synchronous>, transform_indices = @transform_2, window_bounds = array<i64: 1, 128>}, {transform_indices = @transform_3, window_bounds = array<i64: 32, 128>}]} {
    %c0 = arith.constant 0 : index
    %c0_0 = arith.constant 0 : index
    %0 = vector.load %arg1[%c0, %c0_0] : memref<32x128xf32, #tpu.memory_space<vmem>>, vector<32x128xf32>
    %c0_1 = arith.constant 0 : index
    %c0_2 = arith.constant 0 : index
    %1 = vector.load %arg2[%c0_1, %c0_2] : memref<1x128xf32, #tpu.memory_space<vmem>>, vector<1x128xf32>
    %2 = vector.broadcast %1 : vector<1x128xf32> to vector<32x128xf32>
    %3 = arith.mulf %0, %2 : vector<32x128xf32>
    %c0_3 = arith.constant 0 : index
    %c0_4 = arith.constant 0 : index
    %4 = vector.load %arg3[%c0_3, %c0_4] : memref<1x128xf32, #tpu.memory_space<vmem>>, vector<1x128xf32>
    %5 = vector.broadcast %4 : vector<1x128xf32> to vector<32x128xf32>
    %6 = arith.addf %3, %5 : vector<32x128xf32>
    %cst = arith.constant 0.252819866 : f32
    %7 = vector.broadcast %cst : f32 to vector<32x128xf32>
    %8 = arith.mulf %7, %6 : vector<32x128xf32>
    %cst_5 = arith.constant 1.52474451 : f32
    %9 = vector.broadcast %cst_5 : f32 to vector<32x128xf32>
    %10 = arith.addf %8, %9 : vector<32x128xf32>
    %11 = arith.mulf %10, %6 : vector<32x128xf32>
    %cst_6 = arith.constant 3.06608081 : f32
    %12 = vector.broadcast %cst_6 : f32 to vector<32x128xf32>
    %13 = arith.addf %11, %12 : vector<32x128xf32>
    %14 = arith.mulf %13, %6 : vector<32x128xf32>
    %cst_7 = arith.constant 2.37539148 : f32
    %15 = vector.broadcast %cst_7 : f32 to vector<32x128xf32>
    %16 = arith.addf %14, %15 : vector<32x128xf32>
    %17 = arith.mulf %16, %6 : vector<32x128xf32>
    %cst_8 = arith.constant 0.616901636 : f32
    %18 = vector.broadcast %cst_8 : f32 to vector<32x128xf32>
    %19 = arith.addf %17, %18 : vector<32x128xf32>
    %20 = arith.mulf %19, %6 : vector<32x128xf32>
    %cst_9 = arith.constant 0.0299634803 : f32
    %21 = vector.broadcast %cst_9 : f32 to vector<32x128xf32>
    %22 = arith.addf %20, %21 : vector<32x128xf32>
    %23 = math.absf %6 : vector<32x128xf32>
    %cst_10 = arith.constant 0.348859817 : f32
    %24 = vector.broadcast %cst_10 : f32 to vector<32x128xf32>
    %25 = arith.mulf %24, %23 : vector<32x128xf32>
    %cst_11 = arith.constant 0.911110341 : f32
    %26 = vector.broadcast %cst_11 : f32 to vector<32x128xf32>
    %27 = arith.addf %25, %26 : vector<32x128xf32>
    %28 = arith.mulf %27, %23 : vector<32x128xf32>
    %cst_12 = arith.constant 4.40811777 : f32
    %29 = vector.broadcast %cst_12 : f32 to vector<32x128xf32>
    %30 = arith.addf %28, %29 : vector<32x128xf32>
    %31 = arith.mulf %30, %23 : vector<32x128xf32>
    %cst_13 = arith.constant 1.19160819 : f32
    %32 = vector.broadcast %cst_13 : f32 to vector<32x128xf32>
    %33 = arith.addf %31, %32 : vector<32x128xf32>
    %34 = arith.mulf %33, %23 : vector<32x128xf32>
    %cst_14 = arith.constant 1.000000e+00 : f32
    %35 = vector.broadcast %cst_14 : f32 to vector<32x128xf32>
    %36 = arith.addf %34, %35 : vector<32x128xf32>
    %37 = tpu.reciprocal %36 {approx = true} : vector<32x128xf32> -> vector<32x128xf32>
    %38 = arith.mulf %22, %37 : vector<32x128xf32>
    %c0_15 = arith.constant 0 : index
    %c0_16 = arith.constant 0 : index
    %39 = vector.load %arg4[%c0_15, %c0_16] : memref<32x128xf32, #tpu.memory_space<vmem>>, vector<32x128xf32>
    tpu.vector_store %arg4[%c0_15, %c0_16], %38 {strides = array<i32>} : memref<32x128xf32, #tpu.memory_space<vmem>>, vector<32x128xf32>,
    return
  }
  func.func @transform_0(%arg0: i32) -> (i32, i32) {
    %c0_i32 = arith.constant 0 : i32
    %c0_i32_0 = arith.constant 0 : i32
    return %arg0, %c0_i32 : i32, i32
  }
  func.func @transform_1(%arg0: i32) -> (i32, i32) {
    %c0_i32 = arith.constant 0 : i32
    %c0_i32_0 = arith.constant 0 : i32
    %c0_i32_1 = arith.constant 0 : i32
    return %c0_i32, %c0_i32_0 : i32, i32
  }
  func.func @transform_2(%arg0: i32) -> (i32, i32) {
    %c0_i32 = arith.constant 0 : i32
    %c0_i32_0 = arith.constant 0 : i32
    %c0_i32_1 = arith.constant 0 : i32
    return %c0_i32, %c0_i32_0 : i32, i32
  }
  func.func @transform_3(%arg0: i32) -> (i32, i32) {
    %c0_i32 = arith.constant 0 : i32
    %c0_i32_0 = arith.constant 0 : i32
    return %arg0, %c0_i32 : i32, i32
  }
}

module attributes {stable_mosaic.version = 11 : i64} {
  func.func @_matmul_kernel(%arg0: i32, %arg1: i32, %arg2: i32, %arg3: memref<32x128xbf16, #tpu.memory_space<vmem>>, %arg4: memref<128x128xbf16, #tpu.memory_space<vmem>>, %arg5: memref<32x128xf32, #tpu.memory_space<vmem>>) attributes {dimension_semantics = [#tpu.dimension_semantics<parallel>, #tpu.dimension_semantics<parallel>, #tpu.dimension_semantics<arbitrary>], iteration_bounds = array<i64: 1, 1, 9>, scalar_prefetch = 0 : i64, scratch_operands = 0 : i64, tpu.core_type = #tpu.core_type<tc>, window_params = [{transform_indices = @transform_0, window_bounds = array<i64: 32, 128>}, {transform_indices = @transform_1, window_bounds = array<i64: 128, 128>}, {transform_indices = @transform_2, window_bounds = array<i64: 32, 128>}]} {
    %c0_i32 = arith.constant 0 : i32
    %0 = arith.cmpi eq, %arg2, %c0_i32 : i32
    %1 = arith.extui %0 : i1 to i32
    %c0_i32_0 = arith.constant 0 : i32
    %2 = arith.cmpi ne, %1, %c0_i32_0 : i32
    scf.if %2 {
      %cst_8 = arith.constant 0.000000e+00 : f32
      %9 = vector.broadcast %cst_8 : f32 to vector<32x128xf32>
      %c0_9 = arith.constant 0 : index
      %c0_10 = arith.constant 0 : index
      %10 = vector.load %arg5[%c0_9, %c0_10] : memref<32x128xf32, #tpu.memory_space<vmem>>, vector<32x128xf32>
      tpu.vector_store %arg5[%c0_9, %c0_10], %9 {strides = array<i32>} : memref<32x128xf32, #tpu.memory_space<vmem>>, vector<32x128xf32>,
    } else {
    }
    %c0 = arith.constant 0 : index
    %c0_1 = arith.constant 0 : index
    %3 = vector.load %arg5[%c0, %c0_1] : memref<32x128xf32, #tpu.memory_space<vmem>>, vector<32x128xf32>
    %c0_2 = arith.constant 0 : index
    %c0_3 = arith.constant 0 : index
    %4 = vector.load %arg3[%c0_2, %c0_3] : memref<32x128xbf16, #tpu.memory_space<vmem>>, vector<32x128xbf16>
    %c0_4 = arith.constant 0 : index
    %c0_5 = arith.constant 0 : index
    %5 = vector.load %arg4[%c0_4, %c0_5] : memref<128x128xbf16, #tpu.memory_space<vmem>>, vector<128x128xbf16>
    %cst = arith.constant dense<0.000000e+00> : vector<32x128xf32>
    %6 = tpu.matmul %4, %5, %cst {dimension_numbers = #tpu.dot_dimension_numbers<[1], [0], [0], [1], [0, 0, 1, 1], [], []>} : vector<32x128xbf16>, vector<128x128xbf16>, vector<32x128xf32> -> vector<32x128xf32>
    %7 = arith.addf %3, %6 : vector<32x128xf32>
    %c0_6 = arith.constant 0 : index
    %c0_7 = arith.constant 0 : index
    %8 = vector.load %arg5[%c0_6, %c0_7] : memref<32x128xf32, #tpu.memory_space<vmem>>, vector<32x128xf32>
    tpu.vector_store %arg5[%c0_6, %c0_7], %7 {strides = array<i32>} : memref<32x128xf32, #tpu.memory_space<vmem>>, vector<32x128xf32>,
    return
  }
  func.func @transform_0(%arg0: i32, %arg1: i32, %arg2: i32) -> (i32, i32) {
    %c0_i32 = arith.constant 0 : i32
    return %arg0, %arg2 : i32, i32
  }
  func.func @transform_1(%arg0: i32, %arg1: i32, %arg2: i32) -> (i32, i32) {
    %c0_i32 = arith.constant 0 : i32
    return %arg2, %arg1 : i32, i32
  }
  func.func @transform_2(%arg0: i32, %arg1: i32, %arg2: i32) -> (i32, i32) {
    %c0_i32 = arith.constant 0 : i32
    return %arg0, %arg1 : i32, i32
  }
}

module attributes {stable_mosaic.version = 11 : i64} {
  func.func @_matmul_kernel(%arg0: i32, %arg1: i32, %arg2: i32, %arg3: memref<32x128xbf16, #tpu.memory_space<vmem>>, %arg4: memref<128x128xbf16, #tpu.memory_space<vmem>>, %arg5: memref<32x128xf32, #tpu.memory_space<vmem>>) attributes {dimension_semantics = [#tpu.dimension_semantics<parallel>, #tpu.dimension_semantics<parallel>, #tpu.dimension_semantics<arbitrary>], iteration_bounds = array<i64: 1, 1, 1>, scalar_prefetch = 0 : i64, scratch_operands = 0 : i64, tpu.core_type = #tpu.core_type<tc>, window_params = [{transform_indices = @transform_0, window_bounds = array<i64: 32, 128>}, {transform_indices = @transform_1, window_bounds = array<i64: 128, 128>}, {transform_indices = @transform_2, window_bounds = array<i64: 32, 128>}]} {
    %c0_i32 = arith.constant 0 : i32
    %0 = arith.cmpi eq, %arg2, %c0_i32 : i32
    %1 = arith.extui %0 : i1 to i32
    %c0_i32_0 = arith.constant 0 : i32
    %2 = arith.cmpi ne, %1, %c0_i32_0 : i32
    scf.if %2 {
      %cst_8 = arith.constant 0.000000e+00 : f32
      %9 = vector.broadcast %cst_8 : f32 to vector<32x128xf32>
      %c0_9 = arith.constant 0 : index
      %c0_10 = arith.constant 0 : index
      %10 = vector.load %arg5[%c0_9, %c0_10] : memref<32x128xf32, #tpu.memory_space<vmem>>, vector<32x128xf32>
      tpu.vector_store %arg5[%c0_9, %c0_10], %9 {strides = array<i32>} : memref<32x128xf32, #tpu.memory_space<vmem>>, vector<32x128xf32>,
    } else {
    }
    %c0 = arith.constant 0 : index
    %c0_1 = arith.constant 0 : index
    %3 = vector.load %arg5[%c0, %c0_1] : memref<32x128xf32, #tpu.memory_space<vmem>>, vector<32x128xf32>
    %c0_2 = arith.constant 0 : index
    %c0_3 = arith.constant 0 : index
    %4 = vector.load %arg3[%c0_2, %c0_3] : memref<32x128xbf16, #tpu.memory_space<vmem>>, vector<32x128xbf16>
    %c0_4 = arith.constant 0 : index
    %c0_5 = arith.constant 0 : index
    %5 = vector.load %arg4[%c0_4, %c0_5] : memref<128x128xbf16, #tpu.memory_space<vmem>>, vector<128x128xbf16>
    %cst = arith.constant dense<0.000000e+00> : vector<32x128xf32>
    %6 = tpu.matmul %4, %5, %cst {dimension_numbers = #tpu.dot_dimension_numbers<[1], [0], [0], [1], [0, 0, 1, 1], [], []>} : vector<32x128xbf16>, vector<128x128xbf16>, vector<32x128xf32> -> vector<32x128xf32>
    %7 = arith.addf %3, %6 : vector<32x128xf32>
    %c0_6 = arith.constant 0 : index
    %c0_7 = arith.constant 0 : index
    %8 = vector.load %arg5[%c0_6, %c0_7] : memref<32x128xf32, #tpu.memory_space<vmem>>, vector<32x128xf32>
    tpu.vector_store %arg5[%c0_6, %c0_7], %7 {strides = array<i32>} : memref<32x128xf32, #tpu.memory_space<vmem>>, vector<32x128xf32>,
    return
  }
  func.func @transform_0(%arg0: i32, %arg1: i32, %arg2: i32) -> (i32, i32) {
    %c0_i32 = arith.constant 0 : i32
    return %arg0, %arg2 : i32, i32
  }
  func.func @transform_1(%arg0: i32, %arg1: i32, %arg2: i32) -> (i32, i32) {
    %c0_i32 = arith.constant 0 : i32
    return %arg2, %arg1 : i32, i32
  }
  func.func @transform_2(%arg0: i32, %arg1: i32, %arg2: i32) -> (i32, i32) {
    %c0_i32 = arith.constant 0 : i32
    return %arg0, %arg1 : i32, i32
  }
}

module attributes {stable_mosaic.version = 11 : i64} {
  func.func @_bn_act_kernel(%arg0: i32, %arg1: memref<32x128xf32, #tpu.memory_space<vmem>>, %arg2: memref<1x128xf32, #tpu.memory_space<vmem>>, %arg3: memref<1x128xf32, #tpu.memory_space<vmem>>, %arg4: memref<32x128xf32, #tpu.memory_space<vmem>>) attributes {dimension_semantics = [#tpu.dimension_semantics<parallel>], iteration_bounds = array<i64: 1>, scalar_prefetch = 0 : i64, scratch_operands = 0 : i64, tpu.core_type = #tpu.core_type<tc>, window_params = [{transform_indices = @transform_0, window_bounds = array<i64: 32, 128>}, {pipeline_mode = #tpu.pipeline_mode<synchronous>, transform_indices = @transform_1, window_bounds = array<i64: 1, 128>}, {pipeline_mode = #tpu.pipeline_mode<synchronous>, transform_indices = @transform_2, window_bounds = array<i64: 1, 128>}, {transform_indices = @transform_3, window_bounds = array<i64: 32, 128>}]} {
    %c0 = arith.constant 0 : index
    %c0_0 = arith.constant 0 : index
    %0 = vector.load %arg1[%c0, %c0_0] : memref<32x128xf32, #tpu.memory_space<vmem>>, vector<32x128xf32>
    %c0_1 = arith.constant 0 : index
    %c0_2 = arith.constant 0 : index
    %1 = vector.load %arg2[%c0_1, %c0_2] : memref<1x128xf32, #tpu.memory_space<vmem>>, vector<1x128xf32>
    %2 = vector.broadcast %1 : vector<1x128xf32> to vector<32x128xf32>
    %3 = arith.mulf %0, %2 : vector<32x128xf32>
    %c0_3 = arith.constant 0 : index
    %c0_4 = arith.constant 0 : index
    %4 = vector.load %arg3[%c0_3, %c0_4] : memref<1x128xf32, #tpu.memory_space<vmem>>, vector<1x128xf32>
    %5 = vector.broadcast %4 : vector<1x128xf32> to vector<32x128xf32>
    %6 = arith.addf %3, %5 : vector<32x128xf32>
    %c0_5 = arith.constant 0 : index
    %c0_6 = arith.constant 0 : index
    %7 = vector.load %arg4[%c0_5, %c0_6] : memref<32x128xf32, #tpu.memory_space<vmem>>, vector<32x128xf32>
    tpu.vector_store %arg4[%c0_5, %c0_6], %6 {strides = array<i32>} : memref<32x128xf32, #tpu.memory_space<vmem>>, vector<32x128xf32>,
    return
  }
  func.func @transform_0(%arg0: i32) -> (i32, i32) {
    %c0_i32 = arith.constant 0 : i32
    %c0_i32_0 = arith.constant 0 : i32
    return %arg0, %c0_i32 : i32, i32
  }
  func.func @transform_1(%arg0: i32) -> (i32, i32) {
    %c0_i32 = arith.constant 0 : i32
    %c0_i32_0 = arith.constant 0 : i32
    %c0_i32_1 = arith.constant 0 : i32
    return %c0_i32, %c0_i32_0 : i32, i32
  }
  func.func @transform_2(%arg0: i32) -> (i32, i32) {
    %c0_i32 = arith.constant 0 : i32
    %c0_i32_0 = arith.constant 0 : i32
    %c0_i32_1 = arith.constant 0 : i32
    return %c0_i32, %c0_i32_0 : i32, i32
  }
  func.func @transform_3(%arg0: i32) -> (i32, i32) {
    %c0_i32 = arith.constant 0 : i32
    %c0_i32_0 = arith.constant 0 : i32
    return %arg0, %c0_i32 : i32, i32
  }
}

module attributes {stable_mosaic.version = 11 : i64} {
  func.func @_bn_add_act_kernel(%arg0: i32, %arg1: memref<32x128xf32, #tpu.memory_space<vmem>>, %arg2: memref<1x128xf32, #tpu.memory_space<vmem>>, %arg3: memref<1x128xf32, #tpu.memory_space<vmem>>, %arg4: memref<32x128xf32, #tpu.memory_space<vmem>>, %arg5: memref<32x128xf32, #tpu.memory_space<vmem>>) attributes {dimension_semantics = [#tpu.dimension_semantics<parallel>], iteration_bounds = array<i64: 1>, scalar_prefetch = 0 : i64, scratch_operands = 0 : i64, tpu.core_type = #tpu.core_type<tc>, window_params = [{transform_indices = @transform_0, window_bounds = array<i64: 32, 128>}, {pipeline_mode = #tpu.pipeline_mode<synchronous>, transform_indices = @transform_1, window_bounds = array<i64: 1, 128>}, {pipeline_mode = #tpu.pipeline_mode<synchronous>, transform_indices = @transform_2, window_bounds = array<i64: 1, 128>}, {transform_indices = @transform_3, window_bounds = array<i64: 32, 128>}, {transform_indices = @transform_4, window_bounds = array<i64: 32, 128>}]} {
    %c0 = arith.constant 0 : index
    %c0_0 = arith.constant 0 : index
    %0 = vector.load %arg1[%c0, %c0_0] : memref<32x128xf32, #tpu.memory_space<vmem>>, vector<32x128xf32>
    %c0_1 = arith.constant 0 : index
    %c0_2 = arith.constant 0 : index
    %1 = vector.load %arg2[%c0_1, %c0_2] : memref<1x128xf32, #tpu.memory_space<vmem>>, vector<1x128xf32>
    %2 = vector.broadcast %1 : vector<1x128xf32> to vector<32x128xf32>
    %3 = arith.mulf %0, %2 : vector<32x128xf32>
    %c0_3 = arith.constant 0 : index
    %c0_4 = arith.constant 0 : index
    %4 = vector.load %arg3[%c0_3, %c0_4] : memref<1x128xf32, #tpu.memory_space<vmem>>, vector<1x128xf32>
    %5 = vector.broadcast %4 : vector<1x128xf32> to vector<32x128xf32>
    %6 = arith.addf %3, %5 : vector<32x128xf32>
    %c0_5 = arith.constant 0 : index
    %c0_6 = arith.constant 0 : index
    %7 = vector.load %arg4[%c0_5, %c0_6] : memref<32x128xf32, #tpu.memory_space<vmem>>, vector<32x128xf32>
    %8 = arith.addf %6, %7 : vector<32x128xf32>
    %cst = arith.constant 0.252819866 : f32
    %9 = vector.broadcast %cst : f32 to vector<32x128xf32>
    %10 = arith.mulf %9, %8 : vector<32x128xf32>
    %cst_7 = arith.constant 1.52474451 : f32
    %11 = vector.broadcast %cst_7 : f32 to vector<32x128xf32>
    %12 = arith.addf %10, %11 : vector<32x128xf32>
    %13 = arith.mulf %12, %8 : vector<32x128xf32>
    %cst_8 = arith.constant 3.06608081 : f32
    %14 = vector.broadcast %cst_8 : f32 to vector<32x128xf32>
    %15 = arith.addf %13, %14 : vector<32x128xf32>
    %16 = arith.mulf %15, %8 : vector<32x128xf32>
    %cst_9 = arith.constant 2.37539148 : f32
    %17 = vector.broadcast %cst_9 : f32 to vector<32x128xf32>
    %18 = arith.addf %16, %17 : vector<32x128xf32>
    %19 = arith.mulf %18, %8 : vector<32x128xf32>
    %cst_10 = arith.constant 0.616901636 : f32
    %20 = vector.broadcast %cst_10 : f32 to vector<32x128xf32>
    %21 = arith.addf %19, %20 : vector<32x128xf32>
    %22 = arith.mulf %21, %8 : vector<32x128xf32>
    %cst_11 = arith.constant 0.0299634803 : f32
    %23 = vector.broadcast %cst_11 : f32 to vector<32x128xf32>
    %24 = arith.addf %22, %23 : vector<32x128xf32>
    %25 = math.absf %8 : vector<32x128xf32>
    %cst_12 = arith.constant 0.348859817 : f32
    %26 = vector.broadcast %cst_12 : f32 to vector<32x128xf32>
    %27 = arith.mulf %26, %25 : vector<32x128xf32>
    %cst_13 = arith.constant 0.911110341 : f32
    %28 = vector.broadcast %cst_13 : f32 to vector<32x128xf32>
    %29 = arith.addf %27, %28 : vector<32x128xf32>
    %30 = arith.mulf %29, %25 : vector<32x128xf32>
    %cst_14 = arith.constant 4.40811777 : f32
    %31 = vector.broadcast %cst_14 : f32 to vector<32x128xf32>
    %32 = arith.addf %30, %31 : vector<32x128xf32>
    %33 = arith.mulf %32, %25 : vector<32x128xf32>
    %cst_15 = arith.constant 1.19160819 : f32
    %34 = vector.broadcast %cst_15 : f32 to vector<32x128xf32>
    %35 = arith.addf %33, %34 : vector<32x128xf32>
    %36 = arith.mulf %35, %25 : vector<32x128xf32>
    %cst_16 = arith.constant 1.000000e+00 : f32
    %37 = vector.broadcast %cst_16 : f32 to vector<32x128xf32>
    %38 = arith.addf %36, %37 : vector<32x128xf32>
    %39 = tpu.reciprocal %38 {approx = true} : vector<32x128xf32> -> vector<32x128xf32>
    %40 = arith.mulf %24, %39 : vector<32x128xf32>
    %c0_17 = arith.constant 0 : index
    %c0_18 = arith.constant 0 : index
    %41 = vector.load %arg5[%c0_17, %c0_18] : memref<32x128xf32, #tpu.memory_space<vmem>>, vector<32x128xf32>
    tpu.vector_store %arg5[%c0_17, %c0_18], %40 {strides = array<i32>} : memref<32x128xf32, #tpu.memory_space<vmem>>, vector<32x128xf32>,
    return
  }
  func.func @transform_0(%arg0: i32) -> (i32, i32) {
    %c0_i32 = arith.constant 0 : i32
    %c0_i32_0 = arith.constant 0 : i32
    return %arg0, %c0_i32 : i32, i32
  }
  func.func @transform_1(%arg0: i32) -> (i32, i32) {
    %c0_i32 = arith.constant 0 : i32
    %c0_i32_0 = arith.constant 0 : i32
    %c0_i32_1 = arith.constant 0 : i32
    return %c0_i32, %c0_i32_0 : i32, i32
  }
  func.func @transform_2(%arg0: i32) -> (i32, i32) {
    %c0_i32 = arith.constant 0 : i32
    %c0_i32_0 = arith.constant 0 : i32
    %c0_i32_1 = arith.constant 0 : i32
    return %c0_i32, %c0_i32_0 : i32, i32
  }
  func.func @transform_3(%arg0: i32) -> (i32, i32) {
    %c0_i32 = arith.constant 0 : i32
    %c0_i32_0 = arith.constant 0 : i32
    return %arg0, %c0_i32 : i32, i32
  }
  func.func @transform_4(%arg0: i32) -> (i32, i32) {
    %c0_i32 = arith.constant 0 : i32
    %c0_i32_0 = arith.constant 0 : i32
    return %arg0, %c0_i32 : i32, i32
  }
}

module attributes {stable_mosaic.version = 11 : i64} {
  func.func @_matmul_kernel(%arg0: i32, %arg1: i32, %arg2: i32, %arg3: memref<16x128xbf16, #tpu.memory_space<vmem>>, %arg4: memref<128x256xbf16, #tpu.memory_space<vmem>>, %arg5: memref<16x256xf32, #tpu.memory_space<vmem>>) attributes {dimension_semantics = [#tpu.dimension_semantics<parallel>, #tpu.dimension_semantics<parallel>, #tpu.dimension_semantics<arbitrary>], iteration_bounds = array<i64: 1, 1, 9>, scalar_prefetch = 0 : i64, scratch_operands = 0 : i64, tpu.core_type = #tpu.core_type<tc>, window_params = [{transform_indices = @transform_0, window_bounds = array<i64: 16, 128>}, {transform_indices = @transform_1, window_bounds = array<i64: 128, 256>}, {transform_indices = @transform_2, window_bounds = array<i64: 16, 256>}]} {
    %c0_i32 = arith.constant 0 : i32
    %0 = arith.cmpi eq, %arg2, %c0_i32 : i32
    %1 = arith.extui %0 : i1 to i32
    %c0_i32_0 = arith.constant 0 : i32
    %2 = arith.cmpi ne, %1, %c0_i32_0 : i32
    scf.if %2 {
      %cst_8 = arith.constant 0.000000e+00 : f32
      %9 = vector.broadcast %cst_8 : f32 to vector<16x256xf32>
      %c0_9 = arith.constant 0 : index
      %c0_10 = arith.constant 0 : index
      %10 = vector.load %arg5[%c0_9, %c0_10] : memref<16x256xf32, #tpu.memory_space<vmem>>, vector<16x256xf32>
      tpu.vector_store %arg5[%c0_9, %c0_10], %9 {strides = array<i32>} : memref<16x256xf32, #tpu.memory_space<vmem>>, vector<16x256xf32>,
    } else {
    }
    %c0 = arith.constant 0 : index
    %c0_1 = arith.constant 0 : index
    %3 = vector.load %arg5[%c0, %c0_1] : memref<16x256xf32, #tpu.memory_space<vmem>>, vector<16x256xf32>
    %c0_2 = arith.constant 0 : index
    %c0_3 = arith.constant 0 : index
    %4 = vector.load %arg3[%c0_2, %c0_3] : memref<16x128xbf16, #tpu.memory_space<vmem>>, vector<16x128xbf16>
    %c0_4 = arith.constant 0 : index
    %c0_5 = arith.constant 0 : index
    %5 = vector.load %arg4[%c0_4, %c0_5] : memref<128x256xbf16, #tpu.memory_space<vmem>>, vector<128x256xbf16>
    %cst = arith.constant dense<0.000000e+00> : vector<16x256xf32>
    %6 = tpu.matmul %4, %5, %cst {dimension_numbers = #tpu.dot_dimension_numbers<[1], [0], [0], [1], [0, 0, 1, 1], [], []>} : vector<16x128xbf16>, vector<128x256xbf16>, vector<16x256xf32> -> vector<16x256xf32>
    %7 = arith.addf %3, %6 : vector<16x256xf32>
    %c0_6 = arith.constant 0 : index
    %c0_7 = arith.constant 0 : index
    %8 = vector.load %arg5[%c0_6, %c0_7] : memref<16x256xf32, #tpu.memory_space<vmem>>, vector<16x256xf32>
    tpu.vector_store %arg5[%c0_6, %c0_7], %7 {strides = array<i32>} : memref<16x256xf32, #tpu.memory_space<vmem>>, vector<16x256xf32>,
    return
  }
  func.func @transform_0(%arg0: i32, %arg1: i32, %arg2: i32) -> (i32, i32) {
    %c0_i32 = arith.constant 0 : i32
    return %arg0, %arg2 : i32, i32
  }
  func.func @transform_1(%arg0: i32, %arg1: i32, %arg2: i32) -> (i32, i32) {
    %c0_i32 = arith.constant 0 : i32
    return %arg2, %arg1 : i32, i32
  }
  func.func @transform_2(%arg0: i32, %arg1: i32, %arg2: i32) -> (i32, i32) {
    %c0_i32 = arith.constant 0 : i32
    return %arg0, %arg1 : i32, i32
  }
}

module attributes {stable_mosaic.version = 11 : i64} {
  func.func @_bn_act_kernel(%arg0: i32, %arg1: memref<8x256xf32, #tpu.memory_space<vmem>>, %arg2: memref<1x256xf32, #tpu.memory_space<vmem>>, %arg3: memref<1x256xf32, #tpu.memory_space<vmem>>, %arg4: memref<8x256xf32, #tpu.memory_space<vmem>>) attributes {dimension_semantics = [#tpu.dimension_semantics<parallel>], iteration_bounds = array<i64: 1>, scalar_prefetch = 0 : i64, scratch_operands = 0 : i64, tpu.core_type = #tpu.core_type<tc>, window_params = [{transform_indices = @transform_0, window_bounds = array<i64: 8, 256>}, {pipeline_mode = #tpu.pipeline_mode<synchronous>, transform_indices = @transform_1, window_bounds = array<i64: 1, 256>}, {pipeline_mode = #tpu.pipeline_mode<synchronous>, transform_indices = @transform_2, window_bounds = array<i64: 1, 256>}, {transform_indices = @transform_3, window_bounds = array<i64: 8, 256>}]} {
    %c0 = arith.constant 0 : index
    %c0_0 = arith.constant 0 : index
    %0 = vector.load %arg1[%c0, %c0_0] : memref<8x256xf32, #tpu.memory_space<vmem>>, vector<8x256xf32>
    %c0_1 = arith.constant 0 : index
    %c0_2 = arith.constant 0 : index
    %1 = vector.load %arg2[%c0_1, %c0_2] : memref<1x256xf32, #tpu.memory_space<vmem>>, vector<1x256xf32>
    %2 = vector.broadcast %1 : vector<1x256xf32> to vector<8x256xf32>
    %3 = arith.mulf %0, %2 : vector<8x256xf32>
    %c0_3 = arith.constant 0 : index
    %c0_4 = arith.constant 0 : index
    %4 = vector.load %arg3[%c0_3, %c0_4] : memref<1x256xf32, #tpu.memory_space<vmem>>, vector<1x256xf32>
    %5 = vector.broadcast %4 : vector<1x256xf32> to vector<8x256xf32>
    %6 = arith.addf %3, %5 : vector<8x256xf32>
    %cst = arith.constant 0.252819866 : f32
    %7 = vector.broadcast %cst : f32 to vector<8x256xf32>
    %8 = arith.mulf %7, %6 : vector<8x256xf32>
    %cst_5 = arith.constant 1.52474451 : f32
    %9 = vector.broadcast %cst_5 : f32 to vector<8x256xf32>
    %10 = arith.addf %8, %9 : vector<8x256xf32>
    %11 = arith.mulf %10, %6 : vector<8x256xf32>
    %cst_6 = arith.constant 3.06608081 : f32
    %12 = vector.broadcast %cst_6 : f32 to vector<8x256xf32>
    %13 = arith.addf %11, %12 : vector<8x256xf32>
    %14 = arith.mulf %13, %6 : vector<8x256xf32>
    %cst_7 = arith.constant 2.37539148 : f32
    %15 = vector.broadcast %cst_7 : f32 to vector<8x256xf32>
    %16 = arith.addf %14, %15 : vector<8x256xf32>
    %17 = arith.mulf %16, %6 : vector<8x256xf32>
    %cst_8 = arith.constant 0.616901636 : f32
    %18 = vector.broadcast %cst_8 : f32 to vector<8x256xf32>
    %19 = arith.addf %17, %18 : vector<8x256xf32>
    %20 = arith.mulf %19, %6 : vector<8x256xf32>
    %cst_9 = arith.constant 0.0299634803 : f32
    %21 = vector.broadcast %cst_9 : f32 to vector<8x256xf32>
    %22 = arith.addf %20, %21 : vector<8x256xf32>
    %23 = math.absf %6 : vector<8x256xf32>
    %cst_10 = arith.constant 0.348859817 : f32
    %24 = vector.broadcast %cst_10 : f32 to vector<8x256xf32>
    %25 = arith.mulf %24, %23 : vector<8x256xf32>
    %cst_11 = arith.constant 0.911110341 : f32
    %26 = vector.broadcast %cst_11 : f32 to vector<8x256xf32>
    %27 = arith.addf %25, %26 : vector<8x256xf32>
    %28 = arith.mulf %27, %23 : vector<8x256xf32>
    %cst_12 = arith.constant 4.40811777 : f32
    %29 = vector.broadcast %cst_12 : f32 to vector<8x256xf32>
    %30 = arith.addf %28, %29 : vector<8x256xf32>
    %31 = arith.mulf %30, %23 : vector<8x256xf32>
    %cst_13 = arith.constant 1.19160819 : f32
    %32 = vector.broadcast %cst_13 : f32 to vector<8x256xf32>
    %33 = arith.addf %31, %32 : vector<8x256xf32>
    %34 = arith.mulf %33, %23 : vector<8x256xf32>
    %cst_14 = arith.constant 1.000000e+00 : f32
    %35 = vector.broadcast %cst_14 : f32 to vector<8x256xf32>
    %36 = arith.addf %34, %35 : vector<8x256xf32>
    %37 = tpu.reciprocal %36 {approx = true} : vector<8x256xf32> -> vector<8x256xf32>
    %38 = arith.mulf %22, %37 : vector<8x256xf32>
    %c0_15 = arith.constant 0 : index
    %c0_16 = arith.constant 0 : index
    %39 = vector.load %arg4[%c0_15, %c0_16] : memref<8x256xf32, #tpu.memory_space<vmem>>, vector<8x256xf32>
    tpu.vector_store %arg4[%c0_15, %c0_16], %38 {strides = array<i32>} : memref<8x256xf32, #tpu.memory_space<vmem>>, vector<8x256xf32>,
    return
  }
  func.func @transform_0(%arg0: i32) -> (i32, i32) {
    %c0_i32 = arith.constant 0 : i32
    %c0_i32_0 = arith.constant 0 : i32
    return %arg0, %c0_i32 : i32, i32
  }
  func.func @transform_1(%arg0: i32) -> (i32, i32) {
    %c0_i32 = arith.constant 0 : i32
    %c0_i32_0 = arith.constant 0 : i32
    %c0_i32_1 = arith.constant 0 : i32
    return %c0_i32, %c0_i32_0 : i32, i32
  }
  func.func @transform_2(%arg0: i32) -> (i32, i32) {
    %c0_i32 = arith.constant 0 : i32
    %c0_i32_0 = arith.constant 0 : i32
    %c0_i32_1 = arith.constant 0 : i32
    return %c0_i32, %c0_i32_0 : i32, i32
  }
  func.func @transform_3(%arg0: i32) -> (i32, i32) {
    %c0_i32 = arith.constant 0 : i32
    %c0_i32_0 = arith.constant 0 : i32
    return %arg0, %c0_i32 : i32, i32
  }
}

module attributes {stable_mosaic.version = 11 : i64} {
  func.func @_matmul_kernel(%arg0: i32, %arg1: i32, %arg2: i32, %arg3: memref<16x256xbf16, #tpu.memory_space<vmem>>, %arg4: memref<256x256xbf16, #tpu.memory_space<vmem>>, %arg5: memref<16x256xf32, #tpu.memory_space<vmem>>) attributes {dimension_semantics = [#tpu.dimension_semantics<parallel>, #tpu.dimension_semantics<parallel>, #tpu.dimension_semantics<arbitrary>], iteration_bounds = array<i64: 1, 1, 9>, scalar_prefetch = 0 : i64, scratch_operands = 0 : i64, tpu.core_type = #tpu.core_type<tc>, window_params = [{transform_indices = @transform_0, window_bounds = array<i64: 16, 256>}, {transform_indices = @transform_1, window_bounds = array<i64: 256, 256>}, {transform_indices = @transform_2, window_bounds = array<i64: 16, 256>}]} {
    %c0_i32 = arith.constant 0 : i32
    %0 = arith.cmpi eq, %arg2, %c0_i32 : i32
    %1 = arith.extui %0 : i1 to i32
    %c0_i32_0 = arith.constant 0 : i32
    %2 = arith.cmpi ne, %1, %c0_i32_0 : i32
    scf.if %2 {
      %cst_8 = arith.constant 0.000000e+00 : f32
      %9 = vector.broadcast %cst_8 : f32 to vector<16x256xf32>
      %c0_9 = arith.constant 0 : index
      %c0_10 = arith.constant 0 : index
      %10 = vector.load %arg5[%c0_9, %c0_10] : memref<16x256xf32, #tpu.memory_space<vmem>>, vector<16x256xf32>
      tpu.vector_store %arg5[%c0_9, %c0_10], %9 {strides = array<i32>} : memref<16x256xf32, #tpu.memory_space<vmem>>, vector<16x256xf32>,
    } else {
    }
    %c0 = arith.constant 0 : index
    %c0_1 = arith.constant 0 : index
    %3 = vector.load %arg5[%c0, %c0_1] : memref<16x256xf32, #tpu.memory_space<vmem>>, vector<16x256xf32>
    %c0_2 = arith.constant 0 : index
    %c0_3 = arith.constant 0 : index
    %4 = vector.load %arg3[%c0_2, %c0_3] : memref<16x256xbf16, #tpu.memory_space<vmem>>, vector<16x256xbf16>
    %c0_4 = arith.constant 0 : index
    %c0_5 = arith.constant 0 : index
    %5 = vector.load %arg4[%c0_4, %c0_5] : memref<256x256xbf16, #tpu.memory_space<vmem>>, vector<256x256xbf16>
    %cst = arith.constant dense<0.000000e+00> : vector<16x256xf32>
    %6 = tpu.matmul %4, %5, %cst {dimension_numbers = #tpu.dot_dimension_numbers<[1], [0], [0], [1], [0, 0, 1, 1], [], []>} : vector<16x256xbf16>, vector<256x256xbf16>, vector<16x256xf32> -> vector<16x256xf32>
    %7 = arith.addf %3, %6 : vector<16x256xf32>
    %c0_6 = arith.constant 0 : index
    %c0_7 = arith.constant 0 : index
    %8 = vector.load %arg5[%c0_6, %c0_7] : memref<16x256xf32, #tpu.memory_space<vmem>>, vector<16x256xf32>
    tpu.vector_store %arg5[%c0_6, %c0_7], %7 {strides = array<i32>} : memref<16x256xf32, #tpu.memory_space<vmem>>, vector<16x256xf32>,
    return
  }
  func.func @transform_0(%arg0: i32, %arg1: i32, %arg2: i32) -> (i32, i32) {
    %c0_i32 = arith.constant 0 : i32
    return %arg0, %arg2 : i32, i32
  }
  func.func @transform_1(%arg0: i32, %arg1: i32, %arg2: i32) -> (i32, i32) {
    %c0_i32 = arith.constant 0 : i32
    return %arg2, %arg1 : i32, i32
  }
  func.func @transform_2(%arg0: i32, %arg1: i32, %arg2: i32) -> (i32, i32) {
    %c0_i32 = arith.constant 0 : i32
    return %arg0, %arg1 : i32, i32
  }
}

module attributes {stable_mosaic.version = 11 : i64} {
  func.func @_bn_act_kernel(%arg0: i32, %arg1: memref<8x256xf32, #tpu.memory_space<vmem>>, %arg2: memref<1x256xf32, #tpu.memory_space<vmem>>, %arg3: memref<1x256xf32, #tpu.memory_space<vmem>>, %arg4: memref<8x256xf32, #tpu.memory_space<vmem>>) attributes {dimension_semantics = [#tpu.dimension_semantics<parallel>], iteration_bounds = array<i64: 1>, scalar_prefetch = 0 : i64, scratch_operands = 0 : i64, tpu.core_type = #tpu.core_type<tc>, window_params = [{transform_indices = @transform_0, window_bounds = array<i64: 8, 256>}, {pipeline_mode = #tpu.pipeline_mode<synchronous>, transform_indices = @transform_1, window_bounds = array<i64: 1, 256>}, {pipeline_mode = #tpu.pipeline_mode<synchronous>, transform_indices = @transform_2, window_bounds = array<i64: 1, 256>}, {transform_indices = @transform_3, window_bounds = array<i64: 8, 256>}]} {
    %c0 = arith.constant 0 : index
    %c0_0 = arith.constant 0 : index
    %0 = vector.load %arg1[%c0, %c0_0] : memref<8x256xf32, #tpu.memory_space<vmem>>, vector<8x256xf32>
    %c0_1 = arith.constant 0 : index
    %c0_2 = arith.constant 0 : index
    %1 = vector.load %arg2[%c0_1, %c0_2] : memref<1x256xf32, #tpu.memory_space<vmem>>, vector<1x256xf32>
    %2 = vector.broadcast %1 : vector<1x256xf32> to vector<8x256xf32>
    %3 = arith.mulf %0, %2 : vector<8x256xf32>
    %c0_3 = arith.constant 0 : index
    %c0_4 = arith.constant 0 : index
    %4 = vector.load %arg3[%c0_3, %c0_4] : memref<1x256xf32, #tpu.memory_space<vmem>>, vector<1x256xf32>
    %5 = vector.broadcast %4 : vector<1x256xf32> to vector<8x256xf32>
    %6 = arith.addf %3, %5 : vector<8x256xf32>
    %c0_5 = arith.constant 0 : index
    %c0_6 = arith.constant 0 : index
    %7 = vector.load %arg4[%c0_5, %c0_6] : memref<8x256xf32, #tpu.memory_space<vmem>>, vector<8x256xf32>
    tpu.vector_store %arg4[%c0_5, %c0_6], %6 {strides = array<i32>} : memref<8x256xf32, #tpu.memory_space<vmem>>, vector<8x256xf32>,
    return
  }
  func.func @transform_0(%arg0: i32) -> (i32, i32) {
    %c0_i32 = arith.constant 0 : i32
    %c0_i32_0 = arith.constant 0 : i32
    return %arg0, %c0_i32 : i32, i32
  }
  func.func @transform_1(%arg0: i32) -> (i32, i32) {
    %c0_i32 = arith.constant 0 : i32
    %c0_i32_0 = arith.constant 0 : i32
    %c0_i32_1 = arith.constant 0 : i32
    return %c0_i32, %c0_i32_0 : i32, i32
  }
  func.func @transform_2(%arg0: i32) -> (i32, i32) {
    %c0_i32 = arith.constant 0 : i32
    %c0_i32_0 = arith.constant 0 : i32
    %c0_i32_1 = arith.constant 0 : i32
    return %c0_i32, %c0_i32_0 : i32, i32
  }
  func.func @transform_3(%arg0: i32) -> (i32, i32) {
    %c0_i32 = arith.constant 0 : i32
    %c0_i32_0 = arith.constant 0 : i32
    return %arg0, %c0_i32 : i32, i32
  }
}

module attributes {stable_mosaic.version = 11 : i64} {
  func.func @_matmul_kernel(%arg0: i32, %arg1: i32, %arg2: i32, %arg3: memref<16x128xbf16, #tpu.memory_space<vmem>>, %arg4: memref<128x256xbf16, #tpu.memory_space<vmem>>, %arg5: memref<16x256xf32, #tpu.memory_space<vmem>>) attributes {dimension_semantics = [#tpu.dimension_semantics<parallel>, #tpu.dimension_semantics<parallel>, #tpu.dimension_semantics<arbitrary>], iteration_bounds = array<i64: 1, 1, 1>, scalar_prefetch = 0 : i64, scratch_operands = 0 : i64, tpu.core_type = #tpu.core_type<tc>, window_params = [{transform_indices = @transform_0, window_bounds = array<i64: 16, 128>}, {transform_indices = @transform_1, window_bounds = array<i64: 128, 256>}, {transform_indices = @transform_2, window_bounds = array<i64: 16, 256>}]} {
    %c0_i32 = arith.constant 0 : i32
    %0 = arith.cmpi eq, %arg2, %c0_i32 : i32
    %1 = arith.extui %0 : i1 to i32
    %c0_i32_0 = arith.constant 0 : i32
    %2 = arith.cmpi ne, %1, %c0_i32_0 : i32
    scf.if %2 {
      %cst_8 = arith.constant 0.000000e+00 : f32
      %9 = vector.broadcast %cst_8 : f32 to vector<16x256xf32>
      %c0_9 = arith.constant 0 : index
      %c0_10 = arith.constant 0 : index
      %10 = vector.load %arg5[%c0_9, %c0_10] : memref<16x256xf32, #tpu.memory_space<vmem>>, vector<16x256xf32>
      tpu.vector_store %arg5[%c0_9, %c0_10], %9 {strides = array<i32>} : memref<16x256xf32, #tpu.memory_space<vmem>>, vector<16x256xf32>,
    } else {
    }
    %c0 = arith.constant 0 : index
    %c0_1 = arith.constant 0 : index
    %3 = vector.load %arg5[%c0, %c0_1] : memref<16x256xf32, #tpu.memory_space<vmem>>, vector<16x256xf32>
    %c0_2 = arith.constant 0 : index
    %c0_3 = arith.constant 0 : index
    %4 = vector.load %arg3[%c0_2, %c0_3] : memref<16x128xbf16, #tpu.memory_space<vmem>>, vector<16x128xbf16>
    %c0_4 = arith.constant 0 : index
    %c0_5 = arith.constant 0 : index
    %5 = vector.load %arg4[%c0_4, %c0_5] : memref<128x256xbf16, #tpu.memory_space<vmem>>, vector<128x256xbf16>
    %cst = arith.constant dense<0.000000e+00> : vector<16x256xf32>
    %6 = tpu.matmul %4, %5, %cst {dimension_numbers = #tpu.dot_dimension_numbers<[1], [0], [0], [1], [0, 0, 1, 1], [], []>} : vector<16x128xbf16>, vector<128x256xbf16>, vector<16x256xf32> -> vector<16x256xf32>
    %7 = arith.addf %3, %6 : vector<16x256xf32>
    %c0_6 = arith.constant 0 : index
    %c0_7 = arith.constant 0 : index
    %8 = vector.load %arg5[%c0_6, %c0_7] : memref<16x256xf32, #tpu.memory_space<vmem>>, vector<16x256xf32>
    tpu.vector_store %arg5[%c0_6, %c0_7], %7 {strides = array<i32>} : memref<16x256xf32, #tpu.memory_space<vmem>>, vector<16x256xf32>,
    return
  }
  func.func @transform_0(%arg0: i32, %arg1: i32, %arg2: i32) -> (i32, i32) {
    %c0_i32 = arith.constant 0 : i32
    return %arg0, %arg2 : i32, i32
  }
  func.func @transform_1(%arg0: i32, %arg1: i32, %arg2: i32) -> (i32, i32) {
    %c0_i32 = arith.constant 0 : i32
    return %arg2, %arg1 : i32, i32
  }
  func.func @transform_2(%arg0: i32, %arg1: i32, %arg2: i32) -> (i32, i32) {
    %c0_i32 = arith.constant 0 : i32
    return %arg0, %arg1 : i32, i32
  }
}

module attributes {stable_mosaic.version = 11 : i64} {
  func.func @_bn_add_act_kernel(%arg0: i32, %arg1: memref<8x256xf32, #tpu.memory_space<vmem>>, %arg2: memref<1x256xf32, #tpu.memory_space<vmem>>, %arg3: memref<1x256xf32, #tpu.memory_space<vmem>>, %arg4: memref<8x256xf32, #tpu.memory_space<vmem>>, %arg5: memref<8x256xf32, #tpu.memory_space<vmem>>) attributes {dimension_semantics = [#tpu.dimension_semantics<parallel>], iteration_bounds = array<i64: 1>, scalar_prefetch = 0 : i64, scratch_operands = 0 : i64, tpu.core_type = #tpu.core_type<tc>, window_params = [{transform_indices = @transform_0, window_bounds = array<i64: 8, 256>}, {pipeline_mode = #tpu.pipeline_mode<synchronous>, transform_indices = @transform_1, window_bounds = array<i64: 1, 256>}, {pipeline_mode = #tpu.pipeline_mode<synchronous>, transform_indices = @transform_2, window_bounds = array<i64: 1, 256>}, {transform_indices = @transform_3, window_bounds = array<i64: 8, 256>}, {transform_indices = @transform_4, window_bounds = array<i64: 8, 256>}]} {
    %c0 = arith.constant 0 : index
    %c0_0 = arith.constant 0 : index
    %0 = vector.load %arg1[%c0, %c0_0] : memref<8x256xf32, #tpu.memory_space<vmem>>, vector<8x256xf32>
    %c0_1 = arith.constant 0 : index
    %c0_2 = arith.constant 0 : index
    %1 = vector.load %arg2[%c0_1, %c0_2] : memref<1x256xf32, #tpu.memory_space<vmem>>, vector<1x256xf32>
    %2 = vector.broadcast %1 : vector<1x256xf32> to vector<8x256xf32>
    %3 = arith.mulf %0, %2 : vector<8x256xf32>
    %c0_3 = arith.constant 0 : index
    %c0_4 = arith.constant 0 : index
    %4 = vector.load %arg3[%c0_3, %c0_4] : memref<1x256xf32, #tpu.memory_space<vmem>>, vector<1x256xf32>
    %5 = vector.broadcast %4 : vector<1x256xf32> to vector<8x256xf32>
    %6 = arith.addf %3, %5 : vector<8x256xf32>
    %c0_5 = arith.constant 0 : index
    %c0_6 = arith.constant 0 : index
    %7 = vector.load %arg4[%c0_5, %c0_6] : memref<8x256xf32, #tpu.memory_space<vmem>>, vector<8x256xf32>
    %8 = arith.addf %6, %7 : vector<8x256xf32>
    %cst = arith.constant 0.252819866 : f32
    %9 = vector.broadcast %cst : f32 to vector<8x256xf32>
    %10 = arith.mulf %9, %8 : vector<8x256xf32>
    %cst_7 = arith.constant 1.52474451 : f32
    %11 = vector.broadcast %cst_7 : f32 to vector<8x256xf32>
    %12 = arith.addf %10, %11 : vector<8x256xf32>
    %13 = arith.mulf %12, %8 : vector<8x256xf32>
    %cst_8 = arith.constant 3.06608081 : f32
    %14 = vector.broadcast %cst_8 : f32 to vector<8x256xf32>
    %15 = arith.addf %13, %14 : vector<8x256xf32>
    %16 = arith.mulf %15, %8 : vector<8x256xf32>
    %cst_9 = arith.constant 2.37539148 : f32
    %17 = vector.broadcast %cst_9 : f32 to vector<8x256xf32>
    %18 = arith.addf %16, %17 : vector<8x256xf32>
    %19 = arith.mulf %18, %8 : vector<8x256xf32>
    %cst_10 = arith.constant 0.616901636 : f32
    %20 = vector.broadcast %cst_10 : f32 to vector<8x256xf32>
    %21 = arith.addf %19, %20 : vector<8x256xf32>
    %22 = arith.mulf %21, %8 : vector<8x256xf32>
    %cst_11 = arith.constant 0.0299634803 : f32
    %23 = vector.broadcast %cst_11 : f32 to vector<8x256xf32>
    %24 = arith.addf %22, %23 : vector<8x256xf32>
    %25 = math.absf %8 : vector<8x256xf32>
    %cst_12 = arith.constant 0.348859817 : f32
    %26 = vector.broadcast %cst_12 : f32 to vector<8x256xf32>
    %27 = arith.mulf %26, %25 : vector<8x256xf32>
    %cst_13 = arith.constant 0.911110341 : f32
    %28 = vector.broadcast %cst_13 : f32 to vector<8x256xf32>
    %29 = arith.addf %27, %28 : vector<8x256xf32>
    %30 = arith.mulf %29, %25 : vector<8x256xf32>
    %cst_14 = arith.constant 4.40811777 : f32
    %31 = vector.broadcast %cst_14 : f32 to vector<8x256xf32>
    %32 = arith.addf %30, %31 : vector<8x256xf32>
    %33 = arith.mulf %32, %25 : vector<8x256xf32>
    %cst_15 = arith.constant 1.19160819 : f32
    %34 = vector.broadcast %cst_15 : f32 to vector<8x256xf32>
    %35 = arith.addf %33, %34 : vector<8x256xf32>
    %36 = arith.mulf %35, %25 : vector<8x256xf32>
    %cst_16 = arith.constant 1.000000e+00 : f32
    %37 = vector.broadcast %cst_16 : f32 to vector<8x256xf32>
    %38 = arith.addf %36, %37 : vector<8x256xf32>
    %39 = tpu.reciprocal %38 {approx = true} : vector<8x256xf32> -> vector<8x256xf32>
    %40 = arith.mulf %24, %39 : vector<8x256xf32>
    %c0_17 = arith.constant 0 : index
    %c0_18 = arith.constant 0 : index
    %41 = vector.load %arg5[%c0_17, %c0_18] : memref<8x256xf32, #tpu.memory_space<vmem>>, vector<8x256xf32>
    tpu.vector_store %arg5[%c0_17, %c0_18], %40 {strides = array<i32>} : memref<8x256xf32, #tpu.memory_space<vmem>>, vector<8x256xf32>,
    return
  }
  func.func @transform_0(%arg0: i32) -> (i32, i32) {
    %c0_i32 = arith.constant 0 : i32
    %c0_i32_0 = arith.constant 0 : i32
    return %arg0, %c0_i32 : i32, i32
  }
  func.func @transform_1(%arg0: i32) -> (i32, i32) {
    %c0_i32 = arith.constant 0 : i32
    %c0_i32_0 = arith.constant 0 : i32
    %c0_i32_1 = arith.constant 0 : i32
    return %c0_i32, %c0_i32_0 : i32, i32
  }
  func.func @transform_2(%arg0: i32) -> (i32, i32) {
    %c0_i32 = arith.constant 0 : i32
    %c0_i32_0 = arith.constant 0 : i32
    %c0_i32_1 = arith.constant 0 : i32
    return %c0_i32, %c0_i32_0 : i32, i32
  }
  func.func @transform_3(%arg0: i32) -> (i32, i32) {
    %c0_i32 = arith.constant 0 : i32
    %c0_i32_0 = arith.constant 0 : i32
    return %arg0, %c0_i32 : i32, i32
  }
  func.func @transform_4(%arg0: i32) -> (i32, i32) {
    %c0_i32 = arith.constant 0 : i32
    %c0_i32_0 = arith.constant 0 : i32
    return %arg0, %c0_i32 : i32, i32
  }
}

module attributes {stable_mosaic.version = 11 : i64} {
  func.func @_matmul_kernel(%arg0: i32, %arg1: i32, %arg2: i32, %arg3: memref<16x256xbf16, #tpu.memory_space<vmem>>, %arg4: memref<256x512xbf16, #tpu.memory_space<vmem>>, %arg5: memref<16x512xf32, #tpu.memory_space<vmem>>) attributes {dimension_semantics = [#tpu.dimension_semantics<parallel>, #tpu.dimension_semantics<parallel>, #tpu.dimension_semantics<arbitrary>], iteration_bounds = array<i64: 1, 1, 1>, scalar_prefetch = 0 : i64, scratch_operands = 0 : i64, tpu.core_type = #tpu.core_type<tc>, window_params = [{transform_indices = @transform_0, window_bounds = array<i64: 16, 256>}, {transform_indices = @transform_1, window_bounds = array<i64: 256, 512>}, {transform_indices = @transform_2, window_bounds = array<i64: 16, 512>}]} {
    %c0_i32 = arith.constant 0 : i32
    %0 = arith.cmpi eq, %arg2, %c0_i32 : i32
    %1 = arith.extui %0 : i1 to i32
    %c0_i32_0 = arith.constant 0 : i32
    %2 = arith.cmpi ne, %1, %c0_i32_0 : i32
    scf.if %2 {
      %cst_8 = arith.constant 0.000000e+00 : f32
      %9 = vector.broadcast %cst_8 : f32 to vector<16x512xf32>
      %c0_9 = arith.constant 0 : index
      %c0_10 = arith.constant 0 : index
      %10 = vector.load %arg5[%c0_9, %c0_10] : memref<16x512xf32, #tpu.memory_space<vmem>>, vector<16x512xf32>
      tpu.vector_store %arg5[%c0_9, %c0_10], %9 {strides = array<i32>} : memref<16x512xf32, #tpu.memory_space<vmem>>, vector<16x512xf32>,
    } else {
    }
    %c0 = arith.constant 0 : index
    %c0_1 = arith.constant 0 : index
    %3 = vector.load %arg5[%c0, %c0_1] : memref<16x512xf32, #tpu.memory_space<vmem>>, vector<16x512xf32>
    %c0_2 = arith.constant 0 : index
    %c0_3 = arith.constant 0 : index
    %4 = vector.load %arg3[%c0_2, %c0_3] : memref<16x256xbf16, #tpu.memory_space<vmem>>, vector<16x256xbf16>
    %c0_4 = arith.constant 0 : index
    %c0_5 = arith.constant 0 : index
    %5 = vector.load %arg4[%c0_4, %c0_5] : memref<256x512xbf16, #tpu.memory_space<vmem>>, vector<256x512xbf16>
    %cst = arith.constant dense<0.000000e+00> : vector<16x512xf32>
    %6 = tpu.matmul %4, %5, %cst {dimension_numbers = #tpu.dot_dimension_numbers<[1], [0], [0], [1], [0, 0, 1, 1], [], []>} : vector<16x256xbf16>, vector<256x512xbf16>, vector<16x512xf32> -> vector<16x512xf32>
    %7 = arith.addf %3, %6 : vector<16x512xf32>
    %c0_6 = arith.constant 0 : index
    %c0_7 = arith.constant 0 : index
    %8 = vector.load %arg5[%c0_6, %c0_7] : memref<16x512xf32, #tpu.memory_space<vmem>>, vector<16x512xf32>
    tpu.vector_store %arg5[%c0_6, %c0_7], %7 {strides = array<i32>} : memref<16x512xf32, #tpu.memory_space<vmem>>, vector<16x512xf32>,
    return
  }
  func.func @transform_0(%arg0: i32, %arg1: i32, %arg2: i32) -> (i32, i32) {
    %c0_i32 = arith.constant 0 : i32
    return %arg0, %arg2 : i32, i32
  }
  func.func @transform_1(%arg0: i32, %arg1: i32, %arg2: i32) -> (i32, i32) {
    %c0_i32 = arith.constant 0 : i32
    return %arg2, %arg1 : i32, i32
  }
  func.func @transform_2(%arg0: i32, %arg1: i32, %arg2: i32) -> (i32, i32) {
    %c0_i32 = arith.constant 0 : i32
    return %arg0, %arg1 : i32, i32
  }
}

module attributes {stable_mosaic.version = 11 : i64} {
  func.func @_matmul_kernel(%arg0: i32, %arg1: i32, %arg2: i32, %arg3: memref<16x256xbf16, #tpu.memory_space<vmem>>, %arg4: memref<256x512xbf16, #tpu.memory_space<vmem>>, %arg5: memref<16x512xf32, #tpu.memory_space<vmem>>) attributes {dimension_semantics = [#tpu.dimension_semantics<parallel>, #tpu.dimension_semantics<parallel>, #tpu.dimension_semantics<arbitrary>], iteration_bounds = array<i64: 1, 1, 9>, scalar_prefetch = 0 : i64, scratch_operands = 0 : i64, tpu.core_type = #tpu.core_type<tc>, window_params = [{transform_indices = @transform_0, window_bounds = array<i64: 16, 256>}, {transform_indices = @transform_1, window_bounds = array<i64: 256, 512>}, {transform_indices = @transform_2, window_bounds = array<i64: 16, 512>}]} {
    %c0_i32 = arith.constant 0 : i32
    %0 = arith.cmpi eq, %arg2, %c0_i32 : i32
    %1 = arith.extui %0 : i1 to i32
    %c0_i32_0 = arith.constant 0 : i32
    %2 = arith.cmpi ne, %1, %c0_i32_0 : i32
    scf.if %2 {
      %cst_8 = arith.constant 0.000000e+00 : f32
      %9 = vector.broadcast %cst_8 : f32 to vector<16x512xf32>
      %c0_9 = arith.constant 0 : index
      %c0_10 = arith.constant 0 : index
      %10 = vector.load %arg5[%c0_9, %c0_10] : memref<16x512xf32, #tpu.memory_space<vmem>>, vector<16x512xf32>
      tpu.vector_store %arg5[%c0_9, %c0_10], %9 {strides = array<i32>} : memref<16x512xf32, #tpu.memory_space<vmem>>, vector<16x512xf32>,
    } else {
    }
    %c0 = arith.constant 0 : index
    %c0_1 = arith.constant 0 : index
    %3 = vector.load %arg5[%c0, %c0_1] : memref<16x512xf32, #tpu.memory_space<vmem>>, vector<16x512xf32>
    %c0_2 = arith.constant 0 : index
    %c0_3 = arith.constant 0 : index
    %4 = vector.load %arg3[%c0_2, %c0_3] : memref<16x256xbf16, #tpu.memory_space<vmem>>, vector<16x256xbf16>
    %c0_4 = arith.constant 0 : index
    %c0_5 = arith.constant 0 : index
    %5 = vector.load %arg4[%c0_4, %c0_5] : memref<256x512xbf16, #tpu.memory_space<vmem>>, vector<256x512xbf16>
    %cst = arith.constant dense<0.000000e+00> : vector<16x512xf32>
    %6 = tpu.matmul %4, %5, %cst {dimension_numbers = #tpu.dot_dimension_numbers<[1], [0], [0], [1], [0, 0, 1, 1], [], []>} : vector<16x256xbf16>, vector<256x512xbf16>, vector<16x512xf32> -> vector<16x512xf32>
    %7 = arith.addf %3, %6 : vector<16x512xf32>
    %c0_6 = arith.constant 0 : index
    %c0_7 = arith.constant 0 : index
    %8 = vector.load %arg5[%c0_6, %c0_7] : memref<16x512xf32, #tpu.memory_space<vmem>>, vector<16x512xf32>
    tpu.vector_store %arg5[%c0_6, %c0_7], %7 {strides = array<i32>} : memref<16x512xf32, #tpu.memory_space<vmem>>, vector<16x512xf32>,
    return
  }
  func.func @transform_0(%arg0: i32, %arg1: i32, %arg2: i32) -> (i32, i32) {
    %c0_i32 = arith.constant 0 : i32
    return %arg0, %arg2 : i32, i32
  }
  func.func @transform_1(%arg0: i32, %arg1: i32, %arg2: i32) -> (i32, i32) {
    %c0_i32 = arith.constant 0 : i32
    return %arg2, %arg1 : i32, i32
  }
  func.func @transform_2(%arg0: i32, %arg1: i32, %arg2: i32) -> (i32, i32) {
    %c0_i32 = arith.constant 0 : i32
    return %arg0, %arg1 : i32, i32
  }
}

module attributes {stable_mosaic.version = 11 : i64} {
  func.func @_bn_act_kernel(%arg0: i32, %arg1: memref<8x512xf32, #tpu.memory_space<vmem>>, %arg2: memref<1x512xf32, #tpu.memory_space<vmem>>, %arg3: memref<1x512xf32, #tpu.memory_space<vmem>>, %arg4: memref<8x512xf32, #tpu.memory_space<vmem>>) attributes {dimension_semantics = [#tpu.dimension_semantics<parallel>], iteration_bounds = array<i64: 1>, scalar_prefetch = 0 : i64, scratch_operands = 0 : i64, tpu.core_type = #tpu.core_type<tc>, window_params = [{transform_indices = @transform_0, window_bounds = array<i64: 8, 512>}, {pipeline_mode = #tpu.pipeline_mode<synchronous>, transform_indices = @transform_1, window_bounds = array<i64: 1, 512>}, {pipeline_mode = #tpu.pipeline_mode<synchronous>, transform_indices = @transform_2, window_bounds = array<i64: 1, 512>}, {transform_indices = @transform_3, window_bounds = array<i64: 8, 512>}]} {
    %c0 = arith.constant 0 : index
    %c0_0 = arith.constant 0 : index
    %0 = vector.load %arg1[%c0, %c0_0] : memref<8x512xf32, #tpu.memory_space<vmem>>, vector<8x512xf32>
    %c0_1 = arith.constant 0 : index
    %c0_2 = arith.constant 0 : index
    %1 = vector.load %arg2[%c0_1, %c0_2] : memref<1x512xf32, #tpu.memory_space<vmem>>, vector<1x512xf32>
    %2 = vector.broadcast %1 : vector<1x512xf32> to vector<8x512xf32>
    %3 = arith.mulf %0, %2 : vector<8x512xf32>
    %c0_3 = arith.constant 0 : index
    %c0_4 = arith.constant 0 : index
    %4 = vector.load %arg3[%c0_3, %c0_4] : memref<1x512xf32, #tpu.memory_space<vmem>>, vector<1x512xf32>
    %5 = vector.broadcast %4 : vector<1x512xf32> to vector<8x512xf32>
    %6 = arith.addf %3, %5 : vector<8x512xf32>
    %c0_5 = arith.constant 0 : index
    %c0_6 = arith.constant 0 : index
    %7 = vector.load %arg4[%c0_5, %c0_6] : memref<8x512xf32, #tpu.memory_space<vmem>>, vector<8x512xf32>
    tpu.vector_store %arg4[%c0_5, %c0_6], %6 {strides = array<i32>} : memref<8x512xf32, #tpu.memory_space<vmem>>, vector<8x512xf32>,
    return
  }
  func.func @transform_0(%arg0: i32) -> (i32, i32) {
    %c0_i32 = arith.constant 0 : i32
    %c0_i32_0 = arith.constant 0 : i32
    return %arg0, %c0_i32 : i32, i32
  }
  func.func @transform_1(%arg0: i32) -> (i32, i32) {
    %c0_i32 = arith.constant 0 : i32
    %c0_i32_0 = arith.constant 0 : i32
    %c0_i32_1 = arith.constant 0 : i32
    return %c0_i32, %c0_i32_0 : i32, i32
  }
  func.func @transform_2(%arg0: i32) -> (i32, i32) {
    %c0_i32 = arith.constant 0 : i32
    %c0_i32_0 = arith.constant 0 : i32
    %c0_i32_1 = arith.constant 0 : i32
    return %c0_i32, %c0_i32_0 : i32, i32
  }
  func.func @transform_3(%arg0: i32) -> (i32, i32) {
    %c0_i32 = arith.constant 0 : i32
    %c0_i32_0 = arith.constant 0 : i32
    return %arg0, %c0_i32 : i32, i32
  }
}

module attributes {stable_mosaic.version = 11 : i64} {
  func.func @_bn_act_kernel(%arg0: i32, %arg1: memref<8x512xf32, #tpu.memory_space<vmem>>, %arg2: memref<1x512xf32, #tpu.memory_space<vmem>>, %arg3: memref<1x512xf32, #tpu.memory_space<vmem>>, %arg4: memref<8x512xf32, #tpu.memory_space<vmem>>) attributes {dimension_semantics = [#tpu.dimension_semantics<parallel>], iteration_bounds = array<i64: 1>, scalar_prefetch = 0 : i64, scratch_operands = 0 : i64, tpu.core_type = #tpu.core_type<tc>, window_params = [{transform_indices = @transform_0, window_bounds = array<i64: 8, 512>}, {pipeline_mode = #tpu.pipeline_mode<synchronous>, transform_indices = @transform_1, window_bounds = array<i64: 1, 512>}, {pipeline_mode = #tpu.pipeline_mode<synchronous>, transform_indices = @transform_2, window_bounds = array<i64: 1, 512>}, {transform_indices = @transform_3, window_bounds = array<i64: 8, 512>}]} {
    %c0 = arith.constant 0 : index
    %c0_0 = arith.constant 0 : index
    %0 = vector.load %arg1[%c0, %c0_0] : memref<8x512xf32, #tpu.memory_space<vmem>>, vector<8x512xf32>
    %c0_1 = arith.constant 0 : index
    %c0_2 = arith.constant 0 : index
    %1 = vector.load %arg2[%c0_1, %c0_2] : memref<1x512xf32, #tpu.memory_space<vmem>>, vector<1x512xf32>
    %2 = vector.broadcast %1 : vector<1x512xf32> to vector<8x512xf32>
    %3 = arith.mulf %0, %2 : vector<8x512xf32>
    %c0_3 = arith.constant 0 : index
    %c0_4 = arith.constant 0 : index
    %4 = vector.load %arg3[%c0_3, %c0_4] : memref<1x512xf32, #tpu.memory_space<vmem>>, vector<1x512xf32>
    %5 = vector.broadcast %4 : vector<1x512xf32> to vector<8x512xf32>
    %6 = arith.addf %3, %5 : vector<8x512xf32>
    %cst = arith.constant 0.252819866 : f32
    %7 = vector.broadcast %cst : f32 to vector<8x512xf32>
    %8 = arith.mulf %7, %6 : vector<8x512xf32>
    %cst_5 = arith.constant 1.52474451 : f32
    %9 = vector.broadcast %cst_5 : f32 to vector<8x512xf32>
    %10 = arith.addf %8, %9 : vector<8x512xf32>
    %11 = arith.mulf %10, %6 : vector<8x512xf32>
    %cst_6 = arith.constant 3.06608081 : f32
    %12 = vector.broadcast %cst_6 : f32 to vector<8x512xf32>
    %13 = arith.addf %11, %12 : vector<8x512xf32>
    %14 = arith.mulf %13, %6 : vector<8x512xf32>
    %cst_7 = arith.constant 2.37539148 : f32
    %15 = vector.broadcast %cst_7 : f32 to vector<8x512xf32>
    %16 = arith.addf %14, %15 : vector<8x512xf32>
    %17 = arith.mulf %16, %6 : vector<8x512xf32>
    %cst_8 = arith.constant 0.616901636 : f32
    %18 = vector.broadcast %cst_8 : f32 to vector<8x512xf32>
    %19 = arith.addf %17, %18 : vector<8x512xf32>
    %20 = arith.mulf %19, %6 : vector<8x512xf32>
    %cst_9 = arith.constant 0.0299634803 : f32
    %21 = vector.broadcast %cst_9 : f32 to vector<8x512xf32>
    %22 = arith.addf %20, %21 : vector<8x512xf32>
    %23 = math.absf %6 : vector<8x512xf32>
    %cst_10 = arith.constant 0.348859817 : f32
    %24 = vector.broadcast %cst_10 : f32 to vector<8x512xf32>
    %25 = arith.mulf %24, %23 : vector<8x512xf32>
    %cst_11 = arith.constant 0.911110341 : f32
    %26 = vector.broadcast %cst_11 : f32 to vector<8x512xf32>
    %27 = arith.addf %25, %26 : vector<8x512xf32>
    %28 = arith.mulf %27, %23 : vector<8x512xf32>
    %cst_12 = arith.constant 4.40811777 : f32
    %29 = vector.broadcast %cst_12 : f32 to vector<8x512xf32>
    %30 = arith.addf %28, %29 : vector<8x512xf32>
    %31 = arith.mulf %30, %23 : vector<8x512xf32>
    %cst_13 = arith.constant 1.19160819 : f32
    %32 = vector.broadcast %cst_13 : f32 to vector<8x512xf32>
    %33 = arith.addf %31, %32 : vector<8x512xf32>
    %34 = arith.mulf %33, %23 : vector<8x512xf32>
    %cst_14 = arith.constant 1.000000e+00 : f32
    %35 = vector.broadcast %cst_14 : f32 to vector<8x512xf32>
    %36 = arith.addf %34, %35 : vector<8x512xf32>
    %37 = tpu.reciprocal %36 {approx = true} : vector<8x512xf32> -> vector<8x512xf32>
    %38 = arith.mulf %22, %37 : vector<8x512xf32>
    %c0_15 = arith.constant 0 : index
    %c0_16 = arith.constant 0 : index
    %39 = vector.load %arg4[%c0_15, %c0_16] : memref<8x512xf32, #tpu.memory_space<vmem>>, vector<8x512xf32>
    tpu.vector_store %arg4[%c0_15, %c0_16], %38 {strides = array<i32>} : memref<8x512xf32, #tpu.memory_space<vmem>>, vector<8x512xf32>,
    return
  }
  func.func @transform_0(%arg0: i32) -> (i32, i32) {
    %c0_i32 = arith.constant 0 : i32
    %c0_i32_0 = arith.constant 0 : i32
    return %arg0, %c0_i32 : i32, i32
  }
  func.func @transform_1(%arg0: i32) -> (i32, i32) {
    %c0_i32 = arith.constant 0 : i32
    %c0_i32_0 = arith.constant 0 : i32
    %c0_i32_1 = arith.constant 0 : i32
    return %c0_i32, %c0_i32_0 : i32, i32
  }
  func.func @transform_2(%arg0: i32) -> (i32, i32) {
    %c0_i32 = arith.constant 0 : i32
    %c0_i32_0 = arith.constant 0 : i32
    %c0_i32_1 = arith.constant 0 : i32
    return %c0_i32, %c0_i32_0 : i32, i32
  }
  func.func @transform_3(%arg0: i32) -> (i32, i32) {
    %c0_i32 = arith.constant 0 : i32
    %c0_i32_0 = arith.constant 0 : i32
    return %arg0, %c0_i32 : i32, i32
  }
}

module attributes {stable_mosaic.version = 11 : i64} {
  func.func @_matmul_kernel(%arg0: i32, %arg1: i32, %arg2: i32, %arg3: memref<16x256xbf16, #tpu.memory_space<vmem>>, %arg4: memref<256x512xbf16, #tpu.memory_space<vmem>>, %arg5: memref<16x512xf32, #tpu.memory_space<vmem>>) attributes {dimension_semantics = [#tpu.dimension_semantics<parallel>, #tpu.dimension_semantics<parallel>, #tpu.dimension_semantics<arbitrary>], iteration_bounds = array<i64: 1, 1, 18>, scalar_prefetch = 0 : i64, scratch_operands = 0 : i64, tpu.core_type = #tpu.core_type<tc>, window_params = [{transform_indices = @transform_0, window_bounds = array<i64: 16, 256>}, {transform_indices = @transform_1, window_bounds = array<i64: 256, 512>}, {transform_indices = @transform_2, window_bounds = array<i64: 16, 512>}]} {
    %c0_i32 = arith.constant 0 : i32
    %0 = arith.cmpi eq, %arg2, %c0_i32 : i32
    %1 = arith.extui %0 : i1 to i32
    %c0_i32_0 = arith.constant 0 : i32
    %2 = arith.cmpi ne, %1, %c0_i32_0 : i32
    scf.if %2 {
      %cst_8 = arith.constant 0.000000e+00 : f32
      %9 = vector.broadcast %cst_8 : f32 to vector<16x512xf32>
      %c0_9 = arith.constant 0 : index
      %c0_10 = arith.constant 0 : index
      %10 = vector.load %arg5[%c0_9, %c0_10] : memref<16x512xf32, #tpu.memory_space<vmem>>, vector<16x512xf32>
      tpu.vector_store %arg5[%c0_9, %c0_10], %9 {strides = array<i32>} : memref<16x512xf32, #tpu.memory_space<vmem>>, vector<16x512xf32>,
    } else {
    }
    %c0 = arith.constant 0 : index
    %c0_1 = arith.constant 0 : index
    %3 = vector.load %arg5[%c0, %c0_1] : memref<16x512xf32, #tpu.memory_space<vmem>>, vector<16x512xf32>
    %c0_2 = arith.constant 0 : index
    %c0_3 = arith.constant 0 : index
    %4 = vector.load %arg3[%c0_2, %c0_3] : memref<16x256xbf16, #tpu.memory_space<vmem>>, vector<16x256xbf16>
    %c0_4 = arith.constant 0 : index
    %c0_5 = arith.constant 0 : index
    %5 = vector.load %arg4[%c0_4, %c0_5] : memref<256x512xbf16, #tpu.memory_space<vmem>>, vector<256x512xbf16>
    %cst = arith.constant dense<0.000000e+00> : vector<16x512xf32>
    %6 = tpu.matmul %4, %5, %cst {dimension_numbers = #tpu.dot_dimension_numbers<[1], [0], [0], [1], [0, 0, 1, 1], [], []>} : vector<16x256xbf16>, vector<256x512xbf16>, vector<16x512xf32> -> vector<16x512xf32>
    %7 = arith.addf %3, %6 : vector<16x512xf32>
    %c0_6 = arith.constant 0 : index
    %c0_7 = arith.constant 0 : index
    %8 = vector.load %arg5[%c0_6, %c0_7] : memref<16x512xf32, #tpu.memory_space<vmem>>, vector<16x512xf32>
    tpu.vector_store %arg5[%c0_6, %c0_7], %7 {strides = array<i32>} : memref<16x512xf32, #tpu.memory_space<vmem>>, vector<16x512xf32>,
    return
  }
  func.func @transform_0(%arg0: i32, %arg1: i32, %arg2: i32) -> (i32, i32) {
    %c0_i32 = arith.constant 0 : i32
    return %arg0, %arg2 : i32, i32
  }
  func.func @transform_1(%arg0: i32, %arg1: i32, %arg2: i32) -> (i32, i32) {
    %c0_i32 = arith.constant 0 : i32
    return %arg2, %arg1 : i32, i32
  }
  func.func @transform_2(%arg0: i32, %arg1: i32, %arg2: i32) -> (i32, i32) {
    %c0_i32 = arith.constant 0 : i32
    return %arg0, %arg1 : i32, i32
  }
}

module attributes {stable_mosaic.version = 11 : i64} {
  func.func @_bn_add_act_kernel(%arg0: i32, %arg1: memref<8x512xf32, #tpu.memory_space<vmem>>, %arg2: memref<1x512xf32, #tpu.memory_space<vmem>>, %arg3: memref<1x512xf32, #tpu.memory_space<vmem>>, %arg4: memref<8x512xf32, #tpu.memory_space<vmem>>, %arg5: memref<8x512xf32, #tpu.memory_space<vmem>>) attributes {dimension_semantics = [#tpu.dimension_semantics<parallel>], iteration_bounds = array<i64: 1>, scalar_prefetch = 0 : i64, scratch_operands = 0 : i64, tpu.core_type = #tpu.core_type<tc>, window_params = [{transform_indices = @transform_0, window_bounds = array<i64: 8, 512>}, {pipeline_mode = #tpu.pipeline_mode<synchronous>, transform_indices = @transform_1, window_bounds = array<i64: 1, 512>}, {pipeline_mode = #tpu.pipeline_mode<synchronous>, transform_indices = @transform_2, window_bounds = array<i64: 1, 512>}, {transform_indices = @transform_3, window_bounds = array<i64: 8, 512>}, {transform_indices = @transform_4, window_bounds = array<i64: 8, 512>}]} {
    %c0 = arith.constant 0 : index
    %c0_0 = arith.constant 0 : index
    %0 = vector.load %arg1[%c0, %c0_0] : memref<8x512xf32, #tpu.memory_space<vmem>>, vector<8x512xf32>
    %c0_1 = arith.constant 0 : index
    %c0_2 = arith.constant 0 : index
    %1 = vector.load %arg2[%c0_1, %c0_2] : memref<1x512xf32, #tpu.memory_space<vmem>>, vector<1x512xf32>
    %2 = vector.broadcast %1 : vector<1x512xf32> to vector<8x512xf32>
    %3 = arith.mulf %0, %2 : vector<8x512xf32>
    %c0_3 = arith.constant 0 : index
    %c0_4 = arith.constant 0 : index
    %4 = vector.load %arg3[%c0_3, %c0_4] : memref<1x512xf32, #tpu.memory_space<vmem>>, vector<1x512xf32>
    %5 = vector.broadcast %4 : vector<1x512xf32> to vector<8x512xf32>
    %6 = arith.addf %3, %5 : vector<8x512xf32>
    %c0_5 = arith.constant 0 : index
    %c0_6 = arith.constant 0 : index
    %7 = vector.load %arg4[%c0_5, %c0_6] : memref<8x512xf32, #tpu.memory_space<vmem>>, vector<8x512xf32>
    %8 = arith.addf %6, %7 : vector<8x512xf32>
    %cst = arith.constant 0.252819866 : f32
    %9 = vector.broadcast %cst : f32 to vector<8x512xf32>
    %10 = arith.mulf %9, %8 : vector<8x512xf32>
    %cst_7 = arith.constant 1.52474451 : f32
    %11 = vector.broadcast %cst_7 : f32 to vector<8x512xf32>
    %12 = arith.addf %10, %11 : vector<8x512xf32>
    %13 = arith.mulf %12, %8 : vector<8x512xf32>
    %cst_8 = arith.constant 3.06608081 : f32
    %14 = vector.broadcast %cst_8 : f32 to vector<8x512xf32>
    %15 = arith.addf %13, %14 : vector<8x512xf32>
    %16 = arith.mulf %15, %8 : vector<8x512xf32>
    %cst_9 = arith.constant 2.37539148 : f32
    %17 = vector.broadcast %cst_9 : f32 to vector<8x512xf32>
    %18 = arith.addf %16, %17 : vector<8x512xf32>
    %19 = arith.mulf %18, %8 : vector<8x512xf32>
    %cst_10 = arith.constant 0.616901636 : f32
    %20 = vector.broadcast %cst_10 : f32 to vector<8x512xf32>
    %21 = arith.addf %19, %20 : vector<8x512xf32>
    %22 = arith.mulf %21, %8 : vector<8x512xf32>
    %cst_11 = arith.constant 0.0299634803 : f32
    %23 = vector.broadcast %cst_11 : f32 to vector<8x512xf32>
    %24 = arith.addf %22, %23 : vector<8x512xf32>
    %25 = math.absf %8 : vector<8x512xf32>
    %cst_12 = arith.constant 0.348859817 : f32
    %26 = vector.broadcast %cst_12 : f32 to vector<8x512xf32>
    %27 = arith.mulf %26, %25 : vector<8x512xf32>
    %cst_13 = arith.constant 0.911110341 : f32
    %28 = vector.broadcast %cst_13 : f32 to vector<8x512xf32>
    %29 = arith.addf %27, %28 : vector<8x512xf32>
    %30 = arith.mulf %29, %25 : vector<8x512xf32>
    %cst_14 = arith.constant 4.40811777 : f32
    %31 = vector.broadcast %cst_14 : f32 to vector<8x512xf32>
    %32 = arith.addf %30, %31 : vector<8x512xf32>
    %33 = arith.mulf %32, %25 : vector<8x512xf32>
    %cst_15 = arith.constant 1.19160819 : f32
    %34 = vector.broadcast %cst_15 : f32 to vector<8x512xf32>
    %35 = arith.addf %33, %34 : vector<8x512xf32>
    %36 = arith.mulf %35, %25 : vector<8x512xf32>
    %cst_16 = arith.constant 1.000000e+00 : f32
    %37 = vector.broadcast %cst_16 : f32 to vector<8x512xf32>
    %38 = arith.addf %36, %37 : vector<8x512xf32>
    %39 = tpu.reciprocal %38 {approx = true} : vector<8x512xf32> -> vector<8x512xf32>
    %40 = arith.mulf %24, %39 : vector<8x512xf32>
    %c0_17 = arith.constant 0 : index
    %c0_18 = arith.constant 0 : index
    %41 = vector.load %arg5[%c0_17, %c0_18] : memref<8x512xf32, #tpu.memory_space<vmem>>, vector<8x512xf32>
    tpu.vector_store %arg5[%c0_17, %c0_18], %40 {strides = array<i32>} : memref<8x512xf32, #tpu.memory_space<vmem>>, vector<8x512xf32>,
    return
  }
  func.func @transform_0(%arg0: i32) -> (i32, i32) {
    %c0_i32 = arith.constant 0 : i32
    %c0_i32_0 = arith.constant 0 : i32
    return %arg0, %c0_i32 : i32, i32
  }
  func.func @transform_1(%arg0: i32) -> (i32, i32) {
    %c0_i32 = arith.constant 0 : i32
    %c0_i32_0 = arith.constant 0 : i32
    %c0_i32_1 = arith.constant 0 : i32
    return %c0_i32, %c0_i32_0 : i32, i32
  }
  func.func @transform_2(%arg0: i32) -> (i32, i32) {
    %c0_i32 = arith.constant 0 : i32
    %c0_i32_0 = arith.constant 0 : i32
    %c0_i32_1 = arith.constant 0 : i32
    return %c0_i32, %c0_i32_0 : i32, i32
  }
  func.func @transform_3(%arg0: i32) -> (i32, i32) {
    %c0_i32 = arith.constant 0 : i32
    %c0_i32_0 = arith.constant 0 : i32
    return %arg0, %c0_i32 : i32, i32
  }
  func.func @transform_4(%arg0: i32) -> (i32, i32) {
    %c0_i32 = arith.constant 0 : i32
    %c0_i32_0 = arith.constant 0 : i32
    return %arg0, %c0_i32 : i32, i32
  }
}

</mosaic_0001>

<bundles_post_ra>
// kernel: tile.53
= control target key start
LH: loop header
LB: loop body
LE: loop exit
PB: predicated region body
PF: predicated region fallthrough
CT: control target
= control target key end

     0   :  { %s22_s0 = inlined_call_operand.vmem [shape: f32[64], index: 0, kind: input, shape index: {}]   ;;  %s23_s1 = inlined_call_operand.vmem [shape: f32[2,64], index: 1, kind: output, shape index: {}]  }
   0x1   :  { %v4_v0 = vld [vmem:[%s22_s0] ss:$0 sm:$0xff] }
   0x2   :  { %5 = vst [vmem:[%s23_s1] sm:$0x3] %v4_v0 }

// kernel: tile.54
= control target key start
LH: loop header
LB: loop body
LE: loop exit
PB: predicated region body
PF: predicated region fallthrough
CT: control target
= control target key end

     0   :  { %vm7_vm0 = vcmask 523264   ;;  %vm13_vm1 = vcmask 1048064   ;;  %s39_s0 = inlined_call_operand.vmem [shape: f32[2,64], index: 0, kind: input, shape index: {}]   ;;  %s40_s1 = inlined_call_operand.vmem [shape: f32[1,128], index: 1, kind: output, shape index: {}]  }
   0x1   :  { %v4_v0 = vld [vmem:[%s39_s0] sm:$0x3]  ;;  %s22_s0 = smov 64  }
   0x2   :  { %5 = vst [vmem:[#allocation1] sm:$0x3] %v4_v0 }
   0x9   :  { %v10_v1 = vld [vmem:[#allocation1 + $0x1] sm:$0x1]   ;;  %v6_v2 = vld [vmem:[#allocation1] sm:$0x1]  }
   0xa   :  { %11 = vrot.lane.b32.xlu0 %v10_v1, %s22_s0  ;;  %8 = vst.msk [vmem:[#allocation0] sm:$0x1] %vm7_vm0, %v6_v2  }
  0x7c   :  { %v12_v3 = vpop.permute.xlu0 %11  }
  0x7d   :  { %14 = vst.msk [vmem:[#allocation0] sm:$0x1] %vm13_vm1, %v12_v3  }
  0x84   :  { %v17_v4 = vld [vmem:[#allocation0] sm:$0x1] }
  0x85   :  { %20 = vst [vmem:[%s40_s1] sm:$0x1] %v17_v4 }

// kernel: resnet_forward.41
= control target key start
LH: loop header
LB: loop body
LE: loop exit
PB: predicated region body
PF: predicated region fallthrough
CT: control target
= control target key end

     0   :  { %s1548_s0 = inlined_call_operand.vmem [shape: f32[256,128], index: 0, kind: input, shape index: {}]   ;;  %s1549_s1 = inlined_call_operand.vmem [shape: f32[1,128], index: 1, kind: input, shape index: {}]   ;;  %s1550_s2 = inlined_call_operand.vmem [shape: f32[1,128], index: 2, kind: input, shape index: {}]   ;;  %s1551_s3 = inlined_call_operand.vmem [shape: f32[256,128], index: 3, kind: output, shape index: {}]  }
   0x1   :  { %v14_v0 = vld [vmem:[%s1548_s0] sm:$0xff]  ;;  %v15_v3 = vld [vmem:[%s1548_s0 + $0x8] sm:$0xff]  ;;  %v16_v6 = vld [vmem:[%s1548_s0 + $0x10] sm:$0xff] }
   0x2   :  { %v920_v1 = vld [vmem:[%s1549_s1] ss:$0 sm:$0xff]  ;;  %v17_v7 = vld [vmem:[%s1548_s0 + $0x18] sm:$0xff]  ;;  %v19_v12 = vld [vmem:[%s1548_s0 + $0x28] sm:$0xff] }
   0x3   :  { %v925_v2 = vld [vmem:[%s1550_s2] ss:$0 sm:$0xff]  ;;  %v50_v4 = vmul.f32 %v920_v1, %v14_v0  ;;  %v51_v5 = vmul.f32 %v920_v1, %v15_v3  ;;  %v52_v9 = vmul.f32 %v920_v1, %v16_v6  ;;  %v53_v10 = vmul.f32 %v920_v1, %v17_v7  ;;  %v20_v13 = vld [vmem:[%s1548_s0 + $0x30] sm:$0xff]  ;;  %v21_v14 = vld [vmem:[%s1548_s0 + $0x38] sm:$0xff] }
   0x4   :  { %v18_v8 = vld [vmem:[%s1548_s0 + $0x20] sm:$0xff]  ;;  %v55_v17 = vmul.f32 %v920_v1, %v19_v12  ;;  %v56_v18 = vmul.f32 %v920_v1, %v20_v13  ;;  %v57_v22 = vmul.f32 %v920_v1, %v21_v14 }
   0x5   :  { %v54_v11 = vmul.f32 %v920_v1, %v18_v8  ;;  %v954_v15 = vadd.f32 %v925_v2, %v50_v4  ;;  %v957_v16 = vadd.f32 %v925_v2, %v51_v5  ;;  %v962_v19 = vadd.f32 %v925_v2, %v52_v9  ;;  %v22_v23 = vld [vmem:[%s1548_s0 + $0x40] sm:$0xff] }
   0x6   :  { %v965_v20 = vadd.f32 %v925_v2, %v53_v10  ;;  %v978_v27 = vadd.f32 %v925_v2, %v55_v17  ;;  %v984_v31 = vadd.f32 %v925_v2, %v56_v18  ;;  %v987_v35 = vadd.f32 %v925_v2, %v57_v22 }
   0x7   :  { %v968_v21 = vadd.f32 %v925_v2, %v54_v11  ;;  %v118_v24 = vmul.f32 0.25281987, %v954_v15  ;;  %v438_v25 = vand.u32 2147483647, %v954_v15  ;;  %v119_v26 = vmul.f32 0.25281987, %v957_v16 }
   0x8   :  { %v439_v28 = vand.u32 2147483647, %v957_v16  ;;  %v120_v29 = vmul.f32 0.25281987, %v962_v19  ;;  %v440_v30 = vand.u32 2147483647, %v962_v19  ;;  %v990_v39 = vmul.f32 %v920_v1, %v22_v23 }
   0x9   :  { %v150_v32 = vadd.f32 1.5247445, %v118_v24  ;;  %v470_v33 = vmul.f32 0.34885982, %v438_v25  ;;  %v151_v34 = vadd.f32 1.5247445, %v119_v26 }
   0xa   :  { %v471_v36 = vmul.f32 0.34885982, %v439_v28  ;;  %v152_v37 = vadd.f32 1.5247445, %v120_v29  ;;  %v472_v38 = vmul.f32 0.34885982, %v440_v30 }
   0xb   :  { %v182_v40 = vmul.f32 %v150_v32, %v954_v15  ;;  %v502_v41 = vadd.f32 0.91111034, %v470_v33  ;;  %v183_v42 = vmul.f32 %v151_v34, %v957_v16  ;;  %v121_v43 = vmul.f32 0.25281987, %v965_v20 }
   0xc   :  { %v503_v44 = vadd.f32 0.91111034, %v471_v36  ;;  %v184_v45 = vmul.f32 %v152_v37, %v962_v19  ;;  %v504_v46 = vadd.f32 0.91111034, %v472_v38  ;;  %v441_v47 = vand.u32 2147483647, %v965_v20 }
   0xd   :  { %v214_v48 = vadd.f32 3.0660808, %v182_v40  ;;  %v534_v49 = vmul.f32 %v502_v41, %v438_v25  ;;  %v215_v50 = vadd.f32 3.0660808, %v183_v42  ;;  %v153_v51 = vadd.f32 1.5247445, %v121_v43 }
   0xe   :  { %v535_v52 = vmul.f32 %v503_v44, %v439_v28  ;;  %v216_v53 = vadd.f32 3.0660808, %v184_v45  ;;  %v536_v54 = vmul.f32 %v504_v46, %v440_v30  ;;  %v473_v55 = vmul.f32 0.34885982, %v441_v47 }
   0xf   :  { %v246_v56 = vmul.f32 %v214_v48, %v954_v15  ;;  %v566_v57 = vadd.f32 4.408118, %v534_v49  ;;  %v247_v58 = vmul.f32 %v215_v50, %v957_v16  ;;  %v185_v59 = vmul.f32 %v153_v51, %v965_v20 }
  0x10   :  { %v567_v60 = vadd.f32 4.408118, %v535_v52  ;;  %v248_v61 = vmul.f32 %v216_v53, %v962_v19  ;;  %v568_v62 = vadd.f32 4.408118, %v536_v54  ;;  %v505_v63 = vadd.f32 0.91111034, %v473_v55 }
  0x11   :  { %v278_v0 = vadd.f32 2.3753915, %v246_v56  ;;  %v598_v3 = vmul.f32 %v566_v57, %v438_v25  ;;  %v279_v4 = vadd.f32 2.3753915, %v247_v58  ;;  %v217_v5 = vadd.f32 3.0660808, %v185_v59 }
  0x12   :  { %v599_v6 = vmul.f32 %v567_v60, %v439_v28  ;;  %v280_v7 = vadd.f32 2.3753915, %v248_v61  ;;  %v600_v8 = vmul.f32 %v568_v62, %v440_v30  ;;  %v537_v9 = vmul.f32 %v505_v63, %v441_v47 }
  0x13   :  { %v310_v10 = vmul.f32 %v278_v0, %v954_v15  ;;  %v630_v11 = vadd.f32 1.1916082, %v598_v3  ;;  %v311_v12 = vmul.f32 %v279_v4, %v957_v16  ;;  %v249_v13 = vmul.f32 %v217_v5, %v965_v20 }
  0x14   :  { %v631_v14 = vadd.f32 1.1916082, %v599_v6  ;;  %v312_v17 = vmul.f32 %v280_v7, %v962_v19  ;;  %v632_v18 = vadd.f32 1.1916082, %v600_v8  ;;  %v569_v22 = vadd.f32 4.408118, %v537_v9 }
  0x15   :  { %v342_v23 = vadd.f32 0.61690164, %v310_v10  ;;  %v662_v24 = vmul.f32 %v630_v11, %v438_v25  ;;  %v343_v26 = vadd.f32 0.61690164, %v311_v12  ;;  %v281_v29 = vadd.f32 2.3753915, %v249_v13 }
  0x16   :  { %v663_v32 = vmul.f32 %v631_v14, %v439_v28  ;;  %v344_v33 = vadd.f32 0.61690164, %v312_v17  ;;  %v664_v34 = vmul.f32 %v632_v18, %v440_v30  ;;  %v601_v36 = vmul.f32 %v569_v22, %v441_v47  ;;  %v24_v12 = vld [vmem:[%s1548_s0 + $0x50] sm:$0xff]  ;;  %v25_v13 = vld [vmem:[%s1548_s0 + $0x58] sm:$0xff] }
  0x17   :  { %v374_v37 = vmul.f32 %v342_v23, %v954_v15  ;;  %v694_v38 = vadd.f32 1.0, %v662_v24  ;;  %v375_v40 = vmul.f32 %v343_v26, %v957_v16  ;;  %v313_v41 = vmul.f32 %v281_v29, %v965_v20  ;;  %v23_v15 = vld [vmem:[%s1548_s0 + $0x48] sm:$0xff] }
  0x18   :  { %v695_v42 = vadd.f32 1.0, %v663_v32  ;;  %v376_v43 = vmul.f32 %v344_v33, %v962_v19  ;;  %v696_v44 = vadd.f32 1.0, %v664_v34  ;;  %v633_v45 = vadd.f32 1.1916082, %v601_v36 }
  0x19   :  { %v406_v46 = vadd.f32 0.02996348, %v374_v37  ;;  %828 = vrcp.f32 %v694_v38  ;;  %v407_v25 = vadd.f32 0.02996348, %v375_v40  ;;  %v345_v48 = vadd.f32 0.61690164, %v313_v41 }
  0x1a   :  { %830 = vrcp.f32 %v695_v42  ;;  %v408_v28 = vadd.f32 0.02996348, %v376_v43  ;;  %v665_v30 = vmul.f32 %v633_v45, %v441_v47  ;;  %v122_v49 = vmul.f32 0.25281987, %v968_v21 }
  0x1b   :  { %832 = vrcp.f32 %v696_v44  ;;  %v377_v16 = vmul.f32 %v345_v48, %v965_v20  ;;  %v1015_v19 = vand.u32 2147483647, %v968_v21  ;;  %v123_v50 = vmul.f32 0.25281987, %v978_v27 }
  0x1c   :  { %v697_v51 = vadd.f32 1.0, %v665_v30  ;;  %v154_v52 = vadd.f32 1.5247445, %v122_v49  ;;  %v1019_v53 = vand.u32 2147483647, %v978_v27  ;;  %v1023_v47 = vadd.f32 %v925_v2, %v990_v39 }
  0x1d   :  { %v409_v54 = vadd.f32 0.02996348, %v377_v16  ;;  %v474_v55 = vmul.f32 0.34885982, %v1015_v19  ;;  %v155_v56 = vadd.f32 1.5247445, %v123_v50  ;;  %v59_v20 = vmul.f32 %v920_v1, %v23_v15 }
  0x1e   :  { %834 = vrcp.f32 %v697_v51  ;;  %v186_v57 = vmul.f32 %v154_v52, %v968_v21  ;;  %v475_v58 = vmul.f32 0.34885982, %v1019_v53  ;;  %v124_v59 = vmul.f32 0.25281987, %v984_v31 }
  0x1f   :  { %v829_v60 = vpop.eup %828  ;;  %v506_v61 = vadd.f32 0.91111034, %v474_v55  ;;  %v187_v62 = vmul.f32 %v155_v56, %v978_v27  ;;  %v1032_v39 = vand.u32 2147483647, %v984_v31  ;;  %v125_v63 = vmul.f32 0.25281987, %v987_v35 }
  0x20   :  { %v831_v0 = vpop.eup %830  ;;  %v758_v3 = vmul.f32 %v829_v60, %v406_v46  ;;  %v218_v4 = vadd.f32 3.0660808, %v186_v57  ;;  %v507_v5 = vadd.f32 0.91111034, %v475_v58  ;;  %v156_v6 = vadd.f32 1.5247445, %v124_v59 }
  0x21   :  { %v833_v7 = vpop.eup %832  ;;  %v759_v8 = vmul.f32 %v831_v0, %v407_v25  ;;  %v538_v9 = vmul.f32 %v506_v61, %v1015_v19  ;;  %v219_v10 = vadd.f32 3.0660808, %v187_v62  ;;  %v476_v11 = vmul.f32 0.34885982, %v1032_v39 }
  0x22   :  { %790 = vst [vmem:[%s1551_s3] sm:$0xff] %v758_v3  ;;  %v760_v14 = vmul.f32 %v833_v7, %v408_v28  ;;  %v250_v17 = vmul.f32 %v218_v4, %v968_v21  ;;  %v539_v18 = vmul.f32 %v507_v5, %v1019_v53  ;;  %v188_v22 = vmul.f32 %v156_v6, %v984_v31 }
  0x23   :  { %791 = vst [vmem:[%s1551_s3 + $0x8] sm:$0xff] %v759_v8  ;;  %v570_v23 = vadd.f32 4.408118, %v538_v9  ;;  %v251_v24 = vmul.f32 %v219_v10, %v978_v27  ;;  %v508_v26 = vadd.f32 0.91111034, %v476_v11  ;;  %v1054_v29 = vadd.f32 %v925_v2, %v59_v20 }
  0x24   :  { %v835_v32 = vpop.eup %834  ;;  %792 = vst [vmem:[%s1551_s3 + $0x10] sm:$0xff] %v760_v14  ;;  %v282_v33 = vadd.f32 2.3753915, %v250_v17  ;;  %v571_v34 = vadd.f32 4.408118, %v539_v18  ;;  %v1060_v36 = vmul.f32 %v920_v1, %v24_v12  ;;  %v1063_v37 = vmul.f32 %v920_v1, %v25_v13 }
  0x25   :  { %v761_v38 = vmul.f32 %v835_v32, %v409_v54  ;;  %v602_v40 = vmul.f32 %v570_v23, %v1015_v19  ;;  %v283_v41 = vadd.f32 2.3753915, %v251_v24  ;;  %v220_v42 = vadd.f32 3.0660808, %v188_v22 }
  0x26   :  { %v314_v43 = vmul.f32 %v282_v33, %v968_v21  ;;  %v603_v44 = vmul.f32 %v571_v34, %v1019_v53  ;;  %v540_v45 = vmul.f32 %v508_v26, %v1032_v39  ;;  %v157_v46 = vadd.f32 1.5247445, %v125_v63 }
  0x27   :  { %793 = vst [vmem:[%s1551_s3 + $0x18] sm:$0xff] %v761_v38  ;;  %v634_v25 = vadd.f32 1.1916082, %v602_v40  ;;  %v315_v48 = vmul.f32 %v283_v41, %v978_v27  ;;  %v252_v28 = vmul.f32 %v220_v42, %v984_v31  ;;  %v445_v30 = vand.u32 2147483647, %v987_v35 }
  0x28   :  { %v346_v49 = vadd.f32 0.61690164, %v314_v43  ;;  %v635_v15 = vadd.f32 1.1916082, %v603_v44  ;;  %v572_v16 = vadd.f32 4.408118, %v540_v45  ;;  %v189_v50 = vmul.f32 %v157_v46, %v987_v35 }
  0x29   :  { %v666_v51 = vmul.f32 %v634_v25, %v1015_v19  ;;  %v347_v52 = vadd.f32 0.61690164, %v315_v48  ;;  %v284_v54 = vadd.f32 2.3753915, %v252_v28  ;;  %v477_v55 = vmul.f32 0.34885982, %v445_v30 }
  0x2a   :  { %v378_v56 = vmul.f32 %v346_v49, %v968_v21  ;;  %v667_v20 = vmul.f32 %v635_v15, %v1019_v53  ;;  %v604_v57 = vmul.f32 %v572_v16, %v1032_v39  ;;  %v221_v58 = vadd.f32 3.0660808, %v189_v50 }
  0x2b   :  { %v698_v59 = vadd.f32 1.0, %v666_v51  ;;  %v379_v60 = vmul.f32 %v347_v52, %v978_v27  ;;  %v316_v61 = vmul.f32 %v284_v54, %v984_v31  ;;  %v509_v62 = vadd.f32 0.91111034, %v477_v55 }
  0x2c   :  { %v410_v63 = vadd.f32 0.02996348, %v378_v56  ;;  %v699_v0 = vadd.f32 1.0, %v667_v20  ;;  %v636_v3 = vadd.f32 1.1916082, %v604_v57  ;;  %v253_v19 = vmul.f32 %v221_v58, %v987_v35 }
  0x2d   :  { %836 = vrcp.f32 %v698_v59  ;;  %v411_v4 = vadd.f32 0.02996348, %v379_v60  ;;  %v348_v5 = vadd.f32 0.61690164, %v316_v61  ;;  %v541_v21 = vmul.f32 %v509_v62, %v445_v30  ;;  %v27_v60 = vld [vmem:[%s1548_s0 + $0x68] sm:$0xff] }
  0x2e   :  { %838 = vrcp.f32 %v699_v0  ;;  %v668_v53 = vmul.f32 %v636_v3, %v1032_v39  ;;  %v285_v6 = vadd.f32 2.3753915, %v253_v19  ;;  %v126_v7 = vmul.f32 0.25281987, %v1023_v47 }
  0x2f   :  { %v380_v27 = vmul.f32 %v348_v5, %v984_v31  ;;  %v573_v8 = vadd.f32 4.408118, %v541_v21  ;;  %v446_v9 = vand.u32 2147483647, %v1023_v47  ;;  %v127_v10 = vmul.f32 0.25281987, %v1054_v29 }
  0x30   :  { %v700_v11 = vadd.f32 1.0, %v668_v53  ;;  %v317_v12 = vmul.f32 %v285_v6, %v987_v35  ;;  %v158_v13 = vadd.f32 1.5247445, %v126_v7  ;;  %v447_v14 = vand.u32 2147483647, %v1054_v29 }
  0x31   :  { %v412_v17 = vadd.f32 0.02996348, %v380_v27  ;;  %v605_v18 = vmul.f32 %v573_v8, %v445_v30  ;;  %v478_v22 = vmul.f32 0.34885982, %v446_v9  ;;  %v159_v39 = vadd.f32 1.5247445, %v127_v10 }
  0x32   :  { %840 = vrcp.f32 %v700_v11  ;;  %v349_v23 = vadd.f32 0.61690164, %v317_v12  ;;  %v190_v24 = vmul.f32 %v158_v13, %v1023_v47  ;;  %v479_v31 = vmul.f32 0.34885982, %v447_v14 }
  0x33   :  { %v837_v26 = vpop.eup %836  ;;  %v637_v32 = vadd.f32 1.1916082, %v605_v18  ;;  %v510_v33 = vadd.f32 0.91111034, %v478_v22  ;;  %v191_v34 = vmul.f32 %v159_v39, %v1054_v29  ;;  %v1094_v38 = vadd.f32 %v925_v2, %v1060_v36 }
  0x34   :  { %v839_v40 = vpop.eup %838  ;;  %v762_v41 = vmul.f32 %v837_v26, %v410_v63  ;;  %v381_v42 = vmul.f32 %v349_v23, %v987_v35  ;;  %v222_v43 = vadd.f32 3.0660808, %v190_v24  ;;  %v511_v44 = vadd.f32 0.91111034, %v479_v31  ;;  %v26_v35 = vld [vmem:[%s1548_s0 + $0x60] sm:$0xff] }
  0x35   :  { %v763_v45 = vmul.f32 %v839_v40, %v411_v4  ;;  %v669_v46 = vmul.f32 %v637_v32, %v445_v30  ;;  %v542_v25 = vmul.f32 %v510_v33, %v446_v9  ;;  %v223_v48 = vadd.f32 3.0660808, %v191_v34  ;;  %v29_v32 = vld [vmem:[%s1548_s0 + $0x78] sm:$0xff] }
  0x36   :  { %794 = vst [vmem:[%s1551_s3 + $0x20] sm:$0xff] %v762_v41  ;;  %v413_v28 = vadd.f32 0.02996348, %v381_v42  ;;  %v254_v49 = vmul.f32 %v222_v43, %v1023_v47  ;;  %v543_v15 = vmul.f32 %v511_v44, %v447_v14  ;;  %v128_v36 = vmul.f32 0.25281987, %v1094_v38 }
  0x37   :  { %795 = vst [vmem:[%s1551_s3 + $0x28] sm:$0xff] %v763_v45  ;;  %v701_v30 = vadd.f32 1.0, %v669_v46  ;;  %v574_v16 = vadd.f32 4.408118, %v542_v25  ;;  %v255_v50 = vmul.f32 %v223_v48, %v1054_v29  ;;  %v1110_v51 = vand.u32 2147483647, %v1094_v38 }
  0x38   :  { %v841_v52 = vpop.eup %840  ;;  %v286_v54 = vadd.f32 2.3753915, %v254_v49  ;;  %v575_v55 = vadd.f32 4.408118, %v543_v15  ;;  %v160_v56 = vadd.f32 1.5247445, %v128_v36  ;;  %v1114_v20 = vadd.f32 %v925_v2, %v1063_v37 }
  0x39   :  { %v764_v57 = vmul.f32 %v841_v52, %v412_v17  ;;  %842 = vrcp.f32 %v701_v30  ;;  %v606_v58 = vmul.f32 %v574_v16, %v446_v9  ;;  %v287_v59 = vadd.f32 2.3753915, %v255_v50 }
  0x3a   :  { %v318_v61 = vmul.f32 %v286_v54, %v1023_v47  ;;  %v607_v62 = vmul.f32 %v575_v55, %v447_v14  ;;  %v192_v63 = vmul.f32 %v160_v56, %v1094_v38  ;;  %v480_v0 = vmul.f32 0.34885982, %v1110_v51 }
  0x3b   :  { %796 = vst [vmem:[%s1551_s3 + $0x30] sm:$0xff] %v764_v57  ;;  %v638_v37 = vadd.f32 1.1916082, %v606_v58  ;;  %v319_v3 = vmul.f32 %v287_v59, %v1054_v29  ;;  %v129_v19 = vmul.f32 0.25281987, %v1114_v20  ;;  %v62_v4 = vmul.f32 %v920_v1, %v26_v35 }
  0x3c   :  { %v350_v5 = vadd.f32 0.61690164, %v318_v61  ;;  %v639_v21 = vadd.f32 1.1916082, %v607_v62  ;;  %v224_v53 = vadd.f32 3.0660808, %v192_v63  ;;  %v63_v6 = vmul.f32 %v920_v1, %v27_v60 }
  0x3d   :  { %v670_v7 = vmul.f32 %v638_v37, %v446_v9  ;;  %v351_v27 = vadd.f32 0.61690164, %v319_v3  ;;  %v512_v8 = vadd.f32 0.91111034, %v480_v0  ;;  %v161_v10 = vadd.f32 1.5247445, %v129_v19 }
  0x3e   :  { %v382_v11 = vmul.f32 %v350_v5, %v1023_v47  ;;  %v671_v12 = vmul.f32 %v639_v21, %v447_v14  ;;  %v256_v13 = vmul.f32 %v224_v53, %v1094_v38  ;;  %v1132_v17 = vand.u32 2147483647, %v1114_v20  ;;  %v28_v9 = vld [vmem:[%s1548_s0 + $0x70] sm:$0xff]  ;;  %v30_v53 = vld [vmem:[%s1548_s0 + $0x80] sm:$0xff] }
  0x3f   :  { %v843_v18 = vpop.eup %842  ;;  %v702_v22 = vadd.f32 1.0, %v670_v7  ;;  %v383_v39 = vmul.f32 %v351_v27, %v1054_v29  ;;  %v544_v23 = vmul.f32 %v512_v8, %v1110_v51  ;;  %v193_v24 = vmul.f32 %v161_v10, %v1114_v20 }
  0x40   :  { %v765_v31 = vmul.f32 %v843_v18, %v413_v28  ;;  %v414_v47 = vadd.f32 0.02996348, %v382_v11  ;;  %v703_v14 = vadd.f32 1.0, %v671_v12  ;;  %v288_v26 = vadd.f32 2.3753915, %v256_v13 }
  0x41   :  { %844 = vrcp.f32 %v702_v22  ;;  %v415_v33 = vadd.f32 0.02996348, %v383_v39  ;;  %v576_v34 = vadd.f32 4.408118, %v544_v23  ;;  %v225_v29 = vadd.f32 3.0660808, %v193_v24 }
  0x42   :  { %797 = vst [vmem:[%s1551_s3 + $0x38] sm:$0xff] %v765_v31  ;;  %846 = vrcp.f32 %v703_v14  ;;  %v320_v40 = vmul.f32 %v288_v26, %v1094_v38  ;;  %v481_v41 = vmul.f32 0.34885982, %v1132_v17  ;;  %v1149_v42 = vadd.f32 %v925_v2, %v62_v4 }
  0x43   :  { %v608_v43 = vmul.f32 %v576_v34, %v1110_v51  ;;  %v257_v44 = vmul.f32 %v225_v29, %v1114_v20  ;;  %v1154_v45 = vadd.f32 %v925_v2, %v63_v6  ;;  %v64_v46 = vmul.f32 %v920_v1, %v28_v9 }
  0x44   :  { %v352_v25 = vadd.f32 0.61690164, %v320_v40  ;;  %v513_v48 = vadd.f32 0.91111034, %v481_v41  ;;  %v130_v28 = vmul.f32 0.25281987, %v1149_v42  ;;  %v65_v49 = vmul.f32 %v920_v1, %v29_v32 }
  0x45   :  { %v640_v15 = vadd.f32 1.1916082, %v608_v43  ;;  %v289_v36 = vadd.f32 2.3753915, %v257_v44  ;;  %v450_v35 = vand.u32 2147483647, %v1149_v42  ;;  %v1161_v30 = vadd.f32 %v925_v2, %v64_v46 }
  0x46   :  { %v384_v16 = vmul.f32 %v352_v25, %v1094_v38  ;;  %v545_v50 = vmul.f32 %v513_v48, %v1132_v17  ;;  %v162_v52 = vadd.f32 1.5247445, %v130_v28  ;;  %v131_v54 = vmul.f32 0.25281987, %v1154_v45 }
  0x47   :  { %v845_v55 = vpop.eup %844  ;;  %v672_v56 = vmul.f32 %v640_v15, %v1110_v51  ;;  %v321_v57 = vmul.f32 %v289_v36, %v1114_v20  ;;  %v482_v58 = vmul.f32 0.34885982, %v450_v35  ;;  %v1169_v59 = vand.u32 2147483647, %v1154_v45 }
  0x48   :  { %v847_v60 = vpop.eup %846  ;;  %v766_v61 = vmul.f32 %v845_v55, %v414_v47  ;;  %v416_v62 = vadd.f32 0.02996348, %v384_v16  ;;  %v577_v63 = vadd.f32 4.408118, %v545_v50  ;;  %v194_v38 = vmul.f32 %v162_v52, %v1149_v42 }
  0x49   :  { %v767_v0 = vmul.f32 %v847_v60, %v415_v33  ;;  %v704_v37 = vadd.f32 1.0, %v672_v56  ;;  %v353_v3 = vadd.f32 0.61690164, %v321_v57  ;;  %v514_v19 = vadd.f32 0.91111034, %v482_v58 }
  0x4a   :  { %798 = vst [vmem:[%s1551_s3 + $0x40] sm:$0xff] %v766_v61  ;;  %v609_v51 = vmul.f32 %v577_v63, %v1132_v17  ;;  %v226_v4 = vadd.f32 3.0660808, %v194_v38  ;;  %v163_v5 = vadd.f32 1.5247445, %v131_v54  ;;  %v1177_v21 = vadd.f32 %v925_v2, %v65_v49 }
  0x4b   :  { %799 = vst [vmem:[%s1551_s3 + $0x48] sm:$0xff] %v767_v0  ;;  %848 = vrcp.f32 %v704_v37  ;;  %v385_v6 = vmul.f32 %v353_v3, %v1114_v20  ;;  %v546_v7 = vmul.f32 %v514_v19, %v450_v35  ;;  %v483_v27 = vmul.f32 0.34885982, %v1169_v59  ;;  %v31_v0 = vld [vmem:[%s1548_s0 + $0x88] sm:$0xff] }
  0x4c   :  { %v641_v8 = vadd.f32 1.1916082, %v609_v51  ;;  %v258_v10 = vmul.f32 %v226_v4, %v1149_v42  ;;  %v195_v11 = vmul.f32 %v163_v5, %v1154_v45  ;;  %v132_v12 = vmul.f32 0.25281987, %v1161_v30 }
  0x4d   :  { %v417_v13 = vadd.f32 0.02996348, %v385_v6  ;;  %v578_v18 = vadd.f32 4.408118, %v546_v7  ;;  %v515_v22 = vadd.f32 0.91111034, %v483_v27  ;;  %v66_v39 = vmul.f32 %v920_v1, %v30_v53 }
  0x4e   :  { %v673_v23 = vmul.f32 %v641_v8, %v1132_v17  ;;  %v290_v24 = vadd.f32 2.3753915, %v258_v10  ;;  %v227_v9 = vadd.f32 3.0660808, %v195_v11  ;;  %v164_v20 = vadd.f32 1.5247445, %v132_v12 }
  0x4f   :  { %v610_v31 = vmul.f32 %v578_v18, %v450_v35  ;;  %v547_v47 = vmul.f32 %v515_v22, %v1169_v59  ;;  %v452_v14 = vand.u32 2147483647, %v1161_v30  ;;  %v133_v26 = vmul.f32 0.25281987, %v1177_v21  ;;  %v32_v11 = vld [vmem:[%s1548_s0 + $0x90] sm:$0xff] }
  0x50   :  { %v705_v32 = vadd.f32 1.0, %v673_v23  ;;  %v322_v33 = vmul.f32 %v290_v24, %v1149_v42  ;;  %v259_v34 = vmul.f32 %v227_v9, %v1154_v45  ;;  %v196_v29 = vmul.f32 %v164_v20, %v1161_v30 }
  0x51   :  { %v849_v40 = vpop.eup %848  ;;  %v642_v41 = vadd.f32 1.1916082, %v610_v31  ;;  %v579_v17 = vadd.f32 4.408118, %v547_v47  ;;  %v484_v43 = vmul.f32 0.34885982, %v452_v14  ;;  %v1199_v44 = vadd.f32 %v925_v2, %v66_v39 }
  0x52   :  { %v768_v46 = vmul.f32 %v849_v40, %v416_v62  ;;  %850 = vrcp.f32 %v705_v32  ;;  %v354_v25 = vadd.f32 0.61690164, %v322_v33  ;;  %v291_v48 = vadd.f32 2.3753915, %v259_v34 }
  0x53   :  { %v674_v28 = vmul.f32 %v642_v41, %v450_v35  ;;  %v611_v49 = vmul.f32 %v579_v17, %v1169_v59  ;;  %v228_v15 = vadd.f32 3.0660808, %v196_v29  ;;  %v516_v36 = vadd.f32 0.91111034, %v484_v43 }
  0x54   :  { %800 = vst [vmem:[%s1551_s3 + $0x50] sm:$0xff] %v768_v46  ;;  %v386_v16 = vmul.f32 %v354_v25, %v1149_v42  ;;  %v323_v50 = vmul.f32 %v291_v48, %v1154_v45  ;;  %v165_v52 = vadd.f32 1.5247445, %v133_v26  ;;  %v1208_v54 = vand.u32 2147483647, %v1177_v21  ;;  %v33_v26 = vld [vmem:[%s1548_s0 + $0x98] sm:$0xff] }
  0x55   :  { %v706_v55 = vadd.f32 1.0, %v674_v28  ;;  %v643_v56 = vadd.f32 1.1916082, %v611_v49  ;;  %v260_v35 = vmul.f32 %v228_v15, %v1161_v30  ;;  %v548_v57 = vmul.f32 %v516_v36, %v452_v14 }
  0x56   :  { %v418_v58 = vadd.f32 0.02996348, %v386_v16  ;;  %v355_v60 = vadd.f32 0.61690164, %v323_v50  ;;  %v197_v61 = vmul.f32 %v165_v52, %v1177_v21  ;;  %v485_v62 = vmul.f32 0.34885982, %v1208_v54 }
  0x57   :  { %852 = vrcp.f32 %v706_v55  ;;  %v675_v42 = vmul.f32 %v643_v56, %v1169_v59  ;;  %v292_v63 = vadd.f32 2.3753915, %v260_v35  ;;  %v580_v38 = vadd.f32 4.408118, %v548_v57 }
  0x58   :  { %v851_v37 = vpop.eup %850  ;;  %v387_v3 = vmul.f32 %v355_v60, %v1154_v45  ;;  %v229_v19 = vadd.f32 3.0660808, %v197_v61  ;;  %v517_v51 = vadd.f32 0.91111034, %v485_v62  ;;  %v134_v4 = vmul.f32 0.25281987, %v1199_v44 }
  0x59   :  { %v769_v5 = vmul.f32 %v851_v37, %v417_v13  ;;  %v707_v53 = vadd.f32 1.0, %v675_v42  ;;  %v324_v6 = vmul.f32 %v292_v63, %v1161_v30  ;;  %v612_v7 = vmul.f32 %v580_v38, %v452_v14 }
  0x5a   :  { %v419_v27 = vadd.f32 0.02996348, %v387_v3  ;;  %v261_v59 = vmul.f32 %v229_v19, %v1177_v21  ;;  %v549_v8 = vmul.f32 %v517_v51, %v1208_v54  ;;  %v166_v10 = vadd.f32 1.5247445, %v134_v4 }
  0x5b   :  { %801 = vst [vmem:[%s1551_s3 + $0x58] sm:$0xff] %v769_v5  ;;  %854 = vrcp.f32 %v707_v53  ;;  %v356_v45 = vadd.f32 0.61690164, %v324_v6  ;;  %v644_v12 = vadd.f32 1.1916082, %v612_v7  ;;  %v67_v13 = vmul.f32 %v920_v1, %v31_v0  ;;  %v34_v53 = vld [vmem:[%s1548_s0 + $0xa0] sm:$0xff] }
  0x5c   :  { %v293_v18 = vadd.f32 2.3753915, %v261_v59  ;;  %v581_v22 = vadd.f32 4.408118, %v549_v8  ;;  %v198_v39 = vmul.f32 %v166_v10, %v1199_v44  ;;  %v1231_v23 = vand.u32 2147483647, %v1199_v44 }
  0x5d   :  { %v853_v24 = vpop.eup %852  ;;  %v388_v9 = vmul.f32 %v356_v45, %v1161_v30  ;;  %v676_v20 = vmul.f32 %v644_v12, %v452_v14  ;;  %v1235_v31 = vadd.f32 %v925_v2, %v67_v13  ;;  %v68_v47 = vmul.f32 %v920_v1, %v32_v11 }
  0x5e   :  { %v770_v32 = vmul.f32 %v853_v24, %v418_v58  ;;  %v325_v33 = vmul.f32 %v293_v18, %v1177_v21  ;;  %v613_v34 = vmul.f32 %v581_v22, %v1208_v54  ;;  %v230_v29 = vadd.f32 3.0660808, %v198_v39 }
  0x5f   :  { %v420_v40 = vadd.f32 0.02996348, %v388_v9  ;;  %v708_v41 = vadd.f32 1.0, %v676_v20  ;;  %v486_v30 = vmul.f32 0.34885982, %v1231_v23  ;;  %v1245_v14 = vadd.f32 %v925_v2, %v68_v47 }
  0x60   :  { %802 = vst [vmem:[%s1551_s3 + $0x60] sm:$0xff] %v770_v32  ;;  %v357_v17 = vadd.f32 0.61690164, %v325_v33  ;;  %v645_v43 = vadd.f32 1.1916082, %v613_v34  ;;  %v262_v46 = vmul.f32 %v230_v29, %v1199_v44  ;;  %v69_v25 = vmul.f32 %v920_v1, %v33_v26 }
  0x61   :  { %v855_v48 = vpop.eup %854  ;;  %856 = vrcp.f32 %v708_v41  ;;  %v518_v28 = vadd.f32 0.91111034, %v486_v30  ;;  %v135_v49 = vmul.f32 0.25281987, %v1235_v31  ;;  %v455_v15 = vand.u32 2147483647, %v1235_v31 }
  0x62   :  { %v771_v36 = vmul.f32 %v855_v48, %v419_v27  ;;  %v389_v16 = vmul.f32 %v357_v17, %v1177_v21  ;;  %v677_v50 = vmul.f32 %v645_v43, %v1208_v54  ;;  %v294_v52 = vadd.f32 2.3753915, %v262_v46 }
  0x63   :  { %v550_v55 = vmul.f32 %v518_v28, %v1231_v23  ;;  %v167_v56 = vadd.f32 1.5247445, %v135_v49  ;;  %v487_v35 = vmul.f32 0.34885982, %v455_v15  ;;  %v136_v57 = vmul.f32 0.25281987, %v1245_v14 }
  0x64   :  { %803 = vst [vmem:[%s1551_s3 + $0x68] sm:$0xff] %v771_v36  ;;  %v421_v58 = vadd.f32 0.02996348, %v389_v16  ;;  %v709_v60 = vadd.f32 1.0, %v677_v50  ;;  %v326_v61 = vmul.f32 %v294_v52, %v1199_v44  ;;  %v456_v62 = vand.u32 2147483647, %v1245_v14 }
  0x65   :  { %v582_v21 = vadd.f32 4.408118, %v550_v55  ;;  %v199_v54 = vmul.f32 %v167_v56, %v1235_v31  ;;  %v519_v42 = vadd.f32 0.91111034, %v487_v35  ;;  %v168_v63 = vadd.f32 1.5247445, %v136_v57 }
  0x66   :  { %858 = vrcp.f32 %v709_v60  ;;  %v358_v38 = vadd.f32 0.61690164, %v326_v61  ;;  %v488_v0 = vmul.f32 0.34885982, %v456_v62  ;;  %v1265_v37 = vadd.f32 %v925_v2, %v69_v25  ;;  %v35_v57 = vld [vmem:[%s1548_s0 + $0xa8] sm:$0xff] }
  0x67   :  { %v857_v3 = vpop.eup %856  ;;  %v614_v19 = vmul.f32 %v582_v21, %v1231_v23  ;;  %v231_v51 = vadd.f32 3.0660808, %v199_v54  ;;  %v551_v4 = vmul.f32 %v519_v42, %v455_v15  ;;  %v200_v5 = vmul.f32 %v168_v63, %v1245_v14 }
  0x68   :  { %v772_v6 = vmul.f32 %v857_v3, %v420_v40  ;;  %v390_v7 = vmul.f32 %v358_v38, %v1199_v44  ;;  %v520_v27 = vadd.f32 0.91111034, %v488_v0  ;;  %v137_v59 = vmul.f32 0.25281987, %v1265_v37  ;;  %v1314_v0 = vld [vmem:[%s1549_s1] ss:$0 sm:$0xff] }
  0x69   :  { %v646_v8 = vadd.f32 1.1916082, %v614_v19  ;;  %v263_v10 = vmul.f32 %v231_v51, %v1235_v31  ;;  %v583_v11 = vadd.f32 4.408118, %v551_v4  ;;  %v232_v45 = vadd.f32 3.0660808, %v200_v5 }
  0x6a   :  { %804 = vst [vmem:[%s1551_s3 + $0x70] sm:$0xff] %v772_v6  ;;  %v422_v12 = vadd.f32 0.02996348, %v390_v7  ;;  %v552_v13 = vmul.f32 %v520_v27, %v456_v62  ;;  %v169_v18 = vadd.f32 1.5247445, %v137_v59  ;;  %v70_v22 = vmul.f32 %v920_v1, %v34_v53  ;;  %v38_v53 = vld [vmem:[%s1548_s0 + $0xc0] sm:$0xff] }
  0x6b   :  { %v678_v39 = vmul.f32 %v646_v8, %v1231_v23  ;;  %v295_v44 = vadd.f32 2.3753915, %v263_v10  ;;  %v615_v24 = vmul.f32 %v583_v11, %v455_v15  ;;  %v264_v9 = vmul.f32 %v232_v45, %v1245_v14  ;;  %v1330_v59 = vld [vmem:[%s1550_s2] ss:$0 sm:$0xff] }
  0x6c   :  { %v859_v20 = vpop.eup %858  ;;  %v584_v47 = vadd.f32 4.408118, %v552_v13  ;;  %v201_v26 = vmul.f32 %v169_v18, %v1265_v37  ;;  %v1283_v32 = vand.u32 2147483647, %v1265_v37  ;;  %v1286_v33 = vadd.f32 %v925_v2, %v70_v22  ;;  %v39_v13 = vld [vmem:[%s1548_s0 + $0xc8] sm:$0xff] }
  0x6d   :  { %v773_v34 = vmul.f32 %v859_v20, %v421_v58  ;;  %v710_v29 = vadd.f32 1.0, %v678_v39  ;;  %v327_v1 = vmul.f32 %v295_v44, %v1235_v31  ;;  %v647_v40 = vadd.f32 1.1916082, %v615_v24  ;;  %v36_v58 = vld [vmem:[%s1548_s0 + $0xb0] sm:$0xff] }
  0x6e   :  { %v296_v23 = vadd.f32 2.3753915, %v264_v9  ;;  %v616_v41 = vmul.f32 %v584_v47, %v456_v62  ;;  %v233_v30 = vadd.f32 3.0660808, %v201_v26  ;;  %v489_v17 = vmul.f32 0.34885982, %v1283_v32 }
  0x6f   :  { %805 = vst [vmem:[%s1551_s3 + $0x78] sm:$0xff] %v773_v34  ;;  %860 = vrcp.f32 %v710_v29  ;;  %v359_v43 = vadd.f32 0.61690164, %v327_v1  ;;  %v679_v46 = vmul.f32 %v647_v40, %v455_v15  ;;  %v138_v2 = vmul.f32 0.25281987, %v1286_v33 }
  0x70   :  { %v328_v25 = vmul.f32 %v296_v23, %v1245_v14  ;;  %v648_v48 = vadd.f32 1.1916082, %v616_v41  ;;  %v265_v28 = vmul.f32 %v233_v30, %v1265_v37  ;;  %v521_v49 = vadd.f32 0.91111034, %v489_v17 }
  0x71   :  { %v391_v36 = vmul.f32 %v359_v43, %v1235_v31  ;;  %v711_v16 = vadd.f32 1.0, %v679_v46  ;;  %v170_v50 = vadd.f32 1.5247445, %v138_v2  ;;  %v1298_v52 = vand.u32 2147483647, %v1286_v33 }
  0x72   :  { %v360_v55 = vadd.f32 0.61690164, %v328_v25  ;;  %v680_v56 = vmul.f32 %v648_v48, %v456_v62  ;;  %v297_v35 = vadd.f32 2.3753915, %v265_v28  ;;  %v553_v15 = vmul.f32 %v521_v49, %v1283_v32 }
  0x73   :  { %862 = vrcp.f32 %v711_v16  ;;  %v202_v31 = vmul.f32 %v170_v50, %v1286_v33  ;;  %v490_v60 = vmul.f32 0.34885982, %v1298_v52  ;;  %v71_v3 = vmul.f32 %v1314_v0, %v35_v57 }
  0x74   :  { %v392_v61 = vmul.f32 %v360_v55, %v1245_v14  ;;  %v712_v21 = vadd.f32 1.0, %v680_v56  ;;  %v329_v62 = vmul.f32 %v297_v35, %v1265_v37  ;;  %v585_v54 = vadd.f32 4.408118, %v553_v15  ;;  %v37_v14 = vld [vmem:[%s1548_s0 + $0xb8] sm:$0xff] }
  0x75   :  { %v861_v42 = vpop.eup %860  ;;  %v234_v63 = vadd.f32 3.0660808, %v202_v31  ;;  %v522_v38 = vadd.f32 0.91111034, %v490_v60  ;;  %v72_v19 = vmul.f32 %v1314_v0, %v36_v58  ;;  %v423_v4 = vadd.f32 0.02996348, %v391_v36 }
  0x76   :  { %v774_v51 = vmul.f32 %v861_v42, %v422_v12  ;;  %864 = vrcp.f32 %v712_v21  ;;  %v361_v5 = vadd.f32 0.61690164, %v329_v62  ;;  %v617_v6 = vmul.f32 %v585_v54, %v1283_v32 }
  0x77   :  { %v266_v7 = vmul.f32 %v234_v63, %v1286_v33  ;;  %v554_v27 = vmul.f32 %v522_v38, %v1298_v52  ;;  %v1333_v8 = vadd.f32 %v1330_v59, %v71_v3  ;;  %v424_v10 = vadd.f32 0.02996348, %v392_v61 }
  0x78   :  { %806 = vst [vmem:[%s1551_s3 + $0x80] sm:$0xff] %v774_v51  ;;  %v393_v11 = vmul.f32 %v361_v5, %v1265_v37  ;;  %v1340_v45 = vadd.f32 %v1330_v59, %v72_v19  ;;  %v73_v12 = vmul.f32 %v1314_v0, %v37_v14  ;;  %v649_v22 = vadd.f32 1.1916082, %v617_v6 }
  0x79   :  { %v863_v18 = vpop.eup %862  ;;  %v298_v39 = vadd.f32 2.3753915, %v266_v7  ;;  %v586_v44 = vadd.f32 4.408118, %v554_v27  ;;  %v74_v24 = vmul.f32 %v1314_v0, %v38_v53  ;;  %v139_v47 = vmul.f32 0.25281987, %v1333_v8 }
  0x7a   :  { %v775_v9 = vmul.f32 %v863_v18, %v423_v4  ;;  %v425_v20 = vadd.f32 0.02996348, %v393_v11  ;;  %v459_v37 = vand.u32 2147483647, %v1333_v8  ;;  %v681_v26 = vmul.f32 %v649_v22, %v1283_v32 }
  0x7b   :  { %v330_v34 = vmul.f32 %v298_v39, %v1286_v33  ;;  %v618_v29 = vmul.f32 %v586_v44, %v1298_v52  ;;  %v140_v1 = vmul.f32 0.25281987, %v1340_v45  ;;  %v171_v23 = vadd.f32 1.5247445, %v139_v47 }
  0x7c   :  { %v865_v40 = vpop.eup %864  ;;  %807 = vst [vmem:[%s1551_s3 + $0x88] sm:$0xff] %v775_v9  ;;  %v491_v41 = vmul.f32 0.34885982, %v459_v37  ;;  %v1357_v30 = vadd.f32 %v1330_v59, %v73_v12  ;;  %v1360_v17 = vmul.f32 %v1314_v0, %v39_v13  ;;  %v713_v43 = vadd.f32 1.0, %v681_v26 }
  0x7d   :  { %v776_v32 = vmul.f32 %v865_v40, %v424_v10  ;;  %v362_v46 = vadd.f32 0.61690164, %v330_v34  ;;  %v650_v2 = vadd.f32 1.1916082, %v618_v29  ;;  %v203_v25 = vmul.f32 %v171_v23, %v1333_v8 }
  0x7e   :  { %v523_v48 = vadd.f32 0.91111034, %v491_v41  ;;  %v172_v28 = vadd.f32 1.5247445, %v140_v1  ;;  %v1364_v49 = vand.u32 2147483647, %v1340_v45  ;;  %866 = vrcp.f32 %v713_v43 }
  0x7f   :  { %808 = vst [vmem:[%s1551_s3 + $0x90] sm:$0xff] %v776_v32  ;;  %v394_v36 = vmul.f32 %v362_v46, %v1286_v33  ;;  %v682_v16 = vmul.f32 %v650_v2, %v1298_v52  ;;  %v141_v50 = vmul.f32 0.25281987, %v1357_v30  ;;  %v235_v55 = vadd.f32 3.0660808, %v203_v25  ;;  %v40_v33 = vld [vmem:[%s1548_s0 + $0xd0] sm:$0xff] }
  0x80   :  { %v555_v56 = vmul.f32 %v523_v48, %v459_v37  ;;  %v204_v35 = vmul.f32 %v172_v28, %v1340_v45  ;;  %v492_v15 = vmul.f32 0.34885982, %v1364_v49  ;;  %v1375_v60 = vadd.f32 %v1330_v59, %v74_v24 }
  0x81   :  { %v426_v57 = vadd.f32 0.02996348, %v394_v36  ;;  %v714_v58 = vadd.f32 1.0, %v682_v16  ;;  %v173_v31 = vadd.f32 1.5247445, %v141_v50  ;;  %v267_v52 = vmul.f32 %v235_v55, %v1333_v8 }
  0x82   :  { %v587_v61 = vadd.f32 4.408118, %v555_v56  ;;  %v236_v21 = vadd.f32 3.0660808, %v204_v35  ;;  %v524_v62 = vadd.f32 0.91111034, %v492_v15  ;;  %v76_v6 = vmul.f32 %v1314_v0, %v40_v33 }
  0x83   :  { %868 = vrcp.f32 %v714_v58  ;;  %v205_v54 = vmul.f32 %v173_v31, %v1357_v30  ;;  %v461_v42 = vand.u32 2147483647, %v1357_v30  ;;  %v142_v63 = vmul.f32 0.25281987, %v1375_v60 }
  0x84   :  { %v299_v38 = vadd.f32 2.3753915, %v267_v52  ;;  %v619_v3 = vmul.f32 %v587_v61, %v459_v37  ;;  %v268_v19 = vmul.f32 %v236_v21, %v1340_v45  ;;  %v556_v14 = vmul.f32 %v524_v62, %v1364_v49  ;;  %v867_v51 = vpop.eup %866  ;;  %v41_v62 = vld [vmem:[%s1548_s0 + $0xd8] sm:$0xff] }
  0x85   :  { %v237_v4 = vadd.f32 3.0660808, %v205_v54  ;;  %v493_v5 = vmul.f32 0.34885982, %v461_v42  ;;  %v174_v53 = vadd.f32 1.5247445, %v142_v63  ;;  %v777_v7 = vmul.f32 %v867_v51, %v425_v20 }
  0x86   :  { %v331_v27 = vmul.f32 %v299_v38, %v1333_v8  ;;  %v651_v10 = vadd.f32 1.1916082, %v619_v3  ;;  %v300_v11 = vadd.f32 2.3753915, %v268_v19  ;;  %v588_v12 = vadd.f32 4.408118, %v556_v14 }
  0x87   :  { %v269_v13 = vmul.f32 %v237_v4, %v1357_v30  ;;  %v525_v18 = vadd.f32 0.91111034, %v493_v5  ;;  %v206_v22 = vmul.f32 %v174_v53, %v1375_v60  ;;  %809 = vst [vmem:[%s1551_s3 + $0x98] sm:$0xff] %v777_v7  ;;  %v1395_v9 = vand.u32 2147483647, %v1375_v60  ;;  %v42_v7 = vld [vmem:[%s1548_s0 + $0xe0] sm:$0xff] }
  0x88   :  { %v363_v39 = vadd.f32 0.61690164, %v331_v27  ;;  %v683_v44 = vmul.f32 %v651_v10, %v459_v37  ;;  %v332_v24 = vmul.f32 %v300_v11, %v1340_v45  ;;  %v620_v47 = vmul.f32 %v588_v12, %v1364_v49 }
  0x89   :  { %v869_v20 = vpop.eup %868  ;;  %v301_v26 = vadd.f32 2.3753915, %v269_v13  ;;  %v557_v34 = vmul.f32 %v525_v18, %v461_v42  ;;  %v238_v29 = vadd.f32 3.0660808, %v206_v22  ;;  %v494_v25 = vmul.f32 0.34885982, %v1395_v9 }
  0x8a   :  { %v778_v1 = vmul.f32 %v869_v20, %v426_v57  ;;  %v395_v40 = vmul.f32 %v363_v39, %v1333_v8  ;;  %v715_v23 = vadd.f32 1.0, %v683_v44  ;;  %v364_v41 = vadd.f32 0.61690164, %v332_v24 }
  0x8b   :  { %v652_v32 = vadd.f32 1.1916082, %v620_v47  ;;  %v333_v43 = vmul.f32 %v301_v26, %v1357_v30  ;;  %v589_v37 = vadd.f32 4.408118, %v557_v34  ;;  %v270_v46 = vmul.f32 %v238_v29, %v1375_v60 }
  0x8c   :  { %810 = vst [vmem:[%s1551_s3 + $0xa0] sm:$0xff] %v778_v1  ;;  %870 = vrcp.f32 %v715_v23  ;;  %v396_v2 = vmul.f32 %v364_v41, %v1340_v45  ;;  %v1408_v8 = vadd.f32 %v1330_v59, %v1360_v17  ;;  %v427_v50 = vadd.f32 0.02996348, %v395_v40  ;;  %v43_v1 = vld [vmem:[%s1548_s0 + $0xe8] sm:$0xff] }
  0x8d   :  { %v684_v48 = vmul.f32 %v652_v32, %v1364_v49  ;;  %v365_v28 = vadd.f32 0.61690164, %v333_v43  ;;  %v621_v36 = vmul.f32 %v589_v37, %v461_v42  ;;  %v302_v16 = vadd.f32 2.3753915, %v270_v46 }
  0x8e   :  { %v526_v55 = vadd.f32 0.91111034, %v494_v25  ;;  %v143_v56 = vmul.f32 0.25281987, %v1408_v8  ;;  %v1413_v35 = vadd.f32 %v1330_v59, %v76_v6  ;;  %v428_v15 = vadd.f32 0.02996348, %v396_v2 }
  0x8f   :  { %v716_v45 = vadd.f32 1.0, %v684_v48  ;;  %v653_v57 = vadd.f32 1.1916082, %v621_v36  ;;  %v334_v58 = vmul.f32 %v302_v16, %v1375_v60  ;;  %v1418_v49 = vand.u32 2147483647, %v1408_v8 }
  0x90   :  { %v558_v17 = vmul.f32 %v526_v55, %v1395_v9  ;;  %v175_v31 = vadd.f32 1.5247445, %v143_v56  ;;  %v144_v33 = vmul.f32 0.25281987, %v1413_v35  ;;  %v397_v52 = vmul.f32 %v365_v28, %v1357_v30 }
  0x91   :  { %872 = vrcp.f32 %v716_v45  ;;  %v685_v61 = vmul.f32 %v653_v57, %v461_v42  ;;  %v366_v21 = vadd.f32 0.61690164, %v334_v58  ;;  %v495_v3 = vmul.f32 0.34885982, %v1418_v49  ;;  %v44_v58 = vld [vmem:[%s1548_s0 + $0xf0] sm:$0xff] }
  0x92   :  { %v871_v54 = vpop.eup %870  ;;  %v590_v63 = vadd.f32 4.408118, %v558_v17  ;;  %v207_v38 = vmul.f32 %v175_v31, %v1408_v8  ;;  %v176_v19 = vadd.f32 1.5247445, %v144_v33  ;;  %v464_v5 = vand.u32 2147483647, %v1413_v35 }
  0x93   :  { %v779_v14 = vmul.f32 %v871_v54, %v427_v50  ;;  %v717_v51 = vadd.f32 1.0, %v685_v61  ;;  %v398_v4 = vmul.f32 %v366_v21, %v1375_v60  ;;  %v527_v53 = vadd.f32 0.91111034, %v495_v3 }
  0x94   :  { %v622_v30 = vmul.f32 %v590_v63, %v1395_v9  ;;  %v239_v42 = vadd.f32 3.0660808, %v207_v38  ;;  %v208_v6 = vmul.f32 %v176_v19, %v1413_v35  ;;  %v429_v27 = vadd.f32 0.02996348, %v397_v52 }
  0x95   :  { %811 = vst [vmem:[%s1551_s3 + $0xa8] sm:$0xff] %v779_v14  ;;  %874 = vrcp.f32 %v717_v51  ;;  %v496_v10 = vmul.f32 0.34885982, %v464_v5  ;;  %v77_v60 = vmul.f32 %v1314_v0, %v41_v62  ;;  %v559_v13 = vmul.f32 %v527_v53, %v1418_v49 }
  0x96   :  { %v654_v11 = vadd.f32 1.1916082, %v622_v30  ;;  %v271_v12 = vmul.f32 %v239_v42, %v1408_v8  ;;  %v240_v18 = vadd.f32 3.0660808, %v208_v6  ;;  %v430_v39 = vadd.f32 0.02996348, %v398_v4 }
  0x97   :  { %v873_v22 = vpop.eup %872  ;;  %v528_v44 = vadd.f32 0.91111034, %v496_v10  ;;  %v1441_v24 = vadd.f32 %v1330_v59, %v77_v60  ;;  %v78_v20 = vmul.f32 %v1314_v0, %v42_v7  ;;  %v591_v29 = vadd.f32 4.408118, %v559_v13 }
  0x98   :  { %v780_v47 = vmul.f32 %v873_v22, %v428_v15  ;;  %v686_v26 = vmul.f32 %v654_v11, %v1395_v9  ;;  %v303_v34 = vadd.f32 2.3753915, %v271_v12  ;;  %v272_v40 = vmul.f32 %v240_v18, %v1413_v35 }
  0x99   :  { %v560_v23 = vmul.f32 %v528_v44, %v464_v5  ;;  %v145_v41 = vmul.f32 0.25281987, %v1441_v24  ;;  %v1451_v32 = vand.u32 2147483647, %v1441_v24  ;;  %v623_v37 = vmul.f32 %v591_v29, %v1418_v49 }
  0x9a   :  { %812 = vst [vmem:[%s1551_s3 + $0xb0] sm:$0xff] %v780_v47  ;;  %v718_v43 = vadd.f32 1.0, %v686_v26  ;;  %v335_v9 = vmul.f32 %v303_v34, %v1408_v8  ;;  %v1459_v46 = vadd.f32 %v1330_v59, %v78_v20  ;;  %v304_v25 = vadd.f32 2.3753915, %v272_v40 }
  0x9b   :  { %v875_v2 = vpop.eup %874  ;;  %v592_v48 = vadd.f32 4.408118, %v560_v23  ;;  %v177_v28 = vadd.f32 1.5247445, %v145_v41  ;;  %v79_v36 = vmul.f32 %v1314_v0, %v43_v1  ;;  %v655_v55 = vadd.f32 1.1916082, %v623_v37 }
  0x9c   :  { %v781_v16 = vmul.f32 %v875_v2, %v429_v27  ;;  %876 = vrcp.f32 %v718_v43  ;;  %v367_v50 = vadd.f32 0.61690164, %v335_v9  ;;  %v336_v56 = vmul.f32 %v304_v25, %v1413_v35 }
  0x9d   :  { %v624_v15 = vmul.f32 %v592_v48, %v464_v5  ;;  %v209_v45 = vmul.f32 %v177_v28, %v1441_v24  ;;  %v497_v57 = vmul.f32 0.34885982, %v1451_v32  ;;  %v687_v31 = vmul.f32 %v655_v55, %v1418_v49 }
  0x9e   :  { %813 = vst [vmem:[%s1551_s3 + $0xb8] sm:$0xff] %v781_v16  ;;  %v399_v17 = vmul.f32 %v367_v50, %v1408_v8  ;;  %v146_v33 = vmul.f32 0.25281987, %v1459_v46  ;;  %v1475_v52 = vand.u32 2147483647, %v1459_v46  ;;  %v1478_v38 = vadd.f32 %v1330_v59, %v79_v36 }
  0x9f   :  { %v368_v61 = vadd.f32 0.61690164, %v336_v56  ;;  %v656_v21 = vadd.f32 1.1916082, %v624_v15  ;;  %v241_v62 = vadd.f32 3.0660808, %v209_v45  ;;  %v80_v3 = vmul.f32 %v1314_v0, %v44_v58 }
  0xa0   :  { %v719_v54 = vadd.f32 1.0, %v687_v31  ;;  %v529_v63 = vadd.f32 0.91111034, %v497_v57  ;;  %v431_v19 = vadd.f32 0.02996348, %v399_v17 }
  0xa1   :  { %v688_v14 = vmul.f32 %v656_v21, %v464_v5  ;;  %v273_v8 = vmul.f32 %v241_v62, %v1441_v24  ;;  %v178_v49 = vadd.f32 1.5247445, %v146_v33  ;;  %v498_v30 = vmul.f32 0.34885982, %v1475_v52  ;;  %v45_v5 = vld [vmem:[%s1548_s0 + $0xf8] sm:$0xff] }
  0xa2   :  { %v877_v51 = vpop.eup %876  ;;  %878 = vrcp.f32 %v719_v54  ;;  %v561_v4 = vmul.f32 %v529_v63, %v1451_v32  ;;  %v147_v42 = vmul.f32 0.25281987, %v1478_v38  ;;  %v400_v6 = vmul.f32 %v368_v61, %v1413_v35 }
  0xa3   :  { %v782_v53 = vmul.f32 %v877_v51, %v430_v39  ;;  %v720_v7 = vadd.f32 1.0, %v688_v14  ;;  %v305_v27 = vadd.f32 2.3753915, %v273_v8  ;;  %v210_v60 = vmul.f32 %v178_v49, %v1459_v46 }
  0xa4   :  { %v593_v10 = vadd.f32 4.408118, %v561_v4  ;;  %v530_v11 = vadd.f32 0.91111034, %v498_v30  ;;  %v179_v12 = vadd.f32 1.5247445, %v147_v42  ;;  %v1496_v18 = vadd.f32 %v1330_v59, %v80_v3 }
  0xa5   :  { %814 = vst [vmem:[%s1551_s3 + $0xc0] sm:$0xff] %v782_v53  ;;  %880 = vrcp.f32 %v720_v7  ;;  %v337_v13 = vmul.f32 %v305_v27, %v1441_v24  ;;  %v467_v35 = vand.u32 2147483647, %v1478_v38  ;;  %v242_v39 = vadd.f32 3.0660808, %v210_v60 }
  0xa6   :  { %v625_v22 = vmul.f32 %v593_v10, %v1451_v32  ;;  %v562_v44 = vmul.f32 %v530_v11, %v1475_v52  ;;  %v211_v20 = vmul.f32 %v179_v12, %v1478_v38  ;;  %v432_v47 = vadd.f32 0.02996348, %v400_v6 }
  0xa7   :  { %v499_v26 = vmul.f32 0.34885982, %v467_v35  ;;  %v148_v34 = vmul.f32 0.25281987, %v1496_v18  ;;  %v81_v29 = vmul.f32 %v1314_v0, %v45_v5  ;;  %v274_v23 = vmul.f32 %v242_v39, %v1459_v46 }
  0xa8   :  { %v879_v1 = vpop.eup %878  ;;  %v657_v40 = vadd.f32 1.1916082, %v625_v22  ;;  %v594_v41 = vadd.f32 4.408118, %v562_v44  ;;  %v243_v43 = vadd.f32 3.0660808, %v211_v20 }
  0xa9   :  { %v783_v9 = vmul.f32 %v879_v1, %v431_v19  ;;  %v369_v37 = vadd.f32 0.61690164, %v337_v13  ;;  %v531_v2 = vadd.f32 0.91111034, %v499_v26  ;;  %v180_v25 = vadd.f32 1.5247445, %v148_v34 }
  0xaa   :  { %v689_v48 = vmul.f32 %v657_v40, %v1451_v32  ;;  %v306_v28 = vadd.f32 2.3753915, %v274_v23  ;;  %v626_v36 = vmul.f32 %v594_v41, %v1475_v52  ;;  %v275_v16 = vmul.f32 %v243_v43, %v1478_v38 }
  0xab   :  { %v881_v50 = vpop.eup %880  ;;  %815 = vst [vmem:[%s1551_s3 + $0xc8] sm:$0xff] %v783_v9  ;;  %v563_v0 = vmul.f32 %v531_v2, %v467_v35  ;;  %v212_v55 = vmul.f32 %v180_v25, %v1496_v18  ;;  %v468_v56 = vand.u32 2147483647, %v1496_v18  ;;  %v1513_v15 = vadd.f32 %v1330_v59, %v81_v29 }
  0xac   :  { %v784_v45 = vmul.f32 %v881_v50, %v432_v47  ;;  %v721_v32 = vadd.f32 1.0, %v689_v48  ;;  %v338_v57 = vmul.f32 %v306_v28, %v1459_v46  ;;  %v658_v58 = vadd.f32 1.1916082, %v626_v36 }
  0xad   :  { %v401_v17 = vmul.f32 %v369_v37, %v1441_v24  ;;  %v307_v31 = vadd.f32 2.3753915, %v275_v16  ;;  %v595_v33 = vadd.f32 4.408118, %v563_v0  ;;  %v244_v61 = vadd.f32 3.0660808, %v212_v55 }
  0xae   :  { %816 = vst [vmem:[%s1551_s3 + $0xd0] sm:$0xff] %v784_v45  ;;  %882 = vrcp.f32 %v721_v32  ;;  %v370_v21 = vadd.f32 0.61690164, %v338_v57  ;;  %v690_v62 = vmul.f32 %v658_v58, %v1475_v52  ;;  %v500_v59 = vmul.f32 0.34885982, %v468_v56 }
  0xaf   :  { %v339_v54 = vmul.f32 %v307_v31, %v1478_v38  ;;  %v627_v63 = vmul.f32 %v595_v33, %v467_v35  ;;  %v276_v3 = vmul.f32 %v244_v61, %v1496_v18  ;;  %v149_v19 = vmul.f32 0.25281987, %v1513_v15 }
  0xb0   :  { %v722_v24 = vadd.f32 1.0, %v690_v62  ;;  %v532_v14 = vadd.f32 0.91111034, %v500_v59  ;;  %v469_v8 = vand.u32 2147483647, %v1513_v15  ;;  %v402_v51 = vmul.f32 %v370_v21, %v1459_v46 }
  0xb1   :  { %v433_v49 = vadd.f32 0.02996348, %v401_v17  ;;  %v659_v4 = vadd.f32 1.1916082, %v627_v63  ;;  %v308_v30 = vadd.f32 2.3753915, %v276_v3 }
  0xb2   :  { %884 = vrcp.f32 %v722_v24  ;;  %v371_v42 = vadd.f32 0.61690164, %v339_v54  ;;  %v564_v52 = vmul.f32 %v532_v14, %v468_v56  ;;  %v181_v53 = vadd.f32 1.5247445, %v149_v19 }
  0xb3   :  { %v691_v6 = vmul.f32 %v659_v4, %v467_v35  ;;  %v501_v7 = vmul.f32 0.34885982, %v469_v8  ;;  %v434_v11 = vadd.f32 0.02996348, %v402_v51  ;;  %v340_v13 = vmul.f32 %v308_v30, %v1496_v18 }
  0xb4   :  { %v883_v27 = vpop.eup %882  ;;  %v596_v5 = vadd.f32 4.408118, %v564_v52  ;;  %v213_v10 = vmul.f32 %v181_v53, %v1513_v15  ;;  %v403_v22 = vmul.f32 %v371_v42, %v1478_v38 }
  0xb5   :  { %v785_v60 = vmul.f32 %v883_v27, %v433_v49  ;;  %v723_v12 = vadd.f32 1.0, %v691_v6  ;;  %v533_v44 = vadd.f32 0.91111034, %v501_v7  ;;  %v372_v29 = vadd.f32 0.61690164, %v340_v13 }
  0xb6   :  { %v628_v46 = vmul.f32 %v596_v5, %v468_v56  ;;  %v245_v39 = vadd.f32 3.0660808, %v213_v10  ;;  %v435_v1 = vadd.f32 0.02996348, %v403_v22 }
  0xb7   :  { %817 = vst [vmem:[%s1551_s3 + $0xd8] sm:$0xff] %v785_v60  ;;  %886 = vrcp.f32 %v723_v12  ;;  %v565_v26 = vmul.f32 %v533_v44, %v469_v8  ;;  %v404_v2 = vmul.f32 %v372_v29, %v1496_v18 }
  0xb8   :  { %v885_v35 = vpop.eup %884  ;;  %v660_v20 = vadd.f32 1.1916082, %v628_v46  ;;  %v277_v47 = vmul.f32 %v245_v39, %v1513_v15 }
  0xb9   :  { %v786_v34 = vmul.f32 %v885_v35, %v434_v11  ;;  %v597_v41 = vadd.f32 4.408118, %v565_v26  ;;  %v436_v16 = vadd.f32 0.02996348, %v404_v2 }
  0xba   :  { %v692_v40 = vmul.f32 %v660_v20, %v468_v56  ;;  %v309_v23 = vadd.f32 2.3753915, %v277_v47 }
  0xbb   :  { %818 = vst [vmem:[%s1551_s3 + $0xe0] sm:$0xff] %v786_v34  ;;  %v629_v9 = vmul.f32 %v597_v41, %v469_v8 }
  0xbc   :  { %v724_v38 = vadd.f32 1.0, %v692_v40  ;;  %v341_v43 = vmul.f32 %v309_v23, %v1513_v15 }
  0xbd   :  { %v887_v37 = vpop.eup %886  ;;  %v661_v48 = vadd.f32 1.1916082, %v629_v9 }
  0xbe   :  { %v787_v25 = vmul.f32 %v887_v37, %v435_v1  ;;  %888 = vrcp.f32 %v724_v38  ;;  %v373_v28 = vadd.f32 0.61690164, %v341_v43 }
  0xbf   :  { %v693_v36 = vmul.f32 %v661_v48, %v469_v8 }
  0xc0   :  { %819 = vst [vmem:[%s1551_s3 + $0xe8] sm:$0xff] %v787_v25  ;;  %v405_v0 = vmul.f32 %v373_v28, %v1513_v15 }
  0xc1   :  { %v725_v50 = vadd.f32 1.0, %v693_v36 }
  0xc2   :  { %v437_v18 = vadd.f32 0.02996348, %v405_v0 }
  0xc3   :  { %890 = vrcp.f32 %v725_v50 }
  0xc4   :  { %v889_v55 = vpop.eup %888 }
  0xc5   :  { %v788_v56 = vmul.f32 %v889_v55, %v436_v16 }
  0xc7   :  { %820 = vst [vmem:[%s1551_s3 + $0xf0] sm:$0xff] %v788_v56 }
  0xc9   :  { %v891_v45 = vpop.eup %890 }
  0xca   :  { %v789_v32 = vmul.f32 %v891_v45, %v437_v18 }
  0xcc   :  { %821 = vst [vmem:[%s1551_s3 + $0xf8] sm:$0xff] %v789_v32 }

// kernel: resnet_forward.40
= control target key start
LH: loop header
LB: loop body
LE: loop exit
PB: predicated region body
PF: predicated region fallthrough
CT: control target
= control target key end

     0   :  { %s2181_s1 = inlined_call_operand.vmem [shape: bf16[256,128], index: 1, kind: input, shape index: {}]   ;;  %s2182_s0 = inlined_call_operand.vmem [shape: bf16[512,256], index: 0, kind: input, shape index: {}]   ;;  %s2183_s2 = inlined_call_operand.vmem [shape: f32[512,128], index: 2, kind: output, shape index: {}]  }
   0x1   :  { %v1516_v0 = vld [vmem:[%s2181_s1 + $0x38] sm:$0xff]  ;;  %v1515_v2 = vld [vmem:[%s2181_s1 + $0x30] sm:$0xff]  ;;  %v1514_v4 = vld [vmem:[%s2181_s1 + $0x28] sm:$0xff] }
   0x2   :  { %v1524_v1 = vld [vmem:[%s2181_s1 + $0x78] sm:$0xff]  ;;  %655 = vmatpush.bf16.msra.mxu0 %v1516_v0  ;;  %1525 = vmatpush.bf16.msra.mxu2 %v1516_v0  ;;  %v1523_v3 = vld [vmem:[%s2181_s1 + $0x70] sm:$0xff]  ;;  %v1522_v5 = vld [vmem:[%s2181_s1 + $0x68] sm:$0xff] }
   0x3   :  { %824 = vmatpush.bf16.msra.mxu1 %v1524_v1  ;;  %1533 = vmatpush.bf16.msra.mxu3 %v1524_v1  ;;  %v1513_v6 = vld [vmem:[%s2181_s1 + $0x20] sm:$0xff]  ;;  %v1512_v8 = vld [vmem:[%s2181_s1 + $0x18] sm:$0xff]  ;;  %v1511_v10 = vld [vmem:[%s2181_s1 + $0x10] sm:$0xff] }
   0x4   :  { %v1521_v7 = vld [vmem:[%s2181_s1 + $0x60] sm:$0xff]  ;;  %v1520_v9 = vld [vmem:[%s2181_s1 + $0x58] sm:$0xff]  ;;  %v1519_v11 = vld [vmem:[%s2181_s1 + $0x50] sm:$0xff] }
   0x5   :  { %v1510_v12 = vld [vmem:[%s2181_s1 + $0x8] sm:$0xff]  ;;  %v1509_v14 = vld [vmem:[%s2181_s1] sm:$0xff]  ;;  %v1135_v28 = vld [vmem:[%s2182_s0 + $0x10] sm:$0xf] }
   0x6   :  { %656 = vmatpush.bf16.msra.mxu0 %v1515_v2  ;;  %1526 = vmatpush.bf16.msra.mxu2 %v1515_v2  ;;  %v1518_v13 = vld [vmem:[%s2181_s1 + $0x48] sm:$0xff]  ;;  %v1517_v15 = vld [vmem:[%s2181_s1 + $0x40] sm:$0xff]  ;;  %v1448_v29 = vld [vmem:[%s2182_s0 + $0x14] sm:$0xf0] }
   0x7   :  { %825 = vmatpush.bf16.msra.mxu1 %v1523_v3  ;;  %1534 = vmatpush.bf16.msra.mxu3 %v1523_v3  ;;  %v1127_v16 = vld [vmem:[%s2182_s0] sm:$0xf]  ;;  %v1446_v17 = vld [vmem:[%s2182_s0 + $0x4] sm:$0xf0]  ;;  %v1445_v20 = vld [vmem:[%s2182_s0 + $0x4] sm:$0xf]  ;;  %v1136_v36 = vor.u32 %v1448_v29, %v1135_v28 }
   0x8   :  { %v1255_v18 = vld [vmem:[%s2182_s0 + $0x100] sm:$0xf]  ;;  %v1478_v19 = vld [vmem:[%s2182_s0 + $0x104] sm:$0xf0]  ;;  %v1129_v21 = vld [vmem:[%s2182_s0 + $0x8] sm:$0xf0]  ;;  %v1128_v24 = vor.u32 %v1446_v17, %v1127_v16 }
   0x9   :  { %v1477_v22 = vld [vmem:[%s2182_s0 + $0x104] sm:$0xf]  ;;  %v1257_v23 = vld [vmem:[%s2182_s0 + $0x108] sm:$0xf0]  ;;  %v1256_v25 = vor.u32 %v1478_v19, %v1255_v18  ;;  %v1132_v26 = vor.u32 %v1445_v20, %v1129_v21  ;;  %v1263_v30 = vld [vmem:[%s2182_s0 + $0x110] sm:$0xf] }
   0xa   :  { %657 = vmatpush.bf16.msra.mxu0 %v1514_v4  ;;  %1527 = vmatpush.bf16.msra.mxu2 %v1514_v4  ;;  %v1260_v27 = vor.u32 %v1477_v22, %v1257_v23  ;;  %v1480_v31 = vld [vmem:[%s2182_s0 + $0x114] sm:$0xf0]  ;;  %v1447_v32 = vld [vmem:[%s2182_s0 + $0x14] sm:$0xf]  ;;  %v1137_v33 = vld [vmem:[%s2182_s0 + $0x18] sm:$0xf0] }
   0xb   :  { %826 = vmatpush.bf16.msra.mxu1 %v1522_v5  ;;  %1535 = vmatpush.bf16.msra.mxu3 %v1522_v5  ;;  %v1479_v34 = vld [vmem:[%s2182_s0 + $0x114] sm:$0xf]  ;;  %v1265_v35 = vld [vmem:[%s2182_s0 + $0x118] sm:$0xf0]  ;;  %v1264_v37 = vor.u32 %v1480_v31, %v1263_v30  ;;  %v1140_v38 = vor.u32 %v1447_v32, %v1137_v33  ;;  %v1143_v40 = vld [vmem:[%s2182_s0 + $0x20] sm:$0xf] }
   0xc   :  { %v1268_v39 = vor.u32 %v1479_v34, %v1265_v35  ;;  %v1450_v41 = vld [vmem:[%s2182_s0 + $0x24] sm:$0xf0]  ;;  %v1271_v42 = vld [vmem:[%s2182_s0 + $0x120] sm:$0xf]  ;;  %v1449_v44 = vld [vmem:[%s2182_s0 + $0x24] sm:$0xf] }
   0xd   :  { %v1482_v43 = vld [vmem:[%s2182_s0 + $0x124] sm:$0xf0]  ;;  %v1145_v45 = vld [vmem:[%s2182_s0 + $0x28] sm:$0xf0]  ;;  %v1481_v46 = vld [vmem:[%s2182_s0 + $0x124] sm:$0xf]  ;;  %v1144_v48 = vor.u32 %v1450_v41, %v1143_v40 }
   0xe   :  { %658 = vmatpush.bf16.msra.mxu0 %v1513_v6  ;;  %1528 = vmatpush.bf16.msra.mxu2 %v1513_v6  ;;  %v1273_v47 = vld [vmem:[%s2182_s0 + $0x128] sm:$0xf0]  ;;  %v1272_v49 = vor.u32 %v1482_v43, %v1271_v42  ;;  %v1148_v50 = vor.u32 %v1449_v44, %v1145_v45  ;;  %v1151_v52 = vld [vmem:[%s2182_s0 + $0x30] sm:$0xf]  ;;  %v1452_v53 = vld [vmem:[%s2182_s0 + $0x34] sm:$0xf0] }
   0xf   :  { %827 = vmatpush.bf16.msra.mxu1 %v1521_v7  ;;  %1536 = vmatpush.bf16.msra.mxu3 %v1521_v7  ;;  %v1276_v51 = vor.u32 %v1481_v46, %v1273_v47  ;;  %v1279_v54 = vld [vmem:[%s2182_s0 + $0x130] sm:$0xf]  ;;  %v1484_v55 = vld [vmem:[%s2182_s0 + $0x134] sm:$0xf0]  ;;  %v1451_v56 = vld [vmem:[%s2182_s0 + $0x34] sm:$0xf]  ;;  %v1152_v60 = vor.u32 %v1452_v53, %v1151_v52 }
  0x10   :  { %v1153_v57 = vld [vmem:[%s2182_s0 + $0x38] sm:$0xf0]  ;;  %v1483_v58 = vld [vmem:[%s2182_s0 + $0x134] sm:$0xf]  ;;  %v1280_v61 = vor.u32 %v1484_v55, %v1279_v54  ;;  %v1159_v0 = vld [vmem:[%s2182_s0 + $0x40] sm:$0xf] }
  0x11   :  { %v1281_v59 = vld [vmem:[%s2182_s0 + $0x138] sm:$0xf0]  ;;  %v1156_v62 = vor.u32 %v1451_v56, %v1153_v57  ;;  %v1454_v1 = vld [vmem:[%s2182_s0 + $0x44] sm:$0xf0]  ;;  %v1287_v2 = vld [vmem:[%s2182_s0 + $0x140] sm:$0xf] }
  0x12   :  { %659 = vmatpush.bf16.msra.mxu0 %v1512_v8  ;;  %1529 = vmatpush.bf16.msra.mxu2 %v1512_v8  ;;  %v1284_v63 = vor.u32 %v1483_v58, %v1281_v59  ;;  %v1486_v3 = vld [vmem:[%s2182_s0 + $0x144] sm:$0xf0]  ;;  %v1453_v4 = vld [vmem:[%s2182_s0 + $0x44] sm:$0xf]  ;;  %v1161_v5 = vld [vmem:[%s2182_s0 + $0x48] sm:$0xf0]  ;;  %v1160_v8 = vor.u32 %v1454_v1, %v1159_v0 }
  0x13   :  { %828 = vmatpush.bf16.msra.mxu1 %v1520_v9  ;;  %1537 = vmatpush.bf16.msra.mxu3 %v1520_v9  ;;  %v1485_v6 = vld [vmem:[%s2182_s0 + $0x144] sm:$0xf]  ;;  %v1289_v7 = vld [vmem:[%s2182_s0 + $0x148] sm:$0xf0]  ;;  %v1288_v9 = vor.u32 %v1486_v3, %v1287_v2  ;;  %v1455_v16 = vld [vmem:[%s2182_s0 + $0x54] sm:$0xf] }
  0x14   :  { %v1169_v17 = vld [vmem:[%s2182_s0 + $0x58] sm:$0xf0]  ;;  %v1487_v18 = vld [vmem:[%s2182_s0 + $0x154] sm:$0xf]  ;;  %v1457_v28 = vld [vmem:[%s2182_s0 + $0x64] sm:$0xf] }
  0x15   :  { %v1297_v19 = vld [vmem:[%s2182_s0 + $0x158] sm:$0xf0]  ;;  %v1172_v22 = vor.u32 %v1455_v16, %v1169_v17  ;;  %v1177_v29 = vld [vmem:[%s2182_s0 + $0x68] sm:$0xf0]  ;;  %v1489_v30 = vld [vmem:[%s2182_s0 + $0x164] sm:$0xf] }
  0x16   :  { %660 = vmatpush.bf16.msra.mxu0 %v1511_v10  ;;  %1530 = vmatpush.bf16.msra.mxu2 %v1511_v10  ;;  %v1164_v10 = vor.u32 %v1453_v4, %v1161_v5  ;;  %v1300_v23 = vor.u32 %v1487_v18, %v1297_v19  ;;  %v1305_v31 = vld [vmem:[%s2182_s0 + $0x168] sm:$0xf0]  ;;  %v1180_v34 = vor.u32 %v1457_v28, %v1177_v29  ;;  %v1459_v40 = vld [vmem:[%s2182_s0 + $0x74] sm:$0xf]  ;;  %v1185_v41 = vld [vmem:[%s2182_s0 + $0x78] sm:$0xf0] }
  0x17   :  { %829 = vmatpush.bf16.msra.mxu1 %v1519_v11  ;;  %1538 = vmatpush.bf16.msra.mxu3 %v1519_v11  ;;  %v1292_v11 = vor.u32 %v1485_v6, %v1289_v7  ;;  %v1308_v35 = vor.u32 %v1489_v30, %v1305_v31  ;;  %v1491_v42 = vld [vmem:[%s2182_s0 + $0x174] sm:$0xf]  ;;  %v1313_v43 = vld [vmem:[%s2182_s0 + $0x178] sm:$0xf0]  ;;  %v1188_v46 = vor.u32 %v1459_v40, %v1185_v41  ;;  %v1461_v52 = vld [vmem:[%s2182_s0 + $0x84] sm:$0xf] }
  0x18   :  { %v1316_v47 = vor.u32 %v1491_v42, %v1313_v43  ;;  %v1193_v53 = vld [vmem:[%s2182_s0 + $0x88] sm:$0xf0]  ;;  %v1493_v54 = vld [vmem:[%s2182_s0 + $0x184] sm:$0xf]  ;;  %v1199_v5 = vld [vmem:[%s2182_s0 + $0x90] sm:$0xf] }
  0x19   :  { %v1321_v55 = vld [vmem:[%s2182_s0 + $0x188] sm:$0xf0]  ;;  %v1196_v59 = vor.u32 %v1461_v52, %v1193_v53  ;;  %v1464_v6 = vld [vmem:[%s2182_s0 + $0x94] sm:$0xf0]  ;;  %v1327_v7 = vld [vmem:[%s2182_s0 + $0x190] sm:$0xf] }
  0x1a   :  { %661 = vmatpush.bf16.msra.mxu0 %v1510_v12  ;;  %1531 = vmatpush.bf16.msra.mxu2 %v1510_v12  ;;  %v1167_v12 = vld [vmem:[%s2182_s0 + $0x50] sm:$0xf]  ;;  %v1207_v29 = vld [vmem:[%s2182_s0 + $0xa0] sm:$0xf]  ;;  %v1466_v30 = vld [vmem:[%s2182_s0 + $0xa4] sm:$0xf0] }
  0x1b   :  { %830 = vmatpush.bf16.msra.mxu1 %v1518_v13  ;;  %1539 = vmatpush.bf16.msra.mxu3 %v1518_v13  ;;  %v1456_v13 = vld [vmem:[%s2182_s0 + $0x54] sm:$0xf0]  ;;  %v1335_v31 = vld [vmem:[%s2182_s0 + $0x1a0] sm:$0xf]  ;;  %v1215_v53 = vld [vmem:[%s2182_s0 + $0xb0] sm:$0xf] }
  0x1c   :  { %v1168_v20 = vor.u32 %v1456_v13, %v1167_v12  ;;  %v1329_v12 = vld [vmem:[%s2182_s0 + $0x198] sm:$0xf0] }
  0x1e   :  { %662 = vmatpush.bf16.msra.mxu0 %v1509_v14  ;;  %1532 = vmatpush.bf16.msra.mxu2 %v1509_v14  ;;  %v1295_v14 = vld [vmem:[%s2182_s0 + $0x150] sm:$0xf] }
  0x1f   :  { %831 = vmatpush.bf16.msra.mxu1 %v1517_v15  ;;  %1540 = vmatpush.bf16.msra.mxu3 %v1517_v15  ;;  %v1488_v15 = vld [vmem:[%s2182_s0 + $0x154] sm:$0xf0] }
  0x20   :  { %v1296_v21 = vor.u32 %v1488_v15, %v1295_v14  ;;  %v1200_v15 = vor.u32 %v1464_v6, %v1199_v5 }
  0x21   :  { %663 = vmatmul.bf16.vlgmr.msra.gmra.mxu0 %v1128_v24  ;;  %743 = vmatmul.bf16.vlgmr.msra.gmra.mxu2 %v1256_v25  ;;  %v1175_v24 = vld [vmem:[%s2182_s0 + $0x60] sm:$0xf]  ;;  %v1458_v25 = vld [vmem:[%s2182_s0 + $0x64] sm:$0xf0] }
  0x22   :  { %832 = vmatmul.bf16.vlgmr.msra.gmra.mxu1 %v1132_v26  ;;  %912 = vmatmul.bf16.vlgmr.msra.gmra.mxu3 %v1260_v27  ;;  %v1303_v26 = vld [vmem:[%s2182_s0 + $0x160] sm:$0xf]  ;;  %v1490_v27 = vld [vmem:[%s2182_s0 + $0x164] sm:$0xf0]  ;;  %v1176_v32 = vor.u32 %v1458_v25, %v1175_v24 }
  0x23   :  { %v1304_v33 = vor.u32 %v1490_v27, %v1303_v26 }
  0x31   :  { %668 = vmatmul.bf16.gmra.mxu0 %v1136_v36  ;;  %748 = vmatmul.bf16.gmra.mxu2 %v1264_v37  ;;  %v1183_v36 = vld [vmem:[%s2182_s0 + $0x70] sm:$0xf]  ;;  %v1460_v37 = vld [vmem:[%s2182_s0 + $0x74] sm:$0xf0] }
  0x32   :  { %837 = vmatmul.bf16.gmra.mxu1 %v1140_v38  ;;  %917 = vmatmul.bf16.gmra.mxu3 %v1268_v39  ;;  %v1311_v38 = vld [vmem:[%s2182_s0 + $0x170] sm:$0xf]  ;;  %v1492_v39 = vld [vmem:[%s2182_s0 + $0x174] sm:$0xf0]  ;;  %v1184_v44 = vor.u32 %v1460_v37, %v1183_v36  ;;  %v1337_v36 = vld [vmem:[%s2182_s0 + $0x1a8] sm:$0xf0] }
  0x33   :  { %v1312_v45 = vor.u32 %v1492_v39, %v1311_v38  ;;  %v1208_v39 = vor.u32 %v1466_v30, %v1207_v29 }
  0x41   :  { %673 = vmatmul.bf16.gmra.mxu0 %v1144_v48  ;;  %753 = vmatmul.bf16.gmra.mxu2 %v1272_v49  ;;  %v1191_v48 = vld [vmem:[%s2182_s0 + $0x80] sm:$0xf]  ;;  %v1462_v49 = vld [vmem:[%s2182_s0 + $0x84] sm:$0xf0] }
  0x42   :  { %842 = vmatmul.bf16.gmra.mxu1 %v1148_v50  ;;  %922 = vmatmul.bf16.gmra.mxu3 %v1276_v51  ;;  %v1319_v50 = vld [vmem:[%s2182_s0 + $0x180] sm:$0xf]  ;;  %v1494_v51 = vld [vmem:[%s2182_s0 + $0x184] sm:$0xf0]  ;;  %v1192_v56 = vor.u32 %v1462_v49, %v1191_v48 }
  0x43   :  { %v1320_v57 = vor.u32 %v1494_v51, %v1319_v50 }
  0x51   :  { %678 = vmatmul.bf16.gmra.mxu0 %v1152_v60  ;;  %758 = vmatmul.bf16.gmra.mxu2 %v1280_v61  ;;  %v1324_v60 = vor.u32 %v1493_v54, %v1321_v55  ;;  %v1468_v54 = vld [vmem:[%s2182_s0 + $0xb4] sm:$0xf0]  ;;  %v1343_v55 = vld [vmem:[%s2182_s0 + $0x1b0] sm:$0xf] }
  0x52   :  { %847 = vmatmul.bf16.gmra.mxu1 %v1156_v62  ;;  %927 = vmatmul.bf16.gmra.mxu3 %v1284_v63 }
  0x61   :  { %683 = vmatmul.bf16.gmra.mxu0 %v1160_v8  ;;  %763 = vmatmul.bf16.gmra.mxu2 %v1288_v9  ;;  %v1496_v8 = vld [vmem:[%s2182_s0 + $0x194] sm:$0xf0]  ;;  %v1463_v9 = vld [vmem:[%s2182_s0 + $0x94] sm:$0xf] }
  0x62   :  { %852 = vmatmul.bf16.gmra.mxu1 %v1164_v10  ;;  %932 = vmatmul.bf16.gmra.mxu3 %v1292_v11  ;;  %v1201_v10 = vld [vmem:[%s2182_s0 + $0x98] sm:$0xf0]  ;;  %v1495_v11 = vld [vmem:[%s2182_s0 + $0x194] sm:$0xf]  ;;  %v1328_v16 = vor.u32 %v1496_v8, %v1327_v7 }
  0x63   :  { %v1204_v19 = vor.u32 %v1463_v9, %v1201_v10 }
  0x71   :  { %688 = vmatmul.bf16.gmra.mxu0 %v1168_v20  ;;  %768 = vmatmul.bf16.gmra.mxu2 %v1296_v21  ;;  %v1332_v20 = vor.u32 %v1495_v11, %v1329_v12 }
  0x72   :  { %857 = vmatmul.bf16.gmra.mxu1 %v1172_v22  ;;  %937 = vmatmul.bf16.gmra.mxu3 %v1300_v23 }
  0x81   :  { %693 = vmatmul.bf16.gmra.mxu0 %v1176_v32  ;;  %773 = vmatmul.bf16.gmra.mxu2 %v1304_v33  ;;  %v1498_v32 = vld [vmem:[%s2182_s0 + $0x1a4] sm:$0xf0]  ;;  %v1465_v33 = vld [vmem:[%s2182_s0 + $0xa4] sm:$0xf] }
  0x82   :  { %862 = vmatmul.bf16.gmra.mxu1 %v1180_v34  ;;  %942 = vmatmul.bf16.gmra.mxu3 %v1308_v35  ;;  %v1209_v34 = vld [vmem:[%s2182_s0 + $0xa8] sm:$0xf0]  ;;  %v1497_v35 = vld [vmem:[%s2182_s0 + $0x1a4] sm:$0xf]  ;;  %v1336_v40 = vor.u32 %v1498_v32, %v1335_v31 }
  0x83   :  { %v1212_v43 = vor.u32 %v1465_v33, %v1209_v34 }
  0x91   :  { %698 = vmatmul.bf16.gmra.mxu0 %v1184_v44  ;;  %778 = vmatmul.bf16.gmra.mxu2 %v1312_v45  ;;  %v1340_v44 = vor.u32 %v1497_v35, %v1337_v36 }
  0x92   :  { %867 = vmatmul.bf16.gmra.mxu1 %v1188_v46  ;;  %947 = vmatmul.bf16.gmra.mxu3 %v1316_v47 }
  0x9e   :  { %v664_v58 = vpop.f32.mrf.mxu0 }
  0x9f   :  { %v833_v61 = vpop.f32.mrf.mxu1 }
  0xa0   :  { %v834_v62 = vadd.f32 %v833_v61, %v664_v58  ;;  %v1217_v58 = vld [vmem:[%s2182_s0 + $0xb8] sm:$0xf0] }
  0xa1   :  { %703 = vmatmul.bf16.gmra.mxu0 %v1192_v56  ;;  %783 = vmatmul.bf16.gmra.mxu2 %v1320_v57  ;;  %v1500_v56 = vld [vmem:[%s2182_s0 + $0x1b4] sm:$0xf0]  ;;  %v1467_v57 = vld [vmem:[%s2182_s0 + $0xb4] sm:$0xf] }
  0xa2   :  { %872 = vmatmul.bf16.gmra.mxu1 %v1196_v59  ;;  %952 = vmatmul.bf16.gmra.mxu3 %v1324_v60  ;;  %1057 = vst [vmem:[%s2183_s2] sm:$0xff] %v834_v62  ;;  %v1499_v59 = vld [vmem:[%s2182_s0 + $0x1b4] sm:$0xf]  ;;  %v1345_v60 = vld [vmem:[%s2182_s0 + $0x1b8] sm:$0xf0] }
  0xa4   :  { %v744_v63 = vpop.f32.mrf.mxu2 }
  0xa5   :  { %v913_v0 = vpop.f32.mrf.mxu3 }
  0xa6   :  { %v914_v1 = vadd.f32 %v913_v0, %v744_v63  ;;  %v666_v2 = vpop.f32.mrf.mxu0  ;;  %v1216_v63 = vor.u32 %v1468_v54, %v1215_v53  ;;  %v1344_v0 = vor.u32 %v1500_v56, %v1343_v55 }
  0xa7   :  { %v835_v3 = vpop.f32.mrf.mxu1 }
  0xa8   :  { %v836_v4 = vadd.f32 %v835_v3, %v666_v2  ;;  %1089 = vst [vmem:[%s2183_s2 + $0x100] sm:$0xff] %v914_v1  ;;  %v1220_v3 = vor.u32 %v1467_v57, %v1217_v58 }
  0xaa   :  { %1058 = vst [vmem:[%s2183_s2 + $0x8] sm:$0xff] %v836_v4  ;;  %v1348_v4 = vor.u32 %v1499_v59, %v1345_v60 }
  0xac   :  { %v746_v13 = vpop.f32.mrf.mxu2 }
  0xad   :  { %v915_v14 = vpop.f32.mrf.mxu3 }
  0xae   :  { %v916_v17 = vadd.f32 %v915_v14, %v746_v13  ;;  %v669_v18 = vpop.f32.mrf.mxu0  ;;  %v1223_v13 = vld [vmem:[%s2182_s0 + $0xc0] sm:$0xf]  ;;  %v1470_v14 = vld [vmem:[%s2182_s0 + $0xc4] sm:$0xf0] }
  0xaf   :  { %v838_v21 = vpop.f32.mrf.mxu1 }
  0xb0   :  { %v839_v22 = vadd.f32 %v838_v21, %v669_v18  ;;  %1090 = vst [vmem:[%s2183_s2 + $0x108] sm:$0xff] %v916_v17  ;;  %v1469_v17 = vld [vmem:[%s2182_s0 + $0xc4] sm:$0xf]  ;;  %v1225_v18 = vld [vmem:[%s2182_s0 + $0xc8] sm:$0xf0] }
  0xb1   :  { %708 = vmatmul.bf16.gmra.mxu0 %v1200_v15  ;;  %788 = vmatmul.bf16.gmra.mxu2 %v1328_v16  ;;  %v1351_v15 = vld [vmem:[%s2182_s0 + $0x1c0] sm:$0xf]  ;;  %v1502_v16 = vld [vmem:[%s2182_s0 + $0x1c4] sm:$0xf0] }
  0xb2   :  { %877 = vmatmul.bf16.gmra.mxu1 %v1204_v19  ;;  %957 = vmatmul.bf16.gmra.mxu3 %v1332_v20  ;;  %1059 = vst [vmem:[%s2183_s2 + $0x10] sm:$0xff] %v839_v22  ;;  %v1501_v19 = vld [vmem:[%s2182_s0 + $0x1c4] sm:$0xf]  ;;  %v1353_v20 = vld [vmem:[%s2182_s0 + $0x1c8] sm:$0xf0] }
  0xb4   :  { %v749_v23 = vpop.f32.mrf.mxu2 }
  0xb5   :  { %v918_v24 = vpop.f32.mrf.mxu3 }
  0xb6   :  { %v919_v25 = vadd.f32 %v918_v24, %v749_v23  ;;  %v671_v26 = vpop.f32.mrf.mxu0  ;;  %v1224_v23 = vor.u32 %v1470_v14, %v1223_v13  ;;  %v1352_v24 = vor.u32 %v1502_v16, %v1351_v15 }
  0xb7   :  { %v840_v27 = vpop.f32.mrf.mxu1 }
  0xb8   :  { %v841_v28 = vadd.f32 %v840_v27, %v671_v26  ;;  %1091 = vst [vmem:[%s2183_s2 + $0x110] sm:$0xff] %v919_v25  ;;  %v1228_v27 = vor.u32 %v1469_v17, %v1225_v18 }
  0xba   :  { %1060 = vst [vmem:[%s2183_s2 + $0x18] sm:$0xff] %v841_v28  ;;  %v1356_v28 = vor.u32 %v1501_v19, %v1353_v20 }
  0xbc   :  { %v751_v37 = vpop.f32.mrf.mxu2 }
  0xbd   :  { %v920_v38 = vpop.f32.mrf.mxu3 }
  0xbe   :  { %v921_v41 = vadd.f32 %v920_v38, %v751_v37  ;;  %v674_v42 = vpop.f32.mrf.mxu0  ;;  %v1231_v37 = vld [vmem:[%s2182_s0 + $0xd0] sm:$0xf]  ;;  %v1472_v38 = vld [vmem:[%s2182_s0 + $0xd4] sm:$0xf0] }
  0xbf   :  { %v843_v45 = vpop.f32.mrf.mxu1 }
  0xc0   :  { %v844_v46 = vadd.f32 %v843_v45, %v674_v42  ;;  %1092 = vst [vmem:[%s2183_s2 + $0x118] sm:$0xff] %v921_v41  ;;  %v1471_v41 = vld [vmem:[%s2182_s0 + $0xd4] sm:$0xf]  ;;  %v1233_v42 = vld [vmem:[%s2182_s0 + $0xd8] sm:$0xf0] }
  0xc1   :  { %713 = vmatmul.bf16.gmra.mxu0 %v1208_v39  ;;  %793 = vmatmul.bf16.gmra.mxu2 %v1336_v40  ;;  %v1359_v39 = vld [vmem:[%s2182_s0 + $0x1d0] sm:$0xf]  ;;  %v1504_v40 = vld [vmem:[%s2182_s0 + $0x1d4] sm:$0xf0] }
  0xc2   :  { %882 = vmatmul.bf16.gmra.mxu1 %v1212_v43  ;;  %962 = vmatmul.bf16.gmra.mxu3 %v1340_v44  ;;  %1061 = vst [vmem:[%s2183_s2 + $0x20] sm:$0xff] %v844_v46  ;;  %v1503_v43 = vld [vmem:[%s2182_s0 + $0x1d4] sm:$0xf]  ;;  %v1361_v44 = vld [vmem:[%s2182_s0 + $0x1d8] sm:$0xf0] }
  0xc4   :  { %v754_v47 = vpop.f32.mrf.mxu2 }
  0xc5   :  { %v923_v48 = vpop.f32.mrf.mxu3 }
  0xc6   :  { %v924_v49 = vadd.f32 %v923_v48, %v754_v47  ;;  %v676_v50 = vpop.f32.mrf.mxu0  ;;  %v1232_v47 = vor.u32 %v1472_v38, %v1231_v37  ;;  %v1360_v48 = vor.u32 %v1504_v40, %v1359_v39 }
  0xc7   :  { %v845_v51 = vpop.f32.mrf.mxu1 }
  0xc8   :  { %v846_v52 = vadd.f32 %v845_v51, %v676_v50  ;;  %1093 = vst [vmem:[%s2183_s2 + $0x120] sm:$0xff] %v924_v49  ;;  %v1236_v51 = vor.u32 %v1471_v41, %v1233_v42 }
  0xca   :  { %1062 = vst [vmem:[%s2183_s2 + $0x28] sm:$0xff] %v846_v52  ;;  %v1364_v52 = vor.u32 %v1503_v43, %v1361_v44 }
  0xcc   :  { %v756_v61 = vpop.f32.mrf.mxu2 }
  0xcd   :  { %v925_v62 = vpop.f32.mrf.mxu3 }
  0xce   :  { %v926_v1 = vadd.f32 %v925_v62, %v756_v61  ;;  %v679_v2 = vpop.f32.mrf.mxu0  ;;  %v1239_v61 = vld [vmem:[%s2182_s0 + $0xe0] sm:$0xf]  ;;  %v1474_v62 = vld [vmem:[%s2182_s0 + $0xe4] sm:$0xf0] }
  0xcf   :  { %v848_v5 = vpop.f32.mrf.mxu1 }
  0xd0   :  { %v849_v6 = vadd.f32 %v848_v5, %v679_v2  ;;  %1094 = vst [vmem:[%s2183_s2 + $0x128] sm:$0xff] %v926_v1  ;;  %v1473_v1 = vld [vmem:[%s2182_s0 + $0xe4] sm:$0xf]  ;;  %v1241_v2 = vld [vmem:[%s2182_s0 + $0xe8] sm:$0xf0] }
  0xd1   :  { %718 = vmatmul.bf16.gmra.mxu0 %v1216_v63  ;;  %798 = vmatmul.bf16.gmra.mxu2 %v1344_v0  ;;  %v1367_v63 = vld [vmem:[%s2182_s0 + $0x1e0] sm:$0xf]  ;;  %v1506_v0 = vld [vmem:[%s2182_s0 + $0x1e4] sm:$0xf0] }
  0xd2   :  { %887 = vmatmul.bf16.gmra.mxu1 %v1220_v3  ;;  %967 = vmatmul.bf16.gmra.mxu3 %v1348_v4  ;;  %1063 = vst [vmem:[%s2183_s2 + $0x30] sm:$0xff] %v849_v6  ;;  %v1505_v3 = vld [vmem:[%s2182_s0 + $0x1e4] sm:$0xf]  ;;  %v1369_v4 = vld [vmem:[%s2182_s0 + $0x1e8] sm:$0xf0] }
  0xd4   :  { %v759_v7 = vpop.f32.mrf.mxu2 }
  0xd5   :  { %v928_v8 = vpop.f32.mrf.mxu3 }
  0xd6   :  { %v929_v9 = vadd.f32 %v928_v8, %v759_v7  ;;  %v681_v10 = vpop.f32.mrf.mxu0  ;;  %v1240_v7 = vor.u32 %v1474_v62, %v1239_v61  ;;  %v1368_v8 = vor.u32 %v1506_v0, %v1367_v63 }
  0xd7   :  { %v850_v11 = vpop.f32.mrf.mxu1 }
  0xd8   :  { %v851_v12 = vadd.f32 %v850_v11, %v681_v10  ;;  %1095 = vst [vmem:[%s2183_s2 + $0x130] sm:$0xff] %v929_v9  ;;  %v1244_v11 = vor.u32 %v1473_v1, %v1241_v2 }
  0xda   :  { %1064 = vst [vmem:[%s2183_s2 + $0x38] sm:$0xff] %v851_v12  ;;  %v1372_v12 = vor.u32 %v1505_v3, %v1369_v4 }
  0xdc   :  { %v761_v21 = vpop.f32.mrf.mxu2 }
  0xdd   :  { %v930_v22 = vpop.f32.mrf.mxu3 }
  0xde   :  { %v931_v25 = vadd.f32 %v930_v22, %v761_v21  ;;  %v684_v26 = vpop.f32.mrf.mxu0  ;;  %v1247_v21 = vld [vmem:[%s2182_s0 + $0xf0] sm:$0xf]  ;;  %v1476_v22 = vld [vmem:[%s2182_s0 + $0xf4] sm:$0xf0] }
  0xdf   :  { %v853_v29 = vpop.f32.mrf.mxu1 }
  0xe0   :  { %v854_v30 = vadd.f32 %v853_v29, %v684_v26  ;;  %1096 = vst [vmem:[%s2183_s2 + $0x138] sm:$0xff] %v931_v25  ;;  %v1475_v25 = vld [vmem:[%s2182_s0 + $0xf4] sm:$0xf]  ;;  %v1249_v26 = vld [vmem:[%s2182_s0 + $0xf8] sm:$0xf0] }
  0xe1   :  { %723 = vmatmul.bf16.gmra.mxu0 %v1224_v23  ;;  %803 = vmatmul.bf16.gmra.mxu2 %v1352_v24  ;;  %v1375_v23 = vld [vmem:[%s2182_s0 + $0x1f0] sm:$0xf]  ;;  %v1508_v24 = vld [vmem:[%s2182_s0 + $0x1f4] sm:$0xf0] }
  0xe2   :  { %892 = vmatmul.bf16.gmra.mxu1 %v1228_v27  ;;  %972 = vmatmul.bf16.gmra.mxu3 %v1356_v28  ;;  %1065 = vst [vmem:[%s2183_s2 + $0x40] sm:$0xff] %v854_v30  ;;  %v1507_v27 = vld [vmem:[%s2182_s0 + $0x1f4] sm:$0xf]  ;;  %v1377_v28 = vld [vmem:[%s2182_s0 + $0x1f8] sm:$0xf0] }
  0xe4   :  { %v764_v31 = vpop.f32.mrf.mxu2 }
  0xe5   :  { %v933_v32 = vpop.f32.mrf.mxu3 }
  0xe6   :  { %v934_v33 = vadd.f32 %v933_v32, %v764_v31  ;;  %v686_v34 = vpop.f32.mrf.mxu0  ;;  %v1248_v31 = vor.u32 %v1476_v22, %v1247_v21  ;;  %v1376_v32 = vor.u32 %v1508_v24, %v1375_v23 }
  0xe7   :  { %v855_v35 = vpop.f32.mrf.mxu1 }
  0xe8   :  { %v856_v36 = vadd.f32 %v855_v35, %v686_v34  ;;  %1097 = vst [vmem:[%s2183_s2 + $0x140] sm:$0xff] %v934_v33  ;;  %v1252_v35 = vor.u32 %v1475_v25, %v1249_v26 }
  0xea   :  { %1066 = vst [vmem:[%s2183_s2 + $0x48] sm:$0xff] %v856_v36  ;;  %v1380_v36 = vor.u32 %v1507_v27, %v1377_v28 }
  0xec   :  { %v766_v45 = vpop.f32.mrf.mxu2 }
  0xed   :  { %v935_v46 = vpop.f32.mrf.mxu3 }
  0xee   :  { %v936_v49 = vadd.f32 %v935_v46, %v766_v45  ;;  %v689_v50 = vpop.f32.mrf.mxu0 }
  0xef   :  { %v858_v53 = vpop.f32.mrf.mxu1 }
  0xf0   :  { %v859_v54 = vadd.f32 %v858_v53, %v689_v50  ;;  %1098 = vst [vmem:[%s2183_s2 + $0x148] sm:$0xff] %v936_v49 }
  0xf1   :  { %728 = vmatmul.bf16.gmra.mxu0 %v1232_v47  ;;  %808 = vmatmul.bf16.gmra.mxu2 %v1360_v48 }
  0xf2   :  { %897 = vmatmul.bf16.gmra.mxu1 %v1236_v51  ;;  %977 = vmatmul.bf16.gmra.mxu3 %v1364_v52  ;;  %1067 = vst [vmem:[%s2183_s2 + $0x50] sm:$0xff] %v859_v54 }
  0xf4   :  { %v769_v55 = vpop.f32.mrf.mxu2 }
  0xf5   :  { %v938_v56 = vpop.f32.mrf.mxu3 }
  0xf6   :  { %v939_v57 = vadd.f32 %v938_v56, %v769_v55  ;;  %v691_v58 = vpop.f32.mrf.mxu0 }
  0xf7   :  { %v860_v59 = vpop.f32.mrf.mxu1 }
  0xf8   :  { %v861_v60 = vadd.f32 %v860_v59, %v691_v58  ;;  %1099 = vst [vmem:[%s2183_s2 + $0x150] sm:$0xff] %v939_v57 }
  0xfa   :  { %1068 = vst [vmem:[%s2183_s2 + $0x58] sm:$0xff] %v861_v60 }
  0xfc   :  { %v771_v5 = vpop.f32.mrf.mxu2 }
  0xfd   :  { %v940_v6 = vpop.f32.mrf.mxu3 }
  0xfe   :  { %v941_v9 = vadd.f32 %v940_v6, %v771_v5  ;;  %v694_v10 = vpop.f32.mrf.mxu0 }
  0xff   :  { %v863_v13 = vpop.f32.mrf.mxu1 }
 0x100   :  { %v864_v14 = vadd.f32 %v863_v13, %v694_v10  ;;  %1100 = vst [vmem:[%s2183_s2 + $0x158] sm:$0xff] %v941_v9 }
 0x101   :  { %733 = vmatmul.bf16.gmra.mxu0 %v1240_v7  ;;  %813 = vmatmul.bf16.gmra.mxu2 %v1368_v8 }
 0x102   :  { %902 = vmatmul.bf16.gmra.mxu1 %v1244_v11  ;;  %982 = vmatmul.bf16.gmra.mxu3 %v1372_v12  ;;  %1069 = vst [vmem:[%s2183_s2 + $0x60] sm:$0xff] %v864_v14 }
 0x104   :  { %v774_v15 = vpop.f32.mrf.mxu2 }
 0x105   :  { %v943_v16 = vpop.f32.mrf.mxu3 }
 0x106   :  { %v944_v17 = vadd.f32 %v943_v16, %v774_v15  ;;  %v696_v18 = vpop.f32.mrf.mxu0 }
 0x107   :  { %v865_v19 = vpop.f32.mrf.mxu1 }
 0x108   :  { %v866_v20 = vadd.f32 %v865_v19, %v696_v18  ;;  %1101 = vst [vmem:[%s2183_s2 + $0x160] sm:$0xff] %v944_v17 }
 0x10a   :  { %1070 = vst [vmem:[%s2183_s2 + $0x68] sm:$0xff] %v866_v20 }
 0x10c   :  { %v776_v29 = vpop.f32.mrf.mxu2 }
 0x10d   :  { %v945_v30 = vpop.f32.mrf.mxu3 }
 0x10e   :  { %v946_v33 = vadd.f32 %v945_v30, %v776_v29  ;;  %v699_v34 = vpop.f32.mrf.mxu0 }
 0x10f   :  { %v868_v37 = vpop.f32.mrf.mxu1 }
 0x110   :  { %v869_v38 = vadd.f32 %v868_v37, %v699_v34  ;;  %1102 = vst [vmem:[%s2183_s2 + $0x168] sm:$0xff] %v946_v33 }
 0x111   :  { %738 = vmatmul.bf16.gmra.mxu0 %v1248_v31  ;;  %818 = vmatmul.bf16.gmra.mxu2 %v1376_v32 }
 0x112   :  { %907 = vmatmul.bf16.gmra.mxu1 %v1252_v35  ;;  %987 = vmatmul.bf16.gmra.mxu3 %v1380_v36  ;;  %1071 = vst [vmem:[%s2183_s2 + $0x70] sm:$0xff] %v869_v38 }
 0x114   :  { %v779_v39 = vpop.f32.mrf.mxu2 }
 0x115   :  { %v948_v40 = vpop.f32.mrf.mxu3 }
 0x116   :  { %v949_v41 = vadd.f32 %v948_v40, %v779_v39  ;;  %v701_v42 = vpop.f32.mrf.mxu0 }
 0x117   :  { %v870_v43 = vpop.f32.mrf.mxu1 }
 0x118   :  { %v871_v44 = vadd.f32 %v870_v43, %v701_v42  ;;  %1103 = vst [vmem:[%s2183_s2 + $0x170] sm:$0xff] %v949_v41 }
 0x11a   :  { %1072 = vst [vmem:[%s2183_s2 + $0x78] sm:$0xff] %v871_v44 }
 0x11c   :  { %v781_v45 = vpop.f32.mrf.mxu2 }
 0x11d   :  { %v950_v46 = vpop.f32.mrf.mxu3 }
 0x11e   :  { %v951_v47 = vadd.f32 %v950_v46, %v781_v45  ;;  %v704_v48 = vpop.f32.mrf.mxu0 }
 0x11f   :  { %v873_v49 = vpop.f32.mrf.mxu1 }
 0x120   :  { %v874_v50 = vadd.f32 %v873_v49, %v704_v48  ;;  %1104 = vst [vmem:[%s2183_s2 + $0x178] sm:$0xff] %v951_v47 }
 0x122   :  { %1073 = vst [vmem:[%s2183_s2 + $0x80] sm:$0xff] %v874_v50 }
 0x124   :  { %v784_v51 = vpop.f32.mrf.mxu2 }
 0x125   :  { %v953_v52 = vpop.f32.mrf.mxu3 }
 0x126   :  { %v954_v53 = vadd.f32 %v953_v52, %v784_v51  ;;  %v706_v54 = vpop.f32.mrf.mxu0 }
 0x127   :  { %v875_v55 = vpop.f32.mrf.mxu1 }
 0x128   :  { %v876_v56 = vadd.f32 %v875_v55, %v706_v54  ;;  %1105 = vst [vmem:[%s2183_s2 + $0x180] sm:$0xff] %v954_v53 }
 0x12a   :  { %1074 = vst [vmem:[%s2183_s2 + $0x88] sm:$0xff] %v876_v56 }
 0x12c   :  { %v786_v57 = vpop.f32.mrf.mxu2 }
 0x12d   :  { %v955_v58 = vpop.f32.mrf.mxu3 }
 0x12e   :  { %v956_v59 = vadd.f32 %v955_v58, %v786_v57  ;;  %v709_v60 = vpop.f32.mrf.mxu0 }
 0x12f   :  { %v878_v61 = vpop.f32.mrf.mxu1 }
 0x130   :  { %v879_v62 = vadd.f32 %v878_v61, %v709_v60  ;;  %1106 = vst [vmem:[%s2183_s2 + $0x188] sm:$0xff] %v956_v59 }
 0x132   :  { %1075 = vst [vmem:[%s2183_s2 + $0x90] sm:$0xff] %v879_v62 }
 0x134   :  { %v789_v63 = vpop.f32.mrf.mxu2 }
 0x135   :  { %v958_v0 = vpop.f32.mrf.mxu3 }
 0x136   :  { %v959_v1 = vadd.f32 %v958_v0, %v789_v63  ;;  %v711_v2 = vpop.f32.mrf.mxu0 }
 0x137   :  { %v880_v3 = vpop.f32.mrf.mxu1 }
 0x138   :  { %v881_v4 = vadd.f32 %v880_v3, %v711_v2  ;;  %1107 = vst [vmem:[%s2183_s2 + $0x190] sm:$0xff] %v959_v1 }
 0x13a   :  { %1076 = vst [vmem:[%s2183_s2 + $0x98] sm:$0xff] %v881_v4 }
 0x13c   :  { %v791_v5 = vpop.f32.mrf.mxu2 }
 0x13d   :  { %v960_v6 = vpop.f32.mrf.mxu3 }
 0x13e   :  { %v961_v7 = vadd.f32 %v960_v6, %v791_v5  ;;  %v714_v8 = vpop.f32.mrf.mxu0 }
 0x13f   :  { %v883_v9 = vpop.f32.mrf.mxu1 }
 0x140   :  { %v884_v10 = vadd.f32 %v883_v9, %v714_v8  ;;  %1108 = vst [vmem:[%s2183_s2 + $0x198] sm:$0xff] %v961_v7 }
 0x142   :  { %1077 = vst [vmem:[%s2183_s2 + $0xa0] sm:$0xff] %v884_v10 }
 0x144   :  { %v794_v11 = vpop.f32.mrf.mxu2 }
 0x145   :  { %v963_v12 = vpop.f32.mrf.mxu3 }
 0x146   :  { %v964_v13 = vadd.f32 %v963_v12, %v794_v11  ;;  %v716_v14 = vpop.f32.mrf.mxu0 }
 0x147   :  { %v885_v15 = vpop.f32.mrf.mxu1 }
 0x148   :  { %v886_v16 = vadd.f32 %v885_v15, %v716_v14  ;;  %1109 = vst [vmem:[%s2183_s2 + $0x1a0] sm:$0xff] %v964_v13 }
 0x14a   :  { %1078 = vst [vmem:[%s2183_s2 + $0xa8] sm:$0xff] %v886_v16 }
 0x14c   :  { %v796_v17 = vpop.f32.mrf.mxu2 }
 0x14d   :  { %v965_v18 = vpop.f32.mrf.mxu3 }
 0x14e   :  { %v966_v19 = vadd.f32 %v965_v18, %v796_v17  ;;  %v719_v20 = vpop.f32.mrf.mxu0 }
 0x14f   :  { %v888_v21 = vpop.f32.mrf.mxu1 }
 0x150   :  { %v889_v22 = vadd.f32 %v888_v21, %v719_v20  ;;  %1110 = vst [vmem:[%s2183_s2 + $0x1a8] sm:$0xff] %v966_v19 }
 0x152   :  { %1079 = vst [vmem:[%s2183_s2 + $0xb0] sm:$0xff] %v889_v22 }
 0x154   :  { %v799_v23 = vpop.f32.mrf.mxu2 }
 0x155   :  { %v968_v24 = vpop.f32.mrf.mxu3 }
 0x156   :  { %v969_v25 = vadd.f32 %v968_v24, %v799_v23  ;;  %v721_v26 = vpop.f32.mrf.mxu0 }
 0x157   :  { %v890_v27 = vpop.f32.mrf.mxu1 }
 0x158   :  { %v891_v28 = vadd.f32 %v890_v27, %v721_v26  ;;  %1111 = vst [vmem:[%s2183_s2 + $0x1b0] sm:$0xff] %v969_v25 }
 0x15a   :  { %1080 = vst [vmem:[%s2183_s2 + $0xb8] sm:$0xff] %v891_v28 }
 0x15c   :  { %v801_v29 = vpop.f32.mrf.mxu2 }
 0x15d   :  { %v970_v30 = vpop.f32.mrf.mxu3 }
 0x15e   :  { %v971_v31 = vadd.f32 %v970_v30, %v801_v29  ;;  %v724_v32 = vpop.f32.mrf.mxu0 }
 0x15f   :  { %v893_v33 = vpop.f32.mrf.mxu1 }
 0x160   :  { %v894_v34 = vadd.f32 %v893_v33, %v724_v32  ;;  %1112 = vst [vmem:[%s2183_s2 + $0x1b8] sm:$0xff] %v971_v31 }
 0x162   :  { %1081 = vst [vmem:[%s2183_s2 + $0xc0] sm:$0xff] %v894_v34 }
 0x164   :  { %v804_v35 = vpop.f32.mrf.mxu2 }
 0x165   :  { %v973_v36 = vpop.f32.mrf.mxu3 }
 0x166   :  { %v974_v37 = vadd.f32 %v973_v36, %v804_v35  ;;  %v726_v38 = vpop.f32.mrf.mxu0 }
 0x167   :  { %v895_v39 = vpop.f32.mrf.mxu1 }
 0x168   :  { %v896_v40 = vadd.f32 %v895_v39, %v726_v38  ;;  %1113 = vst [vmem:[%s2183_s2 + $0x1c0] sm:$0xff] %v974_v37 }
 0x16a   :  { %1082 = vst [vmem:[%s2183_s2 + $0xc8] sm:$0xff] %v896_v40 }
 0x16c   :  { %v806_v41 = vpop.f32.mrf.mxu2 }
 0x16d   :  { %v975_v42 = vpop.f32.mrf.mxu3 }
 0x16e   :  { %v976_v43 = vadd.f32 %v975_v42, %v806_v41  ;;  %v729_v44 = vpop.f32.mrf.mxu0 }
 0x16f   :  { %v898_v45 = vpop.f32.mrf.mxu1 }
 0x170   :  { %v899_v46 = vadd.f32 %v898_v45, %v729_v44  ;;  %1114 = vst [vmem:[%s2183_s2 + $0x1c8] sm:$0xff] %v976_v43 }
 0x172   :  { %1083 = vst [vmem:[%s2183_s2 + $0xd0] sm:$0xff] %v899_v46 }
 0x174   :  { %v809_v47 = vpop.f32.mrf.mxu2 }
 0x175   :  { %v978_v48 = vpop.f32.mrf.mxu3 }
 0x176   :  { %v979_v49 = vadd.f32 %v978_v48, %v809_v47  ;;  %v731_v50 = vpop.f32.mrf.mxu0 }
 0x177   :  { %v900_v51 = vpop.f32.mrf.mxu1 }
 0x178   :  { %v901_v52 = vadd.f32 %v900_v51, %v731_v50  ;;  %1115 = vst [vmem:[%s2183_s2 + $0x1d0] sm:$0xff] %v979_v49 }
 0x17a   :  { %1084 = vst [vmem:[%s2183_s2 + $0xd8] sm:$0xff] %v901_v52 }
 0x17c   :  { %v811_v53 = vpop.f32.mrf.mxu2 }
 0x17d   :  { %v980_v54 = vpop.f32.mrf.mxu3 }
 0x17e   :  { %v981_v55 = vadd.f32 %v980_v54, %v811_v53  ;;  %v734_v56 = vpop.f32.mrf.mxu0 }
 0x17f   :  { %v903_v57 = vpop.f32.mrf.mxu1 }
 0x180   :  { %v904_v58 = vadd.f32 %v903_v57, %v734_v56  ;;  %1116 = vst [vmem:[%s2183_s2 + $0x1d8] sm:$0xff] %v981_v55 }
 0x182   :  { %1085 = vst [vmem:[%s2183_s2 + $0xe0] sm:$0xff] %v904_v58 }
 0x184   :  { %v814_v59 = vpop.f32.mrf.mxu2 }
 0x185   :  { %v983_v60 = vpop.f32.mrf.mxu3 }
 0x186   :  { %v984_v61 = vadd.f32 %v983_v60, %v814_v59  ;;  %v736_v62 = vpop.f32.mrf.mxu0 }
 0x187   :  { %v905_v63 = vpop.f32.mrf.mxu1 }
 0x188   :  { %v906_v0 = vadd.f32 %v905_v63, %v736_v62  ;;  %1117 = vst [vmem:[%s2183_s2 + $0x1e0] sm:$0xff] %v984_v61 }
 0x18a   :  { %1086 = vst [vmem:[%s2183_s2 + $0xe8] sm:$0xff] %v906_v0 }
 0x18c   :  { %v816_v1 = vpop.f32.mrf.mxu2 }
 0x18d   :  { %v985_v2 = vpop.f32.mrf.mxu3 }
 0x18e   :  { %v986_v3 = vadd.f32 %v985_v2, %v816_v1  ;;  %v739_v4 = vpop.f32.mrf.mxu0 }
 0x18f   :  { %v908_v5 = vpop.f32.mrf.mxu1 }
 0x190   :  { %v909_v6 = vadd.f32 %v908_v5, %v739_v4  ;;  %1118 = vst [vmem:[%s2183_s2 + $0x1e8] sm:$0xff] %v986_v3 }
 0x192   :  { %1087 = vst [vmem:[%s2183_s2 + $0xf0] sm:$0xff] %v909_v6 }
 0x194   :  { %v819_v7 = vpop.f32.mrf.mxu2 }
 0x195   :  { %v988_v8 = vpop.f32.mrf.mxu3 }
 0x196   :  { %v989_v9 = vadd.f32 %v988_v8, %v819_v7  ;;  %v741_v10 = vpop.f32.mrf.mxu0 }
 0x197   :  { %v910_v11 = vpop.f32.mrf.mxu1 }
 0x198   :  { %v911_v12 = vadd.f32 %v910_v11, %v741_v10  ;;  %1119 = vst [vmem:[%s2183_s2 + $0x1f0] sm:$0xff] %v989_v9 }
 0x19a   :  { %1088 = vst [vmem:[%s2183_s2 + $0xf8] sm:$0xff] %v911_v12 }
 0x19c   :  { %v821_v13 = vpop.f32.mrf.mxu2 }
 0x19d   :  { %v990_v14 = vpop.f32.mrf.mxu3 }
 0x19e   :  { %v991_v15 = vadd.f32 %v990_v14, %v821_v13 }
 0x1a0   :  { %1120 = vst [vmem:[%s2183_s2 + $0x1f8] sm:$0xff] %v991_v15 }

// kernel: resnet_forward.42
= control target key start
LH: loop header
LB: loop body
LE: loop exit
PB: predicated region body
PF: predicated region fallthrough
CT: control target
= control target key end

     0   :  { %s872_s9 = smov 0   ;;  %s874_s10 = smov 0   ;;  %s1120_s0 = inlined_call_operand.vmem [shape: bf16[128,640], index: 0, kind: input, shape index: {}]   ;;  %s1121_s1 = inlined_call_operand.vmem [shape: bf16[640,128], index: 1, kind: input, shape index: {}]   ;;  %s1122_s2 = inlined_call_operand.vmem [shape: f32[128,128], index: 2, kind: output, shape index: {}]  }
   0x1   :  { %s876_s11 = smov 0   ;;  %s878_s12 = smov 0  }
   0x2   :  { %s880_s13 = smov 0  }
   0x3 LB: > { %s24_s14 = sadd.s32 1, %s850_s12  ;;  %p47_p1 = scmp.ne.s32.totalorder %s842_s10, %s838_s9  ;;  %s854_s13 = sphi %s880_s13, %s12_s13   ;;  %s850_s12 = sphi %s878_s12, %s1126_s12   ;;  %s846_s11 = sphi %s876_s11, %s1125_s11   ;;  %s842_s10 = sphi %s874_s10, %s1124_s10   ;;  %s838_s9 = sphi %s872_s9, %s1123_s9  }
   0x4   : > { %p25_p0 = scmp.ge.s32.totalorder %s24_s14, 5  ;;  %p48_p2 = scmp.eq.s32.totalorder %s854_s13, 0 }
   0x5   : > { %s40_s16 = sadd.s32 1, %s842_s10  ;;  %p659_p5 = scmp.ge.s32.totalorder %s854_s13, 5 }
   0x6   : > { %s1128_s14 = smov (%p25_p0, %s24_s14), 0  ;;  %p49_p3 = por %p48_p2, %p47_p1 }
   0x7   : > { %s36_s15 = ssub.s32 %s850_s12, %s1128_s14  ;;  %129 = sbr.rel (%p659_p5) target bundleno = 32 (0x20), region = 16 }
   0x8   : > { %p38_p4 = scmp.eq.s32.totalorder %s36_s15, 0 }
   0xa   : > { %s907_s17 = scalar_select %p38_p4, %s842_s10, %s40_s16  }
   0xc   : > { %132 = sbr.rel (!%p49_p3) target bundleno = 32 (0x20), region = 20  ;;  %s134_s18 = sand.u32 (%p49_p3), 1, %s842_s10  }
   0xd   : > { %s661_s19 = sshll.u32 (%p49_p3), %s850_s12, 2  ;;  %s660_s20 = sshll.u32 (%p49_p3), %s134_s18, 6 }
   0xe   : > { %s915_s23 = scalar_lea.vmem (%p49_p3), %s1120_s0, %s661_s19  ;;  %s136_s24 = scalar_lea.vmem (%p49_p3), [#allocation2], %s660_s20 }
   0xf   : > { %v158_v0 = vld [vmem:[%s915_s23] sm:$0xf] (%p49_p3)  ;;  %v160_v1 = vld [vmem:[%s915_s23 + $0x14] sm:$0xf] (%p49_p3)  ;;  %v162_v2 = vld [vmem:[%s915_s23 + $0x28] sm:$0xf] (%p49_p3) }
  0x10   : > { %159 = vst [vmem:[%s136_s24] sm:$0xf] (%p49_p3), %v158_v0  ;;  %v164_v3 = vld [vmem:[%s915_s23 + $0x3c] sm:$0xf] (%p49_p3)  ;;  %v166_v4 = vld [vmem:[%s915_s23 + $0x50] sm:$0xf] (%p49_p3) }
  0x11   : > { %161 = vst [vmem:[%s136_s24 + $0x4] sm:$0xf] %v160_v1  ;;  %v168_v5 = vld [vmem:[%s915_s23 + $0x64] sm:$0xf]  ;;  %v170_v6 = vld [vmem:[%s915_s23 + $0x78] sm:$0xf] }
  0x12   : > { %163 = vst [vmem:[%s136_s24 + $0x8] sm:$0xf] %v162_v2  ;;  %v172_v7 = vld [vmem:[%s915_s23 + $0x8c] sm:$0xf]  ;;  %v174_v8 = vld [vmem:[%s915_s23 + $0xa0] sm:$0xf] }
  0x13   : > { %165 = vst [vmem:[%s136_s24 + $0xc] sm:$0xf] %v164_v3  ;;  %v176_v9 = vld [vmem:[%s915_s23 + $0xb4] sm:$0xf]  ;;  %v178_v10 = vld [vmem:[%s915_s23 + $0xc8] sm:$0xf] }
  0x14   : > { %167 = vst [vmem:[%s136_s24 + $0x10] sm:$0xf] %v166_v4  ;;  %v180_v11 = vld [vmem:[%s915_s23 + $0xdc] sm:$0xf]  ;;  %v182_v12 = vld [vmem:[%s915_s23 + $0xf0] sm:$0xf] }
  0x15   : > { %169 = vst [vmem:[%s136_s24 + $0x14] sm:$0xf] %v168_v5  ;;  %v184_v13 = vld [vmem:[%s915_s23 + $0x104] sm:$0xf]  ;;  %v186_v14 = vld [vmem:[%s915_s23 + $0x118] sm:$0xf] }
  0x16   : > { %171 = vst [vmem:[%s136_s24 + $0x18] sm:$0xf] %v170_v6  ;;  %v188_v15 = vld [vmem:[%s915_s23 + $0x12c] sm:$0xf] }
  0x17   : > { %173 = vst [vmem:[%s136_s24 + $0x1c] sm:$0xf] %v172_v7 }
  0x18   : > { %175 = vst [vmem:[%s136_s24 + $0x20] sm:$0xf] %v174_v8 }
  0x19   : > { %177 = vst [vmem:[%s136_s24 + $0x24] sm:$0xf] %v176_v9 }
  0x1a   : > { %179 = vst [vmem:[%s136_s24 + $0x28] sm:$0xf] %v178_v10 }
  0x1b   : > { %181 = vst [vmem:[%s136_s24 + $0x2c] sm:$0xf] %v180_v11 }
  0x1c   : > { %183 = vst [vmem:[%s136_s24 + $0x30] sm:$0xf] %v182_v12 }
  0x1d   : > { %185 = vst [vmem:[%s136_s24 + $0x34] sm:$0xf] %v184_v13 }
  0x1e   : > { %187 = vst [vmem:[%s136_s24 + $0x38] sm:$0xf] %v186_v14 }
  0x1f   : > { %189 = vst [vmem:[%s136_s24 + $0x3c] sm:$0xf] %v188_v15 }
  0x20 PF: > { %p662_p6 = scmp.ge.s32.totalorder %s854_s13, 1  ;;  %p256_p7 = scmp.lt.s32.totalorder %s854_s13, 6 }
  0x22   : > { %p257_p8 = pnand %p662_p6, %p256_p7 }
  0x23   : > { %s263_s25 = sand.u32 (!%p257_p8), 1, %s838_s9   ;;  %s664_s26 = sshll.u32 (!%p257_p8), %s846_s11, 4 }
  0x24   : > { %260 = sbr.rel (%p257_p8) target bundleno = 256 (0x100), region = 65  ;;  %s663_s27 = sshll.u32 (!%p257_p8), %s263_s25, 6 }
  0x25   : > { %p297_p9 = scmp.lt.s32.totalorder (!%p257_p8), %s664_s26, 79  ;;  %s942_s4 = scalar_lea.vmem (!%p257_p8), [#allocation2], %s663_s27 }
  0x26   : > { %p666_p10 = scmp.ne.s32.totalorder (!%p257_p8), %s846_s11, 0 }
  0x29   : > { %s1130_s26 = smov (!%p297_p9, %s664_s26), 79  ;;  %317 = sbr.rel (%p666_p10) target bundleno = 63 (0x3f), region = 73 }
  0x2a   : > { %s665_s28 = sshll.u32 %s1130_s26, 2 }
  0x2b   : > { %s940_s3 = scalar_lea.vmem %s1121_s1, %s665_s28 }
  0x2e   : > { %v856_v16 = vmov 0.0  }
  0x2f   : > { %318 = vst [vmem:[%s1122_s2] sm:$0xff] %v856_v16 }
  0x30   : > { %319 = vst [vmem:[%s1122_s2 + $0x8] sm:$0xff] %v856_v16 }
  0x31   : > { %320 = vst [vmem:[%s1122_s2 + $0x10] sm:$0xff] %v856_v16 }
  0x32   : > { %321 = vst [vmem:[%s1122_s2 + $0x18] sm:$0xff] %v856_v16 }
  0x33   : > { %322 = vst [vmem:[%s1122_s2 + $0x20] sm:$0xff] %v856_v16 }
  0x34   : > { %323 = vst [vmem:[%s1122_s2 + $0x28] sm:$0xff] %v856_v16 }
  0x35   : > { %324 = vst [vmem:[%s1122_s2 + $0x30] sm:$0xff] %v856_v16 }
  0x36   : > { %325 = vst [vmem:[%s1122_s2 + $0x38] sm:$0xff] %v856_v16 }
  0x37   : > { %326 = vst [vmem:[%s1122_s2 + $0x40] sm:$0xff] %v856_v16 }
  0x38   : > { %327 = vst [vmem:[%s1122_s2 + $0x48] sm:$0xff] %v856_v16 }
  0x39   : > { %328 = vst [vmem:[%s1122_s2 + $0x50] sm:$0xff] %v856_v16 }
  0x3a   : > { %329 = vst [vmem:[%s1122_s2 + $0x58] sm:$0xff] %v856_v16 }
  0x3b   : > { %330 = vst [vmem:[%s1122_s2 + $0x60] sm:$0xff] %v856_v16 }
  0x3c   : > { %331 = vst [vmem:[%s1122_s2 + $0x68] sm:$0xff] %v856_v16 }
  0x3d   : > { %332 = vst [vmem:[%s1122_s2 + $0x70] sm:$0xff] %v856_v16 }
  0x3e   : > { %333 = vst [vmem:[%s1122_s2 + $0x78] sm:$0xff] %v856_v16 }
  0x3f PF: > { %v750_v17 = vld [vmem:[%s940_s3 + $0x38] sm:$0xff]  ;;  %v749_v18 = vld [vmem:[%s940_s3 + $0x30] sm:$0xff]  ;;  %v748_v19 = vld [vmem:[%s940_s3 + $0x28] sm:$0xff] }
  0x40   : > { %478 = vmatpush.bf16.msra.mxu0 %v750_v17  ;;  %751 = vmatpush.bf16.msra.mxu1 %v750_v17  ;;  %v747_v20 = vld [vmem:[%s940_s3 + $0x20] sm:$0xff]  ;;  %v746_v21 = vld [vmem:[%s940_s3 + $0x18] sm:$0xff]  ;;  %v745_v22 = vld [vmem:[%s940_s3 + $0x10] sm:$0xff] }
  0x41   : > { %752 = vmatpush.bf16.msra.mxu2 %v750_v17  ;;  %753 = vmatpush.bf16.msra.mxu3 %v750_v17  ;;  %v744_v23 = vld [vmem:[%s940_s3 + $0x8] sm:$0xff]  ;;  %v743_v24 = vld [vmem:[%s940_s3] sm:$0xff]  ;;  %v737_v26 = vld [vmem:[%s942_s4 + $0x10] sm:$0xff] }
  0x42   : > { %v735_v25 = vld [vmem:[%s942_s4] sm:$0xff]  ;;  %v741_v28 = vld [vmem:[%s942_s4 + $0x30] sm:$0xff]  ;;  %v736_v29 = vld [vmem:[%s942_s4 + $0x8] sm:$0xff] }
  0x43   : > { %v739_v27 = vld [vmem:[%s942_s4 + $0x20] sm:$0xff]  ;;  %v738_v30 = vld [vmem:[%s942_s4 + $0x18] sm:$0xff]  ;;  %v740_v31 = vld [vmem:[%s942_s4 + $0x28] sm:$0xff] }
  0x44   : > { %479 = vmatpush.bf16.msra.mxu0 %v749_v18  ;;  %754 = vmatpush.bf16.msra.mxu1 %v749_v18  ;;  %v742_v32 = vld [vmem:[%s942_s4 + $0x38] sm:$0xff]  ;;  %v334_v33 = vld [vmem:[%s1122_s2] sm:$0xff]  ;;  %v335_v41 = vld [vmem:[%s1122_s2 + $0x8] sm:$0xff] }
  0x45   : > { %755 = vmatpush.bf16.msra.mxu2 %v749_v18  ;;  %756 = vmatpush.bf16.msra.mxu3 %v749_v18  ;;  %v338_v34 = vld [vmem:[%s1122_s2 + $0x20] sm:$0xff]  ;;  %v339_v42 = vld [vmem:[%s1122_s2 + $0x28] sm:$0xff]  ;;  %v336_v53 = vld [vmem:[%s1122_s2 + $0x10] sm:$0xff] }
  0x46   : > { %v342_v39 = vld [vmem:[%s1122_s2 + $0x40] sm:$0xff]  ;;  %v343_v51 = vld [vmem:[%s1122_s2 + $0x48] sm:$0xff]  ;;  %v340_v54 = vld [vmem:[%s1122_s2 + $0x30] sm:$0xff] }
  0x47   : > { %v346_v40 = vld [vmem:[%s1122_s2 + $0x60] sm:$0xff]  ;;  %v347_v52 = vld [vmem:[%s1122_s2 + $0x68] sm:$0xff]  ;;  %v344_v63 = vld [vmem:[%s1122_s2 + $0x50] sm:$0xff] }
  0x48   : > { %480 = vmatpush.bf16.msra.mxu0 %v748_v19  ;;  %757 = vmatpush.bf16.msra.mxu1 %v748_v19  ;;  %v348_v0 = vld [vmem:[%s1122_s2 + $0x70] sm:$0xff]  ;;  %v337_v1 = vld [vmem:[%s1122_s2 + $0x18] sm:$0xff] }
  0x49   : > { %758 = vmatpush.bf16.msra.mxu2 %v748_v19  ;;  %759 = vmatpush.bf16.msra.mxu3 %v748_v19  ;;  %v341_v2 = vld [vmem:[%s1122_s2 + $0x38] sm:$0xff] }
  0x4a   : > { %v345_v11 = vld [vmem:[%s1122_s2 + $0x58] sm:$0xff] }
  0x4b   : > { %v349_v12 = vld [vmem:[%s1122_s2 + $0x78] sm:$0xff] }
  0x4c   : > { %481 = vmatpush.bf16.msra.mxu0 %v747_v20  ;;  %760 = vmatpush.bf16.msra.mxu1 %v747_v20 }
  0x4d   : > { %761 = vmatpush.bf16.msra.mxu2 %v747_v20  ;;  %762 = vmatpush.bf16.msra.mxu3 %v747_v20 }
  0x50   : > { %482 = vmatpush.bf16.msra.mxu0 %v746_v21  ;;  %763 = vmatpush.bf16.msra.mxu1 %v746_v21 }
  0x51   : > { %764 = vmatpush.bf16.msra.mxu2 %v746_v21  ;;  %765 = vmatpush.bf16.msra.mxu3 %v746_v21 }
  0x54   : > { %483 = vmatpush.bf16.msra.mxu0 %v745_v22  ;;  %766 = vmatpush.bf16.msra.mxu1 %v745_v22 }
  0x55   : > { %767 = vmatpush.bf16.msra.mxu2 %v745_v22  ;;  %768 = vmatpush.bf16.msra.mxu3 %v745_v22 }
  0x58   : > { %484 = vmatpush.bf16.msra.mxu0 %v744_v23  ;;  %769 = vmatpush.bf16.msra.mxu1 %v744_v23 }
  0x59   : > { %770 = vmatpush.bf16.msra.mxu2 %v744_v23  ;;  %771 = vmatpush.bf16.msra.mxu3 %v744_v23 }
  0x5c   : > { %485 = vmatpush.bf16.msra.mxu0 %v743_v24  ;;  %772 = vmatpush.bf16.msra.mxu1 %v743_v24 }
  0x5d   : > { %773 = vmatpush.bf16.msra.mxu2 %v743_v24  ;;  %774 = vmatpush.bf16.msra.mxu3 %v743_v24 }
  0x5f   : > { %486 = vmatmul.bf16.vlgmr.msra.gmra.mxu0 %v735_v25  ;;  %496 = vmatmul.bf16.vlgmr.msra.gmra.mxu1 %v737_v26 }
  0x60   : > { %506 = vmatmul.bf16.vlgmr.msra.gmra.mxu2 %v739_v27  ;;  %516 = vmatmul.bf16.vlgmr.msra.gmra.mxu3 %v741_v28 }
  0x6f   : > { %491 = vmatmul.bf16.gmra.mxu0 %v736_v29  ;;  %501 = vmatmul.bf16.gmra.mxu1 %v738_v30 }
  0x70   : > { %511 = vmatmul.bf16.gmra.mxu2 %v740_v31  ;;  %521 = vmatmul.bf16.gmra.mxu3 %v742_v32 }
  0xdc   : > { %v487_v35 = vpop.f32.mrf.mxu0  ;;  %v497_v36 = vpop.f32.mrf.mxu1 }
  0xdd   : > { %v527_v37 = vadd.f32 %v487_v35, %v334_v33  ;;  %v531_v38 = vadd.f32 %v497_v36, %v338_v34 }
  0xdf   : > { %543 = vst [vmem:[%s1122_s2] sm:$0xff] %v527_v37 }
  0xe0   : > { %547 = vst [vmem:[%s1122_s2 + $0x20] sm:$0xff] %v531_v38 }
  0xe3   : > { %v507_v43 = vpop.f32.mrf.mxu2  ;;  %v517_v44 = vpop.f32.mrf.mxu3 }
  0xe4   : > { %v535_v45 = vadd.f32 %v507_v43, %v342_v39  ;;  %v539_v46 = vadd.f32 %v517_v44, %v346_v40  ;;  %v489_v47 = vpop.f32.mrf.mxu0  ;;  %v499_v48 = vpop.f32.mrf.mxu1 }
  0xe5   : > { %v528_v49 = vadd.f32 %v489_v47, %v335_v41  ;;  %v532_v50 = vadd.f32 %v499_v48, %v339_v42 }
  0xe6   : > { %551 = vst [vmem:[%s1122_s2 + $0x40] sm:$0xff] %v535_v45 }
  0xe7   : > { %555 = vst [vmem:[%s1122_s2 + $0x60] sm:$0xff] %v539_v46 }
  0xe8   : > { %544 = vst [vmem:[%s1122_s2 + $0x8] sm:$0xff] %v528_v49 }
  0xe9   : > { %548 = vst [vmem:[%s1122_s2 + $0x28] sm:$0xff] %v532_v50 }
  0xeb   : > { %v509_v55 = vpop.f32.mrf.mxu2  ;;  %v519_v56 = vpop.f32.mrf.mxu3 }
  0xec   : > { %v536_v57 = vadd.f32 %v509_v55, %v343_v51  ;;  %v540_v58 = vadd.f32 %v519_v56, %v347_v52  ;;  %v492_v59 = vpop.f32.mrf.mxu0  ;;  %v502_v60 = vpop.f32.mrf.mxu1 }
  0xed   : > { %v529_v61 = vadd.f32 %v492_v59, %v336_v53  ;;  %v533_v62 = vadd.f32 %v502_v60, %v340_v54 }
  0xee   : > { %552 = vst [vmem:[%s1122_s2 + $0x48] sm:$0xff] %v536_v57 }
  0xef   : > { %556 = vst [vmem:[%s1122_s2 + $0x68] sm:$0xff] %v540_v58 }
  0xf0   : > { %545 = vst [vmem:[%s1122_s2 + $0x10] sm:$0xff] %v529_v61 }
  0xf1   : > { %549 = vst [vmem:[%s1122_s2 + $0x30] sm:$0xff] %v533_v62 }
  0xf3   : > { %v512_v3 = vpop.f32.mrf.mxu2  ;;  %v522_v4 = vpop.f32.mrf.mxu3 }
  0xf4   : > { %v537_v5 = vadd.f32 %v512_v3, %v344_v63  ;;  %v541_v6 = vadd.f32 %v522_v4, %v348_v0  ;;  %v494_v7 = vpop.f32.mrf.mxu0  ;;  %v504_v8 = vpop.f32.mrf.mxu1 }
  0xf5   : > { %v530_v9 = vadd.f32 %v494_v7, %v337_v1  ;;  %v534_v10 = vadd.f32 %v504_v8, %v341_v2 }
  0xf6   : > { %553 = vst [vmem:[%s1122_s2 + $0x50] sm:$0xff] %v537_v5 }
  0xf7   : > { %557 = vst [vmem:[%s1122_s2 + $0x70] sm:$0xff] %v541_v6 }
  0xf8   : > { %546 = vst [vmem:[%s1122_s2 + $0x18] sm:$0xff] %v530_v9 }
  0xf9   : > { %550 = vst [vmem:[%s1122_s2 + $0x38] sm:$0xff] %v534_v10 }
  0xfb   : > { %v514_v13 = vpop.f32.mrf.mxu2  ;;  %v524_v14 = vpop.f32.mrf.mxu3 }
  0xfc   : > { %v538_v15 = vadd.f32 %v514_v13, %v345_v11  ;;  %v542_v16 = vadd.f32 %v524_v14, %v349_v12 }
  0xfe   : > { %554 = vst [vmem:[%s1122_s2 + $0x58] sm:$0xff] %v538_v15 }
  0xff   : > { %558 = vst [vmem:[%s1122_s2 + $0x78] sm:$0xff] %v542_v16 }
 0x100 PF: > { %s12_s13 = sadd.s32 1, %s854_s13   ;;  %s1123_s9 = smov %s842_s10 }
 0x101   : > { %p9_p11 = scmp.ge.s32.totalorder %s12_s13, 7   ;;  %s1124_s10 = smov %s907_s17 }
 0x102   : > { %s1125_s11 = smov %s850_s12  ;;  %s1126_s12 = smov %s1128_s14 }
 0x103   :  { %11 = sbr.rel (!%p9_p11) target bundleno = 3 (0x3), region = 111 }

// kernel: resnet_forward.43
= control target key start
LH: loop header
LB: loop body
LE: loop exit
PB: predicated region body
PF: predicated region fallthrough
CT: control target
= control target key end

     0   :  { %s395_s0 = inlined_call_operand.vmem [shape: f32[64,128], index: 0, kind: input, shape index: {}]   ;;  %s396_s1 = inlined_call_operand.vmem [shape: f32[1,128], index: 1, kind: input, shape index: {}]   ;;  %s397_s2 = inlined_call_operand.vmem [shape: f32[1,128], index: 2, kind: input, shape index: {}]   ;;  %s398_s3 = inlined_call_operand.vmem [shape: f32[64,128], index: 3, kind: output, shape index: {}]  }
   0x1   :  { %v14_v0 = vld [vmem:[%s395_s0] sm:$0xff]  ;;  %v15_v3 = vld [vmem:[%s395_s0 + $0x8] sm:$0xff]  ;;  %v16_v6 = vld [vmem:[%s395_s0 + $0x10] sm:$0xff] }
   0x2   :  { %v226_v1 = vld [vmem:[%s396_s1] ss:$0 sm:$0xff]  ;;  %v17_v7 = vld [vmem:[%s395_s0 + $0x18] sm:$0xff]  ;;  %v19_v12 = vld [vmem:[%s395_s0 + $0x28] sm:$0xff] }
   0x3   :  { %v273_v2 = vld [vmem:[%s397_s2] ss:$0 sm:$0xff]  ;;  %v26_v4 = vmul.f32 %v226_v1, %v14_v0  ;;  %v27_v5 = vmul.f32 %v226_v1, %v15_v3  ;;  %v28_v9 = vmul.f32 %v226_v1, %v16_v6  ;;  %v29_v10 = vmul.f32 %v226_v1, %v17_v7  ;;  %v20_v13 = vld [vmem:[%s395_s0 + $0x30] sm:$0xff]  ;;  %v21_v17 = vld [vmem:[%s395_s0 + $0x38] sm:$0xff] }
   0x4   :  { %v18_v8 = vld [vmem:[%s395_s0 + $0x20] sm:$0xff]  ;;  %v31_v16 = vmul.f32 %v226_v1, %v19_v12  ;;  %v32_v20 = vmul.f32 %v226_v1, %v20_v13  ;;  %v317_v28 = vmul.f32 %v226_v1, %v21_v17 }
   0x5   :  { %v30_v11 = vmul.f32 %v226_v1, %v18_v8  ;;  %v294_v14 = vadd.f32 %v273_v2, %v26_v4  ;;  %v297_v15 = vadd.f32 %v273_v2, %v27_v5  ;;  %v303_v18 = vadd.f32 %v273_v2, %v28_v9 }
   0x6   :  { %v306_v19 = vadd.f32 %v273_v2, %v29_v10  ;;  %v320_v32 = vadd.f32 %v273_v2, %v31_v16  ;;  %v323_v36 = vadd.f32 %v273_v2, %v32_v20 }
   0x7   :  { %v46_v21 = vmul.f32 0.25281987, %v294_v14  ;;  %v126_v22 = vand.u32 2147483647, %v294_v14  ;;  %v47_v23 = vmul.f32 0.25281987, %v297_v15  ;;  %v312_v24 = vadd.f32 %v273_v2, %v30_v11 }
   0x8   :  { %v127_v25 = vand.u32 2147483647, %v297_v15  ;;  %v48_v26 = vmul.f32 0.25281987, %v303_v18  ;;  %v128_v27 = vand.u32 2147483647, %v303_v18 }
   0x9   :  { %v54_v29 = vadd.f32 1.5247445, %v46_v21  ;;  %v134_v30 = vmul.f32 0.34885982, %v126_v22  ;;  %v55_v31 = vadd.f32 1.5247445, %v47_v23 }
   0xa   :  { %v135_v33 = vmul.f32 0.34885982, %v127_v25  ;;  %v56_v34 = vadd.f32 1.5247445, %v48_v26  ;;  %v136_v35 = vmul.f32 0.34885982, %v128_v27 }
   0xb   :  { %v62_v37 = vmul.f32 %v54_v29, %v294_v14  ;;  %v142_v38 = vadd.f32 0.91111034, %v134_v30  ;;  %v63_v39 = vmul.f32 %v55_v31, %v297_v15  ;;  %v49_v40 = vmul.f32 0.25281987, %v306_v19 }
   0xc   :  { %v143_v41 = vadd.f32 0.91111034, %v135_v33  ;;  %v64_v42 = vmul.f32 %v56_v34, %v303_v18  ;;  %v144_v43 = vadd.f32 0.91111034, %v136_v35  ;;  %v129_v44 = vand.u32 2147483647, %v306_v19 }
   0xd   :  { %v70_v45 = vadd.f32 3.0660808, %v62_v37  ;;  %v150_v46 = vmul.f32 %v142_v38, %v126_v22  ;;  %v71_v47 = vadd.f32 3.0660808, %v63_v39  ;;  %v57_v48 = vadd.f32 1.5247445, %v49_v40 }
   0xe   :  { %v151_v49 = vmul.f32 %v143_v41, %v127_v25  ;;  %v72_v50 = vadd.f32 3.0660808, %v64_v42  ;;  %v152_v51 = vmul.f32 %v144_v43, %v128_v27  ;;  %v137_v52 = vmul.f32 0.34885982, %v129_v44 }
   0xf   :  { %v78_v53 = vmul.f32 %v70_v45, %v294_v14  ;;  %v158_v54 = vadd.f32 4.408118, %v150_v46  ;;  %v79_v55 = vmul.f32 %v71_v47, %v297_v15  ;;  %v65_v56 = vmul.f32 %v57_v48, %v306_v19 }
  0x10   :  { %v159_v57 = vadd.f32 4.408118, %v151_v49  ;;  %v80_v58 = vmul.f32 %v72_v50, %v303_v18  ;;  %v160_v59 = vadd.f32 4.408118, %v152_v51  ;;  %v145_v60 = vadd.f32 0.91111034, %v137_v52 }
  0x11   :  { %v86_v61 = vadd.f32 2.3753915, %v78_v53  ;;  %v166_v62 = vmul.f32 %v158_v54, %v126_v22  ;;  %v87_v63 = vadd.f32 2.3753915, %v79_v55  ;;  %v73_v0 = vadd.f32 3.0660808, %v65_v56 }
  0x12   :  { %v167_v1 = vmul.f32 %v159_v57, %v127_v25  ;;  %v88_v3 = vadd.f32 2.3753915, %v80_v58  ;;  %v168_v4 = vmul.f32 %v160_v59, %v128_v27  ;;  %v153_v5 = vmul.f32 %v145_v60, %v129_v44 }
  0x13   :  { %v94_v6 = vmul.f32 %v86_v61, %v294_v14  ;;  %v174_v7 = vadd.f32 1.1916082, %v166_v62  ;;  %v95_v8 = vmul.f32 %v87_v63, %v297_v15  ;;  %v81_v9 = vmul.f32 %v73_v0, %v306_v19 }
  0x14   :  { %v175_v10 = vadd.f32 1.1916082, %v167_v1  ;;  %v96_v11 = vmul.f32 %v88_v3, %v303_v18  ;;  %v176_v12 = vadd.f32 1.1916082, %v168_v4  ;;  %v161_v13 = vadd.f32 4.408118, %v153_v5 }
  0x15   :  { %v102_v16 = vadd.f32 0.61690164, %v94_v6  ;;  %v182_v17 = vmul.f32 %v174_v7, %v126_v22  ;;  %v103_v20 = vadd.f32 0.61690164, %v95_v8  ;;  %v89_v21 = vadd.f32 2.3753915, %v81_v9 }
  0x16   :  { %v183_v23 = vmul.f32 %v175_v10, %v127_v25  ;;  %v104_v26 = vadd.f32 0.61690164, %v96_v11  ;;  %v184_v29 = vmul.f32 %v176_v12, %v128_v27  ;;  %v169_v30 = vmul.f32 %v161_v13, %v129_v44 }
  0x17   :  { %v110_v31 = vmul.f32 %v102_v16, %v294_v14  ;;  %v190_v33 = vadd.f32 1.0, %v182_v17  ;;  %v111_v34 = vmul.f32 %v103_v20, %v297_v15  ;;  %v97_v35 = vmul.f32 %v89_v21, %v306_v19 }
  0x18   :  { %v191_v37 = vadd.f32 1.0, %v183_v23  ;;  %v112_v38 = vmul.f32 %v104_v26, %v303_v18  ;;  %v192_v39 = vadd.f32 1.0, %v184_v29  ;;  %v177_v40 = vadd.f32 1.1916082, %v169_v30 }
  0x19   :  { %v118_v41 = vadd.f32 0.02996348, %v110_v31  ;;  %228 = vrcp.f32 %v190_v33  ;;  %v119_v22 = vadd.f32 0.02996348, %v111_v34  ;;  %v105_v42 = vadd.f32 0.61690164, %v97_v35 }
  0x1a   :  { %230 = vrcp.f32 %v191_v37  ;;  %v120_v25 = vadd.f32 0.02996348, %v112_v38  ;;  %v185_v27 = vmul.f32 %v177_v40, %v129_v44  ;;  %v50_v43 = vmul.f32 0.25281987, %v312_v24 }
  0x1b   :  { %232 = vrcp.f32 %v192_v39  ;;  %v113_v14 = vmul.f32 %v105_v42, %v306_v19  ;;  %v130_v15 = vand.u32 2147483647, %v312_v24  ;;  %v51_v45 = vmul.f32 0.25281987, %v320_v32 }
  0x1c   :  { %v193_v46 = vadd.f32 1.0, %v185_v27  ;;  %v58_v18 = vadd.f32 1.5247445, %v50_v43  ;;  %v131_v47 = vand.u32 2147483647, %v320_v32  ;;  %v349_v51 = vadd.f32 %v273_v2, %v317_v28 }
  0x1d   :  { %v121_v48 = vadd.f32 0.02996348, %v113_v14  ;;  %v138_v49 = vmul.f32 0.34885982, %v130_v15  ;;  %v59_v50 = vadd.f32 1.5247445, %v51_v45 }
  0x1e   :  { %234 = vrcp.f32 %v193_v46  ;;  %v66_v44 = vmul.f32 %v58_v18, %v312_v24  ;;  %v139_v52 = vmul.f32 0.34885982, %v131_v47  ;;  %v52_v19 = vmul.f32 0.25281987, %v323_v36 }
  0x1f   :  { %v229_v53 = vpop.eup %228  ;;  %v146_v54 = vadd.f32 0.91111034, %v138_v49  ;;  %v67_v55 = vmul.f32 %v59_v50, %v320_v32  ;;  %v132_v56 = vand.u32 2147483647, %v323_v36  ;;  %v53_v57 = vmul.f32 0.25281987, %v349_v51 }
  0x20   :  { %v231_v58 = vpop.eup %230  ;;  %v206_v59 = vmul.f32 %v229_v53, %v118_v41  ;;  %v74_v60 = vadd.f32 3.0660808, %v66_v44  ;;  %v147_v61 = vadd.f32 0.91111034, %v139_v52  ;;  %v60_v2 = vadd.f32 1.5247445, %v52_v19 }
  0x21   :  { %v233_v28 = vpop.eup %232  ;;  %v207_v62 = vmul.f32 %v231_v58, %v119_v22  ;;  %v154_v63 = vmul.f32 %v146_v54, %v130_v15  ;;  %v75_v0 = vadd.f32 3.0660808, %v67_v55  ;;  %v140_v1 = vmul.f32 0.34885982, %v132_v56 }
  0x22   :  { %214 = vst [vmem:[%s398_s3] sm:$0xff] %v206_v59  ;;  %v208_v3 = vmul.f32 %v233_v28, %v120_v25  ;;  %v82_v4 = vmul.f32 %v74_v60, %v312_v24  ;;  %v155_v5 = vmul.f32 %v147_v61, %v131_v47  ;;  %v68_v6 = vmul.f32 %v60_v2, %v323_v36 }
  0x23   :  { %215 = vst [vmem:[%s398_s3 + $0x8] sm:$0xff] %v207_v62  ;;  %v162_v7 = vadd.f32 4.408118, %v154_v63  ;;  %v83_v8 = vmul.f32 %v75_v0, %v320_v32  ;;  %v148_v9 = vadd.f32 0.91111034, %v140_v1 }
  0x24   :  { %v235_v10 = vpop.eup %234  ;;  %216 = vst [vmem:[%s398_s3 + $0x10] sm:$0xff] %v208_v3  ;;  %v90_v11 = vadd.f32 2.3753915, %v82_v4  ;;  %v163_v12 = vadd.f32 4.408118, %v155_v5 }
  0x25   :  { %v209_v13 = vmul.f32 %v235_v10, %v121_v48  ;;  %v170_v16 = vmul.f32 %v162_v7, %v130_v15  ;;  %v91_v17 = vadd.f32 2.3753915, %v83_v8  ;;  %v76_v20 = vadd.f32 3.0660808, %v68_v6 }
  0x26   :  { %v98_v21 = vmul.f32 %v90_v11, %v312_v24  ;;  %v171_v23 = vmul.f32 %v163_v12, %v131_v47  ;;  %v156_v26 = vmul.f32 %v148_v9, %v132_v56  ;;  %v61_v29 = vadd.f32 1.5247445, %v53_v57 }
  0x27   :  { %217 = vst [vmem:[%s398_s3 + $0x18] sm:$0xff] %v209_v13  ;;  %v178_v30 = vadd.f32 1.1916082, %v170_v16  ;;  %v99_v31 = vmul.f32 %v91_v17, %v320_v32  ;;  %v84_v33 = vmul.f32 %v76_v20, %v323_v36  ;;  %v133_v34 = vand.u32 2147483647, %v349_v51 }
  0x28   :  { %v106_v35 = vadd.f32 0.61690164, %v98_v21  ;;  %v179_v37 = vadd.f32 1.1916082, %v171_v23  ;;  %v164_v38 = vadd.f32 4.408118, %v156_v26  ;;  %v69_v39 = vmul.f32 %v61_v29, %v349_v51 }
  0x29   :  { %v186_v40 = vmul.f32 %v178_v30, %v130_v15  ;;  %v107_v41 = vadd.f32 0.61690164, %v99_v31  ;;  %v92_v22 = vadd.f32 2.3753915, %v84_v33  ;;  %v141_v42 = vmul.f32 0.34885982, %v133_v34 }
  0x2a   :  { %v187_v25 = vmul.f32 %v179_v37, %v131_v47  ;;  %v172_v27 = vmul.f32 %v164_v38, %v132_v56  ;;  %v77_v43 = vadd.f32 3.0660808, %v69_v39  ;;  %v114_v18 = vmul.f32 %v106_v35, %v312_v24 }
  0x2b   :  { %v194_v14 = vadd.f32 1.0, %v186_v40  ;;  %v100_v45 = vmul.f32 %v92_v22, %v323_v36  ;;  %v149_v46 = vadd.f32 0.91111034, %v141_v42  ;;  %v115_v44 = vmul.f32 %v107_v41, %v320_v32 }
  0x2c   :  { %v195_v48 = vadd.f32 1.0, %v187_v25  ;;  %v180_v49 = vadd.f32 1.1916082, %v172_v27  ;;  %v85_v50 = vmul.f32 %v77_v43, %v349_v51  ;;  %v122_v54 = vadd.f32 0.02996348, %v114_v18 }
  0x2d   :  { %236 = vrcp.f32 %v194_v14  ;;  %v108_v15 = vadd.f32 0.61690164, %v100_v45  ;;  %v157_v52 = vmul.f32 %v149_v46, %v133_v34  ;;  %v123_v58 = vadd.f32 0.02996348, %v115_v44 }
  0x2e   :  { %238 = vrcp.f32 %v195_v48  ;;  %v188_v19 = vmul.f32 %v180_v49, %v132_v56  ;;  %v93_v47 = vadd.f32 2.3753915, %v85_v50 }
  0x2f   :  { %v165_v53 = vadd.f32 4.408118, %v157_v52  ;;  %v116_v24 = vmul.f32 %v108_v15, %v323_v36 }
  0x30   :  { %v196_v55 = vadd.f32 1.0, %v188_v19  ;;  %v101_v57 = vmul.f32 %v93_v47, %v349_v51 }
  0x31   :  { %v173_v59 = vmul.f32 %v165_v53, %v133_v34  ;;  %v124_v63 = vadd.f32 0.02996348, %v116_v24 }
  0x32   :  { %240 = vrcp.f32 %v196_v55  ;;  %v109_v32 = vadd.f32 0.61690164, %v101_v57 }
  0x33   :  { %v237_v60 = vpop.eup %236  ;;  %v181_v61 = vadd.f32 1.1916082, %v173_v59 }
  0x34   :  { %v239_v2 = vpop.eup %238  ;;  %v210_v28 = vmul.f32 %v237_v60, %v122_v54  ;;  %v117_v1 = vmul.f32 %v109_v32, %v349_v51 }
  0x35   :  { %v211_v62 = vmul.f32 %v239_v2, %v123_v58  ;;  %v189_v0 = vmul.f32 %v181_v61, %v133_v34 }
  0x36   :  { %218 = vst [vmem:[%s398_s3 + $0x20] sm:$0xff] %v210_v28  ;;  %v125_v4 = vadd.f32 0.02996348, %v117_v1 }
  0x37   :  { %219 = vst [vmem:[%s398_s3 + $0x28] sm:$0xff] %v211_v62  ;;  %v197_v56 = vadd.f32 1.0, %v189_v0 }
  0x38   :  { %v241_v36 = vpop.eup %240 }
  0x39   :  { %v212_v3 = vmul.f32 %v241_v36, %v124_v63  ;;  %242 = vrcp.f32 %v197_v56 }
  0x3b   :  { %220 = vst [vmem:[%s398_s3 + $0x30] sm:$0xff] %v212_v3 }
  0x3f   :  { %v243_v5 = vpop.eup %242 }
  0x40   :  { %v213_v6 = vmul.f32 %v243_v5, %v125_v4 }
  0x42   :  { %221 = vst [vmem:[%s398_s3 + $0x38] sm:$0xff] %v213_v6 }

// kernel: resnet_forward.45
= control target key start
LH: loop header
LB: loop body
LE: loop exit
PB: predicated region body
PF: predicated region fallthrough
CT: control target
= control target key end

     0   :  { %s442_s0 = inlined_call_operand.vmem [shape: f32[64,128], index: 0, kind: input, shape index: {}]   ;;  %s443_s1 = inlined_call_operand.vmem [shape: f32[1,128], index: 1, kind: input, shape index: {}]   ;;  %s444_s2 = inlined_call_operand.vmem [shape: f32[1,128], index: 2, kind: input, shape index: {}]   ;;  %s445_s3 = inlined_call_operand.vmem [shape: f32[64,128], index: 3, kind: input, shape index: {}]   ;;  %s446_s4 = inlined_call_operand.vmem [shape: f32[64,128], index: 4, kind: output, shape index: {}]  }
   0x1   :  { %v17_v0 = vld [vmem:[%s442_s0] sm:$0xff]  ;;  %v18_v4 = vld [vmem:[%s442_s0 + $0x8] sm:$0xff]  ;;  %v19_v5 = vld [vmem:[%s442_s0 + $0x10] sm:$0xff] }
   0x2   :  { %v294_v1 = vld [vmem:[%s443_s1] ss:$0 sm:$0xff]  ;;  %v50_v8 = vld [vmem:[%s445_s3 + $0x8] sm:$0xff]  ;;  %v20_v10 = vld [vmem:[%s442_s0 + $0x18] sm:$0xff] }
   0x3   :  { %v299_v2 = vld [vmem:[%s444_s2] ss:$0 sm:$0xff]  ;;  %v29_v3 = vmul.f32 %v294_v1, %v17_v0  ;;  %v30_v7 = vmul.f32 %v294_v1, %v18_v4  ;;  %v31_v9 = vmul.f32 %v294_v1, %v19_v5  ;;  %v51_v12 = vld [vmem:[%s445_s3 + $0x10] sm:$0xff]  ;;  %v32_v13 = vmul.f32 %v294_v1, %v20_v10  ;;  %v22_v15 = vld [vmem:[%s442_s0 + $0x28] sm:$0xff] }
   0x4   :  { %v49_v6 = vld [vmem:[%s445_s3] sm:$0xff]  ;;  %v52_v18 = vld [vmem:[%s445_s3 + $0x18] sm:$0xff]  ;;  %v34_v20 = vmul.f32 %v294_v1, %v22_v15  ;;  %v23_v21 = vld [vmem:[%s442_s0 + $0x30] sm:$0xff] }
   0x5   :  { %v41_v11 = vadd.f32 %v299_v2, %v29_v3  ;;  %v21_v14 = vld [vmem:[%s442_s0 + $0x20] sm:$0xff]  ;;  %v42_v16 = vadd.f32 %v299_v2, %v30_v7  ;;  %v43_v17 = vadd.f32 %v299_v2, %v31_v9  ;;  %v44_v23 = vadd.f32 %v299_v2, %v32_v13  ;;  %v54_v30 = vld [vmem:[%s445_s3 + $0x28] sm:$0xff]  ;;  %v55_v35 = vld [vmem:[%s445_s3 + $0x30] sm:$0xff] }
   0x6   :  { %v33_v19 = vmul.f32 %v294_v1, %v21_v14  ;;  %v53_v24 = vld [vmem:[%s445_s3 + $0x20] sm:$0xff]  ;;  %v35_v25 = vmul.f32 %v294_v1, %v23_v21  ;;  %v46_v29 = vadd.f32 %v299_v2, %v34_v20 }
   0x7   :  { %v340_v22 = vadd.f32 %v49_v6, %v41_v11  ;;  %v347_v26 = vadd.f32 %v50_v8, %v42_v16  ;;  %v349_v27 = vadd.f32 %v51_v12, %v43_v17  ;;  %v358_v33 = vadd.f32 %v52_v18, %v44_v23 }
   0x8   :  { %v45_v28 = vadd.f32 %v299_v2, %v33_v19  ;;  %v47_v34 = vadd.f32 %v299_v2, %v35_v25  ;;  %v370_v43 = vadd.f32 %v54_v30, %v46_v29 }
   0x9   :  { %v65_v31 = vmul.f32 0.25281987, %v340_v22  ;;  %v145_v32 = vand.u32 2147483647, %v340_v22  ;;  %v66_v36 = vmul.f32 0.25281987, %v347_v26 }
   0xa   :  { %v146_v37 = vand.u32 2147483647, %v347_v26  ;;  %v67_v38 = vmul.f32 0.25281987, %v349_v27  ;;  %v367_v39 = vadd.f32 %v53_v24, %v45_v28  ;;  %v147_v42 = vand.u32 2147483647, %v349_v27 }
   0xb   :  { %v73_v40 = vadd.f32 1.5247445, %v65_v31  ;;  %v153_v41 = vmul.f32 0.34885982, %v145_v32  ;;  %v74_v44 = vadd.f32 1.5247445, %v66_v36  ;;  %v372_v47 = vadd.f32 %v55_v35, %v47_v34 }
   0xc   :  { %v154_v45 = vmul.f32 0.34885982, %v146_v37  ;;  %v75_v46 = vadd.f32 1.5247445, %v67_v38  ;;  %v155_v50 = vmul.f32 0.34885982, %v147_v42 }
   0xd   :  { %v81_v48 = vmul.f32 %v73_v40, %v340_v22  ;;  %v161_v49 = vadd.f32 0.91111034, %v153_v41  ;;  %v68_v51 = vmul.f32 0.25281987, %v358_v33  ;;  %v82_v52 = vmul.f32 %v74_v44, %v347_v26 }
   0xe   :  { %v162_v53 = vadd.f32 0.91111034, %v154_v45  ;;  %v83_v54 = vmul.f32 %v75_v46, %v349_v27  ;;  %v148_v55 = vand.u32 2147483647, %v358_v33  ;;  %v163_v58 = vadd.f32 0.91111034, %v155_v50 }
   0xf   :  { %v89_v56 = vadd.f32 3.0660808, %v81_v48  ;;  %v169_v57 = vmul.f32 %v161_v49, %v145_v32  ;;  %v76_v59 = vadd.f32 1.5247445, %v68_v51  ;;  %v90_v60 = vadd.f32 3.0660808, %v82_v52 }
  0x10   :  { %v170_v61 = vmul.f32 %v162_v53, %v146_v37  ;;  %v91_v62 = vadd.f32 3.0660808, %v83_v54  ;;  %v156_v63 = vmul.f32 0.34885982, %v148_v55  ;;  %v171_v4 = vmul.f32 %v163_v58, %v147_v42 }
  0x11   :  { %v97_v0 = vmul.f32 %v89_v56, %v340_v22  ;;  %v177_v3 = vadd.f32 4.408118, %v169_v57  ;;  %v84_v5 = vmul.f32 %v76_v59, %v358_v33  ;;  %v98_v6 = vmul.f32 %v90_v60, %v347_v26 }
  0x12   :  { %v178_v7 = vadd.f32 4.408118, %v170_v61  ;;  %v99_v8 = vmul.f32 %v91_v62, %v349_v27  ;;  %v164_v9 = vadd.f32 0.91111034, %v156_v63  ;;  %v179_v12 = vadd.f32 4.408118, %v171_v4 }
  0x13   :  { %v105_v10 = vadd.f32 2.3753915, %v97_v0  ;;  %v185_v11 = vmul.f32 %v177_v3, %v145_v32  ;;  %v92_v13 = vadd.f32 3.0660808, %v84_v5  ;;  %v106_v14 = vadd.f32 2.3753915, %v98_v6 }
  0x14   :  { %v186_v15 = vmul.f32 %v178_v7, %v146_v37  ;;  %v107_v16 = vadd.f32 2.3753915, %v99_v8  ;;  %v172_v17 = vmul.f32 %v164_v9, %v148_v55  ;;  %v187_v20 = vmul.f32 %v179_v12, %v147_v42 }
  0x15   :  { %v113_v18 = vmul.f32 %v105_v10, %v340_v22  ;;  %v193_v19 = vadd.f32 1.1916082, %v185_v11  ;;  %v100_v21 = vmul.f32 %v92_v13, %v358_v33  ;;  %v114_v23 = vmul.f32 %v106_v14, %v347_v26 }
  0x16   :  { %v194_v24 = vadd.f32 1.1916082, %v186_v15  ;;  %v115_v25 = vmul.f32 %v107_v16, %v349_v27  ;;  %v180_v28 = vadd.f32 4.408118, %v172_v17  ;;  %v195_v31 = vadd.f32 1.1916082, %v187_v20 }
  0x17   :  { %v121_v29 = vadd.f32 0.61690164, %v113_v18  ;;  %v201_v30 = vmul.f32 %v193_v19, %v145_v32  ;;  %v108_v34 = vadd.f32 2.3753915, %v100_v21  ;;  %v122_v35 = vadd.f32 0.61690164, %v114_v23 }
  0x18   :  { %v202_v36 = vmul.f32 %v194_v24, %v146_v37  ;;  %v123_v38 = vadd.f32 0.61690164, %v115_v25  ;;  %v188_v40 = vmul.f32 %v180_v28, %v148_v55  ;;  %v203_v45 = vmul.f32 %v195_v31, %v147_v42  ;;  %v24_v37 = vld [vmem:[%s442_s0 + $0x38] sm:$0xff] }
  0x19   :  { %v129_v41 = vmul.f32 %v121_v29, %v340_v22  ;;  %v209_v44 = vadd.f32 1.0, %v201_v30  ;;  %v116_v46 = vmul.f32 %v108_v34, %v358_v33  ;;  %v130_v48 = vmul.f32 %v122_v35, %v347_v26  ;;  %v56_v17 = vld [vmem:[%s445_s3 + $0x38] sm:$0xff] }
  0x1a   :  { %v210_v49 = vadd.f32 1.0, %v202_v36  ;;  %v131_v50 = vmul.f32 %v123_v38, %v349_v27  ;;  %v196_v51 = vadd.f32 1.1916082, %v188_v40  ;;  %v211_v32 = vadd.f32 1.0, %v203_v45 }
  0x1b   :  { %v137_v52 = vadd.f32 0.02996348, %v129_v41  ;;  %247 = vrcp.f32 %v209_v44  ;;  %v124_v53 = vadd.f32 0.61690164, %v116_v46  ;;  %v138_v54 = vadd.f32 0.02996348, %v130_v48 }
  0x1c   :  { %249 = vrcp.f32 %v210_v49  ;;  %v139_v22 = vadd.f32 0.02996348, %v131_v50  ;;  %v204_v42 = vmul.f32 %v196_v51, %v148_v55  ;;  %v69_v26 = vmul.f32 0.25281987, %v367_v39 }
  0x1d   :  { %251 = vrcp.f32 %v211_v32  ;;  %v132_v56 = vmul.f32 %v124_v53, %v358_v33  ;;  %v149_v27 = vand.u32 2147483647, %v367_v39  ;;  %v70_v58 = vmul.f32 0.25281987, %v370_v43 }
  0x1e   :  { %v212_v57 = vadd.f32 1.0, %v204_v42  ;;  %v150_v59 = vand.u32 2147483647, %v370_v43  ;;  %v36_v60 = vmul.f32 %v294_v1, %v24_v37  ;;  %v77_v62 = vadd.f32 1.5247445, %v69_v26 }
  0x1f   :  { %v140_v61 = vadd.f32 0.02996348, %v132_v56  ;;  %v157_v63 = vmul.f32 0.34885982, %v149_v27  ;;  %v78_v0 = vadd.f32 1.5247445, %v70_v58 }
  0x20   :  { %253 = vrcp.f32 %v212_v57  ;;  %v158_v55 = vmul.f32 0.34885982, %v150_v59  ;;  %v71_v3 = vmul.f32 0.25281987, %v372_v47  ;;  %v85_v4 = vmul.f32 %v77_v62, %v367_v39 }
  0x21   :  { %v248_v33 = vpop.eup %247  ;;  %v165_v5 = vadd.f32 0.91111034, %v157_v63  ;;  %v151_v6 = vand.u32 2147483647, %v372_v47  ;;  %v48_v7 = vadd.f32 %v299_v2, %v36_v60  ;;  %v86_v1 = vmul.f32 %v78_v0, %v370_v43 }
  0x22   :  { %v250_v8 = vpop.eup %249  ;;  %v225_v9 = vmul.f32 %v248_v33, %v137_v52  ;;  %v166_v10 = vadd.f32 0.91111034, %v158_v55  ;;  %v79_v11 = vadd.f32 1.5247445, %v71_v3  ;;  %v93_v14 = vadd.f32 3.0660808, %v85_v4 }
  0x23   :  { %v252_v12 = vpop.eup %251  ;;  %v226_v13 = vmul.f32 %v250_v8, %v138_v54  ;;  %v173_v15 = vmul.f32 %v165_v5, %v149_v27  ;;  %v159_v16 = vmul.f32 0.34885982, %v151_v6  ;;  %v94_v18 = vadd.f32 3.0660808, %v86_v1 }
  0x24   :  { %233 = vst [vmem:[%s446_s4] sm:$0xff] %v225_v9  ;;  %v227_v2 = vmul.f32 %v252_v12, %v139_v22  ;;  %v174_v19 = vmul.f32 %v166_v10, %v150_v59  ;;  %v87_v20 = vmul.f32 %v79_v11, %v372_v47  ;;  %v101_v21 = vmul.f32 %v93_v14, %v367_v39 }
  0x25   :  { %234 = vst [vmem:[%s446_s4 + $0x8] sm:$0xff] %v226_v13  ;;  %v181_v23 = vadd.f32 4.408118, %v173_v15  ;;  %v167_v24 = vadd.f32 0.91111034, %v159_v16  ;;  %v102_v28 = vmul.f32 %v94_v18, %v370_v43  ;;  %v64_v31 = vadd.f32 %v56_v17, %v48_v7 }
  0x26   :  { %v254_v25 = vpop.eup %253  ;;  %235 = vst [vmem:[%s446_s4 + $0x10] sm:$0xff] %v227_v2  ;;  %v182_v29 = vadd.f32 4.408118, %v174_v19  ;;  %v95_v30 = vadd.f32 3.0660808, %v87_v20 }
  0x27   :  { %v228_v34 = vmul.f32 %v254_v25, %v140_v61  ;;  %v109_v35 = vadd.f32 2.3753915, %v101_v21  ;;  %v189_v36 = vmul.f32 %v181_v23, %v149_v27  ;;  %v175_v38 = vmul.f32 %v167_v24, %v151_v6 }
  0x28   :  { %v110_v40 = vadd.f32 2.3753915, %v102_v28  ;;  %v190_v41 = vmul.f32 %v182_v29, %v150_v59  ;;  %v103_v44 = vmul.f32 %v95_v30, %v372_v47  ;;  %v72_v45 = vmul.f32 0.25281987, %v64_v31 }
  0x29   :  { %236 = vst [vmem:[%s446_s4 + $0x18] sm:$0xff] %v228_v34  ;;  %v117_v46 = vmul.f32 %v109_v35, %v367_v39  ;;  %v197_v48 = vadd.f32 1.1916082, %v189_v36  ;;  %v183_v49 = vadd.f32 4.408118, %v175_v38 }
  0x2a   :  { %v118_v50 = vmul.f32 %v110_v40, %v370_v43  ;;  %v198_v51 = vadd.f32 1.1916082, %v190_v41  ;;  %v111_v52 = vadd.f32 2.3753915, %v103_v44  ;;  %v80_v32 = vadd.f32 1.5247445, %v72_v45 }
  0x2b   :  { %v125_v53 = vadd.f32 0.61690164, %v117_v46  ;;  %v205_v37 = vmul.f32 %v197_v48, %v149_v27  ;;  %v191_v54 = vmul.f32 %v183_v49, %v151_v6  ;;  %v152_v22 = vand.u32 2147483647, %v64_v31 }
  0x2c   :  { %v126_v42 = vadd.f32 0.61690164, %v118_v50  ;;  %v206_v56 = vmul.f32 %v198_v51, %v150_v59  ;;  %v119_v26 = vmul.f32 %v111_v52, %v372_v47  ;;  %v88_v57 = vmul.f32 %v80_v32, %v64_v31 }
  0x2d   :  { %v213_v58 = vadd.f32 1.0, %v205_v37  ;;  %v199_v60 = vadd.f32 1.1916082, %v191_v54  ;;  %v160_v61 = vmul.f32 0.34885982, %v152_v22  ;;  %v133_v62 = vmul.f32 %v125_v53, %v367_v39 }
  0x2e   :  { %v214_v63 = vadd.f32 1.0, %v206_v56  ;;  %v127_v0 = vadd.f32 0.61690164, %v119_v26  ;;  %v96_v55 = vadd.f32 3.0660808, %v88_v57  ;;  %v134_v3 = vmul.f32 %v126_v42, %v370_v43 }
  0x2f   :  { %255 = vrcp.f32 %v213_v58  ;;  %v207_v33 = vmul.f32 %v199_v60, %v151_v6  ;;  %v168_v27 = vadd.f32 0.91111034, %v160_v61  ;;  %v141_v7 = vadd.f32 0.02996348, %v133_v62 }
  0x30   :  { %257 = vrcp.f32 %v214_v63  ;;  %v104_v4 = vmul.f32 %v96_v55, %v64_v31  ;;  %v135_v8 = vmul.f32 %v127_v0, %v372_v47  ;;  %v142_v1 = vadd.f32 0.02996348, %v134_v3 }
  0x31   :  { %v215_v5 = vadd.f32 1.0, %v207_v33  ;;  %v176_v59 = vmul.f32 %v168_v27, %v152_v22 }
  0x32   :  { %v112_v9 = vadd.f32 2.3753915, %v104_v4  ;;  %v143_v15 = vadd.f32 0.02996348, %v135_v8 }
  0x33   :  { %259 = vrcp.f32 %v215_v5  ;;  %v184_v10 = vadd.f32 4.408118, %v176_v59 }
  0x34   :  { %v120_v39 = vmul.f32 %v112_v9, %v64_v31 }
  0x35   :  { %v256_v11 = vpop.eup %255  ;;  %v192_v12 = vmul.f32 %v184_v10, %v152_v22 }
  0x36   :  { %v258_v13 = vpop.eup %257  ;;  %v229_v14 = vmul.f32 %v256_v11, %v141_v7  ;;  %v128_v16 = vadd.f32 0.61690164, %v120_v39 }
  0x37   :  { %v230_v43 = vmul.f32 %v258_v13, %v142_v1  ;;  %v200_v6 = vadd.f32 1.1916082, %v192_v12 }
  0x38   :  { %237 = vst [vmem:[%s446_s4 + $0x20] sm:$0xff] %v229_v14  ;;  %v136_v19 = vmul.f32 %v128_v16, %v64_v31 }
  0x39   :  { %v260_v17 = vpop.eup %259  ;;  %238 = vst [vmem:[%s446_s4 + $0x28] sm:$0xff] %v230_v43  ;;  %v208_v47 = vmul.f32 %v200_v6, %v152_v22 }
  0x3a   :  { %v231_v2 = vmul.f32 %v260_v17, %v143_v15  ;;  %v144_v20 = vadd.f32 0.02996348, %v136_v19 }
  0x3b   :  { %v216_v18 = vadd.f32 1.0, %v208_v47 }
  0x3c   :  { %239 = vst [vmem:[%s446_s4 + $0x30] sm:$0xff] %v231_v2 }
  0x3d   :  { %261 = vrcp.f32 %v216_v18 }
  0x43   :  { %v262_v21 = vpop.eup %261 }
  0x44   :  { %v232_v23 = vmul.f32 %v262_v21, %v144_v20 }
  0x46   :  { %240 = vst [vmem:[%s446_s4 + $0x38] sm:$0xff] %v232_v23 }

// kernel: resnet_forward.50
= control target key start
LH: loop header
LB: loop body
LE: loop exit
PB: predicated region body
PF: predicated region fallthrough
CT: control target
= control target key end

     0   :  { %s652_s9 = smov 0   ;;  %s654_s10 = smov 0   ;;  %s771_s0 = inlined_call_operand.vmem [shape: bf16[32,640], index: 0, kind: input, shape index: {}]   ;;  %s772_s1 = inlined_call_operand.vmem [shape: bf16[640,128], index: 1, kind: input, shape index: {}]   ;;  %s773_s2 = inlined_call_operand.vmem [shape: f32[32,128], index: 2, kind: output, shape index: {}]  }
   0x1   :  { %s656_s11 = smov 0   ;;  %s658_s12 = smov 0  }
   0x2   :  { %s660_s13 = smov 0  }
   0x3 LB: > { %s24_s14 = sadd.s32 1, %s630_s12  ;;  %p47_p1 = scmp.ne.s32.totalorder %s622_s10, %s618_s9  ;;  %s634_s13 = sphi %s660_s13, %s12_s13   ;;  %s630_s12 = sphi %s658_s12, %s777_s12   ;;  %s626_s11 = sphi %s656_s11, %s776_s11   ;;  %s622_s10 = sphi %s654_s10, %s775_s10   ;;  %s618_s9 = sphi %s652_s9, %s774_s9  }
   0x4   : > { %p25_p0 = scmp.ge.s32.totalorder %s24_s14, 5  ;;  %p48_p2 = scmp.eq.s32.totalorder %s634_s13, 0 }
   0x5   : > { %s40_s16 = sadd.s32 1, %s622_s10  ;;  %p485_p5 = scmp.ge.s32.totalorder %s634_s13, 5 }
   0x6   : > { %s779_s14 = smov (%p25_p0, %s24_s14), 0  ;;  %p49_p3 = por %p48_p2, %p47_p1 }
   0x7   : > { %s36_s15 = ssub.s32 %s630_s12, %s779_s14  ;;  %129 = sbr.rel (%p485_p5) target bundleno = 20 (0x14), region = 16 }
   0x8   : > { %p38_p4 = scmp.eq.s32.totalorder %s36_s15, 0 }
   0xa   : > { %s687_s17 = scalar_select %p38_p4, %s622_s10, %s40_s16  }
   0xc   : > { %132 = sbr.rel (!%p49_p3) target bundleno = 20 (0x14), region = 20  ;;  %s134_s18 = sand.u32 (%p49_p3), 1, %s622_s10  }
   0xd   : > { %s487_s19 = sshll.u32 (%p49_p3), %s630_s12, 2  ;;  %s486_s20 = sshll.u32 (%p49_p3), %s134_s18, 4 }
   0xe   : > { %s141_s23 = scalar_lea.vmem (%p49_p3), %s771_s0, %s487_s19  ;;  %s136_s24 = scalar_lea.vmem (%p49_p3), [#allocation2], %s486_s20 }
   0xf   : > { %v158_v0 = vld [vmem:[%s141_s23] sm:$0xf] (%p49_p3)  ;;  %v160_v1 = vld [vmem:[%s141_s23 + $0x14] sm:$0xf] (%p49_p3)  ;;  %v162_v2 = vld [vmem:[%s141_s23 + $0x28] sm:$0xf] (%p49_p3) }
  0x10   : > { %159 = vst [vmem:[%s136_s24] sm:$0xf] (%p49_p3), %v158_v0  ;;  %v164_v3 = vld [vmem:[%s141_s23 + $0x3c] sm:$0xf] (%p49_p3) }
  0x11   : > { %161 = vst [vmem:[%s136_s24 + $0x4] sm:$0xf] %v160_v1 }
  0x12   : > { %163 = vst [vmem:[%s136_s24 + $0x8] sm:$0xf] %v162_v2 }
  0x13   : > { %165 = vst [vmem:[%s136_s24 + $0xc] sm:$0xf] %v164_v3 }
  0x14 PF: > { %p488_p6 = scmp.ge.s32.totalorder %s634_s13, 1  ;;  %p208_p7 = scmp.lt.s32.totalorder %s634_s13, 6 }
  0x16   : > { %p209_p8 = pnand %p488_p6, %p208_p7 }
  0x17   : > { %s215_s25 = sand.u32 (!%p209_p8), 1, %s618_s9   ;;  %s490_s26 = sshll.u32 (!%p209_p8), %s626_s11, 4 }
  0x18   : > { %212 = sbr.rel (%p209_p8) target bundleno = 209 (0xd1), region = 65  ;;  %s699_s27 = sshll.u32 (!%p209_p8), %s215_s25, 4 }
  0x19   : > { %p249_p9 = scmp.lt.s32.totalorder (!%p209_p8), %s490_s26, 79  ;;  %s217_s4 = scalar_lea.vmem (!%p209_p8), [#allocation2], %s699_s27 }
  0x1a   : > { %p492_p10 = scmp.ne.s32.totalorder (!%p209_p8), %s626_s11, 0 }
  0x1d   : > { %s781_s26 = smov (!%p249_p9, %s490_s26), 79  ;;  %269 = sbr.rel (%p492_p10) target bundleno = 39 (0x27), region = 73 }
  0x1e   : > { %s491_s28 = sshll.u32 %s781_s26, 2 }
  0x1f   : > { %s704_s3 = scalar_lea.vmem %s772_s1, %s491_s28 }
  0x22   : > { %v636_v4 = vmov 0.0  }
  0x23   : > { %270 = vst [vmem:[%s773_s2] sm:$0xff] %v636_v4 }
  0x24   : > { %271 = vst [vmem:[%s773_s2 + $0x8] sm:$0xff] %v636_v4 }
  0x25   : > { %272 = vst [vmem:[%s773_s2 + $0x10] sm:$0xff] %v636_v4 }
  0x26   : > { %273 = vst [vmem:[%s773_s2 + $0x18] sm:$0xff] %v636_v4 }
  0x27 PF: > { %v546_v5 = vld [vmem:[%s704_s3 + $0x38] sm:$0xff]  ;;  %v545_v6 = vld [vmem:[%s704_s3 + $0x30] sm:$0xff]  ;;  %v544_v7 = vld [vmem:[%s704_s3 + $0x28] sm:$0xff] }
  0x28   : > { %358 = vmatpush.bf16.msra.mxu0 %v546_v5  ;;  %547 = vmatpush.bf16.msra.mxu1 %v546_v5  ;;  %v543_v8 = vld [vmem:[%s704_s3 + $0x20] sm:$0xff]  ;;  %v542_v9 = vld [vmem:[%s704_s3 + $0x18] sm:$0xff]  ;;  %v541_v10 = vld [vmem:[%s704_s3 + $0x10] sm:$0xff] }
  0x29   : > { %v540_v11 = vld [vmem:[%s704_s3 + $0x8] sm:$0xff]  ;;  %v539_v12 = vld [vmem:[%s704_s3] sm:$0xff] }
  0x2a   : > { %v537_v13 = vld [vmem:[%s217_s4] sm:$0xff]  ;;  %v538_v14 = vld [vmem:[%s217_s4 + $0x8] sm:$0xff] }
  0x2b   : > { %v274_v15 = vld [vmem:[%s773_s2] sm:$0xff]  ;;  %v275_v21 = vld [vmem:[%s773_s2 + $0x8] sm:$0xff] }
  0x2c   : > { %359 = vmatpush.bf16.msra.mxu0 %v545_v6  ;;  %548 = vmatpush.bf16.msra.mxu1 %v545_v6  ;;  %v276_v16 = vld [vmem:[%s773_s2 + $0x10] sm:$0xff] }
  0x2d   : > { %v277_v22 = vld [vmem:[%s773_s2 + $0x18] sm:$0xff] }
  0x30   : > { %360 = vmatpush.bf16.msra.mxu0 %v544_v7  ;;  %549 = vmatpush.bf16.msra.mxu1 %v544_v7 }
  0x34   : > { %361 = vmatpush.bf16.msra.mxu0 %v543_v8  ;;  %550 = vmatpush.bf16.msra.mxu1 %v543_v8 }
  0x38   : > { %362 = vmatpush.bf16.msra.mxu0 %v542_v9  ;;  %551 = vmatpush.bf16.msra.mxu1 %v542_v9 }
  0x3c   : > { %363 = vmatpush.bf16.msra.mxu0 %v541_v10  ;;  %552 = vmatpush.bf16.msra.mxu1 %v541_v10 }
  0x40   : > { %364 = vmatpush.bf16.msra.mxu0 %v540_v11  ;;  %553 = vmatpush.bf16.msra.mxu1 %v540_v11 }
  0x44   : > { %365 = vmatpush.bf16.msra.mxu0 %v539_v12  ;;  %554 = vmatpush.bf16.msra.mxu1 %v539_v12 }
  0x47   : > { %366 = vmatmul.bf16.vlgmr.msra.gmra.mxu0 %v537_v13  ;;  %371 = vmatmul.bf16.vlgmr.msra.gmra.mxu1 %v538_v14 }
  0xc4   : > { %v367_v17 = vpop.f32.mrf.mxu0  ;;  %v372_v18 = vpop.f32.mrf.mxu1 }
  0xc5   : > { %v377_v19 = vadd.f32 %v367_v17, %v274_v15  ;;  %v379_v20 = vadd.f32 %v372_v18, %v276_v16 }
  0xc7   : > { %381 = vst [vmem:[%s773_s2] sm:$0xff] %v377_v19 }
  0xc8   : > { %383 = vst [vmem:[%s773_s2 + $0x10] sm:$0xff] %v379_v20 }
  0xcc   : > { %v369_v23 = vpop.f32.mrf.mxu0  ;;  %v374_v24 = vpop.f32.mrf.mxu1 }
  0xcd   : > { %v378_v25 = vadd.f32 %v369_v23, %v275_v21  ;;  %v380_v26 = vadd.f32 %v374_v24, %v277_v22 }
  0xcf   : > { %382 = vst [vmem:[%s773_s2 + $0x8] sm:$0xff] %v378_v25 }
  0xd0   : > { %384 = vst [vmem:[%s773_s2 + $0x18] sm:$0xff] %v380_v26 }
  0xd1 PF: > { %s12_s13 = sadd.s32 1, %s634_s13   ;;  %s774_s9 = smov %s622_s10 }
  0xd2   : > { %p9_p11 = scmp.ge.s32.totalorder %s12_s13, 7   ;;  %s775_s10 = smov %s687_s17 }
  0xd3   : > { %s776_s11 = smov %s630_s12  ;;  %s777_s12 = smov %s779_s14 }
  0xd4   :  { %11 = sbr.rel (!%p9_p11) target bundleno = 3 (0x3), region = 111 }

// kernel: resnet_forward.51
= control target key start
LH: loop header
LB: loop body
LE: loop exit
PB: predicated region body
PF: predicated region fallthrough
CT: control target
= control target key end

     0   :  { %s218_s0 = inlined_call_operand.vmem [shape: f32[32,128], index: 0, kind: input, shape index: {}]   ;;  %s219_s1 = inlined_call_operand.vmem [shape: f32[1,128], index: 1, kind: input, shape index: {}]   ;;  %s220_s2 = inlined_call_operand.vmem [shape: f32[1,128], index: 2, kind: input, shape index: {}]   ;;  %s221_s3 = inlined_call_operand.vmem [shape: f32[32,128], index: 3, kind: output, shape index: {}]  }
   0x1   :  { %v14_v0 = vld [vmem:[%s218_s0] sm:$0xff]  ;;  %v15_v3 = vld [vmem:[%s218_s0 + $0x8] sm:$0xff]  ;;  %v16_v6 = vld [vmem:[%s218_s0 + $0x10] sm:$0xff] }
   0x2   :  { %v126_v1 = vld [vmem:[%s219_s1] ss:$0 sm:$0xff]  ;;  %v17_v7 = vld [vmem:[%s218_s0 + $0x18] sm:$0xff] }
   0x3   :  { %v127_v2 = vld [vmem:[%s220_s2] ss:$0 sm:$0xff]  ;;  %v22_v4 = vmul.f32 %v126_v1, %v14_v0  ;;  %v23_v5 = vmul.f32 %v126_v1, %v15_v3  ;;  %v24_v8 = vmul.f32 %v126_v1, %v16_v6  ;;  %v25_v9 = vmul.f32 %v126_v1, %v17_v7 }
   0x5   :  { %v174_v10 = vadd.f32 %v127_v2, %v22_v4  ;;  %v176_v11 = vadd.f32 %v127_v2, %v23_v5  ;;  %v178_v12 = vadd.f32 %v127_v2, %v24_v8  ;;  %v186_v19 = vadd.f32 %v127_v2, %v25_v9 }
   0x7   :  { %v34_v13 = vmul.f32 0.25281987, %v174_v10  ;;  %v74_v14 = vand.u32 2147483647, %v174_v10  ;;  %v35_v15 = vmul.f32 0.25281987, %v176_v11 }
   0x8   :  { %v75_v16 = vand.u32 2147483647, %v176_v11  ;;  %v36_v17 = vmul.f32 0.25281987, %v178_v12  ;;  %v76_v18 = vand.u32 2147483647, %v178_v12 }
   0x9   :  { %v38_v20 = vadd.f32 1.5247445, %v34_v13  ;;  %v78_v21 = vmul.f32 0.34885982, %v74_v14  ;;  %v39_v22 = vadd.f32 1.5247445, %v35_v15 }
   0xa   :  { %v79_v23 = vmul.f32 0.34885982, %v75_v16  ;;  %v40_v24 = vadd.f32 1.5247445, %v36_v17  ;;  %v80_v25 = vmul.f32 0.34885982, %v76_v18 }
   0xb   :  { %v42_v26 = vmul.f32 %v38_v20, %v174_v10  ;;  %v82_v27 = vadd.f32 0.91111034, %v78_v21  ;;  %v43_v28 = vmul.f32 %v39_v22, %v176_v11  ;;  %v37_v29 = vmul.f32 0.25281987, %v186_v19 }
   0xc   :  { %v83_v30 = vadd.f32 0.91111034, %v79_v23  ;;  %v44_v31 = vmul.f32 %v40_v24, %v178_v12  ;;  %v84_v32 = vadd.f32 0.91111034, %v80_v25  ;;  %v77_v33 = vand.u32 2147483647, %v186_v19 }
   0xd   :  { %v46_v34 = vadd.f32 3.0660808, %v42_v26  ;;  %v86_v35 = vmul.f32 %v82_v27, %v74_v14  ;;  %v47_v36 = vadd.f32 3.0660808, %v43_v28  ;;  %v41_v37 = vadd.f32 1.5247445, %v37_v29 }
   0xe   :  { %v87_v38 = vmul.f32 %v83_v30, %v75_v16  ;;  %v48_v39 = vadd.f32 3.0660808, %v44_v31  ;;  %v88_v40 = vmul.f32 %v84_v32, %v76_v18  ;;  %v81_v41 = vmul.f32 0.34885982, %v77_v33 }
   0xf   :  { %v50_v42 = vmul.f32 %v46_v34, %v174_v10  ;;  %v90_v43 = vadd.f32 4.408118, %v86_v35  ;;  %v51_v44 = vmul.f32 %v47_v36, %v176_v11  ;;  %v45_v45 = vmul.f32 %v41_v37, %v186_v19 }
  0x10   :  { %v91_v46 = vadd.f32 4.408118, %v87_v38  ;;  %v52_v47 = vmul.f32 %v48_v39, %v178_v12  ;;  %v92_v48 = vadd.f32 4.408118, %v88_v40  ;;  %v85_v49 = vadd.f32 0.91111034, %v81_v41 }
  0x11   :  { %v54_v50 = vadd.f32 2.3753915, %v50_v42  ;;  %v94_v51 = vmul.f32 %v90_v43, %v74_v14  ;;  %v55_v52 = vadd.f32 2.3753915, %v51_v44  ;;  %v49_v53 = vadd.f32 3.0660808, %v45_v45 }
  0x12   :  { %v95_v54 = vmul.f32 %v91_v46, %v75_v16  ;;  %v56_v55 = vadd.f32 2.3753915, %v52_v47  ;;  %v96_v56 = vmul.f32 %v92_v48, %v76_v18  ;;  %v89_v57 = vmul.f32 %v85_v49, %v77_v33 }
  0x13   :  { %v58_v58 = vmul.f32 %v54_v50, %v174_v10  ;;  %v98_v59 = vadd.f32 1.1916082, %v94_v51  ;;  %v59_v60 = vmul.f32 %v55_v52, %v176_v11  ;;  %v53_v61 = vmul.f32 %v49_v53, %v186_v19 }
  0x14   :  { %v99_v62 = vadd.f32 1.1916082, %v95_v54  ;;  %v60_v63 = vmul.f32 %v56_v55, %v178_v12  ;;  %v100_v0 = vadd.f32 1.1916082, %v96_v56  ;;  %v93_v1 = vadd.f32 4.408118, %v89_v57 }
  0x15   :  { %v62_v2 = vadd.f32 0.61690164, %v58_v58  ;;  %v102_v3 = vmul.f32 %v98_v59, %v74_v14  ;;  %v63_v4 = vadd.f32 0.61690164, %v59_v60  ;;  %v57_v5 = vadd.f32 2.3753915, %v53_v61 }
  0x16   :  { %v103_v6 = vmul.f32 %v99_v62, %v75_v16  ;;  %v64_v7 = vadd.f32 0.61690164, %v60_v63  ;;  %v104_v8 = vmul.f32 %v100_v0, %v76_v18  ;;  %v97_v9 = vmul.f32 %v93_v1, %v77_v33 }
  0x17   :  { %v106_v13 = vadd.f32 1.0, %v102_v3  ;;  %v61_v15 = vmul.f32 %v57_v5, %v186_v19  ;;  %v66_v17 = vmul.f32 %v62_v2, %v174_v10  ;;  %v67_v23 = vmul.f32 %v63_v4, %v176_v11 }
  0x18   :  { %v107_v20 = vadd.f32 1.0, %v103_v6  ;;  %v108_v21 = vadd.f32 1.0, %v104_v8  ;;  %v101_v22 = vadd.f32 1.1916082, %v97_v9  ;;  %v68_v14 = vmul.f32 %v64_v7, %v178_v12 }
  0x19   :  { %128 = vrcp.f32 %v106_v13  ;;  %v65_v24 = vadd.f32 0.61690164, %v61_v15  ;;  %v70_v16 = vadd.f32 0.02996348, %v66_v17  ;;  %v71_v26 = vadd.f32 0.02996348, %v67_v23 }
  0x1a   :  { %130 = vrcp.f32 %v107_v20  ;;  %v105_v25 = vmul.f32 %v101_v22, %v77_v33  ;;  %v72_v28 = vadd.f32 0.02996348, %v68_v14 }
  0x1b   :  { %132 = vrcp.f32 %v108_v21  ;;  %v69_v27 = vmul.f32 %v65_v24, %v186_v19 }
  0x1c   :  { %v109_v18 = vadd.f32 1.0, %v105_v25 }
  0x1d   :  { %v73_v34 = vadd.f32 0.02996348, %v69_v27 }
  0x1e   :  { %134 = vrcp.f32 %v109_v18 }
  0x1f   :  { %v129_v10 = vpop.eup %128 }
  0x20   :  { %v131_v29 = vpop.eup %130  ;;  %v114_v30 = vmul.f32 %v129_v10, %v70_v16 }
  0x21   :  { %v133_v31 = vpop.eup %132  ;;  %v115_v32 = vmul.f32 %v131_v29, %v71_v26 }
  0x22   :  { %118 = vst [vmem:[%s221_s3] sm:$0xff] %v114_v30  ;;  %v116_v11 = vmul.f32 %v133_v31, %v72_v28 }
  0x23   :  { %119 = vst [vmem:[%s221_s3 + $0x8] sm:$0xff] %v115_v32 }
  0x24   :  { %v135_v12 = vpop.eup %134  ;;  %120 = vst [vmem:[%s221_s3 + $0x10] sm:$0xff] %v116_v11 }
  0x25   :  { %v117_v19 = vmul.f32 %v135_v12, %v73_v34 }
  0x27   :  { %121 = vst [vmem:[%s221_s3 + $0x18] sm:$0xff] %v117_v19 }

// kernel: resnet_forward.52
= control target key start
LH: loop header
LB: loop body
LE: loop exit
PB: predicated region body
PF: predicated region fallthrough
CT: control target
= control target key end

     0   :  { %s652_s9 = smov 0   ;;  %s654_s10 = smov 0   ;;  %s771_s0 = inlined_call_operand.vmem [shape: bf16[32,1152], index: 0, kind: input, shape index: {}]   ;;  %s772_s1 = inlined_call_operand.vmem [shape: bf16[1152,128], index: 1, kind: input, shape index: {}]   ;;  %s773_s2 = inlined_call_operand.vmem [shape: f32[32,128], index: 2, kind: output, shape index: {}]  }
   0x1   :  { %s656_s11 = smov 0   ;;  %s658_s12 = smov 0  }
   0x2   :  { %s660_s13 = smov 0  }
   0x3 LB: > { %s24_s14 = sadd.s32 1, %s630_s12  ;;  %p47_p1 = scmp.ne.s32.totalorder %s622_s10, %s618_s9  ;;  %s634_s13 = sphi %s660_s13, %s12_s13   ;;  %s630_s12 = sphi %s658_s12, %s777_s12   ;;  %s626_s11 = sphi %s656_s11, %s776_s11   ;;  %s622_s10 = sphi %s654_s10, %s775_s10   ;;  %s618_s9 = sphi %s652_s9, %s774_s9  }
   0x4   : > { %p25_p0 = scmp.ge.s32.totalorder %s24_s14, 9  ;;  %p48_p2 = scmp.eq.s32.totalorder %s634_s13, 0 }
   0x5   : > { %s40_s16 = sadd.s32 1, %s622_s10  ;;  %p485_p5 = scmp.ge.s32.totalorder %s634_s13, 9 }
   0x6   : > { %s779_s14 = smov (%p25_p0, %s24_s14), 0  ;;  %p49_p3 = por %p48_p2, %p47_p1 }
   0x7   : > { %s36_s15 = ssub.s32 %s630_s12, %s779_s14  ;;  %129 = sbr.rel (%p485_p5) target bundleno = 20 (0x14), region = 16 }
   0x8   : > { %p38_p4 = scmp.eq.s32.totalorder %s36_s15, 0 }
   0xa   : > { %s687_s17 = scalar_select %p38_p4, %s622_s10, %s40_s16  }
   0xc   : > { %132 = sbr.rel (!%p49_p3) target bundleno = 20 (0x14), region = 20  ;;  %s134_s18 = sand.u32 (%p49_p3), 1, %s622_s10  }
   0xd   : > { %s487_s19 = sshll.u32 (%p49_p3), %s630_s12, 2  ;;  %s486_s20 = sshll.u32 (%p49_p3), %s134_s18, 4 }
   0xe   : > { %s141_s23 = scalar_lea.vmem (%p49_p3), %s771_s0, %s487_s19  ;;  %s136_s24 = scalar_lea.vmem (%p49_p3), [#allocation2], %s486_s20 }
   0xf   : > { %v158_v0 = vld [vmem:[%s141_s23] sm:$0xf] (%p49_p3)  ;;  %v160_v1 = vld [vmem:[%s141_s23 + $0x24] sm:$0xf] (%p49_p3)  ;;  %v162_v2 = vld [vmem:[%s141_s23 + $0x48] sm:$0xf] (%p49_p3) }
  0x10   : > { %159 = vst [vmem:[%s136_s24] sm:$0xf] (%p49_p3), %v158_v0  ;;  %v164_v3 = vld [vmem:[%s141_s23 + $0x6c] sm:$0xf] (%p49_p3) }
  0x11   : > { %161 = vst [vmem:[%s136_s24 + $0x4] sm:$0xf] %v160_v1 }
  0x12   : > { %163 = vst [vmem:[%s136_s24 + $0x8] sm:$0xf] %v162_v2 }
  0x13   : > { %165 = vst [vmem:[%s136_s24 + $0xc] sm:$0xf] %v164_v3 }
  0x14 PF: > { %p488_p6 = scmp.ge.s32.totalorder %s634_s13, 1  ;;  %p208_p7 = scmp.lt.s32.totalorder %s634_s13, 10 }
  0x16   : > { %p209_p8 = pnand %p488_p6, %p208_p7 }
  0x17   : > { %s215_s25 = sand.u32 (!%p209_p8), 1, %s618_s9   ;;  %s490_s26 = sshll.u32 (!%p209_p8), %s626_s11, 4 }
  0x18   : > { %212 = sbr.rel (%p209_p8) target bundleno = 209 (0xd1), region = 65  ;;  %s699_s27 = sshll.u32 (!%p209_p8), %s215_s25, 4 }
  0x19   : > { %p249_p9 = scmp.lt.s32.totalorder (!%p209_p8), %s490_s26, 143  ;;  %s217_s4 = scalar_lea.vmem (!%p209_p8), [#allocation2], %s699_s27 }
  0x1a   : > { %p492_p10 = scmp.ne.s32.totalorder (!%p209_p8), %s626_s11, 0 }
  0x1d   : > { %s781_s26 = smov (!%p249_p9, %s490_s26), 143  ;;  %269 = sbr.rel (%p492_p10) target bundleno = 39 (0x27), region = 73 }
  0x1e   : > { %s491_s28 = sshll.u32 %s781_s26, 2 }
  0x1f   : > { %s704_s3 = scalar_lea.vmem %s772_s1, %s491_s28 }
  0x22   : > { %v636_v4 = vmov 0.0  }
  0x23   : > { %270 = vst [vmem:[%s773_s2] sm:$0xff] %v636_v4 }
  0x24   : > { %271 = vst [vmem:[%s773_s2 + $0x8] sm:$0xff] %v636_v4 }
  0x25   : > { %272 = vst [vmem:[%s773_s2 + $0x10] sm:$0xff] %v636_v4 }
  0x26   : > { %273 = vst [vmem:[%s773_s2 + $0x18] sm:$0xff] %v636_v4 }
  0x27 PF: > { %v546_v5 = vld [vmem:[%s704_s3 + $0x38] sm:$0xff]  ;;  %v545_v6 = vld [vmem:[%s704_s3 + $0x30] sm:$0xff]  ;;  %v544_v7 = vld [vmem:[%s704_s3 + $0x28] sm:$0xff] }
  0x28   : > { %358 = vmatpush.bf16.msra.mxu0 %v546_v5  ;;  %547 = vmatpush.bf16.msra.mxu1 %v546_v5  ;;  %v543_v8 = vld [vmem:[%s704_s3 + $0x20] sm:$0xff]  ;;  %v542_v9 = vld [vmem:[%s704_s3 + $0x18] sm:$0xff]  ;;  %v541_v10 = vld [vmem:[%s704_s3 + $0x10] sm:$0xff] }
  0x29   : > { %v540_v11 = vld [vmem:[%s704_s3 + $0x8] sm:$0xff]  ;;  %v539_v12 = vld [vmem:[%s704_s3] sm:$0xff] }
  0x2a   : > { %v537_v13 = vld [vmem:[%s217_s4] sm:$0xff]  ;;  %v538_v14 = vld [vmem:[%s217_s4 + $0x8] sm:$0xff] }
  0x2b   : > { %v274_v15 = vld [vmem:[%s773_s2] sm:$0xff]  ;;  %v275_v21 = vld [vmem:[%s773_s2 + $0x8] sm:$0xff] }
  0x2c   : > { %359 = vmatpush.bf16.msra.mxu0 %v545_v6  ;;  %548 = vmatpush.bf16.msra.mxu1 %v545_v6  ;;  %v276_v16 = vld [vmem:[%s773_s2 + $0x10] sm:$0xff] }
  0x2d   : > { %v277_v22 = vld [vmem:[%s773_s2 + $0x18] sm:$0xff] }
  0x30   : > { %360 = vmatpush.bf16.msra.mxu0 %v544_v7  ;;  %549 = vmatpush.bf16.msra.mxu1 %v544_v7 }
  0x34   : > { %361 = vmatpush.bf16.msra.mxu0 %v543_v8  ;;  %550 = vmatpush.bf16.msra.mxu1 %v543_v8 }
  0x38   : > { %362 = vmatpush.bf16.msra.mxu0 %v542_v9  ;;  %551 = vmatpush.bf16.msra.mxu1 %v542_v9 }
  0x3c   : > { %363 = vmatpush.bf16.msra.mxu0 %v541_v10  ;;  %552 = vmatpush.bf16.msra.mxu1 %v541_v10 }
  0x40   : > { %364 = vmatpush.bf16.msra.mxu0 %v540_v11  ;;  %553 = vmatpush.bf16.msra.mxu1 %v540_v11 }
  0x44   : > { %365 = vmatpush.bf16.msra.mxu0 %v539_v12  ;;  %554 = vmatpush.bf16.msra.mxu1 %v539_v12 }
  0x47   : > { %366 = vmatmul.bf16.vlgmr.msra.gmra.mxu0 %v537_v13  ;;  %371 = vmatmul.bf16.vlgmr.msra.gmra.mxu1 %v538_v14 }
  0xc4   : > { %v367_v17 = vpop.f32.mrf.mxu0  ;;  %v372_v18 = vpop.f32.mrf.mxu1 }
  0xc5   : > { %v377_v19 = vadd.f32 %v367_v17, %v274_v15  ;;  %v379_v20 = vadd.f32 %v372_v18, %v276_v16 }
  0xc7   : > { %381 = vst [vmem:[%s773_s2] sm:$0xff] %v377_v19 }
  0xc8   : > { %383 = vst [vmem:[%s773_s2 + $0x10] sm:$0xff] %v379_v20 }
  0xcc   : > { %v369_v23 = vpop.f32.mrf.mxu0  ;;  %v374_v24 = vpop.f32.mrf.mxu1 }
  0xcd   : > { %v378_v25 = vadd.f32 %v369_v23, %v275_v21  ;;  %v380_v26 = vadd.f32 %v374_v24, %v277_v22 }
  0xcf   : > { %382 = vst [vmem:[%s773_s2 + $0x8] sm:$0xff] %v378_v25 }
  0xd0   : > { %384 = vst [vmem:[%s773_s2 + $0x18] sm:$0xff] %v380_v26 }
  0xd1 PF: > { %s12_s13 = sadd.s32 1, %s634_s13   ;;  %s774_s9 = smov %s622_s10 }
  0xd2   : > { %p9_p11 = scmp.ge.s32.totalorder %s12_s13, 11   ;;  %s775_s10 = smov %s687_s17 }
  0xd3   : > { %s776_s11 = smov %s630_s12  ;;  %s777_s12 = smov %s779_s14 }
  0xd4   :  { %11 = sbr.rel (!%p9_p11) target bundleno = 3 (0x3), region = 111 }

// kernel: resnet_forward.53
= control target key start
LH: loop header
LB: loop body
LE: loop exit
PB: predicated region body
PF: predicated region fallthrough
CT: control target
= control target key end

     0   :  { %s250_s1 = inlined_call_operand.vmem [shape: bf16[128,128], index: 1, kind: input, shape index: {}]   ;;  %s251_s0 = inlined_call_operand.vmem [shape: bf16[32,128], index: 0, kind: input, shape index: {}]   ;;  %s252_s2 = inlined_call_operand.vmem [shape: f32[32,128], index: 2, kind: output, shape index: {}]  }
   0x1   :  { %v183_v0 = vld [vmem:[%s250_s1 + $0x38] sm:$0xff]  ;;  %v182_v1 = vld [vmem:[%s250_s1 + $0x30] sm:$0xff]  ;;  %v181_v2 = vld [vmem:[%s250_s1 + $0x28] sm:$0xff] }
   0x2   :  { %103 = vmatpush.bf16.msra.mxu0 %v183_v0  ;;  %184 = vmatpush.bf16.msra.mxu1 %v183_v0  ;;  %v180_v3 = vld [vmem:[%s250_s1 + $0x20] sm:$0xff]  ;;  %v179_v4 = vld [vmem:[%s250_s1 + $0x18] sm:$0xff]  ;;  %v178_v5 = vld [vmem:[%s250_s1 + $0x10] sm:$0xff] }
   0x3   :  { %v177_v6 = vld [vmem:[%s250_s1 + $0x8] sm:$0xff]  ;;  %v176_v7 = vld [vmem:[%s250_s1] sm:$0xff] }
   0x4   :  { %v174_v8 = vld [vmem:[%s251_s0] sm:$0xff]  ;;  %v175_v9 = vld [vmem:[%s251_s0 + $0x8] sm:$0xff] }
   0x6   :  { %104 = vmatpush.bf16.msra.mxu0 %v182_v1  ;;  %185 = vmatpush.bf16.msra.mxu1 %v182_v1 }
   0xa   :  { %105 = vmatpush.bf16.msra.mxu0 %v181_v2  ;;  %186 = vmatpush.bf16.msra.mxu1 %v181_v2 }
   0xe   :  { %106 = vmatpush.bf16.msra.mxu0 %v180_v3  ;;  %187 = vmatpush.bf16.msra.mxu1 %v180_v3 }
  0x12   :  { %107 = vmatpush.bf16.msra.mxu0 %v179_v4  ;;  %188 = vmatpush.bf16.msra.mxu1 %v179_v4 }
  0x16   :  { %108 = vmatpush.bf16.msra.mxu0 %v178_v5  ;;  %189 = vmatpush.bf16.msra.mxu1 %v178_v5 }
  0x1a   :  { %109 = vmatpush.bf16.msra.mxu0 %v177_v6  ;;  %190 = vmatpush.bf16.msra.mxu1 %v177_v6 }
  0x1e   :  { %110 = vmatpush.bf16.msra.mxu0 %v176_v7  ;;  %191 = vmatpush.bf16.msra.mxu1 %v176_v7 }
  0x21   :  { %111 = vmatmul.bf16.vlgmr.msra.gmra.mxu0 %v174_v8  ;;  %116 = vmatmul.bf16.vlgmr.msra.gmra.mxu1 %v175_v9 }
  0x9e   :  { %v112_v10 = vpop.f32.mrf.mxu0  ;;  %v117_v11 = vpop.f32.mrf.mxu1 }
  0x9f   :  { %126 = vst [vmem:[%s252_s2] sm:$0xff] %v112_v10 }
  0xa0   :  { %128 = vst [vmem:[%s252_s2 + $0x10] sm:$0xff] %v117_v11 }
  0xa6   :  { %v114_v12 = vpop.f32.mrf.mxu0  ;;  %v119_v13 = vpop.f32.mrf.mxu1 }
  0xa7   :  { %127 = vst [vmem:[%s252_s2 + $0x8] sm:$0xff] %v114_v12 }
  0xa8   :  { %129 = vst [vmem:[%s252_s2 + $0x18] sm:$0xff] %v119_v13 }

// kernel: resnet_forward.54
= control target key start
LH: loop header
LB: loop body
LE: loop exit
PB: predicated region body
PF: predicated region fallthrough
CT: control target
= control target key end

     0   :  { %s94_s0 = inlined_call_operand.vmem [shape: f32[32,128], index: 0, kind: input, shape index: {}]   ;;  %s95_s1 = inlined_call_operand.vmem [shape: f32[1,128], index: 1, kind: input, shape index: {}]   ;;  %s96_s2 = inlined_call_operand.vmem [shape: f32[1,128], index: 2, kind: input, shape index: {}]   ;;  %s97_s3 = inlined_call_operand.vmem [shape: f32[32,128], index: 3, kind: output, shape index: {}]  }
   0x1   :  { %v14_v0 = vld [vmem:[%s94_s0] sm:$0xff]  ;;  %v15_v3 = vld [vmem:[%s94_s0 + $0x8] sm:$0xff]  ;;  %v16_v6 = vld [vmem:[%s94_s0 + $0x10] sm:$0xff] }
   0x2   :  { %v42_v1 = vld [vmem:[%s95_s1] ss:$0 sm:$0xff]  ;;  %v17_v7 = vld [vmem:[%s94_s0 + $0x18] sm:$0xff] }
   0x3   :  { %v43_v2 = vld [vmem:[%s96_s2] ss:$0 sm:$0xff]  ;;  %v22_v4 = vmul.f32 %v42_v1, %v14_v0  ;;  %v23_v5 = vmul.f32 %v42_v1, %v15_v3  ;;  %v24_v8 = vmul.f32 %v42_v1, %v16_v6  ;;  %v25_v9 = vmul.f32 %v42_v1, %v17_v7 }
   0x5   :  { %v30_v10 = vadd.f32 %v43_v2, %v22_v4  ;;  %v31_v11 = vadd.f32 %v43_v2, %v23_v5  ;;  %v32_v12 = vadd.f32 %v43_v2, %v24_v8  ;;  %v33_v13 = vadd.f32 %v43_v2, %v25_v9 }
   0x7   :  { %34 = vst [vmem:[%s97_s3] sm:$0xff] %v30_v10 }
   0x8   :  { %35 = vst [vmem:[%s97_s3 + $0x8] sm:$0xff] %v31_v11 }
   0x9   :  { %36 = vst [vmem:[%s97_s3 + $0x10] sm:$0xff] %v32_v12 }
   0xa   :  { %37 = vst [vmem:[%s97_s3 + $0x18] sm:$0xff] %v33_v13 }

// kernel: resnet_forward.55
= control target key start
LH: loop header
LB: loop body
LE: loop exit
PB: predicated region body
PF: predicated region fallthrough
CT: control target
= control target key end

     0   :  { %s246_s0 = inlined_call_operand.vmem [shape: f32[32,128], index: 0, kind: input, shape index: {}]   ;;  %s247_s1 = inlined_call_operand.vmem [shape: f32[1,128], index: 1, kind: input, shape index: {}]   ;;  %s248_s2 = inlined_call_operand.vmem [shape: f32[1,128], index: 2, kind: input, shape index: {}]   ;;  %s249_s3 = inlined_call_operand.vmem [shape: f32[32,128], index: 3, kind: input, shape index: {}]   ;;  %s250_s4 = inlined_call_operand.vmem [shape: f32[32,128], index: 4, kind: output, shape index: {}]  }
   0x1   :  { %v17_v0 = vld [vmem:[%s246_s0] sm:$0xff]  ;;  %v18_v4 = vld [vmem:[%s246_s0 + $0x8] sm:$0xff]  ;;  %v19_v5 = vld [vmem:[%s246_s0 + $0x10] sm:$0xff] }
   0x2   :  { %v137_v1 = vld [vmem:[%s247_s1] ss:$0 sm:$0xff]  ;;  %v20_v9 = vld [vmem:[%s246_s0 + $0x18] sm:$0xff]  ;;  %v38_v11 = vld [vmem:[%s249_s3 + $0x8] sm:$0xff] }
   0x3   :  { %v138_v2 = vld [vmem:[%s248_s2] ss:$0 sm:$0xff]  ;;  %v25_v3 = vmul.f32 %v137_v1, %v17_v0  ;;  %v26_v7 = vmul.f32 %v137_v1, %v18_v4  ;;  %v27_v8 = vmul.f32 %v137_v1, %v19_v5  ;;  %v39_v12 = vld [vmem:[%s249_s3 + $0x10] sm:$0xff]  ;;  %v28_v13 = vmul.f32 %v137_v1, %v20_v9  ;;  %v40_v18 = vld [vmem:[%s249_s3 + $0x18] sm:$0xff] }
   0x4   :  { %v37_v6 = vld [vmem:[%s249_s3] sm:$0xff] }
   0x5   :  { %v33_v10 = vadd.f32 %v138_v2, %v25_v3  ;;  %v34_v14 = vadd.f32 %v138_v2, %v26_v7  ;;  %v35_v15 = vadd.f32 %v138_v2, %v27_v8  ;;  %v36_v17 = vadd.f32 %v138_v2, %v28_v13 }
   0x7   :  { %v199_v16 = vadd.f32 %v37_v6, %v33_v10  ;;  %v204_v19 = vadd.f32 %v38_v11, %v34_v14  ;;  %v206_v20 = vadd.f32 %v39_v12, %v35_v15  ;;  %v213_v26 = vadd.f32 %v40_v18, %v36_v17 }
   0x9   :  { %v45_v21 = vmul.f32 0.25281987, %v199_v16  ;;  %v85_v22 = vand.u32 2147483647, %v199_v16  ;;  %v46_v23 = vmul.f32 0.25281987, %v204_v19 }
   0xa   :  { %v86_v24 = vand.u32 2147483647, %v204_v19  ;;  %v47_v25 = vmul.f32 0.25281987, %v206_v20  ;;  %v87_v29 = vand.u32 2147483647, %v206_v20 }
   0xb   :  { %v49_v27 = vadd.f32 1.5247445, %v45_v21  ;;  %v89_v28 = vmul.f32 0.34885982, %v85_v22  ;;  %v50_v30 = vadd.f32 1.5247445, %v46_v23 }
   0xc   :  { %v90_v31 = vmul.f32 0.34885982, %v86_v24  ;;  %v51_v32 = vadd.f32 1.5247445, %v47_v25  ;;  %v91_v35 = vmul.f32 0.34885982, %v87_v29 }
   0xd   :  { %v53_v33 = vmul.f32 %v49_v27, %v199_v16  ;;  %v93_v34 = vadd.f32 0.91111034, %v89_v28  ;;  %v48_v36 = vmul.f32 0.25281987, %v213_v26  ;;  %v54_v37 = vmul.f32 %v50_v30, %v204_v19 }
   0xe   :  { %v94_v38 = vadd.f32 0.91111034, %v90_v31  ;;  %v55_v39 = vmul.f32 %v51_v32, %v206_v20  ;;  %v88_v40 = vand.u32 2147483647, %v213_v26  ;;  %v95_v43 = vadd.f32 0.91111034, %v91_v35 }
   0xf   :  { %v57_v41 = vadd.f32 3.0660808, %v53_v33  ;;  %v97_v42 = vmul.f32 %v93_v34, %v85_v22  ;;  %v52_v44 = vadd.f32 1.5247445, %v48_v36  ;;  %v58_v45 = vadd.f32 3.0660808, %v54_v37 }
  0x10   :  { %v98_v46 = vmul.f32 %v94_v38, %v86_v24  ;;  %v59_v47 = vadd.f32 3.0660808, %v55_v39  ;;  %v92_v48 = vmul.f32 0.34885982, %v88_v40  ;;  %v99_v51 = vmul.f32 %v95_v43, %v87_v29 }
  0x11   :  { %v61_v49 = vmul.f32 %v57_v41, %v199_v16  ;;  %v101_v50 = vadd.f32 4.408118, %v97_v42  ;;  %v56_v52 = vmul.f32 %v52_v44, %v213_v26  ;;  %v62_v53 = vmul.f32 %v58_v45, %v204_v19 }
  0x12   :  { %v102_v54 = vadd.f32 4.408118, %v98_v46  ;;  %v63_v55 = vmul.f32 %v59_v47, %v206_v20  ;;  %v96_v56 = vadd.f32 0.91111034, %v92_v48  ;;  %v103_v59 = vadd.f32 4.408118, %v99_v51 }
  0x13   :  { %v65_v57 = vadd.f32 2.3753915, %v61_v49  ;;  %v105_v58 = vmul.f32 %v101_v50, %v85_v22  ;;  %v60_v60 = vadd.f32 3.0660808, %v56_v52  ;;  %v66_v61 = vadd.f32 2.3753915, %v62_v53 }
  0x14   :  { %v106_v62 = vmul.f32 %v102_v54, %v86_v24  ;;  %v67_v63 = vadd.f32 2.3753915, %v63_v55  ;;  %v100_v0 = vmul.f32 %v96_v56, %v88_v40  ;;  %v107_v3 = vmul.f32 %v103_v59, %v87_v29 }
  0x15   :  { %v69_v1 = vmul.f32 %v65_v57, %v199_v16  ;;  %v109_v2 = vadd.f32 1.1916082, %v105_v58  ;;  %v64_v4 = vmul.f32 %v60_v60, %v213_v26  ;;  %v70_v5 = vmul.f32 %v66_v61, %v204_v19 }
  0x16   :  { %v110_v6 = vadd.f32 1.1916082, %v106_v62  ;;  %v71_v7 = vmul.f32 %v67_v63, %v206_v20  ;;  %v104_v8 = vadd.f32 4.408118, %v100_v0  ;;  %v111_v11 = vadd.f32 1.1916082, %v107_v3 }
  0x17   :  { %v73_v9 = vadd.f32 0.61690164, %v69_v1  ;;  %v113_v10 = vmul.f32 %v109_v2, %v85_v22  ;;  %v68_v12 = vadd.f32 2.3753915, %v64_v4  ;;  %v74_v13 = vadd.f32 0.61690164, %v70_v5 }
  0x18   :  { %v114_v14 = vmul.f32 %v110_v6, %v86_v24  ;;  %v75_v15 = vadd.f32 0.61690164, %v71_v7  ;;  %v108_v17 = vmul.f32 %v104_v8, %v88_v40  ;;  %v115_v21 = vmul.f32 %v111_v11, %v87_v29 }
  0x19   :  { %v117_v18 = vadd.f32 1.0, %v113_v10  ;;  %v72_v23 = vmul.f32 %v68_v12, %v213_v26  ;;  %v77_v25 = vmul.f32 %v73_v9, %v199_v16  ;;  %v78_v30 = vmul.f32 %v74_v13, %v204_v19 }
  0x1a   :  { %v118_v27 = vadd.f32 1.0, %v114_v14  ;;  %v112_v28 = vadd.f32 1.1916082, %v108_v17  ;;  %v119_v31 = vadd.f32 1.0, %v115_v21  ;;  %v79_v22 = vmul.f32 %v75_v15, %v206_v20 }
  0x1b   :  { %139 = vrcp.f32 %v117_v18  ;;  %v76_v32 = vadd.f32 0.61690164, %v72_v23  ;;  %v81_v24 = vadd.f32 0.02996348, %v77_v25  ;;  %v82_v35 = vadd.f32 0.02996348, %v78_v30 }
  0x1c   :  { %141 = vrcp.f32 %v118_v27  ;;  %v116_v33 = vmul.f32 %v112_v28, %v88_v40  ;;  %v83_v36 = vadd.f32 0.02996348, %v79_v22 }
  0x1d   :  { %143 = vrcp.f32 %v119_v31  ;;  %v80_v29 = vmul.f32 %v76_v32, %v213_v26 }
  0x1e   :  { %v120_v34 = vadd.f32 1.0, %v116_v33 }
  0x1f   :  { %v84_v19 = vadd.f32 0.02996348, %v80_v29 }
  0x20   :  { %145 = vrcp.f32 %v120_v34 }
  0x21   :  { %v140_v16 = vpop.eup %139 }
  0x22   :  { %v142_v37 = vpop.eup %141  ;;  %v125_v38 = vmul.f32 %v140_v16, %v81_v24 }
  0x23   :  { %v144_v39 = vpop.eup %143  ;;  %v126_v41 = vmul.f32 %v142_v37, %v82_v35 }
  0x24   :  { %129 = vst [vmem:[%s250_s4] sm:$0xff] %v125_v38  ;;  %v127_v20 = vmul.f32 %v144_v39, %v83_v36 }
  0x25   :  { %130 = vst [vmem:[%s250_s4 + $0x8] sm:$0xff] %v126_v41 }
  0x26   :  { %v146_v40 = vpop.eup %145  ;;  %131 = vst [vmem:[%s250_s4 + $0x10] sm:$0xff] %v127_v20 }
  0x27   :  { %v128_v26 = vmul.f32 %v146_v40, %v84_v19 }
  0x29   :  { %132 = vst [vmem:[%s250_s4 + $0x18] sm:$0xff] %v128_v26 }

// kernel: resnet_forward.60
= control target key start
LH: loop header
LB: loop body
LE: loop exit
PB: predicated region body
PF: predicated region fallthrough
CT: control target
= control target key end

     0   :  { %s731_s9 = smov 0   ;;  %s733_s10 = smov 0   ;;  %s872_s0 = inlined_call_operand.vmem [shape: bf16[16,1152], index: 0, kind: input, shape index: {}]   ;;  %s873_s1 = inlined_call_operand.vmem [shape: bf16[1152,256], index: 1, kind: input, shape index: {}]   ;;  %s874_s2 = inlined_call_operand.vmem [shape: f32[16,256], index: 2, kind: output, shape index: {}]  }
   0x1   :  { %s735_s11 = smov 0   ;;  %s737_s12 = smov 0  }
   0x2   :  { %s739_s13 = smov 0  }
   0x3 LB: > { %s24_s14 = sadd.s32 1, %s709_s12  ;;  %p47_p1 = scmp.ne.s32.totalorder %s701_s10, %s697_s9  ;;  %s713_s13 = sphi %s739_s13, %s12_s13   ;;  %s709_s12 = sphi %s737_s12, %s878_s12   ;;  %s705_s11 = sphi %s735_s11, %s877_s11   ;;  %s701_s10 = sphi %s733_s10, %s876_s10   ;;  %s697_s9 = sphi %s731_s9, %s875_s9  }
   0x4   : > { %p25_p0 = scmp.ge.s32.totalorder %s24_s14, 9  ;;  %p48_p2 = scmp.eq.s32.totalorder %s713_s13, 0 }
   0x5   : > { %s40_s16 = sadd.s32 1, %s701_s10  ;;  %p535_p5 = scmp.ge.s32.totalorder %s713_s13, 9 }
   0x6   : > { %s880_s14 = smov (%p25_p0, %s24_s14), 0  ;;  %p49_p3 = por %p48_p2, %p47_p1 }
   0x7   : > { %s36_s15 = ssub.s32 %s709_s12, %s880_s14  ;;  %129 = sbr.rel (%p535_p5) target bundleno = 18 (0x12), region = 16 }
   0x8   : > { %p38_p4 = scmp.eq.s32.totalorder %s36_s15, 0 }
   0xa   : > { %s766_s17 = scalar_select %p38_p4, %s701_s10, %s40_s16  }
   0xc   : > { %132 = sbr.rel (!%p49_p3) target bundleno = 18 (0x12), region = 20  ;;  %s134_s18 = sand.u32 (%p49_p3), 1, %s701_s10  }
   0xd   : > { %s537_s19 = sshll.u32 (%p49_p3), %s709_s12, 2  ;;  %s536_s20 = sshll.u32 (%p49_p3), %s134_s18, 3 }
   0xe   : > { %s141_s23 = scalar_lea.vmem (%p49_p3), %s872_s0, %s537_s19  ;;  %s136_s24 = scalar_lea.vmem (%p49_p3), [#allocation2], %s536_s20 }
   0xf   : > { %v158_v0 = vld [vmem:[%s141_s23] sm:$0xf] (%p49_p3)  ;;  %v160_v1 = vld [vmem:[%s141_s23 + $0x24] sm:$0xf] (%p49_p3) }
  0x10   : > { %159 = vst [vmem:[%s136_s24] sm:$0xf] (%p49_p3), %v158_v0 }
  0x11   : > { %161 = vst [vmem:[%s136_s24 + $0x4] sm:$0xf] %v160_v1 }
  0x12 PF: > { %p538_p6 = scmp.ge.s32.totalorder %s713_s13, 1  ;;  %p203_p7 = scmp.lt.s32.totalorder %s713_s13, 10 }
  0x14   : > { %p204_p8 = pnand %p538_p6, %p203_p7 }
  0x15   : > { %s210_s25 = sand.u32 (!%p204_p8), 1, %s697_s9   ;;  %s540_s26 = sshll.u32 (!%p204_p8), %s705_s11, 4 }
  0x16   : > { %207 = sbr.rel (%p204_p8) target bundleno = 209 (0xd1), region = 65  ;;  %s778_s27 = sshll.u32 (!%p204_p8), %s210_s25, 3 }
  0x17   : > { %p249_p9 = scmp.lt.s32.totalorder (!%p204_p8), %s540_s26, 143  ;;  %s212_s4 = scalar_lea.vmem (!%p204_p8), [#allocation2], %s778_s27 }
  0x18   : > { %p543_p10 = scmp.ne.s32.totalorder (!%p204_p8), %s705_s11, 0 }
  0x1b   : > { %s882_s26 = smov (!%p249_p9, %s540_s26), 143  ;;  %274 = sbr.rel (%p543_p10) target bundleno = 37 (0x25), region = 73 }
  0x1c   : > { %s616_s28 = sshll.u32 %s882_s26, 3 }
  0x1d   : > { %s783_s3 = scalar_lea.vmem %s873_s1, %s616_s28 }
  0x20   : > { %v715_v2 = vmov 0.0  }
  0x21   : > { %275 = vst [vmem:[%s874_s2] sm:$0xff] %v715_v2 }
  0x22   : > { %276 = vst [vmem:[%s874_s2 + $0x8] sm:$0xff] %v715_v2 }
  0x23   : > { %277 = vst [vmem:[%s874_s2 + $0x10] sm:$0xff] %v715_v2 }
  0x24   : > { %278 = vst [vmem:[%s874_s2 + $0x18] sm:$0xff] %v715_v2 }
  0x25 PF: > { %v606_v3 = vld [vmem:[%s783_s3 + $0x70] sm:$0xf]  ;;  %v633_v4 = vld [vmem:[%s783_s3 + $0x74] sm:$0xf0]  ;;  %v632_v5 = vld [vmem:[%s783_s3 + $0x74] sm:$0xf] }
  0x26   : > { %v607_v6 = vor.u32 %v633_v4, %v606_v3  ;;  %v608_v7 = vld [vmem:[%s783_s3 + $0x78] sm:$0xf0]  ;;  %v598_v8 = vld [vmem:[%s783_s3 + $0x60] sm:$0xf]  ;;  %v631_v9 = vld [vmem:[%s783_s3 + $0x64] sm:$0xf0] }
  0x27   : > { %v611_v10 = vor.u32 %v632_v5, %v608_v7  ;;  %v630_v11 = vld [vmem:[%s783_s3 + $0x64] sm:$0xf]  ;;  %v600_v12 = vld [vmem:[%s783_s3 + $0x68] sm:$0xf0]  ;;  %v599_v13 = vor.u32 %v631_v9, %v598_v8  ;;  %v590_v15 = vld [vmem:[%s783_s3 + $0x50] sm:$0xf] }
  0x28   : > { %387 = vmatpush.bf16.msra.mxu0 %v607_v6  ;;  %v603_v14 = vor.u32 %v630_v11, %v600_v12  ;;  %v629_v16 = vld [vmem:[%s783_s3 + $0x54] sm:$0xf0]  ;;  %v628_v17 = vld [vmem:[%s783_s3 + $0x54] sm:$0xf]  ;;  %v592_v18 = vld [vmem:[%s783_s3 + $0x58] sm:$0xf0] }
  0x29   : > { %401 = vmatpush.bf16.msra.mxu1 %v611_v10  ;;  %v591_v19 = vor.u32 %v629_v16, %v590_v15  ;;  %v595_v20 = vor.u32 %v628_v17, %v592_v18  ;;  %v582_v21 = vld [vmem:[%s783_s3 + $0x40] sm:$0xf]  ;;  %v627_v22 = vld [vmem:[%s783_s3 + $0x44] sm:$0xf0]  ;;  %v626_v23 = vld [vmem:[%s783_s3 + $0x44] sm:$0xf] }
  0x2a   : > { %v584_v24 = vld [vmem:[%s783_s3 + $0x48] sm:$0xf0]  ;;  %v583_v25 = vor.u32 %v627_v22, %v582_v21  ;;  %v574_v27 = vld [vmem:[%s783_s3 + $0x30] sm:$0xf]  ;;  %v625_v28 = vld [vmem:[%s783_s3 + $0x34] sm:$0xf0] }
  0x2b   : > { %v587_v26 = vor.u32 %v626_v23, %v584_v24  ;;  %v624_v29 = vld [vmem:[%s783_s3 + $0x34] sm:$0xf]  ;;  %v576_v30 = vld [vmem:[%s783_s3 + $0x38] sm:$0xf0]  ;;  %v575_v31 = vor.u32 %v625_v28, %v574_v27  ;;  %v566_v33 = vld [vmem:[%s783_s3 + $0x20] sm:$0xf] }
  0x2c   : > { %388 = vmatpush.bf16.msra.mxu0 %v599_v13  ;;  %v579_v32 = vor.u32 %v624_v29, %v576_v30  ;;  %v623_v34 = vld [vmem:[%s783_s3 + $0x24] sm:$0xf0]  ;;  %v622_v35 = vld [vmem:[%s783_s3 + $0x24] sm:$0xf]  ;;  %v568_v36 = vld [vmem:[%s783_s3 + $0x28] sm:$0xf0] }
  0x2d   : > { %402 = vmatpush.bf16.msra.mxu1 %v603_v14  ;;  %v567_v37 = vor.u32 %v623_v34, %v566_v33  ;;  %v571_v38 = vor.u32 %v622_v35, %v568_v36  ;;  %v558_v39 = vld [vmem:[%s783_s3 + $0x10] sm:$0xf]  ;;  %v621_v40 = vld [vmem:[%s783_s3 + $0x14] sm:$0xf0]  ;;  %v620_v41 = vld [vmem:[%s783_s3 + $0x14] sm:$0xf] }
  0x2e   : > { %v560_v42 = vld [vmem:[%s783_s3 + $0x18] sm:$0xf0]  ;;  %v559_v43 = vor.u32 %v621_v40, %v558_v39  ;;  %v550_v45 = vld [vmem:[%s783_s3] sm:$0xf]  ;;  %v619_v46 = vld [vmem:[%s783_s3 + $0x4] sm:$0xf0] }
  0x2f   : > { %v563_v44 = vor.u32 %v620_v41, %v560_v42  ;;  %v618_v47 = vld [vmem:[%s783_s3 + $0x4] sm:$0xf]  ;;  %v552_v48 = vld [vmem:[%s783_s3 + $0x8] sm:$0xf0]  ;;  %v551_v49 = vor.u32 %v619_v46, %v550_v45  ;;  %v281_v58 = vld [vmem:[%s874_s2 + $0x10] sm:$0xff] }
  0x30   : > { %389 = vmatpush.bf16.msra.mxu0 %v591_v19  ;;  %v555_v50 = vor.u32 %v618_v47, %v552_v48  ;;  %v617_v51 = vld [vmem:[%s212_s4] sm:$0xff]  ;;  %v282_v59 = vld [vmem:[%s874_s2 + $0x18] sm:$0xff] }
  0x31   : > { %403 = vmatpush.bf16.msra.mxu1 %v595_v20  ;;  %v279_v52 = vld [vmem:[%s874_s2] sm:$0xff]  ;;  %v280_v53 = vld [vmem:[%s874_s2 + $0x8] sm:$0xff] }
  0x34   : > { %390 = vmatpush.bf16.msra.mxu0 %v583_v25 }
  0x35   : > { %404 = vmatpush.bf16.msra.mxu1 %v587_v26 }
  0x38   : > { %391 = vmatpush.bf16.msra.mxu0 %v575_v31 }
  0x39   : > { %405 = vmatpush.bf16.msra.mxu1 %v579_v32 }
  0x3c   : > { %392 = vmatpush.bf16.msra.mxu0 %v567_v37 }
  0x3d   : > { %406 = vmatpush.bf16.msra.mxu1 %v571_v38 }
  0x40   : > { %393 = vmatpush.bf16.msra.mxu0 %v559_v43 }
  0x41   : > { %407 = vmatpush.bf16.msra.mxu1 %v563_v44 }
  0x44   : > { %394 = vmatpush.bf16.msra.mxu0 %v551_v49 }
  0x45   : > { %408 = vmatpush.bf16.msra.mxu1 %v555_v50 }
  0x47   : > { %395 = vmatmul.bf16.vlgmr.msra.gmra.mxu0 %v617_v51 }
  0x48   : > { %409 = vmatmul.bf16.vlgmr.msra.gmra.mxu1 %v617_v51 }
  0xc4   : > { %v396_v54 = vpop.f32.mrf.mxu0 }
  0xc5   : > { %v415_v55 = vadd.f32 %v396_v54, %v279_v52  ;;  %v410_v56 = vpop.f32.mrf.mxu1 }
  0xc6   : > { %v416_v57 = vadd.f32 %v410_v56, %v280_v53 }
  0xc7   : > { %419 = vst [vmem:[%s874_s2] sm:$0xff] %v415_v55 }
  0xc8   : > { %420 = vst [vmem:[%s874_s2 + $0x8] sm:$0xff] %v416_v57 }
  0xcc   : > { %v398_v60 = vpop.f32.mrf.mxu0 }
  0xcd   : > { %v417_v61 = vadd.f32 %v398_v60, %v281_v58  ;;  %v412_v62 = vpop.f32.mrf.mxu1 }
  0xce   : > { %v418_v63 = vadd.f32 %v412_v62, %v282_v59 }
  0xcf   : > { %421 = vst [vmem:[%s874_s2 + $0x10] sm:$0xff] %v417_v61 }
  0xd0   : > { %422 = vst [vmem:[%s874_s2 + $0x18] sm:$0xff] %v418_v63 }
  0xd1 PF: > { %s12_s13 = sadd.s32 1, %s713_s13   ;;  %s875_s9 = smov %s701_s10 }
  0xd2   : > { %p9_p11 = scmp.ge.s32.totalorder %s12_s13, 11   ;;  %s876_s10 = smov %s766_s17 }
  0xd3   : > { %s877_s11 = smov %s709_s12  ;;  %s878_s12 = smov %s880_s14 }
  0xd4   :  { %11 = sbr.rel (!%p9_p11) target bundleno = 3 (0x3), region = 111 }

// kernel: resnet_forward.61
= control target key start
LH: loop header
LB: loop body
LE: loop exit
PB: predicated region body
PF: predicated region fallthrough
CT: control target
= control target key end

     0   :  { %s122_s0 = inlined_call_operand.vmem [shape: f32[8,256], index: 0, kind: input, shape index: {}]   ;;  %s123_s1 = inlined_call_operand.vmem [shape: f32[1,256], index: 1, kind: input, shape index: {}]   ;;  %s124_s2 = inlined_call_operand.vmem [shape: f32[1,256], index: 2, kind: input, shape index: {}]   ;;  %s125_s3 = inlined_call_operand.vmem [shape: f32[8,256], index: 3, kind: output, shape index: {}]  }
   0x1   :  { %v14_v0 = vld [vmem:[%s122_s0] sm:$0xff]  ;;  %v15_v5 = vld [vmem:[%s122_s0 + $0x8] sm:$0xff] }
   0x2   :  { %v16_v1 = vld [vmem:[%s123_s1] sm:$0x3] }
   0x3   :  { %v24_v2 = vld [vmem:[%s124_s2] sm:$0x3]  ;;  %v18_v3 = vperm.slane %v16_v1, 0  ;;  %v19_v6 = vperm.slane %v16_v1, 1 }
   0x4   :  { %v26_v4 = vperm.slane %v24_v2, 0  ;;  %v27_v7 = vperm.slane %v24_v2, 1 }
   0x5   :  { %v22_v8 = vmul.f32 %v18_v3, %v14_v0  ;;  %v23_v9 = vmul.f32 %v19_v6, %v15_v5 }
   0x7   :  { %v30_v10 = vadd.f32 %v26_v4, %v22_v8  ;;  %v31_v11 = vadd.f32 %v27_v7, %v23_v9 }
   0x9   :  { %v32_v12 = vmul.f32 0.25281987, %v30_v10  ;;  %v52_v13 = vand.u32 2147483647, %v30_v10  ;;  %v33_v14 = vmul.f32 0.25281987, %v31_v11 }
   0xa   :  { %v53_v15 = vand.u32 2147483647, %v31_v11 }
   0xb   :  { %v34_v16 = vadd.f32 1.5247445, %v32_v12  ;;  %v54_v17 = vmul.f32 0.34885982, %v52_v13  ;;  %v35_v18 = vadd.f32 1.5247445, %v33_v14 }
   0xc   :  { %v55_v19 = vmul.f32 0.34885982, %v53_v15 }
   0xd   :  { %v36_v20 = vmul.f32 %v34_v16, %v30_v10  ;;  %v56_v21 = vadd.f32 0.91111034, %v54_v17  ;;  %v37_v22 = vmul.f32 %v35_v18, %v31_v11 }
   0xe   :  { %v57_v23 = vadd.f32 0.91111034, %v55_v19 }
   0xf   :  { %v38_v24 = vadd.f32 3.0660808, %v36_v20  ;;  %v58_v25 = vmul.f32 %v56_v21, %v52_v13  ;;  %v39_v26 = vadd.f32 3.0660808, %v37_v22 }
  0x10   :  { %v59_v27 = vmul.f32 %v57_v23, %v53_v15 }
  0x11   :  { %v40_v28 = vmul.f32 %v38_v24, %v30_v10  ;;  %v60_v29 = vadd.f32 4.408118, %v58_v25  ;;  %v41_v30 = vmul.f32 %v39_v26, %v31_v11 }
  0x12   :  { %v61_v31 = vadd.f32 4.408118, %v59_v27 }
  0x13   :  { %v42_v32 = vadd.f32 2.3753915, %v40_v28  ;;  %v62_v33 = vmul.f32 %v60_v29, %v52_v13  ;;  %v43_v34 = vadd.f32 2.3753915, %v41_v30 }
  0x14   :  { %v63_v35 = vmul.f32 %v61_v31, %v53_v15 }
  0x15   :  { %v44_v36 = vmul.f32 %v42_v32, %v30_v10  ;;  %v64_v37 = vadd.f32 1.1916082, %v62_v33  ;;  %v45_v38 = vmul.f32 %v43_v34, %v31_v11 }
  0x16   :  { %v65_v39 = vadd.f32 1.1916082, %v63_v35 }
  0x17   :  { %v46_v40 = vadd.f32 0.61690164, %v44_v36  ;;  %v66_v41 = vmul.f32 %v64_v37, %v52_v13  ;;  %v47_v42 = vadd.f32 0.61690164, %v45_v38 }
  0x18   :  { %v67_v43 = vmul.f32 %v65_v39, %v53_v15 }
  0x19   :  { %v68_v44 = vadd.f32 1.0, %v66_v41  ;;  %v48_v45 = vmul.f32 %v46_v40, %v30_v10  ;;  %v49_v47 = vmul.f32 %v47_v42, %v31_v11 }
  0x1a   :  { %v69_v46 = vadd.f32 1.0, %v67_v43 }
  0x1b   :  { %80 = vrcp.f32 %v68_v44  ;;  %v50_v48 = vadd.f32 0.02996348, %v48_v45  ;;  %v51_v49 = vadd.f32 0.02996348, %v49_v47 }
  0x1c   :  { %82 = vrcp.f32 %v69_v46 }
  0x21   :  { %v81_v50 = vpop.eup %80 }
  0x22   :  { %v83_v51 = vpop.eup %82  ;;  %v72_v52 = vmul.f32 %v81_v50, %v50_v48 }
  0x23   :  { %v73_v53 = vmul.f32 %v83_v51, %v51_v49 }
  0x24   :  { %74 = vst [vmem:[%s125_s3] sm:$0xff] %v72_v52 }
  0x25   :  { %75 = vst [vmem:[%s125_s3 + $0x8] sm:$0xff] %v73_v53 }

// kernel: resnet_forward.62
= control target key start
LH: loop header
LB: loop body
LE: loop exit
PB: predicated region body
PF: predicated region fallthrough
CT: control target
= control target key end

     0   :  { %s941_s9 = smov 0   ;;  %s943_s10 = smov 0   ;;  %s1115_s0 = inlined_call_operand.vmem [shape: bf16[16,2304], index: 0, kind: input, shape index: {}]   ;;  %s1116_s1 = inlined_call_operand.vmem [shape: bf16[2304,256], index: 1, kind: input, shape index: {}]   ;;  %s1117_s2 = inlined_call_operand.vmem [shape: f32[16,256], index: 2, kind: output, shape index: {}]  }
   0x1   :  { %s945_s11 = smov 0   ;;  %s947_s12 = smov 0  }
   0x2   :  { %s949_s13 = smov 0  }
   0x3 LB: > { %s24_s14 = sadd.s32 1, %s919_s12  ;;  %p47_p1 = scmp.ne.s32.totalorder %s911_s10, %s907_s9  ;;  %s923_s13 = sphi %s949_s13, %s12_s13   ;;  %s919_s12 = sphi %s947_s12, %s1121_s12   ;;  %s915_s11 = sphi %s945_s11, %s1120_s11   ;;  %s911_s10 = sphi %s943_s10, %s1119_s10   ;;  %s907_s9 = sphi %s941_s9, %s1118_s9  }
   0x4   : > { %p25_p0 = scmp.ge.s32.totalorder %s24_s14, 9  ;;  %p48_p2 = scmp.eq.s32.totalorder %s923_s13, 0 }
   0x5   : > { %s40_s16 = sadd.s32 1, %s911_s10  ;;  %p658_p5 = scmp.ge.s32.totalorder %s923_s13, 9 }
   0x6   : > { %s1123_s14 = smov (%p25_p0, %s24_s14), 0  ;;  %p49_p3 = por %p48_p2, %p47_p1 }
   0x7   : > { %s36_s15 = ssub.s32 %s919_s12, %s1123_s14  ;;  %129 = sbr.rel (%p658_p5) target bundleno = 18 (0x12), region = 16 }
   0x8   : > { %p38_p4 = scmp.eq.s32.totalorder %s36_s15, 0 }
   0xa   : > { %s976_s17 = scalar_select %p38_p4, %s911_s10, %s40_s16  }
   0xc   : > { %132 = sbr.rel (!%p49_p3) target bundleno = 18 (0x12), region = 20  ;;  %s134_s18 = sand.u32 (%p49_p3), 1, %s911_s10  }
   0xd   : > { %s808_s19 = sshll.u32 (%p49_p3), %s919_s12, 3  ;;  %s659_s20 = sshll.u32 (%p49_p3), %s134_s18, 4 }
   0xe   : > { %s142_s23 = scalar_lea.vmem (%p49_p3), %s1115_s0, %s808_s19  ;;  %s136_s24 = scalar_lea.vmem (%p49_p3), [#allocation2], %s659_s20 }
   0xf   : > { %v173_v0 = vld [vmem:[%s142_s23] sm:$0xff] (%p49_p3)  ;;  %v175_v1 = vld [vmem:[%s142_s23 + $0x48] sm:$0xff] (%p49_p3) }
  0x10   : > { %174 = vst [vmem:[%s136_s24] sm:$0xff] (%p49_p3), %v173_v0 }
  0x11   : > { %176 = vst [vmem:[%s136_s24 + $0x8] sm:$0xff] %v175_v1 }
  0x12 PF: > { %p662_p6 = scmp.ge.s32.totalorder %s923_s13, 1  ;;  %p196_p7 = scmp.lt.s32.totalorder %s923_s13, 10 }
  0x14   : > { %p197_p8 = pnand %p662_p6, %p196_p7 }
  0x15   : > { %s203_s25 = sand.u32 (!%p197_p8), 1, %s907_s9   ;;  %s664_s26 = sshll.u32 (!%p197_p8), %s915_s11, 5 }
  0x16   : > { %200 = sbr.rel (%p197_p8) target bundleno = 218 (0xda), region = 62  ;;  %s663_s27 = sshll.u32 (!%p197_p8), %s203_s25, 4 }
  0x17   : > { %p243_p9 = scmp.lt.s32.totalorder (!%p197_p8), %s664_s26, 287  ;;  %s993_s4 = scalar_lea.vmem (!%p197_p8), [#allocation2], %s663_s27 }
  0x18   : > { %p667_p10 = scmp.ne.s32.totalorder (!%p197_p8), %s915_s11, 0 }
  0x1b   : > { %s1125_s26 = smov (!%p243_p9, %s664_s26), 287  ;;  %268 = sbr.rel (%p667_p10) target bundleno = 37 (0x25), region = 70 }
  0x1c   : > { %s809_s28 = sshll.u32 %s1125_s26, 3 }
  0x1d   : > { %s991_s3 = scalar_lea.vmem %s1116_s1, %s809_s28 }
  0x20   : > { %v925_v2 = vmov 0.0  }
  0x21   : > { %269 = vst [vmem:[%s1117_s2] sm:$0xff] %v925_v2 }
  0x22   : > { %270 = vst [vmem:[%s1117_s2 + $0x8] sm:$0xff] %v925_v2 }
  0x23   : > { %271 = vst [vmem:[%s1117_s2 + $0x10] sm:$0xff] %v925_v2 }
  0x24   : > { %272 = vst [vmem:[%s1117_s2 + $0x18] sm:$0xff] %v925_v2 }
  0x25 PF: > { %v734_v3 = vld [vmem:[%s991_s3 + $0x70] sm:$0xf]  ;;  %v827_v4 = vld [vmem:[%s991_s3 + $0x74] sm:$0xf0]  ;;  %v826_v8 = vld [vmem:[%s991_s3 + $0x74] sm:$0xf] }
  0x26   : > { %v798_v5 = vld [vmem:[%s991_s3 + $0xf0] sm:$0xf]  ;;  %v735_v6 = vor.u32 %v827_v4, %v734_v3  ;;  %v843_v7 = vld [vmem:[%s991_s3 + $0xf4] sm:$0xf0]  ;;  %v736_v9 = vld [vmem:[%s991_s3 + $0x78] sm:$0xf0] }
  0x27   : > { %v799_v10 = vor.u32 %v843_v7, %v798_v5  ;;  %v739_v11 = vor.u32 %v826_v8, %v736_v9  ;;  %v842_v12 = vld [vmem:[%s991_s3 + $0xf4] sm:$0xf]  ;;  %v800_v13 = vld [vmem:[%s991_s3 + $0xf8] sm:$0xf0]  ;;  %v726_v14 = vld [vmem:[%s991_s3 + $0x60] sm:$0xf] }
  0x28   : > { %481 = vmatpush.bf16.msra.mxu0 %v735_v6  ;;  %v803_v15 = vor.u32 %v842_v12, %v800_v13  ;;  %v825_v16 = vld [vmem:[%s991_s3 + $0x64] sm:$0xf0]  ;;  %v790_v17 = vld [vmem:[%s991_s3 + $0xe0] sm:$0xf]  ;;  %v824_v21 = vld [vmem:[%s991_s3 + $0x64] sm:$0xf] }
  0x29   : > { %v841_v18 = vld [vmem:[%s991_s3 + $0xe4] sm:$0xf0]  ;;  %495 = vmatpush.bf16.msra.mxu1 %v799_v10  ;;  %509 = vmatpush.bf16.msra.mxu2 %v739_v11  ;;  %v727_v19 = vor.u32 %v825_v16, %v726_v14  ;;  %v728_v22 = vld [vmem:[%s991_s3 + $0x68] sm:$0xf0]  ;;  %v840_v23 = vld [vmem:[%s991_s3 + $0xe4] sm:$0xf] }
  0x2a   : > { %v791_v20 = vor.u32 %v841_v18, %v790_v17  ;;  %523 = vmatpush.bf16.msra.mxu3 %v803_v15  ;;  %v731_v24 = vor.u32 %v824_v21, %v728_v22  ;;  %v792_v25 = vld [vmem:[%s991_s3 + $0xe8] sm:$0xf0]  ;;  %v718_v26 = vld [vmem:[%s991_s3 + $0x50] sm:$0xf]  ;;  %v823_v27 = vld [vmem:[%s991_s3 + $0x54] sm:$0xf0] }
  0x2b   : > { %v795_v28 = vor.u32 %v840_v23, %v792_v25  ;;  %v782_v29 = vld [vmem:[%s991_s3 + $0xd0] sm:$0xf]  ;;  %v839_v30 = vld [vmem:[%s991_s3 + $0xd4] sm:$0xf0]  ;;  %v822_v31 = vld [vmem:[%s991_s3 + $0x54] sm:$0xf]  ;;  %v719_v32 = vor.u32 %v823_v27, %v718_v26 }
  0x2c   : > { %482 = vmatpush.bf16.msra.mxu0 %v727_v19  ;;  %v720_v33 = vld [vmem:[%s991_s3 + $0x58] sm:$0xf0]  ;;  %v838_v34 = vld [vmem:[%s991_s3 + $0xd4] sm:$0xf]  ;;  %v783_v36 = vor.u32 %v839_v30, %v782_v29  ;;  %v710_v38 = vld [vmem:[%s991_s3 + $0x40] sm:$0xf] }
  0x2d   : > { %v784_v35 = vld [vmem:[%s991_s3 + $0xd8] sm:$0xf0]  ;;  %496 = vmatpush.bf16.msra.mxu1 %v791_v20  ;;  %510 = vmatpush.bf16.msra.mxu2 %v731_v24  ;;  %v723_v37 = vor.u32 %v822_v31, %v720_v33  ;;  %v821_v39 = vld [vmem:[%s991_s3 + $0x44] sm:$0xf0]  ;;  %v774_v40 = vld [vmem:[%s991_s3 + $0xc0] sm:$0xf] }
  0x2e   : > { %524 = vmatpush.bf16.msra.mxu3 %v795_v28  ;;  %v787_v41 = vor.u32 %v838_v34, %v784_v35  ;;  %v837_v42 = vld [vmem:[%s991_s3 + $0xc4] sm:$0xf0]  ;;  %v820_v43 = vld [vmem:[%s991_s3 + $0x44] sm:$0xf]  ;;  %v712_v44 = vld [vmem:[%s991_s3 + $0x48] sm:$0xf0]  ;;  %v711_v47 = vor.u32 %v821_v39, %v710_v38 }
  0x2f   : > { %v836_v45 = vld [vmem:[%s991_s3 + $0xc4] sm:$0xf]  ;;  %v776_v46 = vld [vmem:[%s991_s3 + $0xc8] sm:$0xf0]  ;;  %v775_v48 = vor.u32 %v837_v42, %v774_v40  ;;  %v715_v49 = vor.u32 %v820_v43, %v712_v44  ;;  %v702_v50 = vld [vmem:[%s991_s3 + $0x30] sm:$0xf] }
  0x30   : > { %483 = vmatpush.bf16.msra.mxu0 %v719_v32  ;;  %v819_v51 = vld [vmem:[%s991_s3 + $0x34] sm:$0xf0]  ;;  %v766_v52 = vld [vmem:[%s991_s3 + $0xb0] sm:$0xf]  ;;  %v779_v53 = vor.u32 %v836_v45, %v776_v46  ;;  %v818_v55 = vld [vmem:[%s991_s3 + $0x34] sm:$0xf] }
  0x31   : > { %497 = vmatpush.bf16.msra.mxu1 %v783_v36  ;;  %511 = vmatpush.bf16.msra.mxu2 %v723_v37  ;;  %v835_v54 = vld [vmem:[%s991_s3 + $0xb4] sm:$0xf0]  ;;  %v704_v56 = vld [vmem:[%s991_s3 + $0x38] sm:$0xf0]  ;;  %v834_v57 = vld [vmem:[%s991_s3 + $0xb4] sm:$0xf]  ;;  %v703_v59 = vor.u32 %v819_v51, %v702_v50 }
  0x32   : > { %525 = vmatpush.bf16.msra.mxu3 %v787_v41  ;;  %v768_v58 = vld [vmem:[%s991_s3 + $0xb8] sm:$0xf0]  ;;  %v767_v60 = vor.u32 %v835_v54, %v766_v52  ;;  %v707_v61 = vor.u32 %v818_v55, %v704_v56  ;;  %v694_v62 = vld [vmem:[%s991_s3 + $0x20] sm:$0xf]  ;;  %v817_v63 = vld [vmem:[%s991_s3 + $0x24] sm:$0xf0] }
  0x33   : > { %v758_v0 = vld [vmem:[%s991_s3 + $0xa0] sm:$0xf]  ;;  %v771_v1 = vor.u32 %v834_v57, %v768_v58  ;;  %v833_v2 = vld [vmem:[%s991_s3 + $0xa4] sm:$0xf0]  ;;  %v816_v3 = vld [vmem:[%s991_s3 + $0x24] sm:$0xf]  ;;  %v695_v7 = vor.u32 %v817_v63, %v694_v62 }
  0x34   : > { %484 = vmatpush.bf16.msra.mxu0 %v711_v47  ;;  %v696_v4 = vld [vmem:[%s991_s3 + $0x28] sm:$0xf0]  ;;  %v832_v5 = vld [vmem:[%s991_s3 + $0xa4] sm:$0xf]  ;;  %v759_v8 = vor.u32 %v833_v2, %v758_v0  ;;  %v686_v10 = vld [vmem:[%s991_s3 + $0x10] sm:$0xf] }
  0x35   : > { %498 = vmatpush.bf16.msra.mxu1 %v775_v48  ;;  %512 = vmatpush.bf16.msra.mxu2 %v715_v49  ;;  %v760_v6 = vld [vmem:[%s991_s3 + $0xa8] sm:$0xf0]  ;;  %v699_v9 = vor.u32 %v816_v3, %v696_v4  ;;  %v815_v11 = vld [vmem:[%s991_s3 + $0x14] sm:$0xf0]  ;;  %v750_v12 = vld [vmem:[%s991_s3 + $0x90] sm:$0xf] }
  0x36   : > { %526 = vmatpush.bf16.msra.mxu3 %v779_v53  ;;  %v763_v13 = vor.u32 %v832_v5, %v760_v6  ;;  %v831_v14 = vld [vmem:[%s991_s3 + $0x94] sm:$0xf0]  ;;  %v814_v15 = vld [vmem:[%s991_s3 + $0x14] sm:$0xf]  ;;  %v688_v16 = vld [vmem:[%s991_s3 + $0x18] sm:$0xf0]  ;;  %v687_v19 = vor.u32 %v815_v11, %v686_v10 }
  0x37   : > { %v830_v17 = vld [vmem:[%s991_s3 + $0x94] sm:$0xf]  ;;  %v752_v18 = vld [vmem:[%s991_s3 + $0x98] sm:$0xf0]  ;;  %v751_v20 = vor.u32 %v831_v14, %v750_v12  ;;  %v691_v21 = vor.u32 %v814_v15, %v688_v16  ;;  %v678_v22 = vld [vmem:[%s991_s3] sm:$0xf] }
  0x38   : > { %485 = vmatpush.bf16.msra.mxu0 %v703_v59  ;;  %v813_v23 = vld [vmem:[%s991_s3 + $0x4] sm:$0xf0]  ;;  %v742_v24 = vld [vmem:[%s991_s3 + $0x80] sm:$0xf]  ;;  %v755_v25 = vor.u32 %v830_v17, %v752_v18  ;;  %v812_v27 = vld [vmem:[%s991_s3 + $0x4] sm:$0xf] }
  0x39   : > { %499 = vmatpush.bf16.msra.mxu1 %v767_v60  ;;  %513 = vmatpush.bf16.msra.mxu2 %v707_v61  ;;  %v829_v26 = vld [vmem:[%s991_s3 + $0x84] sm:$0xf0]  ;;  %v680_v28 = vld [vmem:[%s991_s3 + $0x8] sm:$0xf0]  ;;  %v828_v29 = vld [vmem:[%s991_s3 + $0x84] sm:$0xf]  ;;  %v679_v31 = vor.u32 %v813_v23, %v678_v22 }
  0x3a   : > { %527 = vmatpush.bf16.msra.mxu3 %v771_v1  ;;  %v744_v30 = vld [vmem:[%s991_s3 + $0x88] sm:$0xf0]  ;;  %v670_v32 = vld [vmem:[%s993_s4] sm:$0xf]  ;;  %v811_v33 = vld [vmem:[%s993_s4 + $0x4] sm:$0xf0]  ;;  %v743_v34 = vor.u32 %v829_v26, %v742_v24  ;;  %v683_v35 = vor.u32 %v812_v27, %v680_v28 }
  0x3b   : > { %v810_v36 = vld [vmem:[%s993_s4 + $0x4] sm:$0xf]  ;;  %v672_v37 = vld [vmem:[%s993_s4 + $0x8] sm:$0xf0]  ;;  %v747_v38 = vor.u32 %v828_v29, %v744_v30  ;;  %v671_v39 = vor.u32 %v811_v33, %v670_v32 }
  0x3c   : > { %486 = vmatpush.bf16.msra.mxu0 %v695_v7  ;;  %v675_v40 = vor.u32 %v810_v36, %v672_v37  ;;  %v273_v42 = vld [vmem:[%s1117_s2] sm:$0xff]  ;;  %v274_v47 = vld [vmem:[%s1117_s2 + $0x8] sm:$0xff]  ;;  %v275_v51 = vld [vmem:[%s1117_s2 + $0x10] sm:$0xff] }
  0x3d   : > { %500 = vmatpush.bf16.msra.mxu1 %v759_v8  ;;  %514 = vmatpush.bf16.msra.mxu2 %v699_v9  ;;  %v276_v57 = vld [vmem:[%s1117_s2 + $0x18] sm:$0xff] }
  0x3e   : > { %528 = vmatpush.bf16.msra.mxu3 %v763_v13 }
  0x40   : > { %487 = vmatpush.bf16.msra.mxu0 %v687_v19 }
  0x41   : > { %501 = vmatpush.bf16.msra.mxu1 %v751_v20  ;;  %515 = vmatpush.bf16.msra.mxu2 %v691_v21 }
  0x42   : > { %529 = vmatpush.bf16.msra.mxu3 %v755_v25 }
  0x44   : > { %488 = vmatpush.bf16.msra.mxu0 %v679_v31 }
  0x45   : > { %502 = vmatpush.bf16.msra.mxu1 %v743_v34  ;;  %516 = vmatpush.bf16.msra.mxu2 %v683_v35 }
  0x46   : > { %530 = vmatpush.bf16.msra.mxu3 %v747_v38 }
  0x47   : > { %489 = vmatmul.bf16.vlgmr.msra.gmra.mxu0 %v671_v39 }
  0x48   : > { %503 = vmatmul.bf16.vlgmr.msra.gmra.mxu1 %v675_v40  ;;  %517 = vmatmul.bf16.vlgmr.msra.gmra.mxu2 %v671_v39 }
  0x49   : > { %531 = vmatmul.bf16.vlgmr.msra.gmra.mxu3 %v675_v40 }
  0xc4   : > { %v490_v41 = vpop.f32.mrf.mxu0 }
  0xc5   : > { %v504_v43 = vpop.f32.mrf.mxu1 }
  0xc6   : > { %v505_v44 = vadd.f32 %v504_v43, %v490_v41 }
  0xc8   : > { %v537_v45 = vadd.f32 %v505_v44, %v273_v42 }
  0xca   : > { %541 = vst [vmem:[%s1117_s2] sm:$0xff] %v537_v45 }
  0xcb   : > { %v518_v46 = vpop.f32.mrf.mxu2 }
  0xcc   : > { %v532_v48 = vpop.f32.mrf.mxu3  ;;  %v492_v49 = vpop.f32.mrf.mxu0 }
  0xcd   : > { %v533_v50 = vadd.f32 %v532_v48, %v518_v46  ;;  %v506_v52 = vpop.f32.mrf.mxu1 }
  0xce   : > { %v507_v53 = vadd.f32 %v506_v52, %v492_v49 }
  0xcf   : > { %v538_v54 = vadd.f32 %v533_v50, %v274_v47 }
  0xd0   : > { %v539_v55 = vadd.f32 %v507_v53, %v275_v51 }
  0xd1   : > { %542 = vst [vmem:[%s1117_s2 + $0x8] sm:$0xff] %v538_v54 }
  0xd2   : > { %543 = vst [vmem:[%s1117_s2 + $0x10] sm:$0xff] %v539_v55 }
  0xd3   : > { %v520_v56 = vpop.f32.mrf.mxu2 }
  0xd4   : > { %v534_v58 = vpop.f32.mrf.mxu3 }
  0xd5   : > { %v535_v59 = vadd.f32 %v534_v58, %v520_v56 }
  0xd7   : > { %v540_v60 = vadd.f32 %v535_v59, %v276_v57 }
  0xd9   : > { %544 = vst [vmem:[%s1117_s2 + $0x18] sm:$0xff] %v540_v60 }
  0xda PF: > { %s12_s13 = sadd.s32 1, %s923_s13   ;;  %s1118_s9 = smov %s911_s10 }
  0xdb   : > { %p9_p11 = scmp.ge.s32.totalorder %s12_s13, 11   ;;  %s1119_s10 = smov %s976_s17 }
  0xdc   : > { %s1120_s11 = smov %s919_s12  ;;  %s1121_s12 = smov %s1123_s14 }
  0xdd   :  { %11 = sbr.rel (!%p9_p11) target bundleno = 3 (0x3), region = 108 }

// kernel: resnet_forward.64
= control target key start
LH: loop header
LB: loop body
LE: loop exit
PB: predicated region body
PF: predicated region fallthrough
CT: control target
= control target key end

     0   :  { %s76_s0 = inlined_call_operand.vmem [shape: f32[8,256], index: 0, kind: input, shape index: {}]   ;;  %s77_s1 = inlined_call_operand.vmem [shape: f32[1,256], index: 1, kind: input, shape index: {}]   ;;  %s78_s2 = inlined_call_operand.vmem [shape: f32[1,256], index: 2, kind: input, shape index: {}]   ;;  %s79_s3 = inlined_call_operand.vmem [shape: f32[8,256], index: 3, kind: output, shape index: {}]  }
   0x1   :  { %v14_v0 = vld [vmem:[%s76_s0] sm:$0xff]  ;;  %v15_v5 = vld [vmem:[%s76_s0 + $0x8] sm:$0xff] }
   0x2   :  { %v16_v1 = vld [vmem:[%s77_s1] sm:$0x3] }
   0x3   :  { %v24_v2 = vld [vmem:[%s78_s2] sm:$0x3]  ;;  %v18_v3 = vperm.slane %v16_v1, 0  ;;  %v19_v6 = vperm.slane %v16_v1, 1 }
   0x4   :  { %v26_v4 = vperm.slane %v24_v2, 0  ;;  %v27_v7 = vperm.slane %v24_v2, 1 }
   0x5   :  { %v22_v8 = vmul.f32 %v18_v3, %v14_v0  ;;  %v23_v9 = vmul.f32 %v19_v6, %v15_v5 }
   0x7   :  { %v30_v10 = vadd.f32 %v26_v4, %v22_v8  ;;  %v31_v11 = vadd.f32 %v27_v7, %v23_v9 }
   0x9   :  { %32 = vst [vmem:[%s79_s3] sm:$0xff] %v30_v10 }
   0xa   :  { %33 = vst [vmem:[%s79_s3 + $0x8] sm:$0xff] %v31_v11 }

// kernel: resnet_forward.63
= control target key start
LH: loop header
LB: loop body
LE: loop exit
PB: predicated region body
PF: predicated region fallthrough
CT: control target
= control target key end

     0   :  { %s379_s1 = inlined_call_operand.vmem [shape: bf16[128,256], index: 1, kind: input, shape index: {}]   ;;  %s380_s0 = inlined_call_operand.vmem [shape: bf16[16,128], index: 0, kind: input, shape index: {}]   ;;  %s381_s2 = inlined_call_operand.vmem [shape: f32[16,256], index: 2, kind: output, shape index: {}]  }
   0x1   :  { %v229_v0 = vld [vmem:[%s379_s1 + $0x70] sm:$0xf]  ;;  %v251_v1 = vld [vmem:[%s379_s1 + $0x74] sm:$0xf0]  ;;  %v250_v2 = vld [vmem:[%s379_s1 + $0x74] sm:$0xf] }
   0x2   :  { %v230_v3 = vor.u32 %v251_v1, %v229_v0  ;;  %v231_v4 = vld [vmem:[%s379_s1 + $0x78] sm:$0xf0]  ;;  %v221_v5 = vld [vmem:[%s379_s1 + $0x60] sm:$0xf]  ;;  %v249_v6 = vld [vmem:[%s379_s1 + $0x64] sm:$0xf0] }
   0x3   :  { %v234_v7 = vor.u32 %v250_v2, %v231_v4  ;;  %v248_v8 = vld [vmem:[%s379_s1 + $0x64] sm:$0xf]  ;;  %v223_v9 = vld [vmem:[%s379_s1 + $0x68] sm:$0xf0]  ;;  %v222_v10 = vor.u32 %v249_v6, %v221_v5  ;;  %v213_v12 = vld [vmem:[%s379_s1 + $0x50] sm:$0xf] }
   0x4   :  { %127 = vmatpush.bf16.msra.mxu0 %v230_v3  ;;  %v226_v11 = vor.u32 %v248_v8, %v223_v9  ;;  %v247_v13 = vld [vmem:[%s379_s1 + $0x54] sm:$0xf0]  ;;  %v246_v14 = vld [vmem:[%s379_s1 + $0x54] sm:$0xf]  ;;  %v215_v15 = vld [vmem:[%s379_s1 + $0x58] sm:$0xf0] }
   0x5   :  { %141 = vmatpush.bf16.msra.mxu1 %v234_v7  ;;  %v214_v16 = vor.u32 %v247_v13, %v213_v12  ;;  %v218_v17 = vor.u32 %v246_v14, %v215_v15  ;;  %v205_v18 = vld [vmem:[%s379_s1 + $0x40] sm:$0xf]  ;;  %v245_v19 = vld [vmem:[%s379_s1 + $0x44] sm:$0xf0]  ;;  %v244_v20 = vld [vmem:[%s379_s1 + $0x44] sm:$0xf] }
   0x6   :  { %v207_v21 = vld [vmem:[%s379_s1 + $0x48] sm:$0xf0]  ;;  %v206_v22 = vor.u32 %v245_v19, %v205_v18  ;;  %v197_v24 = vld [vmem:[%s379_s1 + $0x30] sm:$0xf]  ;;  %v243_v25 = vld [vmem:[%s379_s1 + $0x34] sm:$0xf0] }
   0x7   :  { %v210_v23 = vor.u32 %v244_v20, %v207_v21  ;;  %v242_v26 = vld [vmem:[%s379_s1 + $0x34] sm:$0xf]  ;;  %v199_v27 = vld [vmem:[%s379_s1 + $0x38] sm:$0xf0]  ;;  %v198_v28 = vor.u32 %v243_v25, %v197_v24  ;;  %v189_v30 = vld [vmem:[%s379_s1 + $0x20] sm:$0xf] }
   0x8   :  { %128 = vmatpush.bf16.msra.mxu0 %v222_v10  ;;  %v202_v29 = vor.u32 %v242_v26, %v199_v27  ;;  %v241_v31 = vld [vmem:[%s379_s1 + $0x24] sm:$0xf0]  ;;  %v240_v32 = vld [vmem:[%s379_s1 + $0x24] sm:$0xf]  ;;  %v191_v33 = vld [vmem:[%s379_s1 + $0x28] sm:$0xf0] }
   0x9   :  { %142 = vmatpush.bf16.msra.mxu1 %v226_v11  ;;  %v190_v34 = vor.u32 %v241_v31, %v189_v30  ;;  %v194_v35 = vor.u32 %v240_v32, %v191_v33  ;;  %v181_v36 = vld [vmem:[%s379_s1 + $0x10] sm:$0xf]  ;;  %v239_v37 = vld [vmem:[%s379_s1 + $0x14] sm:$0xf0]  ;;  %v238_v38 = vld [vmem:[%s379_s1 + $0x14] sm:$0xf] }
   0xa   :  { %v183_v39 = vld [vmem:[%s379_s1 + $0x18] sm:$0xf0]  ;;  %v182_v40 = vor.u32 %v239_v37, %v181_v36  ;;  %v173_v42 = vld [vmem:[%s379_s1] sm:$0xf]  ;;  %v237_v43 = vld [vmem:[%s379_s1 + $0x4] sm:$0xf0] }
   0xb   :  { %v186_v41 = vor.u32 %v238_v38, %v183_v39  ;;  %v236_v44 = vld [vmem:[%s379_s1 + $0x4] sm:$0xf]  ;;  %v175_v45 = vld [vmem:[%s379_s1 + $0x8] sm:$0xf0]  ;;  %v174_v46 = vor.u32 %v237_v43, %v173_v42 }
   0xc   :  { %129 = vmatpush.bf16.msra.mxu0 %v214_v16  ;;  %v178_v47 = vor.u32 %v236_v44, %v175_v45  ;;  %v235_v48 = vld [vmem:[%s380_s0] sm:$0xff] }
   0xd   :  { %143 = vmatpush.bf16.msra.mxu1 %v218_v17 }
  0x10   :  { %130 = vmatpush.bf16.msra.mxu0 %v206_v22 }
  0x11   :  { %144 = vmatpush.bf16.msra.mxu1 %v210_v23 }
  0x14   :  { %131 = vmatpush.bf16.msra.mxu0 %v198_v28 }
  0x15   :  { %145 = vmatpush.bf16.msra.mxu1 %v202_v29 }
  0x18   :  { %132 = vmatpush.bf16.msra.mxu0 %v190_v34 }
  0x19   :  { %146 = vmatpush.bf16.msra.mxu1 %v194_v35 }
  0x1c   :  { %133 = vmatpush.bf16.msra.mxu0 %v182_v40 }
  0x1d   :  { %147 = vmatpush.bf16.msra.mxu1 %v186_v41 }
  0x20   :  { %134 = vmatpush.bf16.msra.mxu0 %v174_v46 }
  0x21   :  { %148 = vmatpush.bf16.msra.mxu1 %v178_v47 }
  0x23   :  { %135 = vmatmul.bf16.vlgmr.msra.gmra.mxu0 %v235_v48 }
  0x24   :  { %149 = vmatmul.bf16.vlgmr.msra.gmra.mxu1 %v235_v48 }
  0xa0   :  { %v136_v49 = vpop.f32.mrf.mxu0 }
  0xa1   :  { %v150_v50 = vpop.f32.mrf.mxu1  ;;  %159 = vst [vmem:[%s381_s2] sm:$0xff] %v136_v49 }
  0xa2   :  { %160 = vst [vmem:[%s381_s2 + $0x8] sm:$0xff] %v150_v50 }
  0xa8   :  { %v138_v51 = vpop.f32.mrf.mxu0 }
  0xa9   :  { %v152_v52 = vpop.f32.mrf.mxu1  ;;  %161 = vst [vmem:[%s381_s2 + $0x10] sm:$0xff] %v138_v51 }
  0xaa   :  { %162 = vst [vmem:[%s381_s2 + $0x18] sm:$0xff] %v152_v52 }

// kernel: resnet_forward.65
= control target key start
LH: loop header
LB: loop body
LE: loop exit
PB: predicated region body
PF: predicated region fallthrough
CT: control target
= control target key end

     0   :  { %s140_s0 = inlined_call_operand.vmem [shape: f32[8,256], index: 0, kind: input, shape index: {}]   ;;  %s141_s1 = inlined_call_operand.vmem [shape: f32[1,256], index: 1, kind: input, shape index: {}]   ;;  %s142_s2 = inlined_call_operand.vmem [shape: f32[1,256], index: 2, kind: input, shape index: {}]   ;;  %s143_s3 = inlined_call_operand.vmem [shape: f32[8,256], index: 3, kind: input, shape index: {}]   ;;  %s144_s4 = inlined_call_operand.vmem [shape: f32[8,256], index: 4, kind: output, shape index: {}]  }
   0x1   :  { %v17_v0 = vld [vmem:[%s140_s0] sm:$0xff]  ;;  %v18_v5 = vld [vmem:[%s140_s0 + $0x8] sm:$0xff] }
   0x2   :  { %v19_v1 = vld [vmem:[%s141_s1] sm:$0x3]  ;;  %v36_v11 = vld [vmem:[%s143_s3 + $0x8] sm:$0xff] }
   0x3   :  { %v27_v2 = vld [vmem:[%s142_s2] sm:$0x3]  ;;  %v21_v3 = vperm.slane %v19_v1, 0  ;;  %v22_v6 = vperm.slane %v19_v1, 1 }
   0x4   :  { %v29_v4 = vperm.slane %v27_v2, 0  ;;  %v30_v7 = vperm.slane %v27_v2, 1  ;;  %v35_v10 = vld [vmem:[%s143_s3] sm:$0xff] }
   0x5   :  { %v25_v8 = vmul.f32 %v21_v3, %v17_v0  ;;  %v26_v9 = vmul.f32 %v22_v6, %v18_v5 }
   0x7   :  { %v33_v12 = vadd.f32 %v29_v4, %v25_v8  ;;  %v34_v13 = vadd.f32 %v30_v7, %v26_v9 }
   0x9   :  { %v37_v14 = vadd.f32 %v35_v10, %v33_v12  ;;  %v38_v15 = vadd.f32 %v36_v11, %v34_v13 }
   0xb   :  { %v39_v16 = vmul.f32 0.25281987, %v37_v14  ;;  %v59_v17 = vand.u32 2147483647, %v37_v14  ;;  %v40_v18 = vmul.f32 0.25281987, %v38_v15 }
   0xc   :  { %v60_v19 = vand.u32 2147483647, %v38_v15 }
   0xd   :  { %v41_v20 = vadd.f32 1.5247445, %v39_v16  ;;  %v61_v21 = vmul.f32 0.34885982, %v59_v17  ;;  %v42_v22 = vadd.f32 1.5247445, %v40_v18 }
   0xe   :  { %v62_v23 = vmul.f32 0.34885982, %v60_v19 }
   0xf   :  { %v43_v24 = vmul.f32 %v41_v20, %v37_v14  ;;  %v63_v25 = vadd.f32 0.91111034, %v61_v21  ;;  %v44_v26 = vmul.f32 %v42_v22, %v38_v15 }
  0x10   :  { %v64_v27 = vadd.f32 0.91111034, %v62_v23 }
  0x11   :  { %v45_v28 = vadd.f32 3.0660808, %v43_v24  ;;  %v65_v29 = vmul.f32 %v63_v25, %v59_v17  ;;  %v46_v30 = vadd.f32 3.0660808, %v44_v26 }
  0x12   :  { %v66_v31 = vmul.f32 %v64_v27, %v60_v19 }
  0x13   :  { %v47_v32 = vmul.f32 %v45_v28, %v37_v14  ;;  %v67_v33 = vadd.f32 4.408118, %v65_v29  ;;  %v48_v34 = vmul.f32 %v46_v30, %v38_v15 }
  0x14   :  { %v68_v35 = vadd.f32 4.408118, %v66_v31 }
  0x15   :  { %v49_v36 = vadd.f32 2.3753915, %v47_v32  ;;  %v69_v37 = vmul.f32 %v67_v33, %v59_v17  ;;  %v50_v38 = vadd.f32 2.3753915, %v48_v34 }
  0x16   :  { %v70_v39 = vmul.f32 %v68_v35, %v60_v19 }
  0x17   :  { %v51_v40 = vmul.f32 %v49_v36, %v37_v14  ;;  %v71_v41 = vadd.f32 1.1916082, %v69_v37  ;;  %v52_v42 = vmul.f32 %v50_v38, %v38_v15 }
  0x18   :  { %v72_v43 = vadd.f32 1.1916082, %v70_v39 }
  0x19   :  { %v53_v44 = vadd.f32 0.61690164, %v51_v40  ;;  %v73_v45 = vmul.f32 %v71_v41, %v59_v17  ;;  %v54_v46 = vadd.f32 0.61690164, %v52_v42 }
  0x1a   :  { %v74_v47 = vmul.f32 %v72_v43, %v60_v19 }
  0x1b   :  { %v75_v48 = vadd.f32 1.0, %v73_v45  ;;  %v55_v49 = vmul.f32 %v53_v44, %v37_v14  ;;  %v56_v51 = vmul.f32 %v54_v46, %v38_v15 }
  0x1c   :  { %v76_v50 = vadd.f32 1.0, %v74_v47 }
  0x1d   :  { %87 = vrcp.f32 %v75_v48  ;;  %v57_v52 = vadd.f32 0.02996348, %v55_v49  ;;  %v58_v53 = vadd.f32 0.02996348, %v56_v51 }
  0x1e   :  { %89 = vrcp.f32 %v76_v50 }
  0x23   :  { %v88_v54 = vpop.eup %87 }
  0x24   :  { %v90_v55 = vpop.eup %89  ;;  %v79_v56 = vmul.f32 %v88_v54, %v57_v52 }
  0x25   :  { %v80_v57 = vmul.f32 %v90_v55, %v58_v53 }
  0x26   :  { %81 = vst [vmem:[%s144_s4] sm:$0xff] %v79_v56 }
  0x27   :  { %82 = vst [vmem:[%s144_s4 + $0x8] sm:$0xff] %v80_v57 }

// kernel: resnet_forward.73
= control target key start
LH: loop header
LB: loop body
LE: loop exit
PB: predicated region body
PF: predicated region fallthrough
CT: control target
= control target key end

     0   :  { %s1337_s1 = inlined_call_operand.vmem [shape: bf16[256,512], index: 1, kind: input, shape index: {}]   ;;  %s1338_s0 = inlined_call_operand.vmem [shape: bf16[16,256], index: 0, kind: input, shape index: {}]   ;;  %s1339_s2 = inlined_call_operand.vmem [shape: f32[16,512], index: 2, kind: output, shape index: {}]  }
   0x1   :  { %v681_v0 = vld [vmem:[%s1337_s1 + $0xe0] sm:$0xf]  ;;  %v855_v1 = vld [vmem:[%s1337_s1 + $0xec] sm:$0xf0]  ;;  %v853_v5 = vld [vmem:[%s1337_s1 + $0xe4] sm:$0xf] }
   0x2   :  { %v809_v2 = vld [vmem:[%s1337_s1 + $0x1e0] sm:$0xf]  ;;  %v682_v3 = vor.u32 %v855_v1, %v681_v0  ;;  %v887_v4 = vld [vmem:[%s1337_s1 + $0x1ec] sm:$0xf0]  ;;  %v683_v6 = vld [vmem:[%s1337_s1 + $0xf0] sm:$0xf0] }
   0x3   :  { %v810_v7 = vor.u32 %v887_v4, %v809_v2  ;;  %v686_v8 = vor.u32 %v853_v5, %v683_v6  ;;  %v885_v9 = vld [vmem:[%s1337_s1 + $0x1e4] sm:$0xf]  ;;  %v811_v10 = vld [vmem:[%s1337_s1 + $0x1f0] sm:$0xf0]  ;;  %v665_v11 = vld [vmem:[%s1337_s1 + $0xc0] sm:$0xf] }
   0x4   :  { %427 = vmatpush.bf16.msra.mxu0 %v682_v3  ;;  %v814_v12 = vor.u32 %v885_v9, %v811_v10  ;;  %v851_v13 = vld [vmem:[%s1337_s1 + $0xcc] sm:$0xf0]  ;;  %v793_v14 = vld [vmem:[%s1337_s1 + $0x1c0] sm:$0xf]  ;;  %v849_v18 = vld [vmem:[%s1337_s1 + $0xc4] sm:$0xf] }
   0x5   :  { %v883_v15 = vld [vmem:[%s1337_s1 + $0x1cc] sm:$0xf0]  ;;  %441 = vmatpush.bf16.msra.mxu1 %v810_v7  ;;  %455 = vmatpush.bf16.msra.mxu2 %v686_v8  ;;  %v666_v16 = vor.u32 %v851_v13, %v665_v11  ;;  %v667_v19 = vld [vmem:[%s1337_s1 + $0xd0] sm:$0xf0]  ;;  %v881_v20 = vld [vmem:[%s1337_s1 + $0x1c4] sm:$0xf] }
   0x6   :  { %v794_v17 = vor.u32 %v883_v15, %v793_v14  ;;  %469 = vmatpush.bf16.msra.mxu3 %v814_v12  ;;  %v670_v21 = vor.u32 %v849_v18, %v667_v19  ;;  %v795_v22 = vld [vmem:[%s1337_s1 + $0x1d0] sm:$0xf0]  ;;  %v649_v23 = vld [vmem:[%s1337_s1 + $0xa0] sm:$0xf]  ;;  %v847_v24 = vld [vmem:[%s1337_s1 + $0xac] sm:$0xf0] }
   0x7   :  { %v798_v25 = vor.u32 %v881_v20, %v795_v22  ;;  %v777_v26 = vld [vmem:[%s1337_s1 + $0x1a0] sm:$0xf]  ;;  %v879_v27 = vld [vmem:[%s1337_s1 + $0x1ac] sm:$0xf0]  ;;  %v845_v28 = vld [vmem:[%s1337_s1 + $0xa4] sm:$0xf]  ;;  %v650_v29 = vor.u32 %v847_v24, %v649_v23 }
   0x8   :  { %428 = vmatpush.bf16.msra.mxu0 %v666_v16  ;;  %v651_v30 = vld [vmem:[%s1337_s1 + $0xb0] sm:$0xf0]  ;;  %v877_v31 = vld [vmem:[%s1337_s1 + $0x1a4] sm:$0xf]  ;;  %v778_v33 = vor.u32 %v879_v27, %v777_v26  ;;  %v633_v35 = vld [vmem:[%s1337_s1 + $0x80] sm:$0xf] }
   0x9   :  { %v779_v32 = vld [vmem:[%s1337_s1 + $0x1b0] sm:$0xf0]  ;;  %442 = vmatpush.bf16.msra.mxu1 %v794_v17  ;;  %456 = vmatpush.bf16.msra.mxu2 %v670_v21  ;;  %v654_v34 = vor.u32 %v845_v28, %v651_v30  ;;  %v843_v36 = vld [vmem:[%s1337_s1 + $0x8c] sm:$0xf0]  ;;  %v761_v37 = vld [vmem:[%s1337_s1 + $0x180] sm:$0xf] }
   0xa   :  { %470 = vmatpush.bf16.msra.mxu3 %v798_v25  ;;  %v782_v38 = vor.u32 %v877_v31, %v779_v32  ;;  %v875_v39 = vld [vmem:[%s1337_s1 + $0x18c] sm:$0xf0]  ;;  %v841_v40 = vld [vmem:[%s1337_s1 + $0x84] sm:$0xf]  ;;  %v635_v41 = vld [vmem:[%s1337_s1 + $0x90] sm:$0xf0]  ;;  %v634_v44 = vor.u32 %v843_v36, %v633_v35 }
   0xb   :  { %v873_v42 = vld [vmem:[%s1337_s1 + $0x184] sm:$0xf]  ;;  %v763_v43 = vld [vmem:[%s1337_s1 + $0x190] sm:$0xf0]  ;;  %v762_v45 = vor.u32 %v875_v39, %v761_v37  ;;  %v638_v46 = vor.u32 %v841_v40, %v635_v41  ;;  %v617_v47 = vld [vmem:[%s1337_s1 + $0x60] sm:$0xf] }
   0xc   :  { %429 = vmatpush.bf16.msra.mxu0 %v650_v29  ;;  %v839_v48 = vld [vmem:[%s1337_s1 + $0x6c] sm:$0xf0]  ;;  %v745_v49 = vld [vmem:[%s1337_s1 + $0x160] sm:$0xf]  ;;  %v766_v50 = vor.u32 %v873_v42, %v763_v43  ;;  %v837_v52 = vld [vmem:[%s1337_s1 + $0x64] sm:$0xf] }
   0xd   :  { %443 = vmatpush.bf16.msra.mxu1 %v778_v33  ;;  %457 = vmatpush.bf16.msra.mxu2 %v654_v34  ;;  %v871_v51 = vld [vmem:[%s1337_s1 + $0x16c] sm:$0xf0]  ;;  %v619_v53 = vld [vmem:[%s1337_s1 + $0x70] sm:$0xf0]  ;;  %v869_v54 = vld [vmem:[%s1337_s1 + $0x164] sm:$0xf]  ;;  %v618_v56 = vor.u32 %v839_v48, %v617_v47 }
   0xe   :  { %471 = vmatpush.bf16.msra.mxu3 %v782_v38  ;;  %v747_v55 = vld [vmem:[%s1337_s1 + $0x170] sm:$0xf0]  ;;  %v746_v57 = vor.u32 %v871_v51, %v745_v49  ;;  %v622_v58 = vor.u32 %v837_v52, %v619_v53  ;;  %v601_v59 = vld [vmem:[%s1337_s1 + $0x40] sm:$0xf]  ;;  %v835_v60 = vld [vmem:[%s1337_s1 + $0x4c] sm:$0xf0] }
   0xf   :  { %v729_v61 = vld [vmem:[%s1337_s1 + $0x140] sm:$0xf]  ;;  %v750_v62 = vor.u32 %v869_v54, %v747_v55  ;;  %v867_v63 = vld [vmem:[%s1337_s1 + $0x14c] sm:$0xf0]  ;;  %v833_v0 = vld [vmem:[%s1337_s1 + $0x44] sm:$0xf]  ;;  %v602_v4 = vor.u32 %v835_v60, %v601_v59 }
  0x10   :  { %430 = vmatpush.bf16.msra.mxu0 %v634_v44  ;;  %v603_v1 = vld [vmem:[%s1337_s1 + $0x50] sm:$0xf0]  ;;  %v865_v2 = vld [vmem:[%s1337_s1 + $0x144] sm:$0xf]  ;;  %v730_v5 = vor.u32 %v867_v63, %v729_v61  ;;  %v585_v7 = vld [vmem:[%s1337_s1 + $0x20] sm:$0xf] }
  0x11   :  { %444 = vmatpush.bf16.msra.mxu1 %v762_v45  ;;  %458 = vmatpush.bf16.msra.mxu2 %v638_v46  ;;  %v731_v3 = vld [vmem:[%s1337_s1 + $0x150] sm:$0xf0]  ;;  %v606_v6 = vor.u32 %v833_v0, %v603_v1  ;;  %v831_v8 = vld [vmem:[%s1337_s1 + $0x2c] sm:$0xf0]  ;;  %v713_v9 = vld [vmem:[%s1337_s1 + $0x120] sm:$0xf] }
  0x12   :  { %472 = vmatpush.bf16.msra.mxu3 %v766_v50  ;;  %v734_v10 = vor.u32 %v865_v2, %v731_v3  ;;  %v863_v11 = vld [vmem:[%s1337_s1 + $0x12c] sm:$0xf0]  ;;  %v829_v12 = vld [vmem:[%s1337_s1 + $0x24] sm:$0xf]  ;;  %v587_v13 = vld [vmem:[%s1337_s1 + $0x30] sm:$0xf0]  ;;  %v586_v16 = vor.u32 %v831_v8, %v585_v7 }
  0x13   :  { %v861_v14 = vld [vmem:[%s1337_s1 + $0x124] sm:$0xf]  ;;  %v715_v15 = vld [vmem:[%s1337_s1 + $0x130] sm:$0xf0]  ;;  %v569_v17 = vld [vmem:[%s1337_s1] sm:$0xf]  ;;  %v714_v20 = vor.u32 %v863_v11, %v713_v9  ;;  %v590_v21 = vor.u32 %v829_v12, %v587_v13 }
  0x14   :  { %431 = vmatpush.bf16.msra.mxu0 %v618_v56  ;;  %v827_v18 = vld [vmem:[%s1337_s1 + $0xc] sm:$0xf0]  ;;  %v697_v19 = vld [vmem:[%s1337_s1 + $0x100] sm:$0xf]  ;;  %v825_v23 = vld [vmem:[%s1337_s1 + $0x4] sm:$0xf]  ;;  %v718_v25 = vor.u32 %v861_v14, %v715_v15 }
  0x15   :  { %445 = vmatpush.bf16.msra.mxu1 %v746_v57  ;;  %459 = vmatpush.bf16.msra.mxu2 %v622_v58  ;;  %v859_v22 = vld [vmem:[%s1337_s1 + $0x10c] sm:$0xf0]  ;;  %v571_v24 = vld [vmem:[%s1337_s1 + $0x10] sm:$0xf0]  ;;  %v857_v26 = vld [vmem:[%s1337_s1 + $0x104] sm:$0xf]  ;;  %v570_v32 = vor.u32 %v827_v18, %v569_v17 }
  0x16   :  { %473 = vmatpush.bf16.msra.mxu3 %v750_v62  ;;  %v699_v27 = vld [vmem:[%s1337_s1 + $0x110] sm:$0xf0]  ;;  %v689_v28 = vld [vmem:[%s1337_s1 + $0xe8] sm:$0xf]  ;;  %v856_v29 = vld [vmem:[%s1337_s1 + $0xf4] sm:$0xf0]  ;;  %v698_v36 = vor.u32 %v859_v22, %v697_v19  ;;  %v574_v37 = vor.u32 %v825_v23, %v571_v24 }
  0x17   :  { %v817_v30 = vld [vmem:[%s1337_s1 + $0x1e8] sm:$0xf]  ;;  %v888_v31 = vld [vmem:[%s1337_s1 + $0x1f4] sm:$0xf0]  ;;  %v854_v33 = vld [vmem:[%s1337_s1 + $0xec] sm:$0xf]  ;;  %v702_v41 = vor.u32 %v857_v26, %v699_v27  ;;  %v690_v42 = vor.u32 %v856_v29, %v689_v28 }
  0x18   :  { %432 = vmatpush.bf16.msra.mxu0 %v602_v4  ;;  %v691_v34 = vld [vmem:[%s1337_s1 + $0xf8] sm:$0xf0]  ;;  %v886_v35 = vld [vmem:[%s1337_s1 + $0x1ec] sm:$0xf]  ;;  %v561_v39 = vld [vmem:[%s1338_s0] sm:$0xf]  ;;  %v818_v45 = vor.u32 %v888_v31, %v817_v30 }
  0x19   :  { %446 = vmatpush.bf16.msra.mxu1 %v730_v5  ;;  %460 = vmatpush.bf16.msra.mxu2 %v606_v6  ;;  %v819_v38 = vld [vmem:[%s1337_s1 + $0x1f8] sm:$0xf0]  ;;  %v824_v40 = vld [vmem:[%s1338_s0 + $0x4] sm:$0xf0]  ;;  %v823_v43 = vld [vmem:[%s1338_s0 + $0x4] sm:$0xf]  ;;  %v694_v46 = vor.u32 %v854_v33, %v691_v34 }
  0x1a   :  { %474 = vmatpush.bf16.msra.mxu3 %v734_v10  ;;  %v563_v44 = vld [vmem:[%s1338_s0 + $0x8] sm:$0xf0]  ;;  %v673_v47 = vld [vmem:[%s1337_s1 + $0xc8] sm:$0xf]  ;;  %v852_v48 = vld [vmem:[%s1337_s1 + $0xd4] sm:$0xf0]  ;;  %v822_v50 = vor.u32 %v886_v35, %v819_v38  ;;  %v1151_v54 = vor.u32 %v824_v40, %v561_v39 }
  0x1b   :  { %v801_v49 = vld [vmem:[%s1337_s1 + $0x1c8] sm:$0xf]  ;;  %v884_v51 = vld [vmem:[%s1337_s1 + $0x1d4] sm:$0xf0]  ;;  %v850_v52 = vld [vmem:[%s1337_s1 + $0xcc] sm:$0xf]  ;;  %v1159_v57 = vor.u32 %v823_v43, %v563_v44  ;;  %v674_v58 = vor.u32 %v852_v48, %v673_v47 }
  0x1c   :  { %433 = vmatpush.bf16.msra.mxu0 %v586_v16  ;;  %v675_v53 = vld [vmem:[%s1337_s1 + $0xd8] sm:$0xf0]  ;;  %v882_v55 = vld [vmem:[%s1337_s1 + $0x1cc] sm:$0xf]  ;;  %v802_v59 = vor.u32 %v884_v51, %v801_v49  ;;  %v657_v61 = vld [vmem:[%s1337_s1 + $0xa8] sm:$0xf] }
  0x1d   :  { %447 = vmatpush.bf16.msra.mxu1 %v714_v20  ;;  %461 = vmatpush.bf16.msra.mxu2 %v590_v21  ;;  %v803_v56 = vld [vmem:[%s1337_s1 + $0x1d8] sm:$0xf0]  ;;  %v678_v60 = vor.u32 %v850_v52, %v675_v53  ;;  %v848_v62 = vld [vmem:[%s1337_s1 + $0xb4] sm:$0xf0]  ;;  %v785_v63 = vld [vmem:[%s1337_s1 + $0x1a8] sm:$0xf] }
  0x1e   :  { %475 = vmatpush.bf16.msra.mxu3 %v718_v25  ;;  %v806_v0 = vor.u32 %v882_v55, %v803_v56  ;;  %v880_v1 = vld [vmem:[%s1337_s1 + $0x1b4] sm:$0xf0]  ;;  %v846_v2 = vld [vmem:[%s1337_s1 + $0xac] sm:$0xf]  ;;  %v659_v3 = vld [vmem:[%s1337_s1 + $0xb8] sm:$0xf0]  ;;  %v658_v6 = vor.u32 %v848_v62, %v657_v61 }
  0x1f   :  { %v878_v4 = vld [vmem:[%s1337_s1 + $0x1ac] sm:$0xf]  ;;  %v787_v5 = vld [vmem:[%s1337_s1 + $0x1b8] sm:$0xf0]  ;;  %v786_v7 = vor.u32 %v880_v1, %v785_v63  ;;  %v662_v8 = vor.u32 %v846_v2, %v659_v3  ;;  %v641_v9 = vld [vmem:[%s1337_s1 + $0x88] sm:$0xf] }
  0x20   :  { %434 = vmatpush.bf16.msra.mxu0 %v570_v32  ;;  %v844_v10 = vld [vmem:[%s1337_s1 + $0x94] sm:$0xf0]  ;;  %v769_v11 = vld [vmem:[%s1337_s1 + $0x188] sm:$0xf]  ;;  %v790_v12 = vor.u32 %v878_v4, %v787_v5  ;;  %v842_v14 = vld [vmem:[%s1337_s1 + $0x8c] sm:$0xf] }
  0x21   :  { %448 = vmatpush.bf16.msra.mxu1 %v698_v36  ;;  %462 = vmatpush.bf16.msra.mxu2 %v574_v37  ;;  %v876_v13 = vld [vmem:[%s1337_s1 + $0x194] sm:$0xf0]  ;;  %v643_v15 = vld [vmem:[%s1337_s1 + $0x98] sm:$0xf0]  ;;  %v874_v16 = vld [vmem:[%s1337_s1 + $0x18c] sm:$0xf]  ;;  %v642_v18 = vor.u32 %v844_v10, %v641_v9 }
  0x22   :  { %476 = vmatpush.bf16.msra.mxu3 %v702_v41  ;;  %v771_v17 = vld [vmem:[%s1337_s1 + $0x198] sm:$0xf0]  ;;  %v770_v19 = vor.u32 %v876_v13, %v769_v11  ;;  %v646_v20 = vor.u32 %v842_v14, %v643_v15  ;;  %v625_v21 = vld [vmem:[%s1337_s1 + $0x68] sm:$0xf]  ;;  %v840_v22 = vld [vmem:[%s1337_s1 + $0x74] sm:$0xf0] }
  0x23   :  { %435 = vmatmul.bf16.vlgmr.msra.gmra.mxu0 %v1151_v54  ;;  %v753_v23 = vld [vmem:[%s1337_s1 + $0x168] sm:$0xf]  ;;  %v774_v24 = vor.u32 %v874_v16, %v771_v17  ;;  %v872_v25 = vld [vmem:[%s1337_s1 + $0x174] sm:$0xf0]  ;;  %v838_v26 = vld [vmem:[%s1337_s1 + $0x6c] sm:$0xf]  ;;  %v626_v30 = vor.u32 %v840_v22, %v625_v21 }
  0x24   :  { %483 = vmatpush.bf16.msrb.mxu0 %v690_v42  ;;  %463 = vmatmul.bf16.vlgmr.msra.gmra.mxu2 %v1151_v54  ;;  %v627_v27 = vld [vmem:[%s1337_s1 + $0x78] sm:$0xf0]  ;;  %v870_v28 = vld [vmem:[%s1337_s1 + $0x16c] sm:$0xf]  ;;  %v754_v31 = vor.u32 %v872_v25, %v753_v23  ;;  %v609_v33 = vld [vmem:[%s1337_s1 + $0x48] sm:$0xf] }
  0x25   :  { %497 = vmatpush.bf16.msrb.mxu1 %v818_v45  ;;  %511 = vmatpush.bf16.msrb.mxu2 %v694_v46  ;;  %v755_v29 = vld [vmem:[%s1337_s1 + $0x178] sm:$0xf0]  ;;  %v630_v32 = vor.u32 %v838_v26, %v627_v27  ;;  %v836_v34 = vld [vmem:[%s1337_s1 + $0x54] sm:$0xf0]  ;;  %v737_v35 = vld [vmem:[%s1337_s1 + $0x148] sm:$0xf] }
  0x26   :  { %525 = vmatpush.bf16.msrb.mxu3 %v822_v50  ;;  %449 = vmatmul.bf16.vlgmr.msra.gmra.mxu1 %v1159_v57  ;;  %v758_v36 = vor.u32 %v870_v28, %v755_v29  ;;  %v868_v37 = vld [vmem:[%s1337_s1 + $0x154] sm:$0xf0]  ;;  %v834_v38 = vld [vmem:[%s1337_s1 + $0x4c] sm:$0xf]  ;;  %v611_v39 = vld [vmem:[%s1337_s1 + $0x58] sm:$0xf0]  ;;  %v610_v42 = vor.u32 %v836_v34, %v609_v33 }
  0x27   :  { %477 = vmatmul.bf16.vlgmr.msra.gmra.mxu3 %v1159_v57  ;;  %v866_v40 = vld [vmem:[%s1337_s1 + $0x14c] sm:$0xf]  ;;  %v739_v41 = vld [vmem:[%s1337_s1 + $0x158] sm:$0xf0]  ;;  %v738_v43 = vor.u32 %v868_v37, %v737_v35  ;;  %v614_v44 = vor.u32 %v834_v38, %v611_v39  ;;  %v593_v45 = vld [vmem:[%s1337_s1 + $0x28] sm:$0xf] }
  0x28   :  { %484 = vmatpush.bf16.msrb.mxu0 %v674_v58  ;;  %v832_v46 = vld [vmem:[%s1337_s1 + $0x34] sm:$0xf0]  ;;  %v721_v47 = vld [vmem:[%s1337_s1 + $0x128] sm:$0xf]  ;;  %v742_v48 = vor.u32 %v866_v40, %v739_v41  ;;  %v830_v50 = vld [vmem:[%s1337_s1 + $0x2c] sm:$0xf] }
  0x29   :  { %498 = vmatpush.bf16.msrb.mxu1 %v802_v59  ;;  %512 = vmatpush.bf16.msrb.mxu2 %v678_v60  ;;  %v864_v49 = vld [vmem:[%s1337_s1 + $0x134] sm:$0xf0]  ;;  %v595_v51 = vld [vmem:[%s1337_s1 + $0x38] sm:$0xf0]  ;;  %v862_v52 = vld [vmem:[%s1337_s1 + $0x12c] sm:$0xf]  ;;  %v594_v55 = vor.u32 %v832_v46, %v593_v45 }
  0x2a   :  { %526 = vmatpush.bf16.msrb.mxu3 %v806_v0  ;;  %v723_v53 = vld [vmem:[%s1337_s1 + $0x138] sm:$0xf0]  ;;  %v722_v56 = vor.u32 %v864_v49, %v721_v47  ;;  %v598_v58 = vor.u32 %v830_v50, %v595_v51  ;;  %v577_v59 = vld [vmem:[%s1337_s1 + $0x8] sm:$0xf]  ;;  %v828_v60 = vld [vmem:[%s1337_s1 + $0x14] sm:$0xf0] }
  0x2b   :  { %v705_v61 = vld [vmem:[%s1337_s1 + $0x108] sm:$0xf]  ;;  %v726_v62 = vor.u32 %v862_v52, %v723_v53  ;;  %v860_v63 = vld [vmem:[%s1337_s1 + $0x114] sm:$0xf0]  ;;  %v826_v0 = vld [vmem:[%s1337_s1 + $0xc] sm:$0xf]  ;;  %v578_v4 = vor.u32 %v828_v60, %v577_v59 }
  0x2c   :  { %485 = vmatpush.bf16.msrb.mxu0 %v658_v6  ;;  %v579_v1 = vld [vmem:[%s1337_s1 + $0x18] sm:$0xf0]  ;;  %v858_v2 = vld [vmem:[%s1337_s1 + $0x10c] sm:$0xf]  ;;  %v706_v5 = vor.u32 %v860_v63, %v705_v61 }
  0x2d   :  { %499 = vmatpush.bf16.msrb.mxu1 %v786_v7  ;;  %513 = vmatpush.bf16.msrb.mxu2 %v662_v8  ;;  %v707_v3 = vld [vmem:[%s1337_s1 + $0x118] sm:$0xf0]  ;;  %v582_v6 = vor.u32 %v826_v0, %v579_v1 }
  0x2e   :  { %527 = vmatpush.bf16.msrb.mxu3 %v790_v12  ;;  %v710_v7 = vor.u32 %v858_v2, %v707_v3 }
  0x30   :  { %486 = vmatpush.bf16.msrb.mxu0 %v642_v18 }
  0x31   :  { %500 = vmatpush.bf16.msrb.mxu1 %v770_v19  ;;  %514 = vmatpush.bf16.msrb.mxu2 %v646_v20 }
  0x32   :  { %528 = vmatpush.bf16.msrb.mxu3 %v774_v24 }
  0x34   :  { %487 = vmatpush.bf16.msrb.mxu0 %v626_v30 }
  0x35   :  { %501 = vmatpush.bf16.msrb.mxu1 %v754_v31  ;;  %515 = vmatpush.bf16.msrb.mxu2 %v630_v32 }
  0x36   :  { %529 = vmatpush.bf16.msrb.mxu3 %v758_v36 }
  0x38   :  { %488 = vmatpush.bf16.msrb.mxu0 %v610_v42 }
  0x39   :  { %502 = vmatpush.bf16.msrb.mxu1 %v738_v43  ;;  %516 = vmatpush.bf16.msrb.mxu2 %v614_v44 }
  0x3a   :  { %530 = vmatpush.bf16.msrb.mxu3 %v742_v48 }
  0x3c   :  { %489 = vmatpush.bf16.msrb.mxu0 %v594_v55 }
  0x3d   :  { %503 = vmatpush.bf16.msrb.mxu1 %v722_v56  ;;  %517 = vmatpush.bf16.msrb.mxu2 %v598_v58 }
  0x3e   :  { %531 = vmatpush.bf16.msrb.mxu3 %v726_v62 }
  0x40   :  { %490 = vmatpush.bf16.msrb.mxu0 %v578_v4 }
  0x41   :  { %504 = vmatpush.bf16.msrb.mxu1 %v706_v5  ;;  %518 = vmatpush.bf16.msrb.mxu2 %v582_v6 }
  0x42   :  { %532 = vmatpush.bf16.msrb.mxu3 %v710_v7 }
  0x43   :  { %491 = vmatmul.bf16.vlgmr.msrb.gmra.mxu0 %v1151_v54 }
  0x44   :  { %505 = vmatmul.bf16.vlgmr.msrb.gmra.mxu1 %v1159_v57  ;;  %519 = vmatmul.bf16.vlgmr.msrb.gmra.mxu2 %v1151_v54 }
  0x45   :  { %533 = vmatmul.bf16.vlgmr.msrb.gmra.mxu3 %v1159_v57 }
  0xa0   :  { %v436_v8 = vpop.f32.mrf.mxu0 }
  0xa3   :  { %v450_v9 = vpop.f32.mrf.mxu1 }
  0xa4   :  { %v451_v10 = vadd.f32 %v450_v9, %v436_v8 }
  0xa6   :  { %547 = vst [vmem:[%s1339_s2] sm:$0xff] %v451_v10 }
  0xa7   :  { %v464_v11 = vpop.f32.mrf.mxu2 }
  0xa8   :  { %v438_v14 = vpop.f32.mrf.mxu0 }
  0xaa   :  { %v478_v12 = vpop.f32.mrf.mxu3 }
  0xab   :  { %v479_v13 = vadd.f32 %v478_v12, %v464_v11  ;;  %v452_v15 = vpop.f32.mrf.mxu1 }
  0xac   :  { %v453_v16 = vadd.f32 %v452_v15, %v438_v14 }
  0xad   :  { %548 = vst [vmem:[%s1339_s2 + $0x8] sm:$0xff] %v479_v13 }
  0xae   :  { %551 = vst [vmem:[%s1339_s2 + $0x20] sm:$0xff] %v453_v16 }
  0xaf   :  { %v466_v54 = vpop.f32.mrf.mxu2 }
  0xb2   :  { %v480_v57 = vpop.f32.mrf.mxu3 }
  0xb3   :  { %v481_v17 = vadd.f32 %v480_v57, %v466_v54 }
  0xb5   :  { %552 = vst [vmem:[%s1339_s2 + $0x28] sm:$0xff] %v481_v17 }
  0xc0   :  { %v492_v18 = vpop.f32.mrf.mxu0 }
  0xc1   :  { %v506_v19 = vpop.f32.mrf.mxu1 }
  0xc2   :  { %v507_v20 = vadd.f32 %v506_v19, %v492_v18 }
  0xc4   :  { %549 = vst [vmem:[%s1339_s2 + $0x10] sm:$0xff] %v507_v20 }
  0xc7   :  { %v520_v21 = vpop.f32.mrf.mxu2 }
  0xc8   :  { %v534_v22 = vpop.f32.mrf.mxu3  ;;  %v494_v23 = vpop.f32.mrf.mxu0 }
  0xc9   :  { %v535_v24 = vadd.f32 %v534_v22, %v520_v21  ;;  %v508_v25 = vpop.f32.mrf.mxu1 }
  0xca   :  { %v509_v26 = vadd.f32 %v508_v25, %v494_v23 }
  0xcb   :  { %550 = vst [vmem:[%s1339_s2 + $0x18] sm:$0xff] %v535_v24 }
  0xcc   :  { %553 = vst [vmem:[%s1339_s2 + $0x30] sm:$0xff] %v509_v26 }
  0xcf   :  { %v522_v27 = vpop.f32.mrf.mxu2 }
  0xd0   :  { %v536_v28 = vpop.f32.mrf.mxu3 }
  0xd1   :  { %v537_v29 = vadd.f32 %v536_v28, %v522_v27 }
  0xd3   :  { %554 = vst [vmem:[%s1339_s2 + $0x38] sm:$0xff] %v537_v29 }

// kernel: resnet_forward.74
= control target key start
LH: loop header
LB: loop body
LE: loop exit
PB: predicated region body
PF: predicated region fallthrough
CT: control target
= control target key end

     0   :  { %s104_s0 = inlined_call_operand.vmem [shape: f32[8,512], index: 0, kind: input, shape index: {}]   ;;  %s105_s1 = inlined_call_operand.vmem [shape: f32[1,512], index: 1, kind: input, shape index: {}]   ;;  %s106_s2 = inlined_call_operand.vmem [shape: f32[1,512], index: 2, kind: input, shape index: {}]   ;;  %s107_s3 = inlined_call_operand.vmem [shape: f32[8,512], index: 3, kind: output, shape index: {}]  }
   0x1   :  { %v14_v0 = vld [vmem:[%s104_s0] sm:$0xff]  ;;  %v15_v5 = vld [vmem:[%s104_s0 + $0x8] sm:$0xff]  ;;  %v16_v8 = vld [vmem:[%s104_s0 + $0x10] sm:$0xff] }
   0x2   :  { %v18_v1 = vld [vmem:[%s105_s1] sm:$0xf]  ;;  %v17_v11 = vld [vmem:[%s104_s0 + $0x18] sm:$0xff] }
   0x3   :  { %v32_v2 = vld [vmem:[%s106_s2] sm:$0xf]  ;;  %v20_v3 = vperm.slane %v18_v1, 0  ;;  %v21_v6 = vperm.slane %v18_v1, 1  ;;  %v22_v9 = vperm.slane %v18_v1, 2  ;;  %v23_v12 = vperm.slane %v18_v1, 3 }
   0x4   :  { %v34_v4 = vperm.slane %v32_v2, 0  ;;  %v35_v7 = vperm.slane %v32_v2, 1  ;;  %v36_v10 = vperm.slane %v32_v2, 2  ;;  %v37_v13 = vperm.slane %v32_v2, 3 }
   0x5   :  { %v28_v14 = vmul.f32 %v20_v3, %v14_v0  ;;  %v29_v15 = vmul.f32 %v21_v6, %v15_v5  ;;  %v30_v16 = vmul.f32 %v22_v9, %v16_v8  ;;  %v31_v17 = vmul.f32 %v23_v12, %v17_v11 }
   0x7   :  { %v42_v18 = vadd.f32 %v34_v4, %v28_v14  ;;  %v43_v19 = vadd.f32 %v35_v7, %v29_v15  ;;  %v44_v20 = vadd.f32 %v36_v10, %v30_v16  ;;  %v45_v21 = vadd.f32 %v37_v13, %v31_v17 }
   0x9   :  { %46 = vst [vmem:[%s107_s3] sm:$0xff] %v42_v18 }
   0xa   :  { %47 = vst [vmem:[%s107_s3 + $0x8] sm:$0xff] %v43_v19 }
   0xb   :  { %48 = vst [vmem:[%s107_s3 + $0x10] sm:$0xff] %v44_v20 }
   0xc   :  { %49 = vst [vmem:[%s107_s3 + $0x18] sm:$0xff] %v45_v21 }

// kernel: resnet_forward.71
= control target key start
LH: loop header
LB: loop body
LE: loop exit
PB: predicated region body
PF: predicated region fallthrough
CT: control target
= control target key end

     0   :  { %s228_s0 = inlined_call_operand.vmem [shape: f32[8,512], index: 0, kind: input, shape index: {}]   ;;  %s229_s1 = inlined_call_operand.vmem [shape: f32[1,512], index: 1, kind: input, shape index: {}]   ;;  %s230_s2 = inlined_call_operand.vmem [shape: f32[1,512], index: 2, kind: input, shape index: {}]   ;;  %s231_s3 = inlined_call_operand.vmem [shape: f32[8,512], index: 3, kind: output, shape index: {}]  }
   0x1   :  { %v14_v0 = vld [vmem:[%s228_s0] sm:$0xff]  ;;  %v15_v5 = vld [vmem:[%s228_s0 + $0x8] sm:$0xff]  ;;  %v16_v8 = vld [vmem:[%s228_s0 + $0x10] sm:$0xff] }
   0x2   :  { %v18_v1 = vld [vmem:[%s229_s1] sm:$0xf]  ;;  %v17_v11 = vld [vmem:[%s228_s0 + $0x18] sm:$0xff] }
   0x3   :  { %v32_v2 = vld [vmem:[%s230_s2] sm:$0xf]  ;;  %v20_v3 = vperm.slane %v18_v1, 0  ;;  %v21_v6 = vperm.slane %v18_v1, 1  ;;  %v22_v9 = vperm.slane %v18_v1, 2  ;;  %v23_v12 = vperm.slane %v18_v1, 3 }
   0x4   :  { %v34_v4 = vperm.slane %v32_v2, 0  ;;  %v35_v7 = vperm.slane %v32_v2, 1  ;;  %v36_v10 = vperm.slane %v32_v2, 2  ;;  %v37_v17 = vperm.slane %v32_v2, 3 }
   0x5   :  { %v28_v13 = vmul.f32 %v20_v3, %v14_v0  ;;  %v29_v14 = vmul.f32 %v21_v6, %v15_v5  ;;  %v30_v15 = vmul.f32 %v22_v9, %v16_v8  ;;  %v31_v16 = vmul.f32 %v23_v12, %v17_v11 }
   0x7   :  { %v184_v18 = vadd.f32 %v34_v4, %v28_v13  ;;  %v186_v19 = vadd.f32 %v35_v7, %v29_v14  ;;  %v188_v20 = vadd.f32 %v36_v10, %v30_v15  ;;  %v196_v27 = vadd.f32 %v37_v17, %v31_v16 }
   0x9   :  { %v46_v21 = vmul.f32 0.25281987, %v184_v18  ;;  %v86_v22 = vand.u32 2147483647, %v184_v18  ;;  %v47_v23 = vmul.f32 0.25281987, %v186_v19 }
   0xa   :  { %v87_v24 = vand.u32 2147483647, %v186_v19  ;;  %v48_v25 = vmul.f32 0.25281987, %v188_v20  ;;  %v88_v26 = vand.u32 2147483647, %v188_v20 }
   0xb   :  { %v50_v28 = vadd.f32 1.5247445, %v46_v21  ;;  %v90_v29 = vmul.f32 0.34885982, %v86_v22  ;;  %v51_v30 = vadd.f32 1.5247445, %v47_v23 }
   0xc   :  { %v91_v31 = vmul.f32 0.34885982, %v87_v24  ;;  %v52_v32 = vadd.f32 1.5247445, %v48_v25  ;;  %v92_v33 = vmul.f32 0.34885982, %v88_v26 }
   0xd   :  { %v54_v34 = vmul.f32 %v50_v28, %v184_v18  ;;  %v94_v35 = vadd.f32 0.91111034, %v90_v29  ;;  %v55_v36 = vmul.f32 %v51_v30, %v186_v19  ;;  %v49_v37 = vmul.f32 0.25281987, %v196_v27 }
   0xe   :  { %v95_v38 = vadd.f32 0.91111034, %v91_v31  ;;  %v56_v39 = vmul.f32 %v52_v32, %v188_v20  ;;  %v96_v40 = vadd.f32 0.91111034, %v92_v33  ;;  %v89_v41 = vand.u32 2147483647, %v196_v27 }
   0xf   :  { %v58_v42 = vadd.f32 3.0660808, %v54_v34  ;;  %v98_v43 = vmul.f32 %v94_v35, %v86_v22  ;;  %v59_v44 = vadd.f32 3.0660808, %v55_v36  ;;  %v53_v45 = vadd.f32 1.5247445, %v49_v37 }
  0x10   :  { %v99_v46 = vmul.f32 %v95_v38, %v87_v24  ;;  %v60_v47 = vadd.f32 3.0660808, %v56_v39  ;;  %v100_v48 = vmul.f32 %v96_v40, %v88_v26  ;;  %v93_v49 = vmul.f32 0.34885982, %v89_v41 }
  0x11   :  { %v62_v50 = vmul.f32 %v58_v42, %v184_v18  ;;  %v102_v51 = vadd.f32 4.408118, %v98_v43  ;;  %v63_v52 = vmul.f32 %v59_v44, %v186_v19  ;;  %v57_v53 = vmul.f32 %v53_v45, %v196_v27 }
  0x12   :  { %v103_v54 = vadd.f32 4.408118, %v99_v46  ;;  %v64_v55 = vmul.f32 %v60_v47, %v188_v20  ;;  %v104_v56 = vadd.f32 4.408118, %v100_v48  ;;  %v97_v57 = vadd.f32 0.91111034, %v93_v49 }
  0x13   :  { %v66_v58 = vadd.f32 2.3753915, %v62_v50  ;;  %v106_v59 = vmul.f32 %v102_v51, %v86_v22  ;;  %v67_v60 = vadd.f32 2.3753915, %v63_v52  ;;  %v61_v61 = vadd.f32 3.0660808, %v57_v53 }
  0x14   :  { %v107_v62 = vmul.f32 %v103_v54, %v87_v24  ;;  %v68_v63 = vadd.f32 2.3753915, %v64_v55  ;;  %v108_v0 = vmul.f32 %v104_v56, %v88_v26  ;;  %v101_v1 = vmul.f32 %v97_v57, %v89_v41 }
  0x15   :  { %v70_v2 = vmul.f32 %v66_v58, %v184_v18  ;;  %v110_v3 = vadd.f32 1.1916082, %v106_v59  ;;  %v71_v4 = vmul.f32 %v67_v60, %v186_v19  ;;  %v65_v5 = vmul.f32 %v61_v61, %v196_v27 }
  0x16   :  { %v111_v6 = vadd.f32 1.1916082, %v107_v62  ;;  %v72_v7 = vmul.f32 %v68_v63, %v188_v20  ;;  %v112_v8 = vadd.f32 1.1916082, %v108_v0  ;;  %v105_v9 = vadd.f32 4.408118, %v101_v1 }
  0x17   :  { %v74_v10 = vadd.f32 0.61690164, %v70_v2  ;;  %v114_v11 = vmul.f32 %v110_v3, %v86_v22  ;;  %v75_v12 = vadd.f32 0.61690164, %v71_v4  ;;  %v69_v13 = vadd.f32 2.3753915, %v65_v5 }
  0x18   :  { %v115_v14 = vmul.f32 %v111_v6, %v87_v24  ;;  %v76_v15 = vadd.f32 0.61690164, %v72_v7  ;;  %v116_v16 = vmul.f32 %v112_v8, %v88_v26  ;;  %v109_v17 = vmul.f32 %v105_v9, %v89_v41 }
  0x19   :  { %v118_v21 = vadd.f32 1.0, %v114_v11  ;;  %v73_v23 = vmul.f32 %v69_v13, %v196_v27  ;;  %v78_v25 = vmul.f32 %v74_v10, %v184_v18  ;;  %v79_v31 = vmul.f32 %v75_v12, %v186_v19 }
  0x1a   :  { %v119_v28 = vadd.f32 1.0, %v115_v14  ;;  %v120_v29 = vadd.f32 1.0, %v116_v16  ;;  %v113_v30 = vadd.f32 1.1916082, %v109_v17  ;;  %v80_v22 = vmul.f32 %v76_v15, %v188_v20 }
  0x1b   :  { %138 = vrcp.f32 %v118_v21  ;;  %v77_v32 = vadd.f32 0.61690164, %v73_v23  ;;  %v82_v24 = vadd.f32 0.02996348, %v78_v25  ;;  %v83_v34 = vadd.f32 0.02996348, %v79_v31 }
  0x1c   :  { %140 = vrcp.f32 %v119_v28  ;;  %v117_v33 = vmul.f32 %v113_v30, %v89_v41  ;;  %v84_v36 = vadd.f32 0.02996348, %v80_v22 }
  0x1d   :  { %142 = vrcp.f32 %v120_v29  ;;  %v81_v35 = vmul.f32 %v77_v32, %v196_v27 }
  0x1e   :  { %v121_v26 = vadd.f32 1.0, %v117_v33 }
  0x1f   :  { %v85_v42 = vadd.f32 0.02996348, %v81_v35 }
  0x20   :  { %144 = vrcp.f32 %v121_v26 }
  0x21   :  { %v139_v18 = vpop.eup %138 }
  0x22   :  { %v141_v37 = vpop.eup %140  ;;  %v126_v38 = vmul.f32 %v139_v18, %v82_v24 }
  0x23   :  { %v143_v39 = vpop.eup %142  ;;  %v127_v40 = vmul.f32 %v141_v37, %v83_v34 }
  0x24   :  { %130 = vst [vmem:[%s231_s3] sm:$0xff] %v126_v38  ;;  %v128_v19 = vmul.f32 %v143_v39, %v84_v36 }
  0x25   :  { %131 = vst [vmem:[%s231_s3 + $0x8] sm:$0xff] %v127_v40 }
  0x26   :  { %v145_v20 = vpop.eup %144  ;;  %132 = vst [vmem:[%s231_s3 + $0x10] sm:$0xff] %v128_v19 }
  0x27   :  { %v129_v27 = vmul.f32 %v145_v20, %v85_v42 }
  0x29   :  { %133 = vst [vmem:[%s231_s3 + $0x18] sm:$0xff] %v129_v27 }

// kernel: resnet_forward.70
= control target key start
LH: loop header
LB: loop body
LE: loop exit
PB: predicated region body
PF: predicated region fallthrough
CT: control target
= control target key end

     0   :  { %s1365_s9 = smov 0   ;;  %s1367_s10 = smov 0   ;;  %s1651_s0 = inlined_call_operand.vmem [shape: bf16[16,2304], index: 0, kind: input, shape index: {}]   ;;  %s1652_s1 = inlined_call_operand.vmem [shape: bf16[2304,512], index: 1, kind: input, shape index: {}]   ;;  %s1653_s2 = inlined_call_operand.vmem [shape: f32[16,512], index: 2, kind: output, shape index: {}]  }
   0x1   :  { %s1369_s11 = smov 0   ;;  %s1371_s12 = smov 0  }
   0x2   :  { %s1373_s13 = smov 0  }
   0x3 LB: > { %s24_s14 = sadd.s32 1, %s1343_s12  ;;  %p47_p1 = scmp.ne.s32.totalorder %s1335_s10, %s1331_s9  ;;  %s1347_s13 = sphi %s1373_s13, %s12_s13   ;;  %s1343_s12 = sphi %s1371_s12, %s1657_s12   ;;  %s1339_s11 = sphi %s1369_s11, %s1656_s11   ;;  %s1335_s10 = sphi %s1367_s10, %s1655_s10   ;;  %s1331_s9 = sphi %s1365_s9, %s1654_s9  }
   0x4   : > { %p25_p0 = scmp.ge.s32.totalorder %s24_s14, 9  ;;  %p48_p2 = scmp.eq.s32.totalorder %s1347_s13, 0 }
   0x5   : > { %s40_s16 = sadd.s32 1, %s1335_s10  ;;  %p922_p5 = scmp.ge.s32.totalorder %s1347_s13, 9 }
   0x6   : > { %s1659_s14 = smov (%p25_p0, %s24_s14), 0  ;;  %p49_p3 = por %p48_p2, %p47_p1 }
   0x7   : > { %s36_s15 = ssub.s32 %s1343_s12, %s1659_s14  ;;  %129 = sbr.rel (%p922_p5) target bundleno = 18 (0x12), region = 16 }
   0x8   : > { %p38_p4 = scmp.eq.s32.totalorder %s36_s15, 0 }
   0xa   : > { %s1400_s17 = scalar_select %p38_p4, %s1335_s10, %s40_s16  }
   0xc   : > { %132 = sbr.rel (!%p49_p3) target bundleno = 18 (0x12), region = 20  ;;  %s134_s18 = sand.u32 (%p49_p3), 1, %s1335_s10  }
   0xd   : > { %s1200_s19 = sshll.u32 (%p49_p3), %s1343_s12, 3  ;;  %s923_s20 = sshll.u32 (%p49_p3), %s134_s18, 4 }
   0xe   : > { %s142_s23 = scalar_lea.vmem (%p49_p3), %s1651_s0, %s1200_s19  ;;  %s136_s24 = scalar_lea.vmem (%p49_p3), [#allocation2], %s923_s20 }
   0xf   : > { %v173_v0 = vld [vmem:[%s142_s23] sm:$0xff] (%p49_p3)  ;;  %v175_v1 = vld [vmem:[%s142_s23 + $0x48] sm:$0xff] (%p49_p3) }
  0x10   : > { %174 = vst [vmem:[%s136_s24] sm:$0xff] (%p49_p3), %v173_v0 }
  0x11   : > { %176 = vst [vmem:[%s136_s24 + $0x8] sm:$0xff] %v175_v1 }
  0x12 PF: > { %p926_p6 = scmp.ge.s32.totalorder %s1347_s13, 1  ;;  %p196_p7 = scmp.lt.s32.totalorder %s1347_s13, 10 }
  0x14   : > { %p197_p8 = pnand %p926_p6, %p196_p7 }
  0x15   : > { %s203_s25 = sand.u32 (!%p197_p8), 1, %s1331_s9   ;;  %s928_s26 = sshll.u32 (!%p197_p8), %s1339_s11, 5 }
  0x16   : > { %200 = sbr.rel (%p197_p8) target bundleno = 254 (0xfe), region = 62  ;;  %s927_s27 = sshll.u32 (!%p197_p8), %s203_s25, 4 }
  0x17   : > { %p243_p9 = scmp.lt.s32.totalorder (!%p197_p8), %s928_s26, 287  ;;  %s1417_s4 = scalar_lea.vmem (!%p197_p8), [#allocation2], %s927_s27 }
  0x18   : > { %p931_p10 = scmp.ne.s32.totalorder (!%p197_p8), %s1339_s11, 0 }
  0x1b   : > { %s1661_s26 = smov (!%p243_p9, %s928_s26), 287  ;;  %268 = sbr.rel (%p931_p10) target bundleno = 41 (0x29), region = 70 }
  0x1c   : > { %s1201_s28 = sshll.u32 %s1661_s26, 4 }
  0x1d   : > { %s1415_s3 = scalar_lea.vmem %s1652_s1, %s1201_s28 }
  0x20   : > { %v1349_v2 = vmov 0.0  }
  0x21   : > { %269 = vst [vmem:[%s1653_s2] sm:$0xff] %v1349_v2 }
  0x22   : > { %270 = vst [vmem:[%s1653_s2 + $0x8] sm:$0xff] %v1349_v2 }
  0x23   : > { %271 = vst [vmem:[%s1653_s2 + $0x10] sm:$0xff] %v1349_v2 }
  0x24   : > { %272 = vst [vmem:[%s1653_s2 + $0x18] sm:$0xff] %v1349_v2 }
  0x25   : > { %273 = vst [vmem:[%s1653_s2 + $0x20] sm:$0xff] %v1349_v2 }
  0x26   : > { %274 = vst [vmem:[%s1653_s2 + $0x28] sm:$0xff] %v1349_v2 }
  0x27   : > { %275 = vst [vmem:[%s1653_s2 + $0x30] sm:$0xff] %v1349_v2 }
  0x28   : > { %276 = vst [vmem:[%s1653_s2 + $0x38] sm:$0xff] %v1349_v2 }
  0x29 PF: > { %v1054_v3 = vld [vmem:[%s1415_s3 + $0xe0] sm:$0xf]  ;;  %v1234_v4 = vld [vmem:[%s1415_s3 + $0xec] sm:$0xf0]  ;;  %v1232_v8 = vld [vmem:[%s1415_s3 + $0xe4] sm:$0xf] }
  0x2a   : > { %v1182_v5 = vld [vmem:[%s1415_s3 + $0x1e0] sm:$0xf]  ;;  %v1055_v6 = vor.u32 %v1234_v4, %v1054_v3  ;;  %v1266_v7 = vld [vmem:[%s1415_s3 + $0x1ec] sm:$0xf0]  ;;  %v1056_v9 = vld [vmem:[%s1415_s3 + $0xf0] sm:$0xf0] }
  0x2b   : > { %v1183_v10 = vor.u32 %v1266_v7, %v1182_v5  ;;  %v1059_v11 = vor.u32 %v1232_v8, %v1056_v9  ;;  %v1264_v12 = vld [vmem:[%s1415_s3 + $0x1e4] sm:$0xf]  ;;  %v1184_v13 = vld [vmem:[%s1415_s3 + $0x1f0] sm:$0xf0]  ;;  %v1038_v14 = vld [vmem:[%s1415_s3 + $0xc0] sm:$0xf] }
  0x2c   : > { %681 = vmatpush.bf16.msra.mxu0 %v1055_v6  ;;  %v1187_v15 = vor.u32 %v1264_v12, %v1184_v13  ;;  %v1230_v16 = vld [vmem:[%s1415_s3 + $0xcc] sm:$0xf0]  ;;  %v1166_v17 = vld [vmem:[%s1415_s3 + $0x1c0] sm:$0xf]  ;;  %v1228_v21 = vld [vmem:[%s1415_s3 + $0xc4] sm:$0xf] }
  0x2d   : > { %v1262_v18 = vld [vmem:[%s1415_s3 + $0x1cc] sm:$0xf0]  ;;  %695 = vmatpush.bf16.msra.mxu1 %v1183_v10  ;;  %709 = vmatpush.bf16.msra.mxu2 %v1059_v11  ;;  %v1039_v19 = vor.u32 %v1230_v16, %v1038_v14  ;;  %v1040_v22 = vld [vmem:[%s1415_s3 + $0xd0] sm:$0xf0]  ;;  %v1260_v23 = vld [vmem:[%s1415_s3 + $0x1c4] sm:$0xf] }
  0x2e   : > { %v1167_v20 = vor.u32 %v1262_v18, %v1166_v17  ;;  %723 = vmatpush.bf16.msra.mxu3 %v1187_v15  ;;  %v1043_v24 = vor.u32 %v1228_v21, %v1040_v22  ;;  %v1168_v25 = vld [vmem:[%s1415_s3 + $0x1d0] sm:$0xf0]  ;;  %v1022_v26 = vld [vmem:[%s1415_s3 + $0xa0] sm:$0xf]  ;;  %v1226_v27 = vld [vmem:[%s1415_s3 + $0xac] sm:$0xf0] }
  0x2f   : > { %v1171_v28 = vor.u32 %v1260_v23, %v1168_v25  ;;  %v1150_v29 = vld [vmem:[%s1415_s3 + $0x1a0] sm:$0xf]  ;;  %v1258_v30 = vld [vmem:[%s1415_s3 + $0x1ac] sm:$0xf0]  ;;  %v1224_v31 = vld [vmem:[%s1415_s3 + $0xa4] sm:$0xf]  ;;  %v1023_v32 = vor.u32 %v1226_v27, %v1022_v26 }
  0x30   : > { %682 = vmatpush.bf16.msra.mxu0 %v1039_v19  ;;  %v1024_v33 = vld [vmem:[%s1415_s3 + $0xb0] sm:$0xf0]  ;;  %v1256_v34 = vld [vmem:[%s1415_s3 + $0x1a4] sm:$0xf]  ;;  %v1151_v36 = vor.u32 %v1258_v30, %v1150_v29  ;;  %v1006_v38 = vld [vmem:[%s1415_s3 + $0x80] sm:$0xf] }
  0x31   : > { %v1152_v35 = vld [vmem:[%s1415_s3 + $0x1b0] sm:$0xf0]  ;;  %696 = vmatpush.bf16.msra.mxu1 %v1167_v20  ;;  %710 = vmatpush.bf16.msra.mxu2 %v1043_v24  ;;  %v1027_v37 = vor.u32 %v1224_v31, %v1024_v33  ;;  %v1222_v39 = vld [vmem:[%s1415_s3 + $0x8c] sm:$0xf0]  ;;  %v1134_v40 = vld [vmem:[%s1415_s3 + $0x180] sm:$0xf] }
  0x32   : > { %724 = vmatpush.bf16.msra.mxu3 %v1171_v28  ;;  %v1155_v41 = vor.u32 %v1256_v34, %v1152_v35  ;;  %v1254_v42 = vld [vmem:[%s1415_s3 + $0x18c] sm:$0xf0]  ;;  %v1220_v43 = vld [vmem:[%s1415_s3 + $0x84] sm:$0xf]  ;;  %v1008_v44 = vld [vmem:[%s1415_s3 + $0x90] sm:$0xf0]  ;;  %v1007_v47 = vor.u32 %v1222_v39, %v1006_v38 }
  0x33   : > { %v1252_v45 = vld [vmem:[%s1415_s3 + $0x184] sm:$0xf]  ;;  %v1136_v46 = vld [vmem:[%s1415_s3 + $0x190] sm:$0xf0]  ;;  %v1135_v48 = vor.u32 %v1254_v42, %v1134_v40  ;;  %v1011_v49 = vor.u32 %v1220_v43, %v1008_v44  ;;  %v990_v50 = vld [vmem:[%s1415_s3 + $0x60] sm:$0xf] }
  0x34   : > { %683 = vmatpush.bf16.msra.mxu0 %v1023_v32  ;;  %v1218_v51 = vld [vmem:[%s1415_s3 + $0x6c] sm:$0xf0]  ;;  %v1118_v52 = vld [vmem:[%s1415_s3 + $0x160] sm:$0xf]  ;;  %v1139_v53 = vor.u32 %v1252_v45, %v1136_v46  ;;  %v1216_v55 = vld [vmem:[%s1415_s3 + $0x64] sm:$0xf] }
  0x35   : > { %697 = vmatpush.bf16.msra.mxu1 %v1151_v36  ;;  %711 = vmatpush.bf16.msra.mxu2 %v1027_v37  ;;  %v1250_v54 = vld [vmem:[%s1415_s3 + $0x16c] sm:$0xf0]  ;;  %v992_v56 = vld [vmem:[%s1415_s3 + $0x70] sm:$0xf0]  ;;  %v1248_v57 = vld [vmem:[%s1415_s3 + $0x164] sm:$0xf]  ;;  %v991_v59 = vor.u32 %v1218_v51, %v990_v50 }
  0x36   : > { %725 = vmatpush.bf16.msra.mxu3 %v1155_v41  ;;  %v1120_v58 = vld [vmem:[%s1415_s3 + $0x170] sm:$0xf0]  ;;  %v1119_v60 = vor.u32 %v1250_v54, %v1118_v52  ;;  %v995_v61 = vor.u32 %v1216_v55, %v992_v56  ;;  %v974_v62 = vld [vmem:[%s1415_s3 + $0x40] sm:$0xf]  ;;  %v1214_v63 = vld [vmem:[%s1415_s3 + $0x4c] sm:$0xf0] }
  0x37   : > { %v1102_v0 = vld [vmem:[%s1415_s3 + $0x140] sm:$0xf]  ;;  %v1123_v1 = vor.u32 %v1248_v57, %v1120_v58  ;;  %v1246_v2 = vld [vmem:[%s1415_s3 + $0x14c] sm:$0xf0]  ;;  %v1212_v3 = vld [vmem:[%s1415_s3 + $0x44] sm:$0xf]  ;;  %v975_v7 = vor.u32 %v1214_v63, %v974_v62 }
  0x38   : > { %684 = vmatpush.bf16.msra.mxu0 %v1007_v47  ;;  %v976_v4 = vld [vmem:[%s1415_s3 + $0x50] sm:$0xf0]  ;;  %v1244_v5 = vld [vmem:[%s1415_s3 + $0x144] sm:$0xf]  ;;  %v1103_v8 = vor.u32 %v1246_v2, %v1102_v0  ;;  %v958_v10 = vld [vmem:[%s1415_s3 + $0x20] sm:$0xf] }
  0x39   : > { %698 = vmatpush.bf16.msra.mxu1 %v1135_v48  ;;  %712 = vmatpush.bf16.msra.mxu2 %v1011_v49  ;;  %v1104_v6 = vld [vmem:[%s1415_s3 + $0x150] sm:$0xf0]  ;;  %v979_v9 = vor.u32 %v1212_v3, %v976_v4  ;;  %v1210_v11 = vld [vmem:[%s1415_s3 + $0x2c] sm:$0xf0]  ;;  %v1086_v12 = vld [vmem:[%s1415_s3 + $0x120] sm:$0xf] }
  0x3a   : > { %726 = vmatpush.bf16.msra.mxu3 %v1139_v53  ;;  %v1107_v13 = vor.u32 %v1244_v5, %v1104_v6  ;;  %v1242_v14 = vld [vmem:[%s1415_s3 + $0x12c] sm:$0xf0]  ;;  %v1208_v15 = vld [vmem:[%s1415_s3 + $0x24] sm:$0xf]  ;;  %v960_v16 = vld [vmem:[%s1415_s3 + $0x30] sm:$0xf0]  ;;  %v959_v19 = vor.u32 %v1210_v11, %v958_v10 }
  0x3b   : > { %v1240_v17 = vld [vmem:[%s1415_s3 + $0x124] sm:$0xf]  ;;  %v1088_v18 = vld [vmem:[%s1415_s3 + $0x130] sm:$0xf0]  ;;  %v942_v20 = vld [vmem:[%s1415_s3] sm:$0xf]  ;;  %v1087_v23 = vor.u32 %v1242_v14, %v1086_v12  ;;  %v963_v24 = vor.u32 %v1208_v15, %v960_v16 }
  0x3c   : > { %685 = vmatpush.bf16.msra.mxu0 %v991_v59  ;;  %v1206_v21 = vld [vmem:[%s1415_s3 + $0xc] sm:$0xf0]  ;;  %v1070_v22 = vld [vmem:[%s1415_s3 + $0x100] sm:$0xf]  ;;  %v1204_v26 = vld [vmem:[%s1415_s3 + $0x4] sm:$0xf]  ;;  %v1091_v28 = vor.u32 %v1240_v17, %v1088_v18 }
  0x3d   : > { %699 = vmatpush.bf16.msra.mxu1 %v1119_v60  ;;  %713 = vmatpush.bf16.msra.mxu2 %v995_v61  ;;  %v1238_v25 = vld [vmem:[%s1415_s3 + $0x10c] sm:$0xf0]  ;;  %v944_v27 = vld [vmem:[%s1415_s3 + $0x10] sm:$0xf0]  ;;  %v1236_v29 = vld [vmem:[%s1415_s3 + $0x104] sm:$0xf]  ;;  %v943_v35 = vor.u32 %v1206_v21, %v942_v20 }
  0x3e   : > { %727 = vmatpush.bf16.msra.mxu3 %v1123_v1  ;;  %v1072_v30 = vld [vmem:[%s1415_s3 + $0x110] sm:$0xf0]  ;;  %v1062_v31 = vld [vmem:[%s1415_s3 + $0xe8] sm:$0xf]  ;;  %v1235_v32 = vld [vmem:[%s1415_s3 + $0xf4] sm:$0xf0]  ;;  %v1071_v39 = vor.u32 %v1238_v25, %v1070_v22  ;;  %v947_v40 = vor.u32 %v1204_v26, %v944_v27 }
  0x3f   : > { %v1190_v33 = vld [vmem:[%s1415_s3 + $0x1e8] sm:$0xf]  ;;  %v1267_v34 = vld [vmem:[%s1415_s3 + $0x1f4] sm:$0xf0]  ;;  %v1233_v36 = vld [vmem:[%s1415_s3 + $0xec] sm:$0xf]  ;;  %v1075_v44 = vor.u32 %v1236_v29, %v1072_v30  ;;  %v1063_v45 = vor.u32 %v1235_v32, %v1062_v31 }
  0x40   : > { %686 = vmatpush.bf16.msra.mxu0 %v975_v7  ;;  %v1064_v37 = vld [vmem:[%s1415_s3 + $0xf8] sm:$0xf0]  ;;  %v1265_v38 = vld [vmem:[%s1415_s3 + $0x1ec] sm:$0xf]  ;;  %v934_v42 = vld [vmem:[%s1417_s4] sm:$0xf]  ;;  %v1191_v48 = vor.u32 %v1267_v34, %v1190_v33 }
  0x41   : > { %700 = vmatpush.bf16.msra.mxu1 %v1103_v8  ;;  %714 = vmatpush.bf16.msra.mxu2 %v979_v9  ;;  %v1192_v41 = vld [vmem:[%s1415_s3 + $0x1f8] sm:$0xf0]  ;;  %v1203_v43 = vld [vmem:[%s1417_s4 + $0x4] sm:$0xf0]  ;;  %v1202_v46 = vld [vmem:[%s1417_s4 + $0x4] sm:$0xf]  ;;  %v1067_v49 = vor.u32 %v1233_v36, %v1064_v37 }
  0x42   : > { %728 = vmatpush.bf16.msra.mxu3 %v1107_v13  ;;  %v936_v47 = vld [vmem:[%s1417_s4 + $0x8] sm:$0xf0]  ;;  %v1046_v50 = vld [vmem:[%s1415_s3 + $0xc8] sm:$0xf]  ;;  %v1231_v51 = vld [vmem:[%s1415_s3 + $0xd4] sm:$0xf0]  ;;  %v1195_v53 = vor.u32 %v1265_v38, %v1192_v41  ;;  %v1526_v57 = vor.u32 %v1203_v43, %v934_v42 }
  0x43   : > { %v1174_v52 = vld [vmem:[%s1415_s3 + $0x1c8] sm:$0xf]  ;;  %v1263_v54 = vld [vmem:[%s1415_s3 + $0x1d4] sm:$0xf0]  ;;  %v1229_v55 = vld [vmem:[%s1415_s3 + $0xcc] sm:$0xf]  ;;  %v1530_v60 = vor.u32 %v1202_v46, %v936_v47  ;;  %v1047_v61 = vor.u32 %v1231_v51, %v1046_v50 }
  0x44   : > { %687 = vmatpush.bf16.msra.mxu0 %v959_v19  ;;  %v1048_v56 = vld [vmem:[%s1415_s3 + $0xd8] sm:$0xf0]  ;;  %v1261_v58 = vld [vmem:[%s1415_s3 + $0x1cc] sm:$0xf]  ;;  %v1175_v62 = vor.u32 %v1263_v54, %v1174_v52  ;;  %v1030_v0 = vld [vmem:[%s1415_s3 + $0xa8] sm:$0xf] }
  0x45   : > { %701 = vmatpush.bf16.msra.mxu1 %v1087_v23  ;;  %715 = vmatpush.bf16.msra.mxu2 %v963_v24  ;;  %v1176_v59 = vld [vmem:[%s1415_s3 + $0x1d8] sm:$0xf0]  ;;  %v1051_v63 = vor.u32 %v1229_v55, %v1048_v56  ;;  %v1227_v1 = vld [vmem:[%s1415_s3 + $0xb4] sm:$0xf0]  ;;  %v1158_v2 = vld [vmem:[%s1415_s3 + $0x1a8] sm:$0xf] }
  0x46   : > { %729 = vmatpush.bf16.msra.mxu3 %v1091_v28  ;;  %v1179_v3 = vor.u32 %v1261_v58, %v1176_v59  ;;  %v1259_v4 = vld [vmem:[%s1415_s3 + $0x1b4] sm:$0xf0]  ;;  %v1225_v5 = vld [vmem:[%s1415_s3 + $0xac] sm:$0xf]  ;;  %v1032_v6 = vld [vmem:[%s1415_s3 + $0xb8] sm:$0xf0]  ;;  %v1031_v9 = vor.u32 %v1227_v1, %v1030_v0 }
  0x47   : > { %v1257_v7 = vld [vmem:[%s1415_s3 + $0x1ac] sm:$0xf]  ;;  %v1160_v8 = vld [vmem:[%s1415_s3 + $0x1b8] sm:$0xf0]  ;;  %v1159_v10 = vor.u32 %v1259_v4, %v1158_v2  ;;  %v1035_v11 = vor.u32 %v1225_v5, %v1032_v6  ;;  %v1014_v12 = vld [vmem:[%s1415_s3 + $0x88] sm:$0xf] }
  0x48   : > { %688 = vmatpush.bf16.msra.mxu0 %v943_v35  ;;  %v1223_v13 = vld [vmem:[%s1415_s3 + $0x94] sm:$0xf0]  ;;  %v1142_v14 = vld [vmem:[%s1415_s3 + $0x188] sm:$0xf]  ;;  %v1163_v15 = vor.u32 %v1257_v7, %v1160_v8  ;;  %v1221_v17 = vld [vmem:[%s1415_s3 + $0x8c] sm:$0xf] }
  0x49   : > { %702 = vmatpush.bf16.msra.mxu1 %v1071_v39  ;;  %716 = vmatpush.bf16.msra.mxu2 %v947_v40  ;;  %v1255_v16 = vld [vmem:[%s1415_s3 + $0x194] sm:$0xf0]  ;;  %v1016_v18 = vld [vmem:[%s1415_s3 + $0x98] sm:$0xf0]  ;;  %v1253_v19 = vld [vmem:[%s1415_s3 + $0x18c] sm:$0xf]  ;;  %v1015_v21 = vor.u32 %v1223_v13, %v1014_v12 }
  0x4a   : > { %730 = vmatpush.bf16.msra.mxu3 %v1075_v44  ;;  %v1144_v20 = vld [vmem:[%s1415_s3 + $0x198] sm:$0xf0]  ;;  %v1143_v22 = vor.u32 %v1255_v16, %v1142_v14  ;;  %v1019_v23 = vor.u32 %v1221_v17, %v1016_v18  ;;  %v998_v24 = vld [vmem:[%s1415_s3 + $0x68] sm:$0xf]  ;;  %v1219_v25 = vld [vmem:[%s1415_s3 + $0x74] sm:$0xf0] }
  0x4b   : > { %689 = vmatmul.bf16.vlgmr.msra.gmra.mxu0 %v1526_v57  ;;  %v1126_v26 = vld [vmem:[%s1415_s3 + $0x168] sm:$0xf]  ;;  %v1147_v27 = vor.u32 %v1253_v19, %v1144_v20  ;;  %v1251_v28 = vld [vmem:[%s1415_s3 + $0x174] sm:$0xf0]  ;;  %v1217_v29 = vld [vmem:[%s1415_s3 + $0x6c] sm:$0xf]  ;;  %v999_v33 = vor.u32 %v1219_v25, %v998_v24 }
  0x4c   : > { %737 = vmatpush.bf16.msrb.mxu0 %v1063_v45  ;;  %717 = vmatmul.bf16.vlgmr.msra.gmra.mxu2 %v1526_v57  ;;  %v1000_v30 = vld [vmem:[%s1415_s3 + $0x78] sm:$0xf0]  ;;  %v1249_v31 = vld [vmem:[%s1415_s3 + $0x16c] sm:$0xf]  ;;  %v1127_v34 = vor.u32 %v1251_v28, %v1126_v26  ;;  %v982_v36 = vld [vmem:[%s1415_s3 + $0x48] sm:$0xf] }
  0x4d   : > { %751 = vmatpush.bf16.msrb.mxu1 %v1191_v48  ;;  %765 = vmatpush.bf16.msrb.mxu2 %v1067_v49  ;;  %v1128_v32 = vld [vmem:[%s1415_s3 + $0x178] sm:$0xf0]  ;;  %v1003_v35 = vor.u32 %v1217_v29, %v1000_v30  ;;  %v1215_v37 = vld [vmem:[%s1415_s3 + $0x54] sm:$0xf0]  ;;  %v1110_v38 = vld [vmem:[%s1415_s3 + $0x148] sm:$0xf] }
  0x4e   : > { %779 = vmatpush.bf16.msrb.mxu3 %v1195_v53  ;;  %703 = vmatmul.bf16.vlgmr.msra.gmra.mxu1 %v1530_v60  ;;  %v1131_v39 = vor.u32 %v1249_v31, %v1128_v32  ;;  %v1247_v40 = vld [vmem:[%s1415_s3 + $0x154] sm:$0xf0]  ;;  %v1213_v41 = vld [vmem:[%s1415_s3 + $0x4c] sm:$0xf]  ;;  %v984_v42 = vld [vmem:[%s1415_s3 + $0x58] sm:$0xf0]  ;;  %v983_v45 = vor.u32 %v1215_v37, %v982_v36 }
  0x4f   : > { %731 = vmatmul.bf16.vlgmr.msra.gmra.mxu3 %v1530_v60  ;;  %v1245_v43 = vld [vmem:[%s1415_s3 + $0x14c] sm:$0xf]  ;;  %v1112_v44 = vld [vmem:[%s1415_s3 + $0x158] sm:$0xf0]  ;;  %v1111_v46 = vor.u32 %v1247_v40, %v1110_v38  ;;  %v987_v47 = vor.u32 %v1213_v41, %v984_v42  ;;  %v966_v48 = vld [vmem:[%s1415_s3 + $0x28] sm:$0xf] }
  0x50   : > { %738 = vmatpush.bf16.msrb.mxu0 %v1047_v61  ;;  %v1211_v49 = vld [vmem:[%s1415_s3 + $0x34] sm:$0xf0]  ;;  %v1094_v50 = vld [vmem:[%s1415_s3 + $0x128] sm:$0xf]  ;;  %v1115_v51 = vor.u32 %v1245_v43, %v1112_v44  ;;  %v1209_v53 = vld [vmem:[%s1415_s3 + $0x2c] sm:$0xf] }
  0x51   : > { %752 = vmatpush.bf16.msrb.mxu1 %v1175_v62  ;;  %766 = vmatpush.bf16.msrb.mxu2 %v1051_v63  ;;  %v1243_v52 = vld [vmem:[%s1415_s3 + $0x134] sm:$0xf0]  ;;  %v968_v54 = vld [vmem:[%s1415_s3 + $0x38] sm:$0xf0]  ;;  %v1241_v55 = vld [vmem:[%s1415_s3 + $0x12c] sm:$0xf]  ;;  %v967_v58 = vor.u32 %v1211_v49, %v966_v48 }
  0x52   : > { %780 = vmatpush.bf16.msrb.mxu3 %v1179_v3  ;;  %v1096_v56 = vld [vmem:[%s1415_s3 + $0x138] sm:$0xf0]  ;;  %v1095_v59 = vor.u32 %v1243_v52, %v1094_v50  ;;  %v971_v61 = vor.u32 %v1209_v53, %v968_v54  ;;  %v950_v62 = vld [vmem:[%s1415_s3 + $0x8] sm:$0xf]  ;;  %v1207_v63 = vld [vmem:[%s1415_s3 + $0x14] sm:$0xf0] }
  0x53   : > { %v1078_v0 = vld [vmem:[%s1415_s3 + $0x108] sm:$0xf]  ;;  %v1099_v1 = vor.u32 %v1241_v55, %v1096_v56  ;;  %v1239_v2 = vld [vmem:[%s1415_s3 + $0x114] sm:$0xf0]  ;;  %v1205_v3 = vld [vmem:[%s1415_s3 + $0xc] sm:$0xf]  ;;  %v951_v7 = vor.u32 %v1207_v63, %v950_v62 }
  0x54   : > { %739 = vmatpush.bf16.msrb.mxu0 %v1031_v9  ;;  %v952_v4 = vld [vmem:[%s1415_s3 + $0x18] sm:$0xf0]  ;;  %v1237_v5 = vld [vmem:[%s1415_s3 + $0x10c] sm:$0xf]  ;;  %v1079_v8 = vor.u32 %v1239_v2, %v1078_v0  ;;  %v277_v12 = vld [vmem:[%s1653_s2] sm:$0xff] }
  0x55   : > { %753 = vmatpush.bf16.msrb.mxu1 %v1159_v10  ;;  %767 = vmatpush.bf16.msrb.mxu2 %v1035_v11  ;;  %v1080_v6 = vld [vmem:[%s1415_s3 + $0x118] sm:$0xf0]  ;;  %v955_v9 = vor.u32 %v1205_v3, %v952_v4  ;;  %v278_v17 = vld [vmem:[%s1653_s2 + $0x8] sm:$0xff]  ;;  %v281_v20 = vld [vmem:[%s1653_s2 + $0x20] sm:$0xff] }
  0x56   : > { %781 = vmatpush.bf16.msrb.mxu3 %v1163_v15  ;;  %v1083_v10 = vor.u32 %v1237_v5, %v1080_v6  ;;  %v282_v25 = vld [vmem:[%s1653_s2 + $0x28] sm:$0xff]  ;;  %v279_v30 = vld [vmem:[%s1653_s2 + $0x10] sm:$0xff] }
  0x58   : > { %740 = vmatpush.bf16.msrb.mxu0 %v1015_v21 }
  0x59   : > { %754 = vmatpush.bf16.msrb.mxu1 %v1143_v22  ;;  %768 = vmatpush.bf16.msrb.mxu2 %v1019_v23 }
  0x5a   : > { %782 = vmatpush.bf16.msrb.mxu3 %v1147_v27 }
  0x5c   : > { %741 = vmatpush.bf16.msrb.mxu0 %v999_v33 }
  0x5d   : > { %755 = vmatpush.bf16.msrb.mxu1 %v1127_v34  ;;  %769 = vmatpush.bf16.msrb.mxu2 %v1003_v35  ;;  %v280_v35 = vld [vmem:[%s1653_s2 + $0x18] sm:$0xff] }
  0x5e   : > { %783 = vmatpush.bf16.msrb.mxu3 %v1131_v39  ;;  %v283_v39 = vld [vmem:[%s1653_s2 + $0x30] sm:$0xff] }
  0x60   : > { %742 = vmatpush.bf16.msrb.mxu0 %v983_v45  ;;  %v284_v45 = vld [vmem:[%s1653_s2 + $0x38] sm:$0xff] }
  0x61   : > { %756 = vmatpush.bf16.msrb.mxu1 %v1111_v46  ;;  %770 = vmatpush.bf16.msrb.mxu2 %v987_v47 }
  0x62   : > { %784 = vmatpush.bf16.msrb.mxu3 %v1115_v51 }
  0x64   : > { %743 = vmatpush.bf16.msrb.mxu0 %v967_v58 }
  0x65   : > { %757 = vmatpush.bf16.msrb.mxu1 %v1095_v59  ;;  %771 = vmatpush.bf16.msrb.mxu2 %v971_v61 }
  0x66   : > { %785 = vmatpush.bf16.msrb.mxu3 %v1099_v1 }
  0x68   : > { %744 = vmatpush.bf16.msrb.mxu0 %v951_v7 }
  0x69   : > { %758 = vmatpush.bf16.msrb.mxu1 %v1079_v8  ;;  %772 = vmatpush.bf16.msrb.mxu2 %v955_v9 }
  0x6a   : > { %786 = vmatpush.bf16.msrb.mxu3 %v1083_v10 }
  0x6b   : > { %745 = vmatmul.bf16.vlgmr.msrb.gmra.mxu0 %v1526_v57 }
  0x6c   : > { %759 = vmatmul.bf16.vlgmr.msrb.gmra.mxu1 %v1530_v60  ;;  %773 = vmatmul.bf16.vlgmr.msrb.gmra.mxu2 %v1526_v57 }
  0x6d   : > { %787 = vmatmul.bf16.vlgmr.msrb.gmra.mxu3 %v1530_v60 }
  0xc8   : > { %v690_v11 = vpop.f32.mrf.mxu0 }
  0xcb   : > { %v704_v13 = vpop.f32.mrf.mxu1 }
  0xcc   : > { %v705_v14 = vadd.f32 %v704_v13, %v690_v11 }
  0xce   : > { %v793_v15 = vadd.f32 %v705_v14, %v277_v12 }
  0xcf   : > { %v718_v16 = vpop.f32.mrf.mxu2 }
  0xd0   : > { %801 = vst [vmem:[%s1653_s2] sm:$0xff] %v793_v15  ;;  %v692_v60 = vpop.f32.mrf.mxu0 }
  0xd2   : > { %v732_v57 = vpop.f32.mrf.mxu3 }
  0xd3   : > { %v733_v18 = vadd.f32 %v732_v57, %v718_v16  ;;  %v706_v21 = vpop.f32.mrf.mxu1 }
  0xd4   : > { %v707_v22 = vadd.f32 %v706_v21, %v692_v60 }
  0xd5   : > { %v794_v19 = vadd.f32 %v733_v18, %v278_v17 }
  0xd6   : > { %v797_v23 = vadd.f32 %v707_v22, %v281_v20 }
  0xd7   : > { %802 = vst [vmem:[%s1653_s2 + $0x8] sm:$0xff] %v794_v19  ;;  %v720_v24 = vpop.f32.mrf.mxu2 }
  0xd8   : > { %805 = vst [vmem:[%s1653_s2 + $0x20] sm:$0xff] %v797_v23 }
  0xda   : > { %v734_v26 = vpop.f32.mrf.mxu3 }
  0xdb   : > { %v735_v27 = vadd.f32 %v734_v26, %v720_v24 }
  0xdd   : > { %v798_v28 = vadd.f32 %v735_v27, %v282_v25 }
  0xdf   : > { %806 = vst [vmem:[%s1653_s2 + $0x28] sm:$0xff] %v798_v28 }
  0xe8   : > { %v746_v29 = vpop.f32.mrf.mxu0 }
  0xe9   : > { %v760_v31 = vpop.f32.mrf.mxu1 }
  0xea   : > { %v761_v32 = vadd.f32 %v760_v31, %v746_v29 }
  0xec   : > { %v795_v33 = vadd.f32 %v761_v32, %v279_v30 }
  0xee   : > { %803 = vst [vmem:[%s1653_s2 + $0x10] sm:$0xff] %v795_v33 }
  0xef   : > { %v774_v34 = vpop.f32.mrf.mxu2 }
  0xf0   : > { %v788_v36 = vpop.f32.mrf.mxu3  ;;  %v748_v37 = vpop.f32.mrf.mxu0 }
  0xf1   : > { %v789_v38 = vadd.f32 %v788_v36, %v774_v34  ;;  %v762_v40 = vpop.f32.mrf.mxu1 }
  0xf2   : > { %v763_v41 = vadd.f32 %v762_v40, %v748_v37 }
  0xf3   : > { %v796_v42 = vadd.f32 %v789_v38, %v280_v35 }
  0xf4   : > { %v799_v43 = vadd.f32 %v763_v41, %v283_v39 }
  0xf5   : > { %804 = vst [vmem:[%s1653_s2 + $0x18] sm:$0xff] %v796_v42 }
  0xf6   : > { %807 = vst [vmem:[%s1653_s2 + $0x30] sm:$0xff] %v799_v43 }
  0xf7   : > { %v776_v44 = vpop.f32.mrf.mxu2 }
  0xf8   : > { %v790_v46 = vpop.f32.mrf.mxu3 }
  0xf9   : > { %v791_v47 = vadd.f32 %v790_v46, %v776_v44 }
  0xfb   : > { %v800_v48 = vadd.f32 %v791_v47, %v284_v45 }
  0xfd   : > { %808 = vst [vmem:[%s1653_s2 + $0x38] sm:$0xff] %v800_v48 }
  0xfe PF: > { %s12_s13 = sadd.s32 1, %s1347_s13   ;;  %s1654_s9 = smov %s1335_s10 }
  0xff   : > { %p9_p11 = scmp.ge.s32.totalorder %s12_s13, 11   ;;  %s1655_s10 = smov %s1400_s17 }
 0x100   : > { %s1656_s11 = smov %s1343_s12  ;;  %s1657_s12 = smov %s1659_s14 }
 0x101   :  { %11 = sbr.rel (!%p9_p11) target bundleno = 3 (0x3), region = 108 }

// kernel: resnet_forward.72
= control target key start
LH: loop header
LB: loop body
LE: loop exit
PB: predicated region body
PF: predicated region fallthrough
CT: control target
= control target key end

     0   :  { %s1365_s9 = smov 0   ;;  %s1367_s10 = smov 0   ;;  %s1651_s0 = inlined_call_operand.vmem [shape: bf16[16,4608], index: 0, kind: input, shape index: {}]   ;;  %s1652_s1 = inlined_call_operand.vmem [shape: bf16[4608,512], index: 1, kind: input, shape index: {}]   ;;  %s1653_s2 = inlined_call_operand.vmem [shape: f32[16,512], index: 2, kind: output, shape index: {}]  }
   0x1   :  { %s1369_s11 = smov 0   ;;  %s1371_s12 = smov 0  }
   0x2   :  { %s1373_s13 = smov 0  }
   0x3 LB: > { %s24_s14 = sadd.s32 1, %s1343_s12  ;;  %p47_p1 = scmp.ne.s32.totalorder %s1335_s10, %s1331_s9  ;;  %s1347_s13 = sphi %s1373_s13, %s12_s13   ;;  %s1343_s12 = sphi %s1371_s12, %s1657_s12   ;;  %s1339_s11 = sphi %s1369_s11, %s1656_s11   ;;  %s1335_s10 = sphi %s1367_s10, %s1655_s10   ;;  %s1331_s9 = sphi %s1365_s9, %s1654_s9  }
   0x4   : > { %p25_p0 = scmp.ge.s32.totalorder %s24_s14, 18  ;;  %p48_p2 = scmp.eq.s32.totalorder %s1347_s13, 0 }
   0x5   : > { %s40_s16 = sadd.s32 1, %s1335_s10  ;;  %p922_p5 = scmp.ge.s32.totalorder %s1347_s13, 18 }
   0x6   : > { %s1659_s14 = smov (%p25_p0, %s24_s14), 0  ;;  %p49_p3 = por %p48_p2, %p47_p1 }
   0x7   : > { %s36_s15 = ssub.s32 %s1343_s12, %s1659_s14  ;;  %129 = sbr.rel (%p922_p5) target bundleno = 18 (0x12), region = 16 }
   0x8   : > { %p38_p4 = scmp.eq.s32.totalorder %s36_s15, 0 }
   0xa   : > { %s1400_s17 = scalar_select %p38_p4, %s1335_s10, %s40_s16  }
   0xc   : > { %132 = sbr.rel (!%p49_p3) target bundleno = 18 (0x12), region = 20  ;;  %s134_s18 = sand.u32 (%p49_p3), 1, %s1335_s10  }
   0xd   : > { %s1200_s19 = sshll.u32 (%p49_p3), %s1343_s12, 3  ;;  %s923_s20 = sshll.u32 (%p49_p3), %s134_s18, 4 }
   0xe   : > { %s142_s23 = scalar_lea.vmem (%p49_p3), %s1651_s0, %s1200_s19  ;;  %s136_s24 = scalar_lea.vmem (%p49_p3), [#allocation2], %s923_s20 }
   0xf   : > { %v173_v0 = vld [vmem:[%s142_s23] sm:$0xff] (%p49_p3)  ;;  %v175_v1 = vld [vmem:[%s142_s23 + $0x90] sm:$0xff] (%p49_p3) }
  0x10   : > { %174 = vst [vmem:[%s136_s24] sm:$0xff] (%p49_p3), %v173_v0 }
  0x11   : > { %176 = vst [vmem:[%s136_s24 + $0x8] sm:$0xff] %v175_v1 }
  0x12 PF: > { %p926_p6 = scmp.ge.s32.totalorder %s1347_s13, 1  ;;  %p196_p7 = scmp.lt.s32.totalorder %s1347_s13, 19 }
  0x14   : > { %p197_p8 = pnand %p926_p6, %p196_p7 }
  0x15   : > { %s203_s25 = sand.u32 (!%p197_p8), 1, %s1331_s9   ;;  %s928_s26 = sshll.u32 (!%p197_p8), %s1339_s11, 5 }
  0x16   : > { %200 = sbr.rel (%p197_p8) target bundleno = 254 (0xfe), region = 62  ;;  %s927_s27 = sshll.u32 (!%p197_p8), %s203_s25, 4 }
  0x17   : > { %p243_p9 = scmp.lt.s32.totalorder (!%p197_p8), %s928_s26, 575  ;;  %s1417_s4 = scalar_lea.vmem (!%p197_p8), [#allocation2], %s927_s27 }
  0x18   : > { %p931_p10 = scmp.ne.s32.totalorder (!%p197_p8), %s1339_s11, 0 }
  0x1b   : > { %s1661_s26 = smov (!%p243_p9, %s928_s26), 575  ;;  %268 = sbr.rel (%p931_p10) target bundleno = 41 (0x29), region = 70 }
  0x1c   : > { %s1201_s28 = sshll.u32 %s1661_s26, 4 }
  0x1d   : > { %s1415_s3 = scalar_lea.vmem %s1652_s1, %s1201_s28 }
  0x20   : > { %v1349_v2 = vmov 0.0  }
  0x21   : > { %269 = vst [vmem:[%s1653_s2] sm:$0xff] %v1349_v2 }
  0x22   : > { %270 = vst [vmem:[%s1653_s2 + $0x8] sm:$0xff] %v1349_v2 }
  0x23   : > { %271 = vst [vmem:[%s1653_s2 + $0x10] sm:$0xff] %v1349_v2 }
  0x24   : > { %272 = vst [vmem:[%s1653_s2 + $0x18] sm:$0xff] %v1349_v2 }
  0x25   : > { %273 = vst [vmem:[%s1653_s2 + $0x20] sm:$0xff] %v1349_v2 }
  0x26   : > { %274 = vst [vmem:[%s1653_s2 + $0x28] sm:$0xff] %v1349_v2 }
  0x27   : > { %275 = vst [vmem:[%s1653_s2 + $0x30] sm:$0xff] %v1349_v2 }
  0x28   : > { %276 = vst [vmem:[%s1653_s2 + $0x38] sm:$0xff] %v1349_v2 }
  0x29 PF: > { %v1054_v3 = vld [vmem:[%s1415_s3 + $0xe0] sm:$0xf]  ;;  %v1234_v4 = vld [vmem:[%s1415_s3 + $0xec] sm:$0xf0]  ;;  %v1232_v8 = vld [vmem:[%s1415_s3 + $0xe4] sm:$0xf] }
  0x2a   : > { %v1182_v5 = vld [vmem:[%s1415_s3 + $0x1e0] sm:$0xf]  ;;  %v1055_v6 = vor.u32 %v1234_v4, %v1054_v3  ;;  %v1266_v7 = vld [vmem:[%s1415_s3 + $0x1ec] sm:$0xf0]  ;;  %v1056_v9 = vld [vmem:[%s1415_s3 + $0xf0] sm:$0xf0] }
  0x2b   : > { %v1183_v10 = vor.u32 %v1266_v7, %v1182_v5  ;;  %v1059_v11 = vor.u32 %v1232_v8, %v1056_v9  ;;  %v1264_v12 = vld [vmem:[%s1415_s3 + $0x1e4] sm:$0xf]  ;;  %v1184_v13 = vld [vmem:[%s1415_s3 + $0x1f0] sm:$0xf0]  ;;  %v1038_v14 = vld [vmem:[%s1415_s3 + $0xc0] sm:$0xf] }
  0x2c   : > { %681 = vmatpush.bf16.msra.mxu0 %v1055_v6  ;;  %v1187_v15 = vor.u32 %v1264_v12, %v1184_v13  ;;  %v1230_v16 = vld [vmem:[%s1415_s3 + $0xcc] sm:$0xf0]  ;;  %v1166_v17 = vld [vmem:[%s1415_s3 + $0x1c0] sm:$0xf]  ;;  %v1228_v21 = vld [vmem:[%s1415_s3 + $0xc4] sm:$0xf] }
  0x2d   : > { %v1262_v18 = vld [vmem:[%s1415_s3 + $0x1cc] sm:$0xf0]  ;;  %695 = vmatpush.bf16.msra.mxu1 %v1183_v10  ;;  %709 = vmatpush.bf16.msra.mxu2 %v1059_v11  ;;  %v1039_v19 = vor.u32 %v1230_v16, %v1038_v14  ;;  %v1040_v22 = vld [vmem:[%s1415_s3 + $0xd0] sm:$0xf0]  ;;  %v1260_v23 = vld [vmem:[%s1415_s3 + $0x1c4] sm:$0xf] }
  0x2e   : > { %v1167_v20 = vor.u32 %v1262_v18, %v1166_v17  ;;  %723 = vmatpush.bf16.msra.mxu3 %v1187_v15  ;;  %v1043_v24 = vor.u32 %v1228_v21, %v1040_v22  ;;  %v1168_v25 = vld [vmem:[%s1415_s3 + $0x1d0] sm:$0xf0]  ;;  %v1022_v26 = vld [vmem:[%s1415_s3 + $0xa0] sm:$0xf]  ;;  %v1226_v27 = vld [vmem:[%s1415_s3 + $0xac] sm:$0xf0] }
  0x2f   : > { %v1171_v28 = vor.u32 %v1260_v23, %v1168_v25  ;;  %v1150_v29 = vld [vmem:[%s1415_s3 + $0x1a0] sm:$0xf]  ;;  %v1258_v30 = vld [vmem:[%s1415_s3 + $0x1ac] sm:$0xf0]  ;;  %v1224_v31 = vld [vmem:[%s1415_s3 + $0xa4] sm:$0xf]  ;;  %v1023_v32 = vor.u32 %v1226_v27, %v1022_v26 }
  0x30   : > { %682 = vmatpush.bf16.msra.mxu0 %v1039_v19  ;;  %v1024_v33 = vld [vmem:[%s1415_s3 + $0xb0] sm:$0xf0]  ;;  %v1256_v34 = vld [vmem:[%s1415_s3 + $0x1a4] sm:$0xf]  ;;  %v1151_v36 = vor.u32 %v1258_v30, %v1150_v29  ;;  %v1006_v38 = vld [vmem:[%s1415_s3 + $0x80] sm:$0xf] }
  0x31   : > { %v1152_v35 = vld [vmem:[%s1415_s3 + $0x1b0] sm:$0xf0]  ;;  %696 = vmatpush.bf16.msra.mxu1 %v1167_v20  ;;  %710 = vmatpush.bf16.msra.mxu2 %v1043_v24  ;;  %v1027_v37 = vor.u32 %v1224_v31, %v1024_v33  ;;  %v1222_v39 = vld [vmem:[%s1415_s3 + $0x8c] sm:$0xf0]  ;;  %v1134_v40 = vld [vmem:[%s1415_s3 + $0x180] sm:$0xf] }
  0x32   : > { %724 = vmatpush.bf16.msra.mxu3 %v1171_v28  ;;  %v1155_v41 = vor.u32 %v1256_v34, %v1152_v35  ;;  %v1254_v42 = vld [vmem:[%s1415_s3 + $0x18c] sm:$0xf0]  ;;  %v1220_v43 = vld [vmem:[%s1415_s3 + $0x84] sm:$0xf]  ;;  %v1008_v44 = vld [vmem:[%s1415_s3 + $0x90] sm:$0xf0]  ;;  %v1007_v47 = vor.u32 %v1222_v39, %v1006_v38 }
  0x33   : > { %v1252_v45 = vld [vmem:[%s1415_s3 + $0x184] sm:$0xf]  ;;  %v1136_v46 = vld [vmem:[%s1415_s3 + $0x190] sm:$0xf0]  ;;  %v1135_v48 = vor.u32 %v1254_v42, %v1134_v40  ;;  %v1011_v49 = vor.u32 %v1220_v43, %v1008_v44  ;;  %v990_v50 = vld [vmem:[%s1415_s3 + $0x60] sm:$0xf] }
  0x34   : > { %683 = vmatpush.bf16.msra.mxu0 %v1023_v32  ;;  %v1218_v51 = vld [vmem:[%s1415_s3 + $0x6c] sm:$0xf0]  ;;  %v1118_v52 = vld [vmem:[%s1415_s3 + $0x160] sm:$0xf]  ;;  %v1139_v53 = vor.u32 %v1252_v45, %v1136_v46  ;;  %v1216_v55 = vld [vmem:[%s1415_s3 + $0x64] sm:$0xf] }
  0x35   : > { %697 = vmatpush.bf16.msra.mxu1 %v1151_v36  ;;  %711 = vmatpush.bf16.msra.mxu2 %v1027_v37  ;;  %v1250_v54 = vld [vmem:[%s1415_s3 + $0x16c] sm:$0xf0]  ;;  %v992_v56 = vld [vmem:[%s1415_s3 + $0x70] sm:$0xf0]  ;;  %v1248_v57 = vld [vmem:[%s1415_s3 + $0x164] sm:$0xf]  ;;  %v991_v59 = vor.u32 %v1218_v51, %v990_v50 }
  0x36   : > { %725 = vmatpush.bf16.msra.mxu3 %v1155_v41  ;;  %v1120_v58 = vld [vmem:[%s1415_s3 + $0x170] sm:$0xf0]  ;;  %v1119_v60 = vor.u32 %v1250_v54, %v1118_v52  ;;  %v995_v61 = vor.u32 %v1216_v55, %v992_v56  ;;  %v974_v62 = vld [vmem:[%s1415_s3 + $0x40] sm:$0xf]  ;;  %v1214_v63 = vld [vmem:[%s1415_s3 + $0x4c] sm:$0xf0] }
  0x37   : > { %v1102_v0 = vld [vmem:[%s1415_s3 + $0x140] sm:$0xf]  ;;  %v1123_v1 = vor.u32 %v1248_v57, %v1120_v58  ;;  %v1246_v2 = vld [vmem:[%s1415_s3 + $0x14c] sm:$0xf0]  ;;  %v1212_v3 = vld [vmem:[%s1415_s3 + $0x44] sm:$0xf]  ;;  %v975_v7 = vor.u32 %v1214_v63, %v974_v62 }
  0x38   : > { %684 = vmatpush.bf16.msra.mxu0 %v1007_v47  ;;  %v976_v4 = vld [vmem:[%s1415_s3 + $0x50] sm:$0xf0]  ;;  %v1244_v5 = vld [vmem:[%s1415_s3 + $0x144] sm:$0xf]  ;;  %v1103_v8 = vor.u32 %v1246_v2, %v1102_v0  ;;  %v958_v10 = vld [vmem:[%s1415_s3 + $0x20] sm:$0xf] }
  0x39   : > { %698 = vmatpush.bf16.msra.mxu1 %v1135_v48  ;;  %712 = vmatpush.bf16.msra.mxu2 %v1011_v49  ;;  %v1104_v6 = vld [vmem:[%s1415_s3 + $0x150] sm:$0xf0]  ;;  %v979_v9 = vor.u32 %v1212_v3, %v976_v4  ;;  %v1210_v11 = vld [vmem:[%s1415_s3 + $0x2c] sm:$0xf0]  ;;  %v1086_v12 = vld [vmem:[%s1415_s3 + $0x120] sm:$0xf] }
  0x3a   : > { %726 = vmatpush.bf16.msra.mxu3 %v1139_v53  ;;  %v1107_v13 = vor.u32 %v1244_v5, %v1104_v6  ;;  %v1242_v14 = vld [vmem:[%s1415_s3 + $0x12c] sm:$0xf0]  ;;  %v1208_v15 = vld [vmem:[%s1415_s3 + $0x24] sm:$0xf]  ;;  %v960_v16 = vld [vmem:[%s1415_s3 + $0x30] sm:$0xf0]  ;;  %v959_v19 = vor.u32 %v1210_v11, %v958_v10 }
  0x3b   : > { %v1240_v17 = vld [vmem:[%s1415_s3 + $0x124] sm:$0xf]  ;;  %v1088_v18 = vld [vmem:[%s1415_s3 + $0x130] sm:$0xf0]  ;;  %v942_v20 = vld [vmem:[%s1415_s3] sm:$0xf]  ;;  %v1087_v23 = vor.u32 %v1242_v14, %v1086_v12  ;;  %v963_v24 = vor.u32 %v1208_v15, %v960_v16 }
  0x3c   : > { %685 = vmatpush.bf16.msra.mxu0 %v991_v59  ;;  %v1206_v21 = vld [vmem:[%s1415_s3 + $0xc] sm:$0xf0]  ;;  %v1070_v22 = vld [vmem:[%s1415_s3 + $0x100] sm:$0xf]  ;;  %v1204_v26 = vld [vmem:[%s1415_s3 + $0x4] sm:$0xf]  ;;  %v1091_v28 = vor.u32 %v1240_v17, %v1088_v18 }
  0x3d   : > { %699 = vmatpush.bf16.msra.mxu1 %v1119_v60  ;;  %713 = vmatpush.bf16.msra.mxu2 %v995_v61  ;;  %v1238_v25 = vld [vmem:[%s1415_s3 + $0x10c] sm:$0xf0]  ;;  %v944_v27 = vld [vmem:[%s1415_s3 + $0x10] sm:$0xf0]  ;;  %v1236_v29 = vld [vmem:[%s1415_s3 + $0x104] sm:$0xf]  ;;  %v943_v35 = vor.u32 %v1206_v21, %v942_v20 }
  0x3e   : > { %727 = vmatpush.bf16.msra.mxu3 %v1123_v1  ;;  %v1072_v30 = vld [vmem:[%s1415_s3 + $0x110] sm:$0xf0]  ;;  %v1062_v31 = vld [vmem:[%s1415_s3 + $0xe8] sm:$0xf]  ;;  %v1235_v32 = vld [vmem:[%s1415_s3 + $0xf4] sm:$0xf0]  ;;  %v1071_v39 = vor.u32 %v1238_v25, %v1070_v22  ;;  %v947_v40 = vor.u32 %v1204_v26, %v944_v27 }
  0x3f   : > { %v1190_v33 = vld [vmem:[%s1415_s3 + $0x1e8] sm:$0xf]  ;;  %v1267_v34 = vld [vmem:[%s1415_s3 + $0x1f4] sm:$0xf0]  ;;  %v1233_v36 = vld [vmem:[%s1415_s3 + $0xec] sm:$0xf]  ;;  %v1075_v44 = vor.u32 %v1236_v29, %v1072_v30  ;;  %v1063_v45 = vor.u32 %v1235_v32, %v1062_v31 }
  0x40   : > { %686 = vmatpush.bf16.msra.mxu0 %v975_v7  ;;  %v1064_v37 = vld [vmem:[%s1415_s3 + $0xf8] sm:$0xf0]  ;;  %v1265_v38 = vld [vmem:[%s1415_s3 + $0x1ec] sm:$0xf]  ;;  %v934_v42 = vld [vmem:[%s1417_s4] sm:$0xf]  ;;  %v1191_v48 = vor.u32 %v1267_v34, %v1190_v33 }
  0x41   : > { %700 = vmatpush.bf16.msra.mxu1 %v1103_v8  ;;  %714 = vmatpush.bf16.msra.mxu2 %v979_v9  ;;  %v1192_v41 = vld [vmem:[%s1415_s3 + $0x1f8] sm:$0xf0]  ;;  %v1203_v43 = vld [vmem:[%s1417_s4 + $0x4] sm:$0xf0]  ;;  %v1202_v46 = vld [vmem:[%s1417_s4 + $0x4] sm:$0xf]  ;;  %v1067_v49 = vor.u32 %v1233_v36, %v1064_v37 }
  0x42   : > { %728 = vmatpush.bf16.msra.mxu3 %v1107_v13  ;;  %v936_v47 = vld [vmem:[%s1417_s4 + $0x8] sm:$0xf0]  ;;  %v1046_v50 = vld [vmem:[%s1415_s3 + $0xc8] sm:$0xf]  ;;  %v1231_v51 = vld [vmem:[%s1415_s3 + $0xd4] sm:$0xf0]  ;;  %v1195_v53 = vor.u32 %v1265_v38, %v1192_v41  ;;  %v1526_v57 = vor.u32 %v1203_v43, %v934_v42 }
  0x43   : > { %v1174_v52 = vld [vmem:[%s1415_s3 + $0x1c8] sm:$0xf]  ;;  %v1263_v54 = vld [vmem:[%s1415_s3 + $0x1d4] sm:$0xf0]  ;;  %v1229_v55 = vld [vmem:[%s1415_s3 + $0xcc] sm:$0xf]  ;;  %v1530_v60 = vor.u32 %v1202_v46, %v936_v47  ;;  %v1047_v61 = vor.u32 %v1231_v51, %v1046_v50 }
  0x44   : > { %687 = vmatpush.bf16.msra.mxu0 %v959_v19  ;;  %v1048_v56 = vld [vmem:[%s1415_s3 + $0xd8] sm:$0xf0]  ;;  %v1261_v58 = vld [vmem:[%s1415_s3 + $0x1cc] sm:$0xf]  ;;  %v1175_v62 = vor.u32 %v1263_v54, %v1174_v52  ;;  %v1030_v0 = vld [vmem:[%s1415_s3 + $0xa8] sm:$0xf] }
  0x45   : > { %701 = vmatpush.bf16.msra.mxu1 %v1087_v23  ;;  %715 = vmatpush.bf16.msra.mxu2 %v963_v24  ;;  %v1176_v59 = vld [vmem:[%s1415_s3 + $0x1d8] sm:$0xf0]  ;;  %v1051_v63 = vor.u32 %v1229_v55, %v1048_v56  ;;  %v1227_v1 = vld [vmem:[%s1415_s3 + $0xb4] sm:$0xf0]  ;;  %v1158_v2 = vld [vmem:[%s1415_s3 + $0x1a8] sm:$0xf] }
  0x46   : > { %729 = vmatpush.bf16.msra.mxu3 %v1091_v28  ;;  %v1179_v3 = vor.u32 %v1261_v58, %v1176_v59  ;;  %v1259_v4 = vld [vmem:[%s1415_s3 + $0x1b4] sm:$0xf0]  ;;  %v1225_v5 = vld [vmem:[%s1415_s3 + $0xac] sm:$0xf]  ;;  %v1032_v6 = vld [vmem:[%s1415_s3 + $0xb8] sm:$0xf0]  ;;  %v1031_v9 = vor.u32 %v1227_v1, %v1030_v0 }
  0x47   : > { %v1257_v7 = vld [vmem:[%s1415_s3 + $0x1ac] sm:$0xf]  ;;  %v1160_v8 = vld [vmem:[%s1415_s3 + $0x1b8] sm:$0xf0]  ;;  %v1159_v10 = vor.u32 %v1259_v4, %v1158_v2  ;;  %v1035_v11 = vor.u32 %v1225_v5, %v1032_v6  ;;  %v1014_v12 = vld [vmem:[%s1415_s3 + $0x88] sm:$0xf] }
  0x48   : > { %688 = vmatpush.bf16.msra.mxu0 %v943_v35  ;;  %v1223_v13 = vld [vmem:[%s1415_s3 + $0x94] sm:$0xf0]  ;;  %v1142_v14 = vld [vmem:[%s1415_s3 + $0x188] sm:$0xf]  ;;  %v1163_v15 = vor.u32 %v1257_v7, %v1160_v8  ;;  %v1221_v17 = vld [vmem:[%s1415_s3 + $0x8c] sm:$0xf] }
  0x49   : > { %702 = vmatpush.bf16.msra.mxu1 %v1071_v39  ;;  %716 = vmatpush.bf16.msra.mxu2 %v947_v40  ;;  %v1255_v16 = vld [vmem:[%s1415_s3 + $0x194] sm:$0xf0]  ;;  %v1016_v18 = vld [vmem:[%s1415_s3 + $0x98] sm:$0xf0]  ;;  %v1253_v19 = vld [vmem:[%s1415_s3 + $0x18c] sm:$0xf]  ;;  %v1015_v21 = vor.u32 %v1223_v13, %v1014_v12 }
  0x4a   : > { %730 = vmatpush.bf16.msra.mxu3 %v1075_v44  ;;  %v1144_v20 = vld [vmem:[%s1415_s3 + $0x198] sm:$0xf0]  ;;  %v1143_v22 = vor.u32 %v1255_v16, %v1142_v14  ;;  %v1019_v23 = vor.u32 %v1221_v17, %v1016_v18  ;;  %v998_v24 = vld [vmem:[%s1415_s3 + $0x68] sm:$0xf]  ;;  %v1219_v25 = vld [vmem:[%s1415_s3 + $0x74] sm:$0xf0] }
  0x4b   : > { %689 = vmatmul.bf16.vlgmr.msra.gmra.mxu0 %v1526_v57  ;;  %v1126_v26 = vld [vmem:[%s1415_s3 + $0x168] sm:$0xf]  ;;  %v1147_v27 = vor.u32 %v1253_v19, %v1144_v20  ;;  %v1251_v28 = vld [vmem:[%s1415_s3 + $0x174] sm:$0xf0]  ;;  %v1217_v29 = vld [vmem:[%s1415_s3 + $0x6c] sm:$0xf]  ;;  %v999_v33 = vor.u32 %v1219_v25, %v998_v24 }
  0x4c   : > { %737 = vmatpush.bf16.msrb.mxu0 %v1063_v45  ;;  %717 = vmatmul.bf16.vlgmr.msra.gmra.mxu2 %v1526_v57  ;;  %v1000_v30 = vld [vmem:[%s1415_s3 + $0x78] sm:$0xf0]  ;;  %v1249_v31 = vld [vmem:[%s1415_s3 + $0x16c] sm:$0xf]  ;;  %v1127_v34 = vor.u32 %v1251_v28, %v1126_v26  ;;  %v982_v36 = vld [vmem:[%s1415_s3 + $0x48] sm:$0xf] }
  0x4d   : > { %751 = vmatpush.bf16.msrb.mxu1 %v1191_v48  ;;  %765 = vmatpush.bf16.msrb.mxu2 %v1067_v49  ;;  %v1128_v32 = vld [vmem:[%s1415_s3 + $0x178] sm:$0xf0]  ;;  %v1003_v35 = vor.u32 %v1217_v29, %v1000_v30  ;;  %v1215_v37 = vld [vmem:[%s1415_s3 + $0x54] sm:$0xf0]  ;;  %v1110_v38 = vld [vmem:[%s1415_s3 + $0x148] sm:$0xf] }
  0x4e   : > { %779 = vmatpush.bf16.msrb.mxu3 %v1195_v53  ;;  %703 = vmatmul.bf16.vlgmr.msra.gmra.mxu1 %v1530_v60  ;;  %v1131_v39 = vor.u32 %v1249_v31, %v1128_v32  ;;  %v1247_v40 = vld [vmem:[%s1415_s3 + $0x154] sm:$0xf0]  ;;  %v1213_v41 = vld [vmem:[%s1415_s3 + $0x4c] sm:$0xf]  ;;  %v984_v42 = vld [vmem:[%s1415_s3 + $0x58] sm:$0xf0]  ;;  %v983_v45 = vor.u32 %v1215_v37, %v982_v36 }
  0x4f   : > { %731 = vmatmul.bf16.vlgmr.msra.gmra.mxu3 %v1530_v60  ;;  %v1245_v43 = vld [vmem:[%s1415_s3 + $0x14c] sm:$0xf]  ;;  %v1112_v44 = vld [vmem:[%s1415_s3 + $0x158] sm:$0xf0]  ;;  %v1111_v46 = vor.u32 %v1247_v40, %v1110_v38  ;;  %v987_v47 = vor.u32 %v1213_v41, %v984_v42  ;;  %v966_v48 = vld [vmem:[%s1415_s3 + $0x28] sm:$0xf] }
  0x50   : > { %738 = vmatpush.bf16.msrb.mxu0 %v1047_v61  ;;  %v1211_v49 = vld [vmem:[%s1415_s3 + $0x34] sm:$0xf0]  ;;  %v1094_v50 = vld [vmem:[%s1415_s3 + $0x128] sm:$0xf]  ;;  %v1115_v51 = vor.u32 %v1245_v43, %v1112_v44  ;;  %v1209_v53 = vld [vmem:[%s1415_s3 + $0x2c] sm:$0xf] }
  0x51   : > { %752 = vmatpush.bf16.msrb.mxu1 %v1175_v62  ;;  %766 = vmatpush.bf16.msrb.mxu2 %v1051_v63  ;;  %v1243_v52 = vld [vmem:[%s1415_s3 + $0x134] sm:$0xf0]  ;;  %v968_v54 = vld [vmem:[%s1415_s3 + $0x38] sm:$0xf0]  ;;  %v1241_v55 = vld [vmem:[%s1415_s3 + $0x12c] sm:$0xf]  ;;  %v967_v58 = vor.u32 %v1211_v49, %v966_v48 }
  0x52   : > { %780 = vmatpush.bf16.msrb.mxu3 %v1179_v3  ;;  %v1096_v56 = vld [vmem:[%s1415_s3 + $0x138] sm:$0xf0]  ;;  %v1095_v59 = vor.u32 %v1243_v52, %v1094_v50  ;;  %v971_v61 = vor.u32 %v1209_v53, %v968_v54  ;;  %v950_v62 = vld [vmem:[%s1415_s3 + $0x8] sm:$0xf]  ;;  %v1207_v63 = vld [vmem:[%s1415_s3 + $0x14] sm:$0xf0] }
  0x53   : > { %v1078_v0 = vld [vmem:[%s1415_s3 + $0x108] sm:$0xf]  ;;  %v1099_v1 = vor.u32 %v1241_v55, %v1096_v56  ;;  %v1239_v2 = vld [vmem:[%s1415_s3 + $0x114] sm:$0xf0]  ;;  %v1205_v3 = vld [vmem:[%s1415_s3 + $0xc] sm:$0xf]  ;;  %v951_v7 = vor.u32 %v1207_v63, %v950_v62 }
  0x54   : > { %739 = vmatpush.bf16.msrb.mxu0 %v1031_v9  ;;  %v952_v4 = vld [vmem:[%s1415_s3 + $0x18] sm:$0xf0]  ;;  %v1237_v5 = vld [vmem:[%s1415_s3 + $0x10c] sm:$0xf]  ;;  %v1079_v8 = vor.u32 %v1239_v2, %v1078_v0  ;;  %v277_v12 = vld [vmem:[%s1653_s2] sm:$0xff] }
  0x55   : > { %753 = vmatpush.bf16.msrb.mxu1 %v1159_v10  ;;  %767 = vmatpush.bf16.msrb.mxu2 %v1035_v11  ;;  %v1080_v6 = vld [vmem:[%s1415_s3 + $0x118] sm:$0xf0]  ;;  %v955_v9 = vor.u32 %v1205_v3, %v952_v4  ;;  %v278_v17 = vld [vmem:[%s1653_s2 + $0x8] sm:$0xff]  ;;  %v281_v20 = vld [vmem:[%s1653_s2 + $0x20] sm:$0xff] }
  0x56   : > { %781 = vmatpush.bf16.msrb.mxu3 %v1163_v15  ;;  %v1083_v10 = vor.u32 %v1237_v5, %v1080_v6  ;;  %v282_v25 = vld [vmem:[%s1653_s2 + $0x28] sm:$0xff]  ;;  %v279_v30 = vld [vmem:[%s1653_s2 + $0x10] sm:$0xff] }
  0x58   : > { %740 = vmatpush.bf16.msrb.mxu0 %v1015_v21 }
  0x59   : > { %754 = vmatpush.bf16.msrb.mxu1 %v1143_v22  ;;  %768 = vmatpush.bf16.msrb.mxu2 %v1019_v23 }
  0x5a   : > { %782 = vmatpush.bf16.msrb.mxu3 %v1147_v27 }
  0x5c   : > { %741 = vmatpush.bf16.msrb.mxu0 %v999_v33 }
  0x5d   : > { %755 = vmatpush.bf16.msrb.mxu1 %v1127_v34  ;;  %769 = vmatpush.bf16.msrb.mxu2 %v1003_v35  ;;  %v280_v35 = vld [vmem:[%s1653_s2 + $0x18] sm:$0xff] }
  0x5e   : > { %783 = vmatpush.bf16.msrb.mxu3 %v1131_v39  ;;  %v283_v39 = vld [vmem:[%s1653_s2 + $0x30] sm:$0xff] }
  0x60   : > { %742 = vmatpush.bf16.msrb.mxu0 %v983_v45  ;;  %v284_v45 = vld [vmem:[%s1653_s2 + $0x38] sm:$0xff] }
  0x61   : > { %756 = vmatpush.bf16.msrb.mxu1 %v1111_v46  ;;  %770 = vmatpush.bf16.msrb.mxu2 %v987_v47 }
  0x62   : > { %784 = vmatpush.bf16.msrb.mxu3 %v1115_v51 }
  0x64   : > { %743 = vmatpush.bf16.msrb.mxu0 %v967_v58 }
  0x65   : > { %757 = vmatpush.bf16.msrb.mxu1 %v1095_v59  ;;  %771 = vmatpush.bf16.msrb.mxu2 %v971_v61 }
  0x66   : > { %785 = vmatpush.bf16.msrb.mxu3 %v1099_v1 }
  0x68   : > { %744 = vmatpush.bf16.msrb.mxu0 %v951_v7 }
  0x69   : > { %758 = vmatpush.bf16.msrb.mxu1 %v1079_v8  ;;  %772 = vmatpush.bf16.msrb.mxu2 %v955_v9 }
  0x6a   : > { %786 = vmatpush.bf16.msrb.mxu3 %v1083_v10 }
  0x6b   : > { %745 = vmatmul.bf16.vlgmr.msrb.gmra.mxu0 %v1526_v57 }
  0x6c   : > { %759 = vmatmul.bf16.vlgmr.msrb.gmra.mxu1 %v1530_v60  ;;  %773 = vmatmul.bf16.vlgmr.msrb.gmra.mxu2 %v1526_v57 }
  0x6d   : > { %787 = vmatmul.bf16.vlgmr.msrb.gmra.mxu3 %v1530_v60 }
  0xc8   : > { %v690_v11 = vpop.f32.mrf.mxu0 }
  0xcb   : > { %v704_v13 = vpop.f32.mrf.mxu1 }
  0xcc   : > { %v705_v14 = vadd.f32 %v704_v13, %v690_v11 }
  0xce   : > { %v793_v15 = vadd.f32 %v705_v14, %v277_v12 }
  0xcf   : > { %v718_v16 = vpop.f32.mrf.mxu2 }
  0xd0   : > { %801 = vst [vmem:[%s1653_s2] sm:$0xff] %v793_v15  ;;  %v692_v60 = vpop.f32.mrf.mxu0 }
  0xd2   : > { %v732_v57 = vpop.f32.mrf.mxu3 }
  0xd3   : > { %v733_v18 = vadd.f32 %v732_v57, %v718_v16  ;;  %v706_v21 = vpop.f32.mrf.mxu1 }
  0xd4   : > { %v707_v22 = vadd.f32 %v706_v21, %v692_v60 }
  0xd5   : > { %v794_v19 = vadd.f32 %v733_v18, %v278_v17 }
  0xd6   : > { %v797_v23 = vadd.f32 %v707_v22, %v281_v20 }
  0xd7   : > { %802 = vst [vmem:[%s1653_s2 + $0x8] sm:$0xff] %v794_v19  ;;  %v720_v24 = vpop.f32.mrf.mxu2 }
  0xd8   : > { %805 = vst [vmem:[%s1653_s2 + $0x20] sm:$0xff] %v797_v23 }
  0xda   : > { %v734_v26 = vpop.f32.mrf.mxu3 }
  0xdb   : > { %v735_v27 = vadd.f32 %v734_v26, %v720_v24 }
  0xdd   : > { %v798_v28 = vadd.f32 %v735_v27, %v282_v25 }
  0xdf   : > { %806 = vst [vmem:[%s1653_s2 + $0x28] sm:$0xff] %v798_v28 }
  0xe8   : > { %v746_v29 = vpop.f32.mrf.mxu0 }
  0xe9   : > { %v760_v31 = vpop.f32.mrf.mxu1 }
  0xea   : > { %v761_v32 = vadd.f32 %v760_v31, %v746_v29 }
  0xec   : > { %v795_v33 = vadd.f32 %v761_v32, %v279_v30 }
  0xee   : > { %803 = vst [vmem:[%s1653_s2 + $0x10] sm:$0xff] %v795_v33 }
  0xef   : > { %v774_v34 = vpop.f32.mrf.mxu2 }
  0xf0   : > { %v788_v36 = vpop.f32.mrf.mxu3  ;;  %v748_v37 = vpop.f32.mrf.mxu0 }
  0xf1   : > { %v789_v38 = vadd.f32 %v788_v36, %v774_v34  ;;  %v762_v40 = vpop.f32.mrf.mxu1 }
  0xf2   : > { %v763_v41 = vadd.f32 %v762_v40, %v748_v37 }
  0xf3   : > { %v796_v42 = vadd.f32 %v789_v38, %v280_v35 }
  0xf4   : > { %v799_v43 = vadd.f32 %v763_v41, %v283_v39 }
  0xf5   : > { %804 = vst [vmem:[%s1653_s2 + $0x18] sm:$0xff] %v796_v42 }
  0xf6   : > { %807 = vst [vmem:[%s1653_s2 + $0x30] sm:$0xff] %v799_v43 }
  0xf7   : > { %v776_v44 = vpop.f32.mrf.mxu2 }
  0xf8   : > { %v790_v46 = vpop.f32.mrf.mxu3 }
  0xf9   : > { %v791_v47 = vadd.f32 %v790_v46, %v776_v44 }
  0xfb   : > { %v800_v48 = vadd.f32 %v791_v47, %v284_v45 }
  0xfd   : > { %808 = vst [vmem:[%s1653_s2 + $0x38] sm:$0xff] %v800_v48 }
  0xfe PF: > { %s12_s13 = sadd.s32 1, %s1347_s13   ;;  %s1654_s9 = smov %s1335_s10 }
  0xff   : > { %p9_p11 = scmp.ge.s32.totalorder %s12_s13, 20   ;;  %s1655_s10 = smov %s1400_s17 }
 0x100   : > { %s1656_s11 = smov %s1343_s12  ;;  %s1657_s12 = smov %s1659_s14 }
 0x101   :  { %11 = sbr.rel (!%p9_p11) target bundleno = 3 (0x3), region = 108 }

// kernel: resnet_forward.75
= control target key start
LH: loop header
LB: loop body
LE: loop exit
PB: predicated region body
PF: predicated region fallthrough
CT: control target
= control target key end

     0   :  { %s256_s0 = inlined_call_operand.vmem [shape: f32[8,512], index: 0, kind: input, shape index: {}]   ;;  %s257_s1 = inlined_call_operand.vmem [shape: f32[1,512], index: 1, kind: input, shape index: {}]   ;;  %s258_s2 = inlined_call_operand.vmem [shape: f32[1,512], index: 2, kind: input, shape index: {}]   ;;  %s259_s3 = inlined_call_operand.vmem [shape: f32[8,512], index: 3, kind: input, shape index: {}]   ;;  %s260_s4 = inlined_call_operand.vmem [shape: f32[8,512], index: 4, kind: output, shape index: {}]  }
   0x1   :  { %v17_v0 = vld [vmem:[%s256_s0] sm:$0xff]  ;;  %v18_v5 = vld [vmem:[%s256_s0 + $0x8] sm:$0xff]  ;;  %v19_v8 = vld [vmem:[%s256_s0 + $0x10] sm:$0xff] }
   0x2   :  { %v21_v1 = vld [vmem:[%s257_s1] sm:$0xf]  ;;  %v20_v14 = vld [vmem:[%s256_s0 + $0x18] sm:$0xff]  ;;  %v50_v17 = vld [vmem:[%s259_s3 + $0x8] sm:$0xff] }
   0x3   :  { %v35_v2 = vld [vmem:[%s258_s2] sm:$0xf]  ;;  %v23_v3 = vperm.slane %v21_v1, 0  ;;  %v24_v6 = vperm.slane %v21_v1, 1  ;;  %v25_v9 = vperm.slane %v21_v1, 2  ;;  %v26_v11 = vperm.slane %v21_v1, 3 }
   0x4   :  { %v37_v4 = vperm.slane %v35_v2, 0  ;;  %v38_v7 = vperm.slane %v35_v2, 1  ;;  %v39_v10 = vperm.slane %v35_v2, 2  ;;  %v40_v15 = vperm.slane %v35_v2, 3  ;;  %v49_v16 = vld [vmem:[%s259_s3] sm:$0xff]  ;;  %v51_v22 = vld [vmem:[%s259_s3 + $0x10] sm:$0xff] }
   0x5   :  { %v31_v12 = vmul.f32 %v23_v3, %v17_v0  ;;  %v32_v13 = vmul.f32 %v24_v6, %v18_v5  ;;  %v33_v18 = vmul.f32 %v25_v9, %v19_v8  ;;  %v34_v19 = vmul.f32 %v26_v11, %v20_v14  ;;  %v52_v27 = vld [vmem:[%s259_s3 + $0x18] sm:$0xff] }
   0x7   :  { %v45_v20 = vadd.f32 %v37_v4, %v31_v12  ;;  %v46_v21 = vadd.f32 %v38_v7, %v32_v13  ;;  %v47_v23 = vadd.f32 %v39_v10, %v33_v18  ;;  %v48_v24 = vadd.f32 %v40_v15, %v34_v19 }
   0x9   :  { %v209_v25 = vadd.f32 %v49_v16, %v45_v20  ;;  %v211_v26 = vadd.f32 %v50_v17, %v46_v21  ;;  %v216_v28 = vadd.f32 %v51_v22, %v47_v23  ;;  %v224_v35 = vadd.f32 %v52_v27, %v48_v24 }
   0xb   :  { %v57_v29 = vmul.f32 0.25281987, %v209_v25  ;;  %v97_v30 = vand.u32 2147483647, %v209_v25  ;;  %v58_v31 = vmul.f32 0.25281987, %v211_v26 }
   0xc   :  { %v98_v32 = vand.u32 2147483647, %v211_v26  ;;  %v59_v33 = vmul.f32 0.25281987, %v216_v28  ;;  %v99_v34 = vand.u32 2147483647, %v216_v28 }
   0xd   :  { %v61_v36 = vadd.f32 1.5247445, %v57_v29  ;;  %v101_v37 = vmul.f32 0.34885982, %v97_v30  ;;  %v62_v38 = vadd.f32 1.5247445, %v58_v31 }
   0xe   :  { %v102_v39 = vmul.f32 0.34885982, %v98_v32  ;;  %v63_v40 = vadd.f32 1.5247445, %v59_v33  ;;  %v103_v41 = vmul.f32 0.34885982, %v99_v34 }
   0xf   :  { %v65_v42 = vmul.f32 %v61_v36, %v209_v25  ;;  %v105_v43 = vadd.f32 0.91111034, %v101_v37  ;;  %v66_v44 = vmul.f32 %v62_v38, %v211_v26  ;;  %v60_v45 = vmul.f32 0.25281987, %v224_v35 }
  0x10   :  { %v106_v46 = vadd.f32 0.91111034, %v102_v39  ;;  %v67_v47 = vmul.f32 %v63_v40, %v216_v28  ;;  %v107_v48 = vadd.f32 0.91111034, %v103_v41  ;;  %v100_v49 = vand.u32 2147483647, %v224_v35 }
  0x11   :  { %v69_v50 = vadd.f32 3.0660808, %v65_v42  ;;  %v109_v51 = vmul.f32 %v105_v43, %v97_v30  ;;  %v70_v52 = vadd.f32 3.0660808, %v66_v44  ;;  %v64_v53 = vadd.f32 1.5247445, %v60_v45 }
  0x12   :  { %v110_v54 = vmul.f32 %v106_v46, %v98_v32  ;;  %v71_v55 = vadd.f32 3.0660808, %v67_v47  ;;  %v111_v56 = vmul.f32 %v107_v48, %v99_v34  ;;  %v104_v57 = vmul.f32 0.34885982, %v100_v49 }
  0x13   :  { %v73_v58 = vmul.f32 %v69_v50, %v209_v25  ;;  %v113_v59 = vadd.f32 4.408118, %v109_v51  ;;  %v74_v60 = vmul.f32 %v70_v52, %v211_v26  ;;  %v68_v61 = vmul.f32 %v64_v53, %v224_v35 }
  0x14   :  { %v114_v62 = vadd.f32 4.408118, %v110_v54  ;;  %v75_v63 = vmul.f32 %v71_v55, %v216_v28  ;;  %v115_v0 = vadd.f32 4.408118, %v111_v56  ;;  %v108_v1 = vadd.f32 0.91111034, %v104_v57 }
  0x15   :  { %v77_v2 = vadd.f32 2.3753915, %v73_v58  ;;  %v117_v3 = vmul.f32 %v113_v59, %v97_v30  ;;  %v78_v4 = vadd.f32 2.3753915, %v74_v60  ;;  %v72_v5 = vadd.f32 3.0660808, %v68_v61 }
  0x16   :  { %v118_v6 = vmul.f32 %v114_v62, %v98_v32  ;;  %v79_v7 = vadd.f32 2.3753915, %v75_v63  ;;  %v119_v8 = vmul.f32 %v115_v0, %v99_v34  ;;  %v112_v9 = vmul.f32 %v108_v1, %v100_v49 }
  0x17   :  { %v81_v10 = vmul.f32 %v77_v2, %v209_v25  ;;  %v121_v11 = vadd.f32 1.1916082, %v117_v3  ;;  %v82_v12 = vmul.f32 %v78_v4, %v211_v26  ;;  %v76_v13 = vmul.f32 %v72_v5, %v224_v35 }
  0x18   :  { %v122_v14 = vadd.f32 1.1916082, %v118_v6  ;;  %v83_v15 = vmul.f32 %v79_v7, %v216_v28  ;;  %v123_v16 = vadd.f32 1.1916082, %v119_v8  ;;  %v116_v17 = vadd.f32 4.408118, %v112_v9 }
  0x19   :  { %v85_v18 = vadd.f32 0.61690164, %v81_v10  ;;  %v125_v19 = vmul.f32 %v121_v11, %v97_v30  ;;  %v86_v20 = vadd.f32 0.61690164, %v82_v12  ;;  %v80_v21 = vadd.f32 2.3753915, %v76_v13 }
  0x1a   :  { %v126_v22 = vmul.f32 %v122_v14, %v98_v32  ;;  %v87_v23 = vadd.f32 0.61690164, %v83_v15  ;;  %v127_v24 = vmul.f32 %v123_v16, %v99_v34  ;;  %v120_v27 = vmul.f32 %v116_v17, %v100_v49 }
  0x1b   :  { %v129_v29 = vadd.f32 1.0, %v125_v19  ;;  %v84_v31 = vmul.f32 %v80_v21, %v224_v35  ;;  %v89_v33 = vmul.f32 %v85_v18, %v209_v25  ;;  %v90_v39 = vmul.f32 %v86_v20, %v211_v26 }
  0x1c   :  { %v130_v36 = vadd.f32 1.0, %v126_v22  ;;  %v131_v37 = vadd.f32 1.0, %v127_v24  ;;  %v124_v38 = vadd.f32 1.1916082, %v120_v27  ;;  %v91_v30 = vmul.f32 %v87_v23, %v216_v28 }
  0x1d   :  { %149 = vrcp.f32 %v129_v29  ;;  %v88_v40 = vadd.f32 0.61690164, %v84_v31  ;;  %v93_v32 = vadd.f32 0.02996348, %v89_v33  ;;  %v94_v42 = vadd.f32 0.02996348, %v90_v39 }
  0x1e   :  { %151 = vrcp.f32 %v130_v36  ;;  %v128_v41 = vmul.f32 %v124_v38, %v100_v49  ;;  %v95_v44 = vadd.f32 0.02996348, %v91_v30 }
  0x1f   :  { %153 = vrcp.f32 %v131_v37  ;;  %v92_v43 = vmul.f32 %v88_v40, %v224_v35 }
  0x20   :  { %v132_v34 = vadd.f32 1.0, %v128_v41 }
  0x21   :  { %v96_v50 = vadd.f32 0.02996348, %v92_v43 }
  0x22   :  { %155 = vrcp.f32 %v132_v34 }
  0x23   :  { %v150_v25 = vpop.eup %149 }
  0x24   :  { %v152_v45 = vpop.eup %151  ;;  %v137_v46 = vmul.f32 %v150_v25, %v93_v32 }
  0x25   :  { %v154_v47 = vpop.eup %153  ;;  %v138_v48 = vmul.f32 %v152_v45, %v94_v42 }
  0x26   :  { %141 = vst [vmem:[%s260_s4] sm:$0xff] %v137_v46  ;;  %v139_v26 = vmul.f32 %v154_v47, %v95_v44 }
  0x27   :  { %142 = vst [vmem:[%s260_s4 + $0x8] sm:$0xff] %v138_v48 }
  0x28   :  { %v156_v28 = vpop.eup %155  ;;  %143 = vst [vmem:[%s260_s4 + $0x10] sm:$0xff] %v139_v26 }
  0x29   :  { %v140_v35 = vmul.f32 %v156_v28, %v96_v50 }
  0x2b   :  { %144 = vst [vmem:[%s260_s4 + $0x18] sm:$0xff] %v140_v35 }

</bundles_post_ra>
